<compile_context>
chip_gen: v7x
topology: tpu7x:2x2x1
jax: 0.10.0
libtpu: 0.0.40
codegen_flags: <defaults>
</compile_context>

<pallas_src>
import functools

import jax
import jax.numpy as jnp
from jax.experimental import pallas as pl
from jax.experimental.pallas import tpu as pltpu

_K_CHUNK = 512            # contraction (vocab) tile for the one-hot path
_ONEHOT_MAX_USERS = 2048  # above this, the DMA-gather path wins
_SMALL_BATCH = 128        # below this, plain jnp.take beats a kernel launch


def _round_up(x: int, m: int) -> int:
    return ((x + m - 1) // m) * m


def _vmem_capacity_bytes() -> int:
    """Physical VMEM for this generation (fallback sized for v7x's 64 MiB)."""
    try:
        return int(pltpu.get_tpu_info().vmem_capacity_bytes)
    except Exception:  # off-TPU tracing / API drift: stay conservative
        return 64 << 20


def _vmem_budget_bytes(cap: int) -> int:
    """Budget for our tiles: ~3/4 of VMEM minus headroom for Mosaic scratch."""
    return max((cap * 3) // 4 - (8 << 20), 24 << 20)


def _working_set_bytes(block_rows: int, num_users_pad: int, dim_pad: int,
                       kt: int, itemsize: int) -> int:
    """Rough per-TensorCore VMEM working set for the one-hot path."""
    table = num_users_pad * dim_pad * itemsize       # resident, single-buffered
    out_t = 2 * block_rows * dim_pad * itemsize      # double-buffered out tile
    idx_t = 2 * block_rows * 128 * 4                 # (B,1) tile lane-pads to 128
    temps = 3 * block_rows * kt * 4                  # iota + compare + one-hot
    acc = block_rows * dim_pad * 4                   # f32 accumulator scratch
    return table + out_t + idx_t + temps + acc


def _pick_block_rows(n: int, num_users_pad: int, dim_pad: int, dtype,
                     budget: int) -> int:
    """Largest 128-aligned row tile that fits the budget (capped by batch)."""
    itemsize = jnp.dtype(dtype).itemsize
    pref = {4: 256, 2: 512}.get(itemsize, 256)       # dtype-dependent MXU tile
    n_ceil = _round_up(n, 128)
    block = min(pref, n_ceil)
    # v7x: make sure the "parallel" grid axis has >= 2 steps when there is
    # enough work to split across both TensorCores.
    if n_ceil >= 256 and _round_up(n_ceil, block) // block < 2:
        block = max(128, _round_up(n_ceil // 2, 128))
    kt = min(_K_CHUNK, num_users_pad)
    while block > 128 and _working_set_bytes(
            block, num_users_pad, dim_pad, kt, itemsize) > budget:
        block = max(128, _round_up(block // 2, 128))
    return block


# ---------------------------------------------------------------------------
# Path 1: VMEM-resident one-hot matmul (small vocab)
# ---------------------------------------------------------------------------
def _embedding_onehot_kernel(idx_ref, table_ref, out_ref, acc_ref, *,
                             kt, precision):
    """out[b, :] = table[idx[b], :] via K-tiled one-hot matmul on the MXU.

    idx_ref   : VMEM (block_rows, 1) int32
    table_ref : VMEM (num_users_pad, dim_pad), resident, single-buffered
    out_ref   : VMEM (block_rows, dim_pad)
    acc_ref   : VMEM (block_rows, dim_pad) f32 scratch accumulator
    """
    block_rows = out_ref.shape[0]
    num_chunks = table_ref.shape[0] // kt

    idx = idx_ref[...]                                           # (B, 1)
    # Hoisted chunk-local column iota, reused across every K chunk.
    col = jax.lax.broadcasted_iota(jnp.int32, (block_rows, kt), 1)

    def chunk_dot(k0):
        onehot = (col == (idx - k0)).astype(table_ref.dtype)     # (B, kt)
        chunk = table_ref[pl.ds(k0, kt), :]                      # (kt, dim)
        return jnp.dot(onehot, chunk,
                       preferred_element_type=jnp.float32,
                       precision=precision)

    if num_chunks == 1:
        out_ref[...] = chunk_dot(0).astype(out_ref.dtype)
    else:
        acc_ref[...] = chunk_dot(0)

        def body(k, carry):
            k0 = pl.multiple_of(k * kt, kt)
            acc_ref[...] += chunk_dot(k0)
            return carry

        jax.lax.fori_loop(1, num_chunks, body, None, unroll=True)
        out_ref[...] = acc_ref[...].astype(out_ref.dtype)


def _lookup_onehot(table, idx, budget, cap):
    num_users, dim = table.shape
    dtype = table.dtype
    itemsize = jnp.dtype(dtype).itemsize
    n = idx.shape[0]

    dim_pad = _round_up(dim, 128)                     # lane-dense output stores
    num_users_pad = (_round_up(num_users, 128) if num_users <= _K_CHUNK
                     else _round_up(num_users, _K_CHUNK))
    kt = min(_K_CHUNK, num_users_pad)

    block_rows = _pick_block_rows(n, num_users_pad, dim_pad, dtype, budget)
    n_pad = _round_up(n, block_rows)

    tbl = table
    if (num_users_pad, dim_pad) != (num_users, dim):
        tbl = jnp.pad(table, ((0, num_users_pad - num_users),
                              (0, dim_pad - dim)))
    idx2d = jnp.pad(idx, (0, n_pad - n)).reshape(n_pad, 1)

    # Exact lookup for f32 tables (one-hot selection must not bf16-round rows).
    precision = jax.lax.Precision.HIGHEST if dtype == jnp.float32 else None
    kernel = functools.partial(_embedding_onehot_kernel, kt=kt,
                               precision=precision)

    needed = _working_set_bytes(block_rows, num_users_pad, dim_pad, kt, itemsize)
    vmem_limit = min(max(needed + (8 << 20), 32 << 20), cap - (4 << 20))

    cost = pl.CostEstimate(
        flops=2 * n_pad * num_users_pad * dim_pad,
        transcendentals=0,
        bytes_accessed=(num_users_pad * dim_pad * itemsize
                        + n_pad * 4
                        + n_pad * dim_pad * itemsize))

    out = pl.pallas_call(
        kernel,
        out_shape=jax.ShapeDtypeStruct((n_pad, dim_pad), dtype),
        grid=(n_pad // block_rows,),
        in_specs=[
            # Per-step index tile.
            pl.BlockSpec((block_rows, 1), lambda i: (i, 0)),
            # Whole table, constant index_map: fetched once, single-buffered.
            pl.BlockSpec((num_users_pad, dim_pad), lambda i: (0, 0),
                         pipeline_mode=pl.Buffered(1)),
        ],
        out_specs=pl.BlockSpec((block_rows, dim_pad), lambda i: (i, 0)),
        scratch_shapes=[pltpu.VMEM((block_rows, dim_pad), jnp.float32)],
        compiler_params=pltpu.CompilerParams(
            dimension_semantics=("parallel",),   # both TCs on v7x
            vmem_limit_bytes=vmem_limit),
        cost_estimate=cost,
    )(idx2d, tbl)
    return out, n_pad, dim_pad


# ---------------------------------------------------------------------------
# Path 2: HBM-resident DMA gather (large vocab)
# ---------------------------------------------------------------------------
def _embedding_gather_kernel(idx_smem, table_hbm, out_ref, row_buf, sem):
    """Gather block_rows table rows from HBM into one lane-dense output tile.

    idx_smem  : SMEM (n_pad,) int32     (scalar-prefetched ids)
    table_hbm : HBM  (num_users, dim_pad), memory_space=pl.ANY
    out_ref   : VMEM (block_rows, dim_pad)
    row_buf   : VMEM (block_rows, dim_pad) staging buffer
    sem       : DMA semaphore
    """
    block_rows = out_ref.shape[0]
    base = pl.program_id(0) * block_rows

    # Start one row DMA per output row (all in flight together).
    @pl.loop(0, block_rows)
    def _start(r):
        row = idx_smem[base + r]
        pltpu.make_async_copy(table_hbm.at[row], row_buf.at[r], sem).start()

    # Wait for all of them (same-sized descriptor per issued copy).
    @pl.loop(0, block_rows)
    def _wait(r):
        pltpu.make_async_copy(table_hbm.at[0], row_buf.at[0], sem).wait()

    out_ref[...] = row_buf[...]


def _lookup_gather(table, idx, cap):
    num_users, dim = table.shape
    dtype = table.dtype
    itemsize = jnp.dtype(dtype).itemsize
    n = idx.shape[0]

    dim_pad = _round_up(dim, 128)
    block_rows = 256 if n >= 512 else 128
    n_pad = _round_up(n, block_rows)

    tbl = table if dim_pad == dim else jnp.pad(table, ((0, 0), (0, dim_pad - dim)))
    idx_pad = jnp.pad(idx, (0, n_pad - n))

    needed = 3 * block_rows * dim_pad * itemsize
    vmem_limit = min(max(needed + (8 << 20), 32 << 20), cap - (4 << 20))

    cost = pl.CostEstimate(
        flops=0, transcendentals=0,
        bytes_accessed=n_pad * 4 + 2 * n_pad * dim_pad * itemsize)

    out = pl.pallas_call(
        _embedding_gather_kernel,
        out_shape=jax.ShapeDtypeStruct((n_pad, dim_pad), dtype),
        grid_spec=pltpu.PrefetchScalarGridSpec(
            num_scalar_prefetch=1,                       # ids -> SMEM
            grid=(n_pad // block_rows,),
            in_specs=[pl.BlockSpec(memory_space=pl.ANY)],  # table stays in HBM
            out_specs=pl.BlockSpec((block_rows, dim_pad), lambda g, ids: (g, 0)),
            scratch_shapes=[pltpu.VMEM((block_rows, dim_pad), dtype),
                            pltpu.SemaphoreType.DMA]),
        compiler_params=pltpu.CompilerParams(
            dimension_semantics=("arbitrary",),          # DMA-bound either way
            vmem_limit_bytes=vmem_limit),
        cost_estimate=cost,
    )(idx_pad, tbl)
    return out, n_pad, dim_pad


# ---------------------------------------------------------------------------
# Public wrapper == UserEmbeddingLayer.forward
# ---------------------------------------------------------------------------
def user_embedding_lookup(table, user_inputs):
    """Pallas equivalent of UserEmbeddingLayer.forward(user_inputs)."""
    num_users, dim = table.shape
    orig_shape = user_inputs.shape

    idx = user_inputs.reshape(-1).astype(jnp.int32)
    n = int(idx.shape[0])

    # Small-batch fast path: padding up to a full MXU tile and launching a
    # kernel for a handful of rows is pure overhead.
    if n < _SMALL_BATCH:
        return jnp.take(table, idx, axis=0).reshape(orig_shape + (dim,))

    cap = _vmem_capacity_bytes()
    budget = _vmem_budget_bytes(cap)
    itemsize = jnp.dtype(table.dtype).itemsize
    dim_pad = _round_up(dim, 128)

    use_onehot = (jnp.issubdtype(table.dtype, jnp.floating)
                  and num_users <= _ONEHOT_MAX_USERS)
    if use_onehot:
        num_users_pad = (_round_up(num_users, 128) if num_users <= _K_CHUNK
                         else _round_up(num_users, _K_CHUNK))
        kt = min(_K_CHUNK, num_users_pad)
        if _working_set_bytes(128, num_users_pad, dim_pad, kt,
                              itemsize) > budget:
            use_onehot = False           # table too big to keep VMEM-resident

    if use_onehot:
        out, n_pad, dim_p = _lookup_onehot(table, idx, budget, cap)
    else:
        out, n_pad, dim_p = _lookup_gather(table, idx, cap)

    if n_pad != n:
        out = out[:n]
    if dim_p != dim:
        out = out[:, :dim]
    return out.reshape(orig_shape + (dim,))


if __name__ == "__main__":
    key = jax.random.PRNGKey(0)
    w1_key, i1_key, w2_key, i2_key = jax.random.split(key, 4)
    embedding_dim = 128                                   # lane-dense output

    # --- Path 1: small vocab -> VMEM-resident, K-tiled one-hot MXU kernel ---
    num_users = 640                                       # 2 K-chunks of 512
    table = jax.random.normal(w1_key, (num_users, embedding_dim), jnp.float32)
    user_inputs = jax.random.randint(i1_key, (2, 128), 0, num_users, jnp.int32)
    out = jax.block_until_ready(user_embedding_lookup(table, user_inputs))
    ref = jnp.take(table, user_inputs, axis=0)
    assert out.shape == user_inputs.shape + (embedding_dim,)
    assert jnp.allclose(out, ref), "one-hot path mismatch vs reference gather"

    # --- Path 2: large vocab -> HBM-resident DMA-gather kernel ---
    num_users_big = 4096
    table_big = jax.random.normal(w2_key, (num_users_big, embedding_dim),
                                  jnp.float32)
    user_inputs_big = jax.random.randint(i2_key, (2, 128), 0, num_users_big,
                                         jnp.int32)
    out_big = jax.block_until_ready(
        user_embedding_lookup(table_big, user_inputs_big))
    ref_big = jnp.take(table_big, user_inputs_big, axis=0)
    assert out_big.shape == user_inputs_big.shape + (embedding_dim,)
    assert jnp.allclose(out_big, ref_big), "gather path mismatch vs reference"

    print("KERNEL_OK")
</pallas_src>

<mosaic_0001>
module attributes {stable_mosaic.version = 11 : i64} {
  func.func @_embedding_onehot_kernel(%arg0: i32, %arg1: memref<128x1xi32, #tpu.memory_space<vmem>>, %arg2: memref<1024x128xf32, #tpu.memory_space<vmem>>, %arg3: memref<128x128xf32, #tpu.memory_space<vmem>>, %arg4: memref<128x128xf32, #tpu.memory_space<vmem>>) attributes {dimension_semantics = [#tpu.dimension_semantics<parallel>], iteration_bounds = array<i64: 2>, scalar_prefetch = 0 : i64, scratch_operands = 1 : i64, tpu.core_type = #tpu.core_type<tc>, window_params = [{transform_indices = @transform_0, window_bounds = array<i64: 128, 1>}, {pipeline_mode = #tpu.pipeline_mode<synchronous>, transform_indices = @transform_1, window_bounds = array<i64: 1024, 128>}, {transform_indices = @transform_2, window_bounds = array<i64: 128, 128>}]} {
    %c0 = arith.constant 0 : index
    %c0_0 = arith.constant 0 : index
    %0 = vector.load %arg1[%c0, %c0_0] : memref<128x1xi32, #tpu.memory_space<vmem>>, vector<128x1xi32>
    %1 = tpu.iota {dimensions = array<i32: 1>} : vector<128x512xi32>
    %c0_i32 = arith.constant 0 : i32
    %2 = vector.broadcast %c0_i32 : i32 to vector<128x1xi32>
    %3 = arith.subi %0, %2 : vector<128x1xi32>
    %4 = vector.broadcast %3 : vector<128x1xi32> to vector<128x512xi32>
    %5 = arith.cmpi eq, %1, %4 : vector<128x512xi32>
    %6 = arith.extui %5 : vector<128x512xi1> to vector<128x512xi32>
    %7 = arith.sitofp %6 : vector<128x512xi32> to vector<128x512xf32>
    %c0_1 = arith.constant 0 : index
    %c0_2 = arith.constant 0 : index
    %8 = vector.load %arg2[%c0_1, %c0_2] : memref<1024x128xf32, #tpu.memory_space<vmem>>, vector<512x128xf32>
    %cst = arith.constant dense<0.000000e+00> : vector<128x128xf32>
    %9 = tpu.matmul %7, %8, %cst {dimension_numbers = #tpu.dot_dimension_numbers<[1], [0], [0], [1], [0, 0, 1, 1], [], []>, precision = #tpu.contract_precision<fp32>} : vector<128x512xf32>, vector<512x128xf32>, vector<128x128xf32> -> vector<128x128xf32>
    %c0_3 = arith.constant 0 : index
    %c0_4 = arith.constant 0 : index
    %10 = vector.load %arg4[%c0_3, %c0_4] : memref<128x128xf32, #tpu.memory_space<vmem>>, vector<128x128xf32>
    tpu.vector_store %arg4[%c0_3, %c0_4], %9 {strides = array<i32>} : memref<128x128xf32, #tpu.memory_space<vmem>>, vector<128x128xf32>,
    %c1_i32 = arith.constant 1 : i32
    %c512_i32 = arith.constant 512 : i32
    %11 = arith.muli %c1_i32, %c512_i32 : i32
    %12 = tpu.assume_multiple %11, 512 : i32
    %c0_5 = arith.constant 0 : index
    %c0_6 = arith.constant 0 : index
    %13 = vector.load %arg4[%c0_5, %c0_6] : memref<128x128xf32, #tpu.memory_space<vmem>>, vector<128x128xf32>
    %14 = vector.broadcast %12 : i32 to vector<128x1xi32>
    %15 = arith.subi %0, %14 : vector<128x1xi32>
    %16 = vector.broadcast %15 : vector<128x1xi32> to vector<128x512xi32>
    %17 = arith.cmpi eq, %1, %16 : vector<128x512xi32>
    %18 = arith.extui %17 : vector<128x512xi1> to vector<128x512xi32>
    %19 = arith.sitofp %18 : vector<128x512xi32> to vector<128x512xf32>
    %20 = arith.index_cast %12 : i32 to index
    %c0_7 = arith.constant 0 : index
    %21 = vector.load %arg2[%20, %c0_7] : memref<1024x128xf32, #tpu.memory_space<vmem>>, vector<512x128xf32>
    %cst_8 = arith.constant dense<0.000000e+00> : vector<128x128xf32>
    %22 = tpu.matmul %19, %21, %cst_8 {dimension_numbers = #tpu.dot_dimension_numbers<[1], [0], [0], [1], [0, 0, 1, 1], [], []>, precision = #tpu.contract_precision<fp32>} : vector<128x512xf32>, vector<512x128xf32>, vector<128x128xf32> -> vector<128x128xf32>
    %23 = arith.addf %13, %22 : vector<128x128xf32>
    %c0_9 = arith.constant 0 : index
    %c0_10 = arith.constant 0 : index
    %24 = vector.load %arg4[%c0_9, %c0_10] : memref<128x128xf32, #tpu.memory_space<vmem>>, vector<128x128xf32>
    tpu.vector_store %arg4[%c0_9, %c0_10], %23 {strides = array<i32>} : memref<128x128xf32, #tpu.memory_space<vmem>>, vector<128x128xf32>,
    %c1_i32_11 = arith.constant 1 : i32
    %c0_12 = arith.constant 0 : index
    %c0_13 = arith.constant 0 : index
    %25 = vector.load %arg4[%c0_12, %c0_13] : memref<128x128xf32, #tpu.memory_space<vmem>>, vector<128x128xf32>
    %c0_14 = arith.constant 0 : index
    %c0_15 = arith.constant 0 : index
    %26 = vector.load %arg3[%c0_14, %c0_15] : memref<128x128xf32, #tpu.memory_space<vmem>>, vector<128x128xf32>
    tpu.vector_store %arg3[%c0_14, %c0_15], %25 {strides = array<i32>} : memref<128x128xf32, #tpu.memory_space<vmem>>, vector<128x128xf32>,
    return
  }
  func.func @transform_0(%arg0: i32) -> (i32, i32) {
    %c0_i32 = arith.constant 0 : i32
    %c0_i32_0 = arith.constant 0 : i32
    return %arg0, %c0_i32 : i32, i32
  }
  func.func @transform_1(%arg0: i32) -> (i32, i32) {
    %c0_i32 = arith.constant 0 : i32
    %c0_i32_0 = arith.constant 0 : i32
    %c0_i32_1 = arith.constant 0 : i32
    return %c0_i32, %c0_i32_0 : i32, i32
  }
  func.func @transform_2(%arg0: i32) -> (i32, i32) {
    %c0_i32 = arith.constant 0 : i32
    %c0_i32_0 = arith.constant 0 : i32
    return %arg0, %c0_i32 : i32, i32
  }
}

</mosaic_0001>

<bundles_post_ra>
// kernel: tpu_custom_call.1
= control target key start
LH: loop header
LB: loop body
LE: loop exit
PB: predicated region body
PF: predicated region fallthrough
CT: control target
= control target key end

     0   :  { %7 = vsyncpa [#allocation4], 0  ;;  %s18407_s0 = inlined_call_operand.vmem [shape: s32[256,1], index: 0, kind: input, shape index: {}]   ;;  %s18408_s1 = inlined_call_operand.hbm [shape: f32[1024,128], index: 1, kind: input, shape index: {}]   ;;  %s18409_s2 = inlined_call_operand.hbm [shape: f32[256,128], index: 2, kind: output, shape index: {}]  }
   0x1   :  { %8 = vsyncpa [#allocation5], 0 }
   0x2   :  { %10 = vsyncpa [#allocation5 + $0x1], 0  ;;  %s11209_s9 = smov 0   ;;  %s11211_s10 = smov 0  }
   0x3   :  { %s11213_s11 = smov 0   ;;  %s11215_s12 = smov 0  }
   0x4 LB: > { %s11230_s13 = sadd.s32 4294967295, %s11183_s12   ;;  %s7799_s14 = sadd.s32 4294967294, %s11183_s12   ;;  %s11183_s12 = sphi %s11215_s12, %s20697_s12   ;;  %s11179_s11 = sphi %s11213_s11, %s20696_s11   ;;  %s11175_s10 = sphi %s11211_s10, %s20695_s10   ;;  %s11171_s9 = sphi %s11209_s9, %s20694_s9  }
   0x5   : > { %s11234_s15 = sadd.s32 1, %s11183_s12   ;;  %s70_s16 = sadd.s32 1, %s11179_s11 }
   0x6   : > { %s67_s17 = ssub.s32 %s11183_s12, %s11234_s15  ;;  %p80_p0 = scmp.ne.s32.totalorder %s11179_s11, %s11175_s10 }
   0x7   : > { %p68_p1 = scmp.eq.s32.totalorder %s67_s17, 0  ;;  %p81_p2 = scmp.eq.s32.totalorder %s11230_s13, 1 }
   0x8   : > { %p86_p3 = scmp.ne.s32.totalorder %s11175_s10, %s11171_s9  ;;  %p87_p4 = scmp.eq.s32.totalorder %s7799_s14, 1 }
   0x9   : > { %s11245_s18 = scalar_select %p68_p1, %s11179_s11, %s70_s16  }
   0xa   : > { %p11247_p5 = por %p81_p2, %p80_p0  ;;  %p11251_p6 = por %p87_p4, %p86_p3 }
   0xb   : > { %p7800_p7 = scmp.ge.s32.totalorder %s11183_s12, 1  ;;  %p94_p8 = scmp.lt.s32.totalorder %s11183_s12, 3 }
   0xc   : > { %s19148_s19 = scalar_select %p11247_p5, 1, 0 }
   0xd   : > { %s19149_s20 = scalar_select %p11251_p6, 1, 0 }
   0xe   : > { %p18410_p9 = scmp.eq.s32.totalorder %s11230_s13, 0  ;;  %p11258_p10 = pnand %p7800_p7, %p94_p8 }
   0xf   : > { %s11185_s22 = smov [#allocation3]   ;;  %s11089_s27 = scalar_lea.hbm %s18408_s1, 16384 }
  0x10   : > { %s19150_s21 = scalar_select %p11258_p10, 1, 0 }
  0x11   : > { %s106_s23 = sshll.u32 %s11185_s22, 4  ;;  %p11036_p11 = pneg %p11258_p10  ;;  %s107_s23 = int_to_ptr.vmem [resolvable:$true] %s106_s23 }
  0x12   : > { %p11090_p13 = scmp.ne.s32.totalorder %s18408_s1, %s11089_s27  ;;  %p11096_p3 = scmp.lt.u32.totalorder %s11089_s27, %s18408_s1 }
  0x13   : > { %p11266_p12 = pnand %p18410_p9, %p11036_p11 }
  0x15   : > { %p11091_p0 = pneg %p11266_p12 }
  0x17   : > { %p11092_p1 = pnand %p11091_p0, %p11090_p13 }
  0x19   : > { %p11093_p2 = pneg %p11092_p1 }
  0x1b   : > { %p11098_p4 = pnand %p11096_p3, %p11093_p2 }
  0x1d   : > { %11101 = shalt.err (!%p11098_p4)
}
  0x1e   : > { %s11102_s4 = scalar_lea.vmem %s107_s23, 16384  ;;  %p11110_p9 = scmp.lt.s32.totalorder %s107_s23, %s107_s23 }
  0x1f   : > { %p11103_p7 = scmp.ne.s32.totalorder %s107_s23, %s11102_s4  ;;  %p11111_p6 = scmp.lt.s32.totalorder %s11102_s4, %s11102_s4 }
  0x21   : > { %p11105_p8 = pnand %p11103_p7, %p11091_p0  ;;  %p11112_p5 = por %p11111_p6, %p11110_p9 }
  0x23   : > { %p11106_p11 = pneg %p11105_p8 }
  0x25   : > { %p11113_p10 = pnand %p11112_p5, %p11106_p11 }
  0x27   : > { %11116 = shalt.err (!%p11113_p10)
}
  0x28   : > { %s11186_s5 = smov 128   ;;  %s11187_s6 = smov 8  }
  0x29   : > { %11039 = dma.hbm_to_vmem [thread:$0]  (!%p11266_p12), %s18408_s1, 16384, %s107_s23, [#allocation4], %s11186_s5, %s11186_s5, %s11187_s6  }
  0x2a   : > { %p19152_p13 = scmp.ne.s32.totalorder %s19150_s21, 0 }
  0x2c   : > { %131 = sbr.rel (%p19152_p13) target bundleno = 1237 (0x4d5), region = 28 }
  0x33   : > { %p19153_p1 = scmp.eq.s32.totalorder %s11230_s13, 0 }
  0x35   : > { %11162 = dma.done.wait (%p19153_p1), [#allocation4], 16384   ;;  %p19154_p0 = pmov %p19153_p1 }
  0x36   : > { %s7806_s14 = sshll.u32 %s11230_s13, 4  ;;  %v11188_v0 = vmov 0   ;;  %v437_v26 = vld [vmem:[#allocation3 + $0x80] sm:$0xff]  ;;  %v438_v27 = vld [vmem:[#allocation3 + $0x88] sm:$0xff]  ;;  %v11356_v33 = vld [vmem:[#allocation3 + $0x90] sm:$0xff]  ;;  %s150_s21 = sand.u32 1, %s11175_s10  }
  0x37   : > { %11164 = vsyncadd (%p19154_p0), [#allocation4], 4294950912  ;;  %11088 = vset.pattern.permute.xlu1 %v11188_v0  ;;  %11087 = vset.pattern.permute.xlu0 %v11188_v0  ;;  %p154_p5 = scmp.lt.s32.totalorder %s7806_s14, 31  ;;  %v534_v29 = vand.u32 4294901760, %v437_v26  ;;  %v537_v30 = vand.u32 4294901760, %v438_v27  ;;  %v11352_v31 = vld [vmem:[#allocation3] sm:$0xff] }
  0x38   : > { %v11354_v32 = vld [vmem:[#allocation3 + $0x8] sm:$0xff]  ;;  %v486_v34 = vand.u32 4294901760, %v11352_v31  ;;  %v11360_v36 = vld [vmem:[#allocation3 + $0x98] sm:$0xff]  ;;  %v540_v37 = vand.u32 4294901760, %v11356_v33  ;;  %v11363_v38 = vld [vmem:[#allocation3 + $0x10] sm:$0xff]  ;;  %s7805_s24 = sshll.u32 %s150_s21, 7 }
  0x39   : > { %s20699_s14 = smov (!%p154_p5, %s7806_s14), 31  ;;  %v489_v35 = vand.u32 4294901760, %v11354_v32  ;;  %v11365_v39 = vld [vmem:[#allocation3 + $0x18] sm:$0xff]  ;;  %v11367_v40 = vsub.f32 %v437_v26, %v534_v29  ;;  %v11369_v41 = vsub.f32 %v438_v27, %v537_v30  ;;  %v543_v42 = vand.u32 4294901760, %v11360_v36  ;;  %v11434_v27 = vld [vmem:[#allocation3 + $0x20] sm:$0xff]  ;;  %s18308_s25 = scalar_lea.vmem [#allocation6], %s7805_s24 }
  0x3a   : > { %s7807_s16 = sshll.u32 %s20699_s14, 3  ;;  %v492_v43 = vand.u32 4294901760, %v11363_v38  ;;  %v11374_v44 = vsub.f32 %v11352_v31, %v486_v34  ;;  %v11382_v46 = vsub.f32 %v11356_v33, %v540_v37  ;;  %v495_v47 = vand.u32 4294901760, %v11365_v39  ;;  %v11436_v31 = vld [vmem:[#allocation3 + $0x28] sm:$0xff]  ;;  %v11478_v33 = vld [vmem:[#allocation3 + $0x38] sm:$0xff]  ;;  %s8341_s26 = sshll.u32 %s11230_s13, 11 }
  0x3b   : > { %s11296_s23 = scalar_lea.vmem %s18407_s0, %s7807_s16  ;;  %v11377_v45 = vsub.f32 %v11354_v32, %v489_v35  ;;  %v18424_v48 = vand.u32 4294901760, %v11367_v40  ;;  %v18423_v49 = vand.u32 4294901760, %v11369_v41  ;;  %v11388_v50 = vsub.f32 %v11360_v36, %v543_v42  ;;  %s7725_s27 = sshll.u32 %s18308_s25, 4  ;;  %s18360_s27 = int_to_ptr.vmem [resolvable:$true] %s7725_s27 }
  0x3c   : > { %v162_v1 = vld [vmem:[%s11296_s23 + $0x10] sm:$0xff]  ;;  %v160_v2 = vld [vmem:[%s11296_s23] sm:$0xff]  ;;  %v163_v3 = vld [vmem:[%s11296_s23 + $0x18] sm:$0xff]  ;;  %v11393_v51 = vsub.f32 %v11363_v38, %v492_v43  ;;  %v18422_v52 = vand.u32 4294901760, %v11374_v44  ;;  %v18420_v54 = vand.u32 4294901760, %v11382_v46  ;;  %v11401_v55 = vsub.f32 %v11365_v39, %v495_v47  ;;  %s18358_s30 = scalar_lea.hbm %s18409_s2, %s8341_s26  ;;  %s18366_s3 = scalar_lea.sflag [#allocation5], %s150_s21 }
  0x3d   : > { %188 = vperm.xlu1 %11088, %v162_v1   ;;  %182 = vperm.xlu0 %11087, %v160_v2   ;;  %v11301_v4 = vadd.s32 4294966784, %v162_v1  ;;  %v11303_v5 = vadd.s32 4294966784, %v160_v2  ;;  %v11305_v6 = vadd.s32 4294966784, %v163_v3  ;;  %v161_v7 = vld [vmem:[%s11296_s23 + $0x8] sm:$0xff]  ;;  %v164_v9 = vld [vmem:[%s11296_s23 + $0x20] sm:$0xff]  ;;  %v167_v13 = vld [vmem:[%s11296_s23 + $0x38] sm:$0xff]  ;;  %v938_v56 = vsub.f32 %v11367_v40, %v18424_v48 }
  0x3e   : > { %v165_v8 = vld [vmem:[%s11296_s23 + $0x28] sm:$0xff]  ;;  %v11310_v10 = vadd.s32 4294966784, %v161_v7  ;;  %v11314_v12 = vadd.s32 4294966784, %v164_v9  ;;  %v166_v14 = vld [vmem:[%s11296_s23 + $0x30] sm:$0xff]  ;;  %v11321_v16 = vadd.s32 4294966784, %v167_v13  ;;  %v11329_v19 = vld [vmem:[%s11296_s23 + $0x40] sm:$0xff]  ;;  %v945_v57 = vsub.f32 %v11369_v41, %v18423_v49 }
  0x3f   : > { %v11312_v11 = vadd.s32 4294966784, %v165_v8  ;;  %v11319_v15 = vld [vmem:[%s11296_s23 + $0x48] sm:$0xff]  ;;  %v11323_v17 = vadd.s32 4294966784, %v166_v14  ;;  %v11332_v20 = vld [vmem:[%s11296_s23 + $0x58] sm:$0xff]  ;;  %v11335_v21 = vld [vmem:[%s11296_s23 + $0x50] sm:$0xff]  ;;  %v11338_v22 = vadd.s32 4294966784, %v11329_v19  ;;  %v826_v60 = vsub.f32 %v11374_v44, %v18422_v52 }
  0x40   : > { %v11326_v18 = vadd.s32 4294966784, %v11319_v15  ;;  %v11341_v23 = vadd.s32 4294966784, %v11332_v20  ;;  %v11344_v24 = vadd.s32 4294966784, %v11335_v21  ;;  %v11347_v25 = vld [vmem:[%s11296_s23 + $0x68] sm:$0xff]  ;;  %v18421_v53 = vand.u32 4294901760, %v11377_v45  ;;  %s11117_s13 = scalar_lea.vmem %s18360_s27, 2048 }
  0x41   : > { %191 = vperm.xlu1 %11088, %v163_v3   ;;  %185 = vperm.xlu0 %11087, %v161_v7   ;;  %v11350_v28 = vadd.s32 4294966784, %v11347_v25  ;;  %v18415_v58 = vand.u32 4294901760, %v11388_v50  ;;  %v18413_v59 = vand.u32 4294901760, %v11393_v51  ;;  %v952_v62 = vsub.f32 %v11382_v46, %v18420_v54  ;;  %v11427_v7 = vld [vmem:[#allocation3 + $0xa0] sm:$0xff]  ;;  %v11539_v54 = vld [vmem:[%s11296_s23 + $0x78] sm:$0xff]  ;;  %p11118_p6 = scmp.ne.s32.totalorder %s18360_s27, %s11117_s13  ;;  %p20692_p9 = scmp.ne.s32.totalorder %s19148_s19, 0 }
  0x42   : > { %v833_v61 = vsub.f32 %v11377_v45, %v18421_v53  ;;  %v18414_v63 = vand.u32 4294901760, %v11401_v55  ;;  %v939_v0 = vand.u32 4294901760, %v938_v56  ;;  %v946_v1 = vand.u32 4294901760, %v945_v57  ;;  %v11542_v53 = vld [vmem:[%s11296_s23 + $0x70] sm:$0xff]  ;;  %s11191_s4 = smov [#allocation6]  }
  0x43   : > { %v959_v2 = vsub.f32 %v11388_v50, %v18415_v58  ;;  %v840_v3 = vsub.f32 %v11393_v51, %v18413_v59  ;;  %v11438_v57 = vpack.c.bf16 %v537_v30, %v534_v29  ;;  %v11446_v58 = vld [vmem:[#allocation3 + $0xb8] sm:$0xff]  ;;  %v11449_v29 = vpack.c.bf16 %v489_v35, %v486_v34  ;;  %v11453_v30 = vld [vmem:[#allocation3 + $0x30] sm:$0xff]  ;;  %p11119_p10 = pnand %p11118_p6, %p20692_p9  ;;  %s11121_s5 = sshll.u32 %s11191_s4, 4  ;;  %s11122_s5 = int_to_ptr.vmem [resolvable:$false] %s11121_s5 }
  0x44   : > { %v847_v26 = vsub.f32 %v11401_v55, %v18414_v63  ;;  %v10294_v32 = vpack.c.bf16 %v946_v1, %v939_v0  ;;  %v11444_v63 = vld [vmem:[#allocation3 + $0xb0] sm:$0xff]  ;;  %s11123_s6 = scalar_lea.vmem %s11122_s5, 4096  ;;  %p11124_p2 = scmp.lt.s32.totalorder %s18360_s27, %s11122_s5 }
  0x45   : > { %197 = vperm.xlu1 %11088, %v165_v8   ;;  %194 = vperm.xlu0 %11087, %v164_v9   ;;  %v11429_v8 = vld [vmem:[#allocation3 + $0xa8] sm:$0xff]  ;;  %v827_v9 = vand.u32 4294901760, %v826_v60  ;;  %v960_v36 = vand.u32 4294901760, %v959_v2  ;;  %v841_v56 = vand.u32 4294901760, %v840_v3  ;;  %19155 = vst [vmem:[#allocation9_spill] sm:$0xff] %v11438_v57  ;;  %19156 = vst [vmem:[#allocation10_spill] sm:$0xff] %v11449_v29  ;;  %p11120_p12 = pneg %p11119_p10  ;;  %p11125_p3 = scmp.lt.s32.totalorder %s11123_s6, %s11117_s13 }
  0x46   : > { %v549_v59 = vand.u32 4294901760, %v11429_v8  ;;  %10295 = vmatprep.subr.bf16.mxu1 %v10294_v32  ;;  %10263 = vmatprep.subr.bf16.mxu0 %v11438_v57 }
  0x47   : > { %10265 = vmatpush3.bf16.msra.mxu0 %v11449_v29  ;;  %p11126_p4 = por %p11125_p3, %p11124_p2 }
  0x48   : > { %v11459_v3 = vsub.f32 %v11429_v8, %v549_v59  ;;  %v18427_v8 = vand.u32 4294901760, %v11446_v58 }
  0x49   : > { %203 = vperm.xlu1 %11088, %v167_v13   ;;  %200 = vperm.xlu0 %11087, %v166_v14   ;;  %v834_v13 = vand.u32 4294901760, %v833_v61  ;;  %v953_v14 = vand.u32 4294901760, %v952_v62  ;;  %v848_v61 = vand.u32 4294901760, %v847_v26  ;;  %v546_v62 = vand.u32 4294901760, %v11427_v7  ;;  %v11492_v26 = vld [vmem:[%s11296_s23 + $0x60] sm:$0xff]  ;;  %p11127_p7 = pnand %p11126_p4, %p11120_p12 }
  0x4a   : > { %v11505_v38 = vsub.f32 %v11446_v58, %v18427_v8 }
  0x4b   : > { %v10296_v60 = vpack.c.bf16 %v834_v13, %v827_v9  ;;  %v10298_v0 = vpack.c.bf16 %v960_v36, %v953_v14  ;;  %v10300_v1 = vpack.c.bf16 %v848_v61, %v841_v56  ;;  %v11456_v2 = vsub.f32 %v11427_v7, %v546_v62 }
  0x4c   : > { %v11463_v9 = vpack.c.bf16 %v543_v42, %v540_v37  ;;  %v18429_v7 = vand.u32 4294901760, %v11444_v63  ;;  %v18416_v42 = vand.u32 4294901760, %v11459_v3  ;;  %v11488_v13 = vpack.c.bf16 %v495_v47, %v492_v43 }
  0x4d   : > { %209 = vperm.xlu1 %11088, %v11319_v15   ;;  %206 = vperm.xlu0 %11087, %v11329_v19   ;;  %v18432_v15 = vand.u32 4294901760, %v11434_v27  ;;  %v18430_v19 = vand.u32 4294901760, %v11436_v31  ;;  %v18417_v37 = vand.u32 4294901760, %v11456_v2  ;;  %v18426_v14 = vand.u32 4294901760, %v11453_v30 }
  0x4e   : > { %10297 = vmatpush3.bf16.msra.mxu1 %v10296_v60  ;;  %19157 = vst [vmem:[#allocation11_spill] sm:$0xff] %v11463_v9  ;;  %19158 = vst [vmem:[#allocation12_spill] sm:$0xff] %v11488_v13  ;;  %10267 = vmatprep.subr.bf16.mxu0 %v11463_v9  ;;  %v973_v43 = vsub.f32 %v11459_v3, %v18416_v42  ;;  %v18425_v47 = vand.u32 4294901760, %v11478_v33  ;;  %v11556_v8 = vpack.c.bf16 %v549_v59, %v546_v62  ;;  %v11673_v9 = vld [vmem:[#allocation3 + $0x68] sm:$0xff] }
  0x4f   : > { %10299 = vmatprep.subr.bf16.mxu1 %v10298_v0  ;;  %v11469_v34 = vsub.f32 %v11434_v27, %v18432_v15  ;;  %v11474_v35 = vsub.f32 %v11436_v31, %v18430_v19  ;;  %v966_v39 = vsub.f32 %v11456_v2, %v18417_v37  ;;  %v11517_v36 = vsub.f32 %v11453_v30, %v18426_v14  ;;  %v11563_v15 = vld [vmem:[#allocation3 + $0xd0] sm:$0xff] }
  0x50   : > { %v18431_v0 = vand.u32 4294901760, %v11505_v38  ;;  %10269 = vmatpush3.bf16.msra.mxu0 %v11488_v13  ;;  %v974_v42 = vand.u32 4294901760, %v973_v43  ;;  %v11550_v43 = vld [vmem:[#allocation3 + $0xc8] sm:$0xff]  ;;  %19160 = vst [vmem:[#allocation14_spill] sm:$0xff] %v11556_v8 }
  0x51   : > { %215 = vperm.xlu1 %11088, %v11332_v20   ;;  %212 = vperm.xlu0 %11087, %v11335_v21   ;;  %v18418_v32 = vand.u32 4294901760, %v11469_v34  ;;  %v18419_v20 = vand.u32 4294901760, %v11474_v35  ;;  %v11500_v21 = vsub.f32 %v11444_v63, %v18429_v7  ;;  %v18433_v37 = vand.u32 4294901760, %v11517_v36 }
  0x52   : > { %10301 = vmatpush3.bf16.msra.mxu1 %v10300_v1  ;;  %v967_v1 = vand.u32 4294901760, %v966_v39  ;;  %v987_v39 = vsub.f32 %v11505_v38, %v18431_v0  ;;  %v561_v62 = vand.u32 4294901760, %v11550_v43  ;;  %10271 = vmatprep.subr.bf16.mxu0 %v11556_v8 }
  0x53   : > { %v854_v56 = vsub.f32 %v11469_v34, %v18418_v32  ;;  %v861_v60 = vsub.f32 %v11474_v35, %v18419_v20  ;;  %v18428_v61 = vand.u32 4294901760, %v11500_v21  ;;  %v11534_v32 = vsub.f32 %v11478_v33, %v18425_v47  ;;  %v11536_v20 = vld [vmem:[#allocation3 + $0xc0] sm:$0xff] }
  0x54   : > { %v10302_v48 = vpack.c.bf16 %v974_v42, %v967_v1  ;;  %v868_v47 = vsub.f32 %v11517_v36, %v18433_v37  ;;  %v988_v19 = vand.u32 4294901760, %v987_v39  ;;  %v558_v0 = vand.u32 4294901760, %v11536_v20 }
  0x55   : > { %221 = vperm.xlu1 %11088, %v11347_v25   ;;  %218 = vperm.xlu0 %11087, %v11492_v26   ;;  %19159 = vst [vmem:[#allocation13_spill] sm:$0xff] %v11534_v32  ;;  %v855_v52 = vand.u32 4294901760, %v854_v56  ;;  %v862_v49 = vand.u32 4294901760, %v861_v60  ;;  %v980_v25 = vsub.f32 %v11500_v21, %v18428_v61  ;;  %v18434_v14 = vand.u32 4294901760, %v11534_v32  ;;  %v11558_v56 = vld [vmem:[#allocation3 + $0x40] sm:$0xff]  ;;  %v11560_v60 = vld [vmem:[#allocation3 + $0x48] sm:$0xff] }
  0x56   : > { %v869_v42 = vand.u32 4294901760, %v868_v47  ;;  %v19161_v1 = vand.u32 4294901760, %v11434_v27  ;;  %10303 = vmatprep.subr.bf16.mxu1 %v10302_v48  ;;  %v11581_v47 = vsub.f32 %v11536_v20, %v558_v0  ;;  %v18441_v37 = vand.u32 4294901760, %v11558_v56 }
  0x57   : > { %v10304_v61 = vpack.c.bf16 %v862_v49, %v855_v52  ;;  %v981_v7 = vand.u32 4294901760, %v980_v25  ;;  %v875_v59 = vsub.f32 %v11534_v32, %v18434_v14  ;;  %v19162_v49 = vand.u32 4294901760, %v11436_v31  ;;  %v11577_v25 = vld [vmem:[#allocation3 + $0xd8] sm:$0xff] }
  0x58   : > { %v513_v14 = vand.u32 4294901760, %v11560_v60  ;;  %v11586_v27 = vsub.f32 %v11550_v43, %v561_v62  ;;  %v19164_v31 = vand.u32 4294901760, %v11444_v63  ;;  %v19165_v48 = vand.u32 4294901760, %v11446_v58  ;;  %v11606_v63 = vld [vmem:[#allocation3 + $0x50] sm:$0xff]  ;;  %v11608_v58 = vld [vmem:[#allocation3 + $0x58] sm:$0xff] }
  0x59   : > { %227 = vperm.xlu1 %11088, %v11539_v54   ;;  %224 = vperm.xlu0 %11087, %v11542_v53   ;;  %v11575_v52 = vpack.c.bf16 %v19162_v49, %v19161_v1  ;;  %v10306_v39 = vpack.c.bf16 %v988_v19, %v981_v7  ;;  %v876_v13 = vand.u32 4294901760, %v875_v59  ;;  %v18438_v7 = vand.u32 4294901760, %v11563_v15 }
  0x5a   : > { %10305 = vmatpush3.bf16.msra.mxu1 %v10304_v61  ;;  %v11593_v19 = vpack.c.bf16 %v19165_v48, %v19164_v31  ;;  %v18437_v20 = vand.u32 4294901760, %v11581_v47  ;;  %v11600_v61 = vsub.f32 %v11558_v56, %v18441_v37  ;;  %v11603_v43 = vsub.f32 %v11560_v60, %v513_v14 }
  0x5b   : > { %19163 = vst [vmem:[#allocation15_spill] sm:$0xff] %v11575_v52  ;;  %10273 = vmatpush3.bf16.msra.mxu0 %v11575_v52  ;;  %10307 = vmatprep.subr.bf16.mxu1 %v10306_v39  ;;  %v18439_v59 = vand.u32 4294901760, %v11577_v25  ;;  %v10308_v1 = vpack.c.bf16 %v876_v13, %v869_v42  ;;  %v18440_v49 = vand.u32 4294901760, %v11586_v27  ;;  %v11616_v39 = vsub.f32 %v11563_v15, %v18438_v7  ;;  %v11669_v52 = vld [vmem:[#allocation3 + $0x60] sm:$0xff] }
  0x5c   : > { %19166 = vst [vmem:[#allocation16_spill] sm:$0xff] %v11593_v19  ;;  %v19167_v60 = vand.u32 4294901760, %v11453_v30  ;;  %v19168_v31 = vand.u32 4294901760, %v11478_v33  ;;  %v18445_v13 = vand.u32 4294901760, %v11603_v43  ;;  %10275 = vmatprep.subr.bf16.mxu0 %v11593_v19 }
  0x5d   : > { %3942 = vperm.xlu1 %11088, %v11310_v10   ;;  %3939 = vperm.xlu0 %11087, %v11303_v5   ;;  %v994_v10 = vsub.f32 %v11581_v47, %v18437_v20  ;;  %v18442_v5 = vand.u32 4294901760, %v11600_v61  ;;  %v11633_v42 = vsub.f32 %v11577_v25, %v18439_v59  ;;  %v1001_v30 = vsub.f32 %v11586_v27, %v18440_v49 }
  0x5e   : > { %v11622_v48 = vpack.c.bf16 %v19168_v31, %v19167_v60  ;;  %10309 = vmatpush3.bf16.msra.mxu1 %v10308_v1  ;;  %v18450_v33 = vand.u32 4294901760, %v11616_v39  ;;  %v516_v60 = vand.u32 4294901760, %v11606_v63  ;;  %v519_v31 = vand.u32 4294901760, %v11608_v58 }
  0x5f   : > { %v995_v20 = vand.u32 4294901760, %v994_v10  ;;  %v882_v7 = vsub.f32 %v11600_v61, %v18442_v5  ;;  %v889_v1 = vsub.f32 %v11603_v43, %v18445_v13  ;;  %v1002_v49 = vand.u32 4294901760, %v1001_v30  ;;  %v11662_v13 = vld [vmem:[#allocation3 + $0xe8] sm:$0xff] }
  0x60   : > { %19169 = vst [vmem:[#allocation17_spill] sm:$0xff] %v11622_v48  ;;  %10277 = vmatpush3.bf16.msra.mxu0 %v11622_v48  ;;  %v1008_v37 = vsub.f32 %v11616_v39, %v18450_v33  ;;  %v11655_v10 = vsub.f32 %v11606_v63, %v516_v60  ;;  %v11658_v5 = vsub.f32 %v11608_v58, %v519_v31  ;;  %v11660_v48 = vld [vmem:[#allocation3 + $0xe0] sm:$0xff] }
  0x61   : > { %3948 = vperm.xlu1 %11088, %v11305_v6   ;;  %3945 = vperm.xlu0 %11087, %v11301_v4   ;;  %v883_v59 = vand.u32 4294901760, %v882_v7  ;;  %v890_v19 = vand.u32 4294901760, %v889_v1  ;;  %v19170_v6 = vand.u32 4294901760, %v11633_v42  ;;  %v11667_v30 = vpack.c.bf16 %v561_v62, %v558_v0 }
  0x62   : > { %v10310_v33 = vpack.c.bf16 %v1002_v49, %v995_v20  ;;  %v1009_v63 = vand.u32 4294901760, %v1008_v37  ;;  %v18460_v8 = vand.u32 4294901760, %v11655_v10  ;;  %v18459_v58 = vand.u32 4294901760, %v11658_v5 }
  0x63   : > { %v1015_v4 = vsub.f32 %v11633_v42, %v19170_v6  ;;  %19171 = vst [vmem:[#allocation18_spill] sm:$0xff] %v11667_v30  ;;  %v10312_v29 = vpack.c.bf16 %v890_v19, %v883_v59  ;;  %10279 = vmatprep.subr.bf16.mxu0 %v11667_v30  ;;  %v570_v7 = vand.u32 4294901760, %v11660_v48  ;;  %v573_v1 = vand.u32 4294901760, %v11662_v13  ;;  %v451_v59 = vld [vmem:[#allocation3 + $0xf0] sm:$0xff] }
  0x64   : > { %v896_v37 = vsub.f32 %v11655_v10, %v18460_v8  ;;  %v903_v0 = vsub.f32 %v11658_v5, %v18459_v58  ;;  %v19172_v62 = vand.u32 4294901760, %v11558_v56  ;;  %v522_v20 = vand.u32 4294901760, %v11669_v52  ;;  %10311 = vmatprep.subr.bf16.mxu1 %v10310_v33 }
  0x65   : > { %v1016_v57 = vand.u32 4294901760, %v1015_v4  ;;  %3954 = vperm.xlu1 %11088, %v11312_v11   ;;  %3951 = vperm.xlu0 %11087, %v11314_v12   ;;  %v11692_v11 = vsub.f32 %v11660_v48, %v570_v7  ;;  %v11695_v12 = vsub.f32 %v11662_v13, %v573_v1  ;;  %v525_v6 = vand.u32 4294901760, %v11673_v9  ;;  %v452_v4 = vld [vmem:[#allocation3 + $0xf8] sm:$0xff] }
  0x66   : > { %v11688_v19 = vpack.c.bf16 %v513_v14, %v19172_v62  ;;  %10313 = vmatpush3.bf16.msra.mxu1 %v10312_v29  ;;  %v897_v58 = vand.u32 4294901760, %v896_v37  ;;  %v904_v8 = vand.u32 4294901760, %v903_v0  ;;  %v11700_v14 = vsub.f32 %v11669_v52, %v522_v20  ;;  %v435_v37 = vld [vmem:[#allocation3 + $0x70] sm:$0xff]  ;;  %v436_v0 = vld [vmem:[#allocation3 + $0x78] sm:$0xff] }
  0x67   : > { %v10314_v49 = vpack.c.bf16 %v1016_v57, %v1009_v63  ;;  %v19174_v56 = vand.u32 4294901760, %v11563_v15  ;;  %v19175_v57 = vand.u32 4294901760, %v11577_v25  ;;  %v18463_v13 = vand.u32 4294901760, %v11692_v11 }
  0x68   : > { %19173 = vst [vmem:[#allocation19_spill] sm:$0xff] %v11688_v19  ;;  %10281 = vmatpush3.bf16.msra.mxu0 %v11688_v19  ;;  %v18461_v33 = vand.u32 4294901760, %v11695_v12  ;;  %v11711_v29 = vsub.f32 %v11673_v9, %v525_v6  ;;  %v576_v63 = vand.u32 4294901760, %v451_v59  ;;  %v10316_v15 = vpack.c.bf16 %v904_v8, %v897_v58 }
  0x69   : > { %v11706_v48 = vpack.c.bf16 %v19175_v57, %v19174_v56  ;;  %10315 = vmatprep.subr.bf16.mxu1 %v10314_v49  ;;  %3960 = vperm.xlu1 %11088, %v11321_v16   ;;  %v18462_v52 = vand.u32 4294901760, %v11700_v14  ;;  %v579_v25 = vand.u32 4294901760, %v452_v4  ;;  %v11716_v62 = vpack.c.bf16 %v519_v31, %v516_v60 }
  0x6a   : > { %3957 = vperm.xlu0 %11087, %v11323_v17   ;;  %v1022_v49 = vsub.f32 %v11692_v11, %v18463_v13  ;;  %v1029_v9 = vsub.f32 %v11695_v12, %v18461_v33  ;;  %v18466_v56 = vand.u32 4294901760, %v11711_v29  ;;  %v11726_v16 = vsub.f32 %v451_v59, %v576_v63  ;;  %10317 = vmatpush3.bf16.msra.mxu1 %v10316_v15 }
  0x6b   : > { %19176 = vst [vmem:[#allocation20_spill] sm:$0xff] %v11706_v48  ;;  %19177 = vst [vmem:[#allocation21_spill] sm:$0xff] %v11716_v62  ;;  %10283 = vmatprep.subr.bf16.mxu0 %v11706_v48  ;;  %v910_v17 = vsub.f32 %v11700_v14, %v18462_v52  ;;  %v11731_v8 = vsub.f32 %v452_v4, %v579_v25  ;;  %v528_v60 = vand.u32 4294901760, %v435_v37  ;;  %v531_v31 = vand.u32 4294901760, %v436_v0 }
  0x6c   : > { %10285 = vmatpush3.bf16.msra.mxu0 %v11716_v62  ;;  %v1023_v58 = vand.u32 4294901760, %v1022_v49  ;;  %v1030_v57 = vand.u32 4294901760, %v1029_v9  ;;  %v917_v33 = vsub.f32 %v11711_v29, %v18466_v56  ;;  %v18472_v59 = vand.u32 4294901760, %v11726_v16 }
  0x6d   : > { %3966 = vperm.xlu1 %11088, %v11326_v18   ;;  %v911_v15 = vand.u32 4294901760, %v910_v17  ;;  %v18471_v4 = vand.u32 4294901760, %v11731_v8  ;;  %v11741_v52 = vsub.f32 %v435_v37, %v528_v60  ;;  %v11743_v13 = vsub.f32 %v436_v0, %v531_v31 }
  0x6e   : > { %3963 = vperm.xlu0 %11087, %v11338_v22   ;;  %v8076_v49 = vadd.s32 4294966784, %v11492_v26  ;;  %v10318_v9 = vpack.c.bf16 %v1030_v57, %v1023_v58  ;;  %v918_v62 = vand.u32 4294901760, %v917_v33  ;;  %v1036_v56 = vsub.f32 %v11726_v16, %v18472_v59 }
  0x6f   : > { %v1043_v18 = vsub.f32 %v11731_v8, %v18471_v4  ;;  %v18470_v22 = vand.u32 4294901760, %v11741_v52  ;;  %v18469_v17 = vand.u32 4294901760, %v11743_v13  ;;  %v11754_v37 = vpack.c.bf16 %v573_v1, %v570_v7 }
  0x70   : > { %10319 = vmatprep.subr.bf16.mxu1 %v10318_v9  ;;  %v10320_v0 = vpack.c.bf16 %v918_v62, %v911_v15  ;;  %v1037_v48 = vand.u32 4294901760, %v1036_v56  ;;  %v11756_v26 = vpack.c.bf16 %v525_v6, %v522_v20  ;;  %v11758_v33 = vpack.c.bf16 %v579_v25, %v576_v63 }
  0x71   : > { %19178 = vst [vmem:[#allocation22_spill] sm:$0xff] %v11754_v37  ;;  %3972 = vperm.xlu1 %11088, %v11341_v23   ;;  %v1044_v58 = vand.u32 4294901760, %v1043_v18  ;;  %v924_v57 = vsub.f32 %v11741_v52, %v18470_v22  ;;  %v931_v7 = vsub.f32 %v11743_v13, %v18469_v17  ;;  %v11768_v1 = vpack.c.bf16 %v531_v31, %v528_v60 }
  0x72   : > { %19179 = vst [vmem:[#allocation23_spill] sm:$0xff] %v11756_v26  ;;  %19180 = vst [vmem:[#allocation24_spill] sm:$0xff] %v11758_v33  ;;  %3969 = vperm.xlu0 %11087, %v11344_v24   ;;  %v8079_v20 = vadd.s32 4294966784, %v11539_v54  ;;  %10321 = vmatpush3.bf16.msra.mxu1 %v10320_v0  ;;  %v10326_v23 = vpack.c.bf16 %v11369_v41, %v11367_v40  ;;  %v8078_v15 = vadd.s32 4294966784, %v11542_v53  ;;  %v19182_v53 = vld [vmem:[#allocation9_spill] sm:$0xff]  ;;  %v176_v17 = vlaneseq  ;;  %v19201_v54 = vld [vmem:[#allocation12_spill] sm:$0xff] }
  0x73   : > { %19181 = vst [vmem:[#allocation25_spill] sm:$0xff] %v11768_v1  ;;  %10287 = vmatprep.subr.bf16.mxu0 %v11754_v37  ;;  %v10322_v63 = vpack.c.bf16 %v1044_v58, %v1037_v48  ;;  %v925_v25 = vand.u32 4294901760, %v924_v57  ;;  %v932_v62 = vand.u32 4294901760, %v931_v7  ;;  %v19196_v57 = vld [vmem:[#allocation10_spill] sm:$0xff] }
  0x74   : > { %10289 = vmatpush3.bf16.msra.mxu0 %v11756_v26  ;;  %v11822_v22 = vand.u32 127, %v176_v17 }
  0x75   : > { %10291 = vmatprep.subr.bf16.mxu0 %v11758_v33  ;;  %3978 = vperm.xlu1 %11088, %v11350_v28   ;;  %v10324_v9 = vpack.c.bf16 %v932_v62, %v925_v25  ;;  %v19183_v25 = vand.u32 4294901760, %v11367_v40  ;;  %v19184_v62 = vand.u32 4294901760, %v11369_v41  ;;  %v18474_v40 = vmov 1.0  }
  0x76   : > { %3975 = vperm.xlu0 %11087, %v8076_v49   ;;  %10323 = vmatprep.subr.bf16.mxu1 %v10322_v63  ;;  %19188 = vst [vmem:[#allocation26_spill] sm:$0xff] %v11822_v22  ;;  %v11825_v4 = vadd.s32 128, %v11822_v22  ;;  %v18484_v41 = vmov 0.0  }
  0x77   : > { %10325 = vmatpush3.bf16.msra.mxu1 %v10324_v9  ;;  %v11814_v9 = vpack.c.bf16 %v19184_v62, %v19183_v25 }
  0x78   : > { %10293 = vmatpush3.bf16.msra.mxu0 %v11768_v1  ;;  %10359 = vmatprep.subr.bf16.mxu1 %v19182_v53  ;;  %19189 = vst [vmem:[#allocation27_spill] sm:$0xff] %v11825_v4 }
  0x79   : > { %10327 = vmatprep.subr.bf16.mxu0 %v10326_v23  ;;  %3984 = vperm.xlu1 %11088, %v8079_v20   ;;  %v19185_v23 = vand.u32 4294901760, %v11374_v44  ;;  %v19186_v20 = vand.u32 4294901760, %v11377_v45 }
  0x7a   : > { %3981 = vperm.xlu0 %11087, %v8078_v15  }
  0x7b   : > { %v11820_v15 = vpack.c.bf16 %v19186_v20, %v19185_v23 }
  0x7d   : > { %19187 = vst [vmem:[#allocation9_spill] sm:$0xff] %v11820_v15 }
  0xbc   : > { %v11827_v59 = vpop.permute.xlu1 %188  ;;  %v11829_v63 = vpop.permute.xlu0 %182 }
  0xbd   : > { %19190 = vst [vmem:[#allocation28_spill] sm:$0xff] %v11827_v59  ;;  %19191 = vst [vmem:[#allocation29_spill] sm:$0xff] %v11829_v63  ;;  %vm230_vm0 = vcmp.eq.s32.totalorder %v11825_v4, %v11829_v63  ;;  %vm229_vm1 = vcmp.eq.s32.totalorder %v11822_v22, %v11829_v63  ;;  %vm238_vm2 = vcmp.eq.s32.totalorder %v11825_v4, %v11827_v59  ;;  %v19203_v63 = vld [vmem:[#allocation14_spill] sm:$0xff] }
  0xbe   : > { %7872 = vmatprep.mubr.msk.f32.mxu1 %vm230_vm0, %v18474_v40  ;;  %v7808_v17 = vsel %vm229_vm1, 1.0, %v18484_v41  ;;  %v7817_v25 = vsel %vm238_vm2, 1.0, %v18484_v41  ;;  %v7809_v62 = vsel %vm230_vm0, 1.0, %v18484_v41  ;;  %vm237_vm3 = vcmp.eq.s32.totalorder %v11822_v22, %v11827_v59 }
  0xbf   : > { %v11853_v23 = vsub.f32 %v7808_v17, %v7808_v17  ;;  %7873 = vmatmul.mubr.msk.f32.vlgmr.msra.gmra.mrb[0].mxu1 %vm229_vm1, %v18474_v40  ;;  %v11859_v20 = vsub.f32 %v7809_v62, %v7809_v62  ;;  %v11865_v28 = vsub.f32 %v7817_v25, %v7817_v25  ;;  %v7816_v62 = vsel %vm237_vm3, 1.0, %v18484_v41  ;;  %v19197_v25 = vld [vmem:[#allocation11_spill] sm:$0xff] }
  0xc0   : > { %v11861_v7 = vpop.permute.xlu1 %191  ;;  %v11863_v49 = vpop.permute.xlu0 %185  ;;  %10361 = vmatpush3.bf16.msra.mxu1 %v19196_v57  ;;  %v11892_v18 = vsub.f32 %v7816_v62, %v7816_v62 }
  0xc1   : > { %19192 = vst [vmem:[#allocation30_spill] sm:$0xff] %v11853_v23  ;;  %19193 = vst [vmem:[#allocation31_spill] sm:$0xff] %v11861_v7  ;;  %vm234_vm4 = vcmp.eq.s32.totalorder %v11825_v4, %v11863_v49  ;;  %vm233_vm5 = vcmp.eq.s32.totalorder %v11822_v22, %v11863_v49  ;;  %v18473_v17 = vand.u32 4294901760, %v11859_v20  ;;  %10363 = vmatprep.subr.bf16.mxu1 %v19197_v25  ;;  %v18478_v48 = vand.u32 4294901760, %v11853_v23 }
  0xc2   : > { %19194 = vst [vmem:[#allocation32_spill] sm:$0xff] %v11863_v49  ;;  %19195 = vst [vmem:[#allocation33_spill] sm:$0xff] %v11865_v28  ;;  %v7813_v58 = vsel %vm234_vm4, 1.0, %v18484_v41  ;;  %7874 = vmatprep.mubr.msk.f32.mxu1 %vm234_vm4, %v18474_v40  ;;  %v7812_v0 = vsel %vm233_vm5, 1.0, %v18484_v41  ;;  %vm242_vm6 = vcmp.eq.s32.totalorder %v11825_v4, %v11861_v7  ;;  %vm241_vm7 = vcmp.eq.s32.totalorder %v11822_v22, %v11861_v7 }
  0xc3   : > { %v11895_v31 = vsub.f32 %v7813_v58, %v7813_v58  ;;  %v11897_v60 = vsub.f32 %v7812_v0, %v7812_v0  ;;  %7875 = vmatmul.mubr.msk.f32.gmra.mrb[2].mxu1 %vm233_vm5, %v18474_v40  ;;  %v584_v56 = vsub.f32 %v11859_v20, %v18473_v17  ;;  %v590_v0 = vsub.f32 %v11853_v23, %v18478_v48 }
  0xc4   : > { %v11908_v62 = vpop.permute.xlu0 %194  ;;  %7876 = vmatprep.mubr.msk.f32.mxu1 %vm238_vm2, %v18474_v40  ;;  %v7821_v58 = vsel %vm242_vm6, 1.0, %v18484_v41  ;;  %10365 = vmatpush3.bf16.msra.mxu1 %v19201_v54  ;;  %v11925_v6 = vpop.permute.xlu1 %197  ;;  %v7820_v48 = vsel %vm241_vm7, 1.0, %v18484_v41  ;;  %v19210_v54 = vpack.c.bf16 %v11377_v45, %v11374_v44 }
  0xc5   : > { %19198 = vst [vmem:[#allocation34_spill] sm:$0xff] %v11895_v31  ;;  %19199 = vst [vmem:[#allocation35_spill] sm:$0xff] %v11897_v60  ;;  %v585_v24 = vand.u32 4294901760, %v584_v56  ;;  %v11927_v40 = vsub.f32 %v7821_v58, %v7821_v58  ;;  %v18481_v49 = vand.u32 4294901760, %v11895_v31  ;;  %10367 = vmatprep.subr.bf16.mxu1 %v19203_v63  ;;  %v591_v15 = vand.u32 4294901760, %v590_v0 }
  0xc6   : > { %19200 = vst [vmem:[#allocation36_spill] sm:$0xff] %v11908_v62  ;;  %19202 = vst [vmem:[#allocation37_spill] sm:$0xff] %v11925_v6  ;;  %v11935_v25 = vsub.f32 %v7820_v48, %v7820_v48  ;;  %vm246_vm8 = vcmp.eq.s32.totalorder %v11825_v4, %v11908_v62  ;;  %v19204_v56 = vmov 1.0   ;;  %v19205_v0 = vand.u32 4294901760, %v11865_v28 }
  0xc7   : > { %586 = vmatprep.mubr.f32.mxu0 %v585_v24  ;;  %7877 = vmatmul.mubr.msk.f32.gmra.mrb[4].mxu1 %vm237_vm3, %v19204_v56  ;;  %v599_v58 = vsub.f32 %v11895_v31, %v18481_v49  ;;  %v7825_v48 = vsel %vm246_vm8, 1.0, %v18484_v41  ;;  %vm18502_vm9 = vcmp.eq.s32.totalorder %v11822_v22, %v11908_v62  ;;  %v19207_v49 = vand.u32 4294901760, %v11897_v60 }
  0xc8   : > { %v614_v17 = vsub.f32 %v11865_v28, %v19205_v0  ;;  %592 = vmatmul.mubr.f32.vlgmr.msra.gmra.mrb[0].mxu0 %v591_v15  ;;  %7878 = vmatprep.mubr.msk.f32.mxu1 %vm242_vm6, %v19204_v56  ;;  %v11960_v24 = vpop.permute.xlu0 %200  ;;  %v11965_v41 = vsub.f32 %v7825_v48, %v7825_v48  ;;  %v19209_v63 = vmov 0.0   ;;  %v18494_v15 = vand.u32 4294901760, %v11892_v18 }
  0xc9   : > { %19206 = vst [vmem:[#allocation38_spill] sm:$0xff] %v11960_v24  ;;  %v605_v59 = vsub.f32 %v11897_v60, %v19207_v49  ;;  %v7824_v0 = vsel %vm18502_vm9, 1.0, %v19209_v63  ;;  %10329 = vmatpush3.bf16.msra.mxu0 %v19210_v54  ;;  %v600_v28 = vand.u32 4294901760, %v599_v58  ;;  %vm18510_vm10 = vcmp.eq.s32.totalorder %v11825_v4, %v11925_v6  ;;  %v19211_v49 = vld [vmem:[#allocation15_spill] sm:$0xff]  ;;  %v19213_v54 = vld [vmem:[#allocation16_spill] sm:$0xff] }
  0xca   : > { %19208 = vst [vmem:[#allocation39_spill] sm:$0xff] %v11965_v41  ;;  %v615_v57 = vand.u32 4294901760, %v614_v17  ;;  %v11975_v31 = vsub.f32 %v7824_v0, %v7824_v0  ;;  %10369 = vmatpush3.bf16.msra.mxu1 %v19211_v49  ;;  %v19212_v60 = vpack.c.bf16 %v11388_v50, %v11382_v46  ;;  %v620_v23 = vsub.f32 %v11892_v18, %v18494_v15  ;;  %v11992_v17 = vpop.permute.xlu1 %203 }
  0xcb   : > { %v606_v48 = vand.u32 4294901760, %v605_v59  ;;  %v7829_v44 = vsel %vm18510_vm10, 1.0, %v19209_v63  ;;  %v18495_v45 = vand.u32 4294901760, %v11927_v40  ;;  %10371 = vmatprep.subr.bf16.mxu1 %v19213_v54  ;;  %19214 = vst [vmem:[#allocation40_spill] sm:$0xff] %v11992_v17  ;;  %601 = vmatprep.mubr.f32.mxu0 %v600_v28  ;;  %vm18507_vm11 = vcmp.eq.s32.totalorder %v11822_v22, %v11925_v6 }
  0xcc   : > { %10331 = vmatprep.subr.bf16.mxu0 %v19212_v60  ;;  %7879 = vmatmul.mubr.msk.f32.gmra.mrb[6].mxu1 %vm241_vm7, %v19204_v56  ;;  %v18498_v59 = vand.u32 4294901760, %v11935_v25  ;;  %vm18516_vm12 = vcmp.eq.s32.totalorder %v11825_v4, %v11960_v24  ;;  %v12007_v60 = vsub.f32 %v7829_v44, %v7829_v44  ;;  %v7828_v58 = vsel %vm18507_vm11, 1.0, %v19209_v63  ;;  %v12029_v54 = vpop.permute.xlu0 %206 }
  0xcd   : > { %607 = vmatmul.mubr.f32.gmra.mrb[2].mxu0 %v606_v48  ;;  %7880 = vmatprep.mubr.msk.f32.mxu1 %vm246_vm8, %v19204_v56  ;;  %v629_v28 = vsub.f32 %v11927_v40, %v18495_v45  ;;  %v7833_v0 = vsel %vm18516_vm12, 1.0, %v19209_v63  ;;  %v621_v48 = vand.u32 4294901760, %v620_v23  ;;  %v19215_v44 = vpack.c.bf16 %v11401_v55, %v11393_v51  ;;  %19217 = vst [vmem:[#allocation42_spill] sm:$0xff] %v12029_v54 }
  0xce   : > { %616 = vmatprep.mubr.f32.mxu0 %v615_v57  ;;  %v12023_v15 = vsub.f32 %v7828_v58, %v7828_v58  ;;  %v635_v45 = vsub.f32 %v11935_v25, %v18498_v59  ;;  %v18499_v7 = vand.u32 4294901760, %v11965_v41  ;;  %v12031_v49 = vsub.f32 %v7833_v0, %v7833_v0  ;;  %v19219_v58 = vld [vmem:[#allocation17_spill] sm:$0xff] }
  0xcf   : > { %10333 = vmatpush3.bf16.msra.mxu0 %v19215_v44  ;;  %vm18517_vm13 = vcmp.eq.s32.totalorder %v11822_v22, %v11960_v24  ;;  %v19218_v57 = vpack.c.bf16 %v11459_v3, %v11456_v2  ;;  %v18506_v23 = vand.u32 4294901760, %v11975_v31  ;;  %vm258_vm14 = vcmp.eq.s32.totalorder %v11825_v4, %v11992_v17  ;;  %10373 = vmatpush3.bf16.msra.mxu1 %v19219_v58 }
  0xd0   : > { %19216 = vst [vmem:[#allocation41_spill] sm:$0xff] %v12023_v15  ;;  %7881 = vmatmul.mubr.msk.f32.gmra.mrb[8].mxu1 %vm18502_vm9, %v19204_v56  ;;  %v630_v0 = vand.u32 4294901760, %v629_v28  ;;  %v644_v44 = vsub.f32 %v11965_v41, %v18499_v7  ;;  %v7837_v59 = vsel %vm258_vm14, 1.0, %v19209_v63  ;;  %10375 = vmatprep.subr.bf16.mxu1 %v11667_v30  ;;  %v19220_v62 = vpack.c.bf16 %v11474_v35, %v11469_v34  ;;  %v12074_v30 = vpop.permute.xlu1 %209 }
  0xd1   : > { %10335 = vmatprep.subr.bf16.mxu0 %v19218_v57  ;;  %v7832_v57 = vsel %vm18517_vm13, 1.0, %v19209_v63  ;;  %622 = vmatmul.mubr.f32.gmra.mrb[4].mxu0 %v621_v48  ;;  %v650_v7 = vsub.f32 %v11975_v31, %v18506_v23  ;;  %vm18522_vm15 = vcmp.eq.s32.totalorder %v11822_v22, %v11992_v17  ;;  %v18512_v48 = vand.u32 4294901760, %v12023_v15  ;;  %19221 = vst [vmem:[#allocation43_spill] sm:$0xff] %v12074_v30 }
  0xd2   : > { %7882 = vmatprep.mubr.msk.f32.mxu1 %vm18510_vm10, %v19204_v56  ;;  %631 = vmatprep.mubr.f32.mxu0 %v630_v0  ;;  %vm18529_vm9 = vcmp.eq.s32.totalorder %v11825_v4, %v12029_v54  ;;  %v636_v28 = vand.u32 4294901760, %v635_v45  ;;  %v645_v0 = vand.u32 4294901760, %v644_v44  ;;  %v12076_v58 = vsub.f32 %v7832_v57, %v7832_v57  ;;  %v19225_v57 = vld [vmem:[#allocation20_spill] sm:$0xff]  ;;  %v12115_v44 = vpop.permute.xlu0 %212 }
  0xd3   : > { %10337 = vmatpush3.bf16.msra.mxu0 %v19220_v62  ;;  %v12078_v41 = vsub.f32 %v7837_v59, %v7837_v59  ;;  %v19223_v23 = vpack.c.bf16 %v11505_v38, %v11500_v21  ;;  %10377 = vmatpush3.bf16.msra.mxu1 %v11688_v19  ;;  %v19224_v62 = vand.u32 4294901760, %v12007_v60  ;;  %v7836_v59 = vsel %vm18522_vm15, 1.0, %v19209_v63  ;;  %19227 = vst [vmem:[#allocation45_spill] sm:$0xff] %v12115_v44 }
  0xd4   : > { %7883 = vmatmul.mubr.msk.f32.gmra.mrb[10].mxu1 %vm18507_vm11, %v19204_v56  ;;  %10379 = vmatprep.subr.bf16.mxu1 %v19225_v57  ;;  %vm18530_vm11 = vcmp.eq.s32.totalorder %v11822_v22, %v12029_v54  ;;  %v665_v6 = vsub.f32 %v12023_v15, %v18512_v48  ;;  %vm18535_vm10 = vcmp.eq.s32.totalorder %v11825_v4, %v12074_v30  ;;  %v19229_v15 = vld [vmem:[#allocation21_spill] sm:$0xff] }
  0xd5   : > { %19222 = vst [vmem:[#allocation44_spill] sm:$0xff] %v12078_v41  ;;  %10339 = vmatprep.subr.bf16.mxu0 %v19223_v23  ;;  %v659_v45 = vsub.f32 %v12007_v60, %v19224_v62  ;;  %v7841_v23 = vsel %vm18529_vm9, 1.0, %v19209_v63  ;;  %637 = vmatmul.mubr.f32.gmra.mrb[6].mxu0 %v636_v28  ;;  %v651_v62 = vand.u32 4294901760, %v650_v7  ;;  %v19226_v28 = vpack.c.bf16 %v11534_v32, %v11517_v36 }
  0xd6   : > { %7884 = vmatprep.mubr.msk.f32.mxu1 %vm18516_vm12, %v19204_v56  ;;  %646 = vmatprep.mubr.f32.mxu0 %v645_v0  ;;  %v12117_v57 = vsub.f32 %v7836_v59, %v7836_v59  ;;  %v12119_v19 = vsub.f32 %v7841_v23, %v7841_v23  ;;  %v7840_v7 = vsel %vm18530_vm11, 1.0, %v19209_v63  ;;  %v18520_v0 = vand.u32 4294901760, %v12076_v58 }
  0xd7   : > { %10341 = vmatpush3.bf16.msra.mxu0 %v19226_v28  ;;  %v19228_v48 = vpack.c.bf16 %v11586_v27, %v11581_v47  ;;  %10381 = vmatpush3.bf16.msra.mxu1 %v19229_v15  ;;  %v660_v59 = vand.u32 4294901760, %v659_v45  ;;  %v19230_v23 = vand.u32 4294901760, %v12031_v49  ;;  %vm18537_vm12 = vcmp.eq.s32.totalorder %v11822_v22, %v12074_v30 }
  0xd8   : > { %7885 = vmatmul.mubr.msk.f32.gmra.mrb[12].mxu1 %vm18517_vm13, %v19204_v56  ;;  %10383 = vmatprep.subr.bf16.mxu1 %v11754_v37  ;;  %v666_v45 = vand.u32 4294901760, %v665_v6  ;;  %vm18536_vm13 = vcmp.eq.s32.totalorder %v11825_v4, %v12115_v44  ;;  %v680_v32 = vsub.f32 %v12076_v58, %v18520_v0  ;;  %v7844_v24 = vsel %vm18537_vm12, 1.0, %v19209_v63 }
  0xd9   : > { %10343 = vmatprep.subr.bf16.mxu0 %v19228_v48  ;;  %v674_v28 = vsub.f32 %v12031_v49, %v19230_v23  ;;  %652 = vmatmul.mubr.f32.gmra.mrb[8].mxu0 %v651_v62  ;;  %v7845_v48 = vsel %vm18535_vm10, 1.0, %v19209_v63  ;;  %v12149_v23 = vsub.f32 %v7840_v7, %v7840_v7  ;;  %v19231_v62 = vpack.c.bf16 %v11603_v43, %v11600_v61 }
  0xda   : > { %7886 = vmatprep.mubr.msk.f32.mxu1 %vm258_vm14, %v19204_v56  ;;  %661 = vmatprep.mubr.f32.mxu0 %v660_v59  ;;  %v19232_v59 = vpack.c.bf16 %v11633_v42, %v11616_v39  ;;  %v12175_v37 = vsub.f32 %v7845_v48, %v7845_v48  ;;  %v19234_v6 = vand.u32 4294901760, %v12078_v41  ;;  %v19237_v17 = vand.u32 4294901760, %v12117_v57 }
  0xdb   : > { %10345 = vmatpush3.bf16.msra.mxu0 %v19231_v62  ;;  %10385 = vmatpush3.bf16.msra.mxu1 %v11756_v26  ;;  %v12169_v62 = vpop.permute.xlu1 %215  ;;  %v675_v0 = vand.u32 4294901760, %v674_v28  ;;  %v12191_v28 = vsub.f32 %v7844_v24, %v7844_v24  ;;  %v18534_v48 = vand.u32 4294901760, %v12149_v23  ;;  %v19238_v26 = vand.u32 4294901760, %v12119_v19 }
  0xdc   : > { %10347 = vmatprep.subr.bf16.mxu0 %v19232_v59  ;;  %19233 = vst [vmem:[#allocation21_spill] sm:$0xff] %v12169_v62  ;;  %7887 = vmatmul.mubr.msk.f32.gmra.mrb[14].mxu1 %vm18522_vm15, %v19204_v56  ;;  %v689_v7 = vsub.f32 %v12078_v41, %v19234_v6  ;;  %v7849_v59 = vsel %vm18536_vm13, 1.0, %v19209_v63  ;;  %vm18545_vm15 = vcmp.eq.s32.totalorder %v11822_v22, %v12115_v44  ;;  %v681_v6 = vand.u32 4294901760, %v680_v32 }
  0xdd   : > { %10387 = vmatprep.subr.bf16.mxu1 %v11758_v33  ;;  %667 = vmatmul.mubr.f32.gmra.mrb[10].mxu0 %v666_v45  ;;  %19235 = vst [vmem:[#allocation46_spill] sm:$0xff] %v12191_v28  ;;  %v19236_v45 = vpack.c.bf16 %v11658_v5, %v11655_v10  ;;  %v695_v33 = vsub.f32 %v12117_v57, %v19237_v17 }
  0xde   : > { %7888 = vmatprep.mubr.msk.f32.mxu1 %vm18529_vm9, %v19204_v56  ;;  %676 = vmatprep.mubr.f32.mxu0 %v675_v0  ;;  %v704_v41 = vsub.f32 %v12119_v19, %v19238_v26  ;;  %vm18538_vm9 = vcmp.eq.s32.totalorder %v11825_v4, %v12169_v62  ;;  %v19239_v24 = vpack.c.bf16 %v11695_v12, %v11692_v11  ;;  %v690_v32 = vand.u32 4294901760, %v689_v7 }
  0xdf   : > { %10349 = vmatpush3.bf16.msra.mxu0 %v19236_v45  ;;  %10389 = vmatpush3.bf16.msra.mxu1 %v11768_v1  ;;  %v12213_v17 = vsub.f32 %v7849_v59, %v7849_v59  ;;  %v7848_v26 = vsel %vm18545_vm15, 1.0, %v19209_v63  ;;  %v12220_v45 = vpop.permute.xlu0 %218  ;;  %v710_v7 = vsub.f32 %v12149_v23, %v18534_v48  ;;  %v7853_v59 = vsel %vm18538_vm9, 1.0, %v19209_v63 }
  0xe0   : > { %10351 = vmatprep.subr.bf16.mxu0 %v19239_v24  ;;  %7889 = vmatmul.mubr.msk.f32.gmra.mrb[16].mxu1 %vm18530_vm11, %v19204_v56  ;;  %19241 = vst [vmem:[#allocation48_spill] sm:$0xff] %v12220_v45  ;;  %vm273_vm11 = vcmp.eq.s32.totalorder %v11822_v22, %v12169_v62  ;;  %v696_v24 = vand.u32 4294901760, %v695_v33  ;;  %v705_v0 = vand.u32 4294901760, %v704_v41  ;;  %v12238_v54 = vsub.f32 %v7848_v26, %v7848_v26 }
  0xe1   : > { %19240 = vst [vmem:[#allocation47_spill] sm:$0xff] %v12213_v17  ;;  %682 = vmatmul.mubr.f32.gmra.mrb[12].mxu0 %v681_v6  ;;  %7890 = vmatprep.mubr.msk.f32.mxu1 %vm18535_vm10, %v19204_v56  ;;  %v19242_v6 = vpack.c.bf16 %v11711_v29, %v11700_v14  ;;  %v19245_v48 = vand.u32 4294901760, %v12175_v37  ;;  %v7852_v41 = vsel %vm273_vm11, 1.0, %v19209_v63  ;;  %vm18554_vm10 = vcmp.eq.s32.totalorder %v11825_v4, %v12220_v45 }
  0xe2   : > { %691 = vmatprep.mubr.f32.mxu0 %v690_v32  ;;  %19243 = vst [vmem:[#allocation49_spill] sm:$0xff] %v12238_v54  ;;  %v19244_v32 = vpack.c.bf16 %v11731_v8, %v11726_v16  ;;  %10423 = vmatprep.subr.bf16.mxu1 %v19182_v53  ;;  %v12263_v53 = vsub.f32 %v7853_v59, %v7853_v59  ;;  %v19249_v26 = vand.u32 4294901760, %v12191_v28  ;;  %v7857_v59 = vsel %vm18554_vm10, 1.0, %v19209_v63 }
  0xe3   : > { %10353 = vmatpush3.bf16.msra.mxu0 %v19242_v6  ;;  %v719_v33 = vsub.f32 %v12175_v37, %v19245_v48  ;;  %v12265_v6 = vpop.permute.xlu1 %221  ;;  %v711_v48 = vand.u32 4294901760, %v710_v7  ;;  %v12270_v1 = vsub.f32 %v7852_v41, %v7852_v41  ;;  %v19250_v7 = vand.u32 4294901760, %v12213_v17 }
  0xe4   : > { %10355 = vmatprep.subr.bf16.mxu0 %v19244_v32  ;;  %7891 = vmatmul.mubr.msk.f32.gmra.mrb[18].mxu1 %vm18537_vm12, %v19204_v56  ;;  %19246 = vst [vmem:[#allocation50_spill] sm:$0xff] %v12263_v53  ;;  %19247 = vst [vmem:[#allocation51_spill] sm:$0xff] %v12265_v6  ;;  %v19248_v32 = vpack.c.bf16 %v11743_v13, %v11741_v52  ;;  %vm18559_vm12 = vcmp.eq.s32.totalorder %v11825_v4, %v12265_v6 }
  0xe5   : > { %697 = vmatmul.mubr.f32.gmra.mrb[14].mxu0 %v696_v24  ;;  %7892 = vmatprep.mubr.msk.f32.mxu1 %vm18536_vm13, %v19204_v56  ;;  %v725_v24 = vsub.f32 %v12191_v28, %v19249_v26  ;;  %vm18555_vm13 = vcmp.eq.s32.totalorder %v11822_v22, %v12220_v45  ;;  %v734_v41 = vsub.f32 %v12213_v17, %v19250_v7  ;;  %v7861_v7 = vsel %vm18559_vm12, 1.0, %v19209_v63 }
  0xe6   : > { %706 = vmatprep.mubr.f32.mxu0 %v705_v0  ;;  %v720_v0 = vand.u32 4294901760, %v719_v33  ;;  %v12299_v33 = vsub.f32 %v7857_v59, %v7857_v59  ;;  %v19253_v59 = vand.u32 4294901760, %v12263_v53  ;;  %v19256_v62 = vand.u32 4294901760, %v12270_v1 }
  0xe7   : > { %10357 = vmatpush3.bf16.msra.mxu0 %v19248_v32  ;;  %v12297_v32 = vpop.permute.xlu0 %224  ;;  %v726_v26 = vand.u32 4294901760, %v725_v24  ;;  %v735_v17 = vand.u32 4294901760, %v734_v41  ;;  %v12336_v30 = vpop.permute.xlu1 %227 }
  0xe8   : > { %10391 = vmatprep.subr.bf16.mxu0 %v11814_v9  ;;  %7893 = vmatmul.mubr.msk.f32.gmra.mrb[20].mxu1 %vm18545_vm15, %v19204_v56  ;;  %19251 = vst [vmem:[#allocation52_spill] sm:$0xff] %v12297_v32  ;;  %v19252_v9 = vand.u32 4294901760, %v12238_v54  ;;  %v749_v44 = vsub.f32 %v12263_v53, %v19253_v59  ;;  %vm286_vm15 = vcmp.eq.s32.totalorder %v11825_v4, %v12297_v32  ;;  %19255 = vst [vmem:[#allocation54_spill] sm:$0xff] %v12336_v30 }
  0xe9   : > { %712 = vmatmul.mubr.f32.gmra.mrb[16].mxu0 %v711_v48  ;;  %7894 = vmatprep.mubr.msk.f32.mxu1 %vm18538_vm9, %v19204_v56  ;;  %v7856_v48 = vsel %vm18555_vm13, 1.0, %v19209_v63  ;;  %vm281_vm9 = vcmp.eq.s32.totalorder %v11822_v22, %v12265_v6  ;;  %v7865_v41 = vsel %vm286_vm15, 1.0, %v19209_v63  ;;  %v755_v53 = vsub.f32 %v12270_v1, %v19256_v62 }
  0xea   : > { %721 = vmatprep.mubr.f32.mxu0 %v720_v0  ;;  %v740_v0 = vsub.f32 %v12238_v54, %v19252_v9  ;;  %v12326_v24 = vsub.f32 %v7856_v48, %v7856_v48  ;;  %v12328_v9 = vsub.f32 %v7861_v7, %v7861_v7  ;;  %v7860_v59 = vsel %vm281_vm9, 1.0, %v19209_v63 }
  0xeb   : > { %v750_v7 = vand.u32 4294901760, %v749_v44  ;;  %v12350_v54 = vsub.f32 %v7860_v59, %v7860_v59  ;;  %v756_v59 = vand.u32 4294901760, %v755_v53 }
  0xec   : > { %7895 = vmatmul.mubr.msk.f32.gmra.mrb[22].mxu1 %vm273_vm11, %v19204_v56  ;;  %19254 = vst [vmem:[#allocation53_spill] sm:$0xff] %v12328_v9  ;;  %v741_v48 = vand.u32 4294901760, %v740_v0  ;;  %v18560_v62 = vand.u32 4294901760, %v12326_v24  ;;  %v18561_v0 = vand.u32 4294901760, %v12328_v9 }
  0xed   : > { %727 = vmatmul.mubr.f32.gmra.mrb[18].mxu0 %v726_v26  ;;  %7896 = vmatprep.mubr.msk.f32.mxu1 %vm18554_vm10, %v19204_v56  ;;  %v18556_v26 = vand.u32 4294901760, %v12299_v33  ;;  %vm285_vm10 = vcmp.eq.s32.totalorder %v11822_v22, %v12297_v32  ;;  %v19258_v32 = vld [vmem:[#allocation30_spill] sm:$0xff] }
  0xee   : > { %736 = vmatprep.mubr.f32.mxu0 %v735_v17  ;;  %v12352_v17 = vsub.f32 %v7865_v41, %v7865_v41  ;;  %v7864_v44 = vsel %vm285_vm10, 1.0, %v19209_v63  ;;  %v770_v41 = vsub.f32 %v12326_v24, %v18560_v62  ;;  %v779_v53 = vsub.f32 %v12328_v9, %v18561_v0 }
  0xef   : > { %v764_v28 = vsub.f32 %v12299_v33, %v18556_v26  ;;  %v12382_v45 = vsub.f32 %v7864_v44, %v7864_v44  ;;  %v18566_v62 = vand.u32 4294901760, %v12350_v54 }
  0xf0   : > { %7897 = vmatmul.mubr.msk.f32.gmra.mrb[24].mxu1 %vm18555_vm13, %v19204_v56  ;;  %vm290_vm13 = vcmp.eq.s32.totalorder %v11825_v4, %v12336_v30  ;;  %v780_v6 = vand.u32 4294901760, %v779_v53  ;;  %v19263_v4 = vld [vmem:[#allocation11_spill] sm:$0xff] }
  0xf1   : > { %742 = vmatmul.mubr.f32.gmra.mrb[20].mxu0 %v741_v48  ;;  %7898 = vmatprep.mubr.msk.f32.mxu1 %vm18559_vm12, %v19204_v56  ;;  %v7869_v48 = vsel %vm290_vm13, 1.0, %v19209_v63  ;;  %v765_v26 = vand.u32 4294901760, %v764_v28  ;;  %vm289_vm12 = vcmp.eq.s32.totalorder %v11822_v22, %v12336_v30  ;;  %v18567_v28 = vand.u32 4294901760, %v12352_v17 }
  0xf2   : > { %751 = vmatprep.mubr.f32.mxu0 %v750_v7  ;;  %v12391_v7 = vsub.f32 %v7869_v48, %v7869_v48  ;;  %v7868_v44 = vsel %vm289_vm12, 1.0, %v19209_v63  ;;  %v785_v48 = vsub.f32 %v12350_v54, %v18566_v62  ;;  %v18568_v9 = vand.u32 4294901760, %v12382_v45 }
  0xf3   : > { %v12401_v0 = vsub.f32 %v7868_v44, %v7868_v44  ;;  %v19259_v63 = vand.u32 4294901760, %v19258_v32 }
  0xf4   : > { %7899 = vmatmul.mubr.msk.f32.gmra.mrb[26].mxu1 %vm281_vm9, %v19204_v56  ;;  %v786_v44 = vand.u32 4294901760, %v785_v48  ;;  %v800_v53 = vsub.f32 %v12382_v45, %v18568_v9 }
  0xf5   : > { %757 = vmatmul.mubr.f32.gmra.mrb[22].mxu0 %v756_v59  ;;  %7900 = vmatprep.mubr.msk.f32.mxu1 %vm286_vm15, %v19204_v56  ;;  %v771_v59 = vand.u32 4294901760, %v770_v41  ;;  %v18576_v41 = vand.u32 4294901760, %v12391_v7  ;;  %v18579_v62 = vand.u32 4294901760, %v12401_v0 }
  0xf6   : > { %766 = vmatprep.mubr.f32.mxu0 %v765_v26  ;;  %v794_v26 = vsub.f32 %v12352_v17, %v18567_v28  ;;  %v801_v48 = vand.u32 4294901760, %v800_v53 }
  0xf7   : > { %v809_v28 = vsub.f32 %v12391_v7, %v18576_v41  ;;  %v815_v9 = vsub.f32 %v12401_v0, %v18579_v62  ;;  %v19262_v41 = vld [vmem:[#allocation10_spill] sm:$0xff] }
  0xf8   : > { %7901 = vmatmul.mubr.msk.f32.gmra.mrb[28].mxu1 %vm285_vm10, %v19204_v56 }
  0xf9   : > { %772 = vmatmul.mubr.f32.gmra.mrb[24].mxu0 %v771_v59  ;;  %7902 = vmatprep.mubr.msk.f32.mxu1 %vm290_vm13, %v19204_v56  ;;  %v795_v59 = vand.u32 4294901760, %v794_v26  ;;  %v810_v30 = vand.u32 4294901760, %v809_v28  ;;  %v19260_v26 = vld [vmem:[#allocation34_spill] sm:$0xff] }
  0xfa   : > { %781 = vmatprep.mubr.f32.mxu0 %v780_v6  ;;  %v19257_v6 = vand.u32 4294901760, %v11859_v20  ;;  %v19261_v22 = vand.u32 4294901760, %v19260_v26  ;;  %v19271_v28 = vld [vmem:[#allocation14_spill] sm:$0xff] }
  0xfc   : > { %7903 = vmatmul.mubr.msk.f32.gmra.mrb[30].mxu1 %vm289_vm12, %v19204_v56  ;;  %v12445_v56 = vld [vmem:[#allocation3 + $0x180] sm:$0xff] }
  0xfd   : > { %787 = vmatmul.mubr.f32.gmra.mrb[26].mxu0 %v786_v44  ;;  %1531 = vmatprep.mubr.f32.mxu1 %v19257_v6  ;;  %v816_v44 = vand.u32 4294901760, %v815_v9  ;;  %v19266_v6 = vld [vmem:[#allocation33_spill] sm:$0xff]  ;;  %v19270_v9 = vand.u32 4294901760, %v11388_v50  ;;  %v19276_v50 = vand.u32 4294901760, %v11401_v55 }
  0xfe   : > { %796 = vmatprep.mubr.f32.mxu0 %v795_v59  ;;  %v19264_v59 = vld [vmem:[#allocation35_spill] sm:$0xff]  ;;  %v19267_v62 = vand.u32 4294901760, %v19266_v6 }
  0xff   : > { %v19265_v53 = vand.u32 4294901760, %v19264_v59 }
 0x100   : > { %1535 = vmatmul.mubr.f32.vlgmr.msra.gmra.mrb[32].mxu1 %v19259_v63  ;;  %v12447_v63 = vld [vmem:[#allocation3 + $0x188] sm:$0xff] }
 0x101   : > { %802 = vmatmul.mubr.f32.gmra.mrb[28].mxu0 %v801_v48  ;;  %1542 = vmatprep.mubr.f32.mxu1 %v19261_v22  ;;  %v19268_v22 = vld [vmem:[#allocation12_spill] sm:$0xff]  ;;  %v2239_v48 = vand.u32 4294901760, %v12447_v63 }
 0x102   : > { %811 = vmatprep.mubr.f32.mxu0 %v810_v30  ;;  %10425 = vmatpush3.bf16.msra.mxu1 %v19262_v41  ;;  %v19269_v30 = vand.u32 4294901760, %v11382_v46  ;;  %v19272_v41 = vand.u32 4294901760, %v11892_v18  ;;  %v19275_v46 = vand.u32 4294901760, %v11393_v51 }
 0x103   : > { %10427 = vmatprep.subr.bf16.mxu1 %v19263_v4  ;;  %v12485_v55 = vsub.f32 %v12447_v63, %v2239_v48 }
 0x104   : > { %1546 = vmatmul.mubr.f32.gmra.mrb[34].mxu1 %v19265_v53  ;;  %v10394_v4 = vpack.c.bf16 %v19270_v9, %v19269_v30  ;;  %v10396_v53 = vpack.c.bf16 %v19276_v50, %v19275_v46  ;;  %v19278_v30 = vand.u32 4294901760, %v11459_v3  ;;  %v19289_v46 = vand.u32 4294901760, %v11505_v38  ;;  %v19295_v38 = vld [vmem:[#allocation13_spill] sm:$0xff] }
 0x105   : > { %817 = vmatmul.mubr.f32.gmra.mrb[30].mxu0 %v816_v44  ;;  %1553 = vmatprep.mubr.f32.mxu1 %v19267_v62  ;;  %v2236_v62 = vand.u32 4294901760, %v12445_v56  ;;  %v19274_v44 = vld [vmem:[#allocation9_spill] sm:$0xff]  ;;  %19283 = vst [vmem:[#allocation34_spill] sm:$0xff] %v12485_v55 }
 0x106   : > { %1289 = vmatprep.mubr.f32.mxu0 %v11859_v20  ;;  %10429 = vmatpush3.bf16.msra.mxu1 %v19268_v22  ;;  %v19273_v20 = vand.u32 4294901760, %v11927_v40  ;;  %v19277_v22 = vand.u32 4294901760, %v11456_v2  ;;  %v19284_v2 = vld [vmem:[#allocation39_spill] sm:$0xff] }
 0x107   : > { %10431 = vmatprep.subr.bf16.mxu1 %v19271_v28  ;;  %v19279_v28 = vld [vmem:[#allocation15_spill] sm:$0xff]  ;;  %v12480_v51 = vsub.f32 %v12445_v56, %v2236_v62  ;;  %v19285_v3 = vand.u32 4294901760, %v19284_v2 }
 0x108   : > { %1557 = vmatmul.mubr.f32.gmra.mrb[36].mxu1 %v19272_v41  ;;  %v10398_v9 = vpack.c.bf16 %v19278_v30, %v19277_v22  ;;  %v19281_v41 = vld [vmem:[#allocation16_spill] sm:$0xff]  ;;  %v19290_v22 = vld [vmem:[#allocation17_spill] sm:$0xff]  ;;  %v19292_v30 = vld [vmem:[#allocation18_spill] sm:$0xff] }
 0x109   : > { %1292 = vmatmul.mubr.f32.vlgmr.msra.gmra.mrb[32].mxu0 %v19258_v32  ;;  %1564 = vmatprep.mubr.f32.mxu1 %v19273_v20  ;;  %v19280_v32 = vand.u32 4294901760, %v11935_v25  ;;  %19282 = vst [vmem:[#allocation30_spill] sm:$0xff] %v12480_v51 }
 0x10a   : > { %10393 = vmatpush3.bf16.msra.mxu0 %v19274_v44  ;;  %1298 = vmatprep.mubr.f32.mxu0 %v19260_v26  ;;  %v19286_v26 = vand.u32 4294901760, %v11469_v34  ;;  %v19288_v44 = vand.u32 4294901760, %v11500_v21  ;;  %v18585_v34 = vand.u32 4294901760, %v12485_v55  ;;  %v19294_v21 = vand.u32 4294901760, %v11517_v36 }
 0x10b   : > { %10395 = vmatprep.subr.bf16.mxu0 %v10394_v4  ;;  %10433 = vmatpush3.bf16.msra.mxu1 %v19279_v28  ;;  %v19287_v4 = vand.u32 4294901760, %v11474_v35  ;;  %v19293_v35 = vand.u32 4294901760, %v12007_v60  ;;  %v19297_v28 = vand.u32 4294901760, %v11581_v47  ;;  %v19303_v47 = vand.u32 4294901760, %v12031_v49 }
 0x10c   : > { %1568 = vmatmul.mubr.f32.gmra.mrb[38].mxu1 %v19280_v32  ;;  %10435 = vmatprep.subr.bf16.mxu1 %v19281_v41  ;;  %v10402_v50 = vpack.c.bf16 %v19289_v46, %v19288_v44  ;;  %v19298_v32 = vand.u32 4294901760, %v11586_v27  ;;  %v19304_v27 = vand.u32 4294901760, %v11600_v61  ;;  %v19306_v46 = vand.u32 4294901760, %v11616_v39  ;;  %v19310_v61 = vld [vmem:[#allocation44_spill] sm:$0xff] }
 0x10d   : > { %1301 = vmatmul.mubr.f32.gmra.mrb[34].mxu0 %v19264_v59  ;;  %1575 = vmatprep.mubr.f32.mxu1 %v19285_v3  ;;  %v10400_v20 = vpack.c.bf16 %v19287_v4, %v19286_v26  ;;  %v19291_v59 = vand.u32 4294901760, %v11975_v31  ;;  %v19299_v3 = vld [vmem:[#allocation19_spill] sm:$0xff]  ;;  %v19302_v4 = vld [vmem:[#allocation20_spill] sm:$0xff]  ;;  %v19312_v39 = vand.u32 4294901760, %v11655_v10 }
 0x10e   : > { %1307 = vmatprep.mubr.f32.mxu0 %v19266_v6  ;;  %10397 = vmatpush3.bf16.msra.mxu0 %v10396_v53  ;;  %v18587_v6 = vand.u32 4294901760, %v12480_v51  ;;  %v19296_v53 = vand.u32 4294901760, %v19295_v38  ;;  %v10406_v41 = vpack.c.bf16 %v19298_v32, %v19297_v28  ;;  %v12561_v28 = vld [vmem:[#allocation3 + $0x108] sm:$0xff] }
 0x10f   : > { %10399 = vmatprep.subr.bf16.mxu0 %v10398_v9  ;;  %10437 = vmatpush3.bf16.msra.mxu1 %v19290_v22 }
 0x110   : > { %1579 = vmatmul.mubr.f32.gmra.mrb[40].mxu1 %v19291_v59  ;;  %10439 = vmatprep.subr.bf16.mxu1 %v19292_v30  ;;  %v10404_v9 = vpack.c.bf16 %v19296_v53, %v19294_v21  ;;  %v2640_v36 = vsub.f32 %v12480_v51, %v18587_v6  ;;  %v19309_v59 = vld [vmem:[#allocation22_spill] sm:$0xff]  ;;  %v19315_v21 = vand.u32 4294901760, %v11695_v12  ;;  %v19316_v53 = vld [vmem:[#allocation23_spill] sm:$0xff]  ;;  %v19321_v12 = vand.u32 4294901760, %v11711_v29 }
 0x111   : > { %1310 = vmatmul.mubr.f32.gmra.mrb[36].mxu0 %v11892_v18  ;;  %1586 = vmatprep.mubr.f32.mxu1 %v19293_v35  ;;  %v19300_v18 = vld [vmem:[#allocation41_spill] sm:$0xff]  ;;  %v19314_v35 = vand.u32 4294901760, %v11692_v11  ;;  %v19320_v11 = vand.u32 4294901760, %v11700_v14  ;;  %v471_v14 = vld [vmem:[#allocation3 + $0x190] sm:$0xff]  ;;  %v19326_v29 = vand.u32 4294901760, %v12175_v37 }
 0x112   : > { %1316 = vmatprep.mubr.f32.mxu0 %v11927_v40  ;;  %10401 = vmatpush3.bf16.msra.mxu0 %v10400_v20  ;;  %v19301_v26 = vand.u32 4294901760, %v19300_v18  ;;  %v2647_v40 = vsub.f32 %v12485_v55, %v18585_v34  ;;  %v19305_v20 = vand.u32 4294901760, %v11603_v43  ;;  %v19311_v43 = vand.u32 4294901760, %v19310_v61  ;;  %v12738_v34 = vld [vmem:[#allocation3 + $0x1c8] sm:$0xff] }
 0x113   : > { %10403 = vmatprep.subr.bf16.mxu0 %v10402_v50  ;;  %10441 = vmatpush3.bf16.msra.mxu1 %v19299_v3  ;;  %v19307_v50 = vand.u32 4294901760, %v11633_v42  ;;  %v19313_v42 = vand.u32 4294901760, %v11658_v5  ;;  %v10414_v38 = vpack.c.bf16 %v19315_v21, %v19314_v35  ;;  %v19319_v5 = vand.u32 4294901760, %v12119_v19  ;;  %v19322_v3 = vld [vmem:[#allocation25_spill] sm:$0xff] }
 0x114   : > { %1590 = vmatmul.mubr.f32.gmra.mrb[42].mxu1 %v19301_v26  ;;  %10443 = vmatprep.subr.bf16.mxu1 %v19302_v4  ;;  %v10408_v44 = vpack.c.bf16 %v19305_v20, %v19304_v27  ;;  %v2648_v30 = vand.u32 4294901760, %v2647_v40  ;;  %v10416_v32 = vpack.c.bf16 %v19321_v12, %v19320_v11  ;;  %v19323_v26 = vand.u32 4294901760, %v11726_v16  ;;  %v472_v40 = vld [vmem:[#allocation3 + $0x198] sm:$0xff]  ;;  %v12591_v20 = vld [vmem:[#allocation3 + $0x110] sm:$0xff]  ;;  %v19338_v35 = vld [vmem:[#allocation49_spill] sm:$0xff] }
 0x115   : > { %1319 = vmatmul.mubr.f32.gmra.mrb[38].mxu0 %v11935_v25  ;;  %1597 = vmatprep.mubr.f32.mxu1 %v19303_v47  ;;  %v10410_v22 = vpack.c.bf16 %v19307_v50, %v19306_v46  ;;  %v19308_v25 = vand.u32 4294901760, %v12076_v58  ;;  %v19327_v16 = vand.u32 4294901760, %v11741_v52  ;;  %v12595_v46 = vld [vmem:[#allocation3 + $0x1a0] sm:$0xff]  ;;  %v2245_v50 = vand.u32 4294901760, %v472_v40 }
 0x116   : > { %1325 = vmatprep.mubr.f32.mxu0 %v19284_v2  ;;  %10405 = vmatpush3.bf16.msra.mxu0 %v10404_v9  ;;  %v2641_v2 = vand.u32 4294901760, %v2640_v36  ;;  %v19317_v9 = vand.u32 4294901760, %v12117_v57  ;;  %v2191_v36 = vand.u32 4294901760, %v12561_v28  ;;  %v2194_v56 = vand.u32 4294901760, %v12591_v20 }
 0x117   : > { %10407 = vmatprep.subr.bf16.mxu0 %v10406_v41  ;;  %10445 = vmatpush3.bf16.msra.mxu1 %v19229_v15  ;;  %v10412_v15 = vpack.c.bf16 %v19313_v42, %v19312_v39  ;;  %v12625_v42 = vld [vmem:[#allocation3 + $0x120] sm:$0xff]  ;;  %v19339_v21 = vand.u32 4294901760, %v19338_v35 }
 0x118   : > { %1601 = vmatmul.mubr.f32.gmra.mrb[44].mxu1 %v19308_v25  ;;  %10447 = vmatprep.subr.bf16.mxu1 %v19309_v59  ;;  %v10486_v10 = vpack.c.bf16 %v2648_v30, %v2641_v2  ;;  %v12604_v52 = vsub.f32 %v12561_v28, %v2191_v36  ;;  %v12608_v59 = vld [vmem:[#allocation3 + $0x1a8] sm:$0xff]  ;;  %v19334_v2 = vld [vmem:[#allocation47_spill] sm:$0xff] }
 0x119   : > { %1328 = vmatmul.mubr.f32.gmra.mrb[40].mxu0 %v11975_v31  ;;  %1608 = vmatprep.mubr.f32.mxu1 %v19311_v43  ;;  %v12556_v31 = vld [vmem:[#allocation3 + $0x100] sm:$0xff]  ;;  %v19335_v30 = vand.u32 4294901760, %v19334_v2  ;;  %v2251_v39 = vand.u32 4294901760, %v12608_v59 }
 0x11a   : > { %1334 = vmatprep.mubr.f32.mxu0 %v12007_v60  ;;  %10409 = vmatpush3.bf16.msra.mxu0 %v10408_v44  ;;  %v19318_v60 = vld [vmem:[#allocation24_spill] sm:$0xff]  ;;  %v2188_v41 = vand.u32 4294901760, %v12556_v31  ;;  %19331 = vst [vmem:[#allocation35_spill] sm:$0xff] %v12604_v52 }
 0x11b   : > { %10411 = vmatprep.subr.bf16.mxu0 %v10410_v22  ;;  %10449 = vmatpush3.bf16.msra.mxu1 %v19316_v53  ;;  %v12593_v44 = vld [vmem:[#allocation3 + $0x118] sm:$0xff]  ;;  %v19332_v22 = vld [vmem:[#allocation46_spill] sm:$0xff]  ;;  %v12637_v53 = vsub.f32 %v12591_v20, %v2194_v56 }
 0x11c   : > { %1612 = vmatmul.mubr.f32.gmra.mrb[46].mxu1 %v19317_v9  ;;  %10451 = vmatprep.subr.bf16.mxu1 %v19318_v60  ;;  %v12589_v27 = vsub.f32 %v12556_v31, %v2188_v41  ;;  %v19333_v25 = vand.u32 4294901760, %v19332_v22  ;;  %v2197_v63 = vand.u32 4294901760, %v12593_v44  ;;  %v12649_v60 = vld [vmem:[#allocation3 + $0x1b0] sm:$0xff] }
 0x11d   : > { %1337 = vmatmul.mubr.f32.gmra.mrb[42].mxu0 %v19300_v18  ;;  %1619 = vmatprep.mubr.f32.mxu1 %v19319_v5  ;;  %v19324_v18 = vand.u32 4294901760, %v11731_v8  ;;  %v19328_v8 = vand.u32 4294901760, %v11743_v13  ;;  %v2242_v13 = vand.u32 4294901760, %v471_v14  ;;  %19342 = vst [vmem:[#allocation14_spill] sm:$0xff] %v12637_v53 }
 0x11e   : > { %1343 = vmatprep.mubr.f32.mxu0 %v12031_v49  ;;  %10413 = vmatpush3.bf16.msra.mxu0 %v10412_v15  ;;  %v19325_v49 = vand.u32 4294901760, %v12149_v23  ;;  %19329 = vst [vmem:[#allocation10_spill] sm:$0xff] %v12589_v27  ;;  %v12627_v15 = vld [vmem:[#allocation3 + $0x128] sm:$0xff]  ;;  %v12642_v31 = vsub.f32 %v12593_v44, %v2197_v63 }
 0x11f   : > { %10415 = vmatprep.subr.bf16.mxu0 %v10414_v38  ;;  %10453 = vmatpush3.bf16.msra.mxu1 %v19322_v3  ;;  %v10418_v4 = vpack.c.bf16 %v19324_v18, %v19323_v26  ;;  %v10420_v47 = vpack.c.bf16 %v19328_v8, %v19327_v16  ;;  %v12620_v43 = vsub.f32 %v471_v14, %v2242_v13  ;;  %v18594_v5 = vand.u32 4294901760, %v12627_v15  ;;  %v12681_v16 = vld [vmem:[#allocation3 + $0x130] sm:$0xff] }
 0x120   : > { %1623 = vmatmul.mubr.f32.gmra.mrb[48].mxu1 %v19325_v49  ;;  %10487 = vmatprep.subr.bf16.mxu1 %v10486_v10  ;;  %19343 = vst [vmem:[#allocation9_spill] sm:$0xff] %v12642_v31  ;;  %v18599_v10 = vand.u32 4294901760, %v12625_v42  ;;  %v19346_v3 = vand.u32 4294901760, %v12270_v1  ;;  %v18593_v26 = vand.u32 4294901760, %v12649_v60  ;;  %v12676_v49 = vpack.c.bf16 %v2191_v36, %v2188_v41 }
 0x121   : > { %1346 = vmatmul.mubr.f32.gmra.mrb[44].mxu0 %v12076_v58  ;;  %1630 = vmatprep.mubr.f32.mxu1 %v19326_v29  ;;  %v12601_v58 = vpack.c.bf16 %v2239_v48, %v2236_v62  ;;  %v2248_v62 = vand.u32 4294901760, %v12595_v46  ;;  %v18584_v48 = vand.u32 4294901760, %v12589_v27  ;;  %19336 = vst [vmem:[#allocation33_spill] sm:$0xff] %v12620_v43  ;;  %v18582_v12 = vand.u32 4294901760, %v12620_v43 }
 0x122   : > { %1352 = vmatprep.mubr.f32.mxu0 %v19310_v61  ;;  %10417 = vmatpush3.bf16.msra.mxu0 %v10416_v32  ;;  %v18583_v61 = vand.u32 4294901760, %v12604_v52  ;;  %19348 = vst [vmem:[#allocation39_spill] sm:$0xff] %v12676_v49  ;;  %v18586_v14 = vand.u32 4294901760, %v12637_v53  ;;  %v12694_v41 = vsub.f32 %v12627_v15, %v18594_v5 }
 0x123   : > { %10419 = vmatprep.subr.bf16.mxu0 %v10418_v4  ;;  %19330 = vst [vmem:[#allocation11_spill] sm:$0xff] %v12601_v58  ;;  %v12647_v9 = vsub.f32 %v12595_v46, %v2248_v62  ;;  %v2528_v28 = vsub.f32 %v12589_v27, %v18584_v48  ;;  %v19347_v4 = vand.u32 4294901760, %v12299_v33  ;;  %v12882_v27 = vld [vmem:[#allocation3 + $0x160] sm:$0xff] }
 0x124   : > { %1634 = vmatmul.mubr.f32.gmra.mrb[50].mxu1 %v19333_v25  ;;  %v2535_v11 = vsub.f32 %v12604_v52, %v18583_v61  ;;  %19351 = vst [vmem:[#allocation13_spill] sm:$0xff] %v12694_v41  ;;  %v2654_v25 = vsub.f32 %v12620_v43, %v18582_v12  ;;  %v19390_v52 = vld [vmem:[#allocation28_spill] sm:$0xff] }
 0x125   : > { %1355 = vmatmul.mubr.f32.gmra.mrb[46].mxu0 %v12117_v57  ;;  %1641 = vmatprep.mubr.f32.mxu1 %v19335_v30  ;;  %v12622_v57 = vsub.f32 %v472_v40, %v2245_v50  ;;  %19344 = vst [vmem:[#allocation15_spill] sm:$0xff] %v12647_v9  ;;  %v18589_v40 = vand.u32 4294901760, %v12642_v31  ;;  %v18588_v29 = vand.u32 4294901760, %v12647_v9  ;;  %v2529_v8 = vand.u32 4294901760, %v2528_v28 }
 0x126   : > { %1361 = vmatprep.mubr.f32.mxu0 %v12119_v19  ;;  %10421 = vmatpush3.bf16.msra.mxu0 %v10420_v47  ;;  %v19340_v19 = vld [vmem:[#allocation50_spill] sm:$0xff]  ;;  %v12684_v47 = vpack.c.bf16 %v2245_v50, %v2242_v13  ;;  %v2536_v36 = vand.u32 4294901760, %v2535_v11  ;;  %v19352_v30 = vand.u32 4294901760, %v12326_v24  ;;  %v18592_v28 = vand.u32 4294901760, %v12681_v16  ;;  %v12718_v11 = vld [vmem:[#allocation3 + $0x1c0] sm:$0xff] }
 0x127   : > { %10455 = vmatprep.subr.bf16.mxu0 %v12601_v58  ;;  %19337 = vst [vmem:[#allocation12_spill] sm:$0xff] %v12622_v57  ;;  %v19341_v38 = vand.u32 4294901760, %v19340_v19  ;;  %v18581_v32 = vand.u32 4294901760, %v12622_v57  ;;  %v2549_v12 = vsub.f32 %v12642_v31, %v18589_v40  ;;  %v2668_v61 = vsub.f32 %v12647_v9, %v18588_v29  ;;  %v12908_v9 = vld [vmem:[#allocation3 + $0x1f8] sm:$0xff] }
 0x128   : > { %1645 = vmatmul.mubr.f32.gmra.mrb[52].mxu1 %v19339_v21  ;;  %19349 = vst [vmem:[#allocation17_spill] sm:$0xff] %v12684_v47  ;;  %v12710_v21 = vsub.f32 %v12649_v60, %v18593_v26  ;;  %v12742_v6 = vpack.c.bf16 %v2536_v36, %v2529_v8  ;;  %v12748_v29 = vpack.c.bf16 %v2197_v63, %v2194_v56  ;;  %v18598_v40 = vand.u32 4294901760, %v12718_v11  ;;  %v12763_v56 = vld [vmem:[#allocation3 + $0x140] sm:$0xff]  ;;  %v12765_v63 = vld [vmem:[#allocation3 + $0x148] sm:$0xff] }
 0x129   : > { %1364 = vmatmul.mubr.f32.gmra.mrb[48].mxu0 %v12149_v23  ;;  %1652 = vmatprep.mubr.f32.mxu1 %v19341_v38  ;;  %v12651_v23 = vld [vmem:[#allocation3 + $0x1b8] sm:$0xff]  ;;  %v2661_v13 = vsub.f32 %v12622_v57, %v18581_v32  ;;  %v2542_v32 = vsub.f32 %v12637_v53, %v18586_v14  ;;  %v12759_v8 = vsub.f32 %v12681_v16, %v18592_v28  ;;  %v19360_v36 = vand.u32 4294901760, %v12352_v17  ;;  %v12892_v53 = vld [vmem:[#allocation3 + $0x168] sm:$0xff] }
 0x12a   : > { %1370 = vmatprep.mubr.f32.mxu0 %v12175_v37  ;;  %v12667_v37 = vsub.f32 %v12608_v59, %v2251_v39  ;;  %v18590_v18 = vand.u32 4294901760, %v12651_v23  ;;  %19353 = vst [vmem:[#allocation19_spill] sm:$0xff] %v12710_v21  ;;  %19357 = vst [vmem:[#allocation20_spill] sm:$0xff] %v12748_v29  ;;  %v18600_v20 = vand.u32 4294901760, %v12710_v21  ;;  %v18602_v14 = vand.u32 4294901760, %v12738_v34  ;;  %v12838_v59 = vld [vmem:[#allocation3 + $0x158] sm:$0xff] }
 0x12b   : > { %19359 = vst [vmem:[#allocation22_spill] sm:$0xff] %v12759_v8  ;;  %v2669_v28 = vand.u32 4294901760, %v2668_v61  ;;  %v18603_v61 = vand.u32 4294901760, %v12763_v56  ;;  %v19374_v46 = vand.u32 4294901760, %v12759_v8  ;;  %v19393_v58 = vand.u32 4294901760, %v12882_v27 }
 0x12c   : > { %19345 = vst [vmem:[#allocation16_spill] sm:$0xff] %v12667_v37  ;;  %1656 = vmatmul.mubr.f32.gmra.mrb[54].mxu1 %v19346_v3  ;;  %v18591_v50 = vand.u32 4294901760, %v12667_v37  ;;  %v12715_v38 = vsub.f32 %v12651_v23, %v18590_v18  ;;  %v19358_v3 = vand.u32 4294901760, %v12350_v54 }
 0x12d   : > { %1373 = vmatmul.mubr.f32.gmra.mrb[50].mxu0 %v19332_v22  ;;  %1663 = vmatprep.mubr.f32.mxu1 %v19347_v4  ;;  %v12689_v22 = vsub.f32 %v12625_v42, %v18599_v10  ;;  %v19355_v4 = vld [vmem:[#allocation53_spill] sm:$0xff] }
 0x12e   : > { %1379 = vmatprep.mubr.f32.mxu0 %v19334_v2  ;;  %v12703_v2 = vld [vmem:[#allocation3 + $0x138] sm:$0xff]  ;;  %19354 = vst [vmem:[#allocation41_spill] sm:$0xff] %v12715_v38  ;;  %v2675_v18 = vsub.f32 %v12667_v37, %v18591_v50  ;;  %v18601_v44 = vand.u32 4294901760, %v12715_v38  ;;  %v2550_v50 = vand.u32 4294901760, %v2549_v12 }
 0x12f   : > { %19350 = vst [vmem:[#allocation18_spill] sm:$0xff] %v12689_v22  ;;  %v18596_v48 = vand.u32 4294901760, %v12689_v22  ;;  %v12785_v12 = vld [vmem:[#allocation3 + $0x1d8] sm:$0xff] }
 0x130   : > { %1667 = vmatmul.mubr.f32.gmra.mrb[56].mxu1 %v19352_v30  ;;  %v19356_v30 = vand.u32 4294901760, %v19355_v4  ;;  %v12952_v37 = vld [vmem:[#allocation3 + $0x178] sm:$0xff] }
 0x131   : > { %1382 = vmatmul.mubr.f32.gmra.mrb[52].mxu0 %v19338_v35  ;;  %v18595_v35 = vand.u32 4294901760, %v12694_v41  ;;  %v2556_v26 = vsub.f32 %v12689_v22, %v18596_v48  ;;  %v2676_v48 = vand.u32 4294901760, %v2675_v18  ;;  %v2570_v18 = vsub.f32 %v12759_v8, %v19374_v46  ;;  %v12906_v46 = vld [vmem:[#allocation3 + $0x1f0] sm:$0xff] }
 0x132   : > { %1674 = vmatprep.mubr.f32.mxu1 %v19356_v30  ;;  %1388 = vmatprep.mubr.f32.mxu0 %v19340_v19  ;;  %v18597_v30 = vand.u32 4294901760, %v12703_v2  ;;  %v2655_v19 = vand.u32 4294901760, %v2654_v25  ;;  %v2662_v25 = vand.u32 4294901760, %v2661_v13  ;;  %v19364_v13 = vand.u32 4294901760, %v12391_v7 }
 0x133   : > { %v2563_v5 = vsub.f32 %v12694_v41, %v18595_v35  ;;  %v19363_v35 = vand.u32 4294901760, %v12382_v45  ;;  %v2571_v57 = vand.u32 4294901760, %v2570_v18 }
 0x134   : > { %1678 = vmatmul.mubr.f32.gmra.mrb[58].mxu1 %v19358_v3  ;;  %v2543_v3 = vand.u32 4294901760, %v2542_v32  ;;  %v12783_v32 = vld [vmem:[#allocation3 + $0x1d0] sm:$0xff] }
 0x135   : > { %1391 = vmatmul.mubr.f32.gmra.mrb[54].mxu0 %v12270_v1  ;;  %1685 = vmatprep.mubr.f32.mxu1 %v19360_v36  ;;  %v12781_v1 = vsub.f32 %v12703_v2, %v18597_v30  ;;  %v2682_v30 = vsub.f32 %v12710_v21, %v18600_v20  ;;  %v2564_v10 = vand.u32 4294901760, %v2563_v5  ;;  %v12828_v20 = vsub.f32 %v12763_v56, %v18603_v61 }
 0x136   : > { %1397 = vmatprep.mubr.f32.mxu0 %v12299_v33  ;;  %v12790_v33 = vsub.f32 %v12718_v11, %v18598_v40  ;;  %v2689_v40 = vsub.f32 %v12715_v38, %v18601_v44  ;;  %v10490_v44 = vpack.c.bf16 %v2662_v25, %v2655_v19  ;;  %v19368_v36 = vand.u32 4294901760, %v12765_v63  ;;  %v12836_v19 = vld [vmem:[#allocation3 + $0x150] sm:$0xff] }
 0x137   : > { %19361 = vst [vmem:[#allocation44_spill] sm:$0xff] %v12781_v1  ;;  %19367 = vst [vmem:[#allocation46_spill] sm:$0xff] %v12828_v20  ;;  %v12842_v5 = vpack.c.bf16 %v2676_v48, %v2669_v28  ;;  %v19371_v61 = vmov 1.0   ;;  %v12865_v28 = vld [vmem:[#allocation3 + $0x1e8] sm:$0xff]  ;;  %v19386_v41 = vand.u32 4294901760, %v12828_v20  ;;  %v19394_v21 = vand.u32 4294901760, %v12892_v53 }
 0x138   : > { %19362 = vst [vmem:[#allocation23_spill] sm:$0xff] %v12790_v33  ;;  %1689 = vmatmul.mubr.f32.gmra.mrb[60].mxu1 %v19363_v35  ;;  %v12811_v35 = vsub.f32 %v12738_v34, %v18602_v14  ;;  %v2690_v25 = vand.u32 4294901760, %v2689_v40  ;;  %v19372_v14 = vld [vmem:[#allocation27_spill] sm:$0xff]  ;;  %v19377_v40 = vand.u32 4294901760, %v12785_v12 }
 0x139   : > { %1400 = vmatmul.mubr.f32.gmra.mrb[56].mxu0 %v12326_v24  ;;  %1696 = vmatprep.mubr.f32.mxu1 %v19364_v13  ;;  %v12822_v24 = vpack.c.bf16 %v2251_v39, %v2248_v62  ;;  %v2557_v13 = vand.u32 4294901760, %v2556_v26  ;;  %v19370_v62 = vand.u32 4294901760, %v12401_v0  ;;  %v10492_v39 = vpack.c.bf16 %v2550_v50, %v2543_v3  ;;  %v12863_v50 = vld [vmem:[#allocation3 + $0x1e0] sm:$0xff] }
 0x13a   : > { %19365 = vst [vmem:[#allocation24_spill] sm:$0xff] %v12811_v35  ;;  %1406 = vmatprep.mubr.f32.mxu0 %v19355_v4  ;;  %v12833_v4 = vsub.f32 %v12765_v63, %v19368_v36  ;;  %v2683_v26 = vand.u32 4294901760, %v2682_v30  ;;  %v19373_v36 = vld [vmem:[#allocation29_spill] sm:$0xff]  ;;  %v19379_v30 = vand.u32 4294901760, %v12781_v1  ;;  %v12984_v38 = vsub.f32 %v12892_v53, %v19394_v21 }
 0x13b   : > { %19366 = vst [vmem:[#allocation25_spill] sm:$0xff] %v12822_v24  ;;  %v12875_v31 = vpack.c.bf16 %v2564_v10, %v2557_v13  ;;  %v19396_v21 = vand.u32 4294901760, %v12908_v9 }
 0x13c   : > { %19369 = vst [vmem:[#allocation47_spill] sm:$0xff] %v12833_v4  ;;  %1700 = vmatmul.mubr.f32.gmra.mrb[62].mxu1 %v19370_v62  ;;  %v19375_v62 = vand.u32 4294901760, %v12783_v32  ;;  %v2577_v3 = vsub.f32 %v12781_v1, %v19379_v30  ;;  %v19381_v30 = vld [vmem:[#allocation26_spill] sm:$0xff] }
 0x13d   : > { %1409 = vmatmul.mubr.f32.gmra.mrb[58].mxu0 %v12350_v54  ;;  %7936 = vmatprep.mubr.msk.f32.mxu1 %vm230_vm0, %v19371_v61  ;;  %v12861_v54 = vsub.f32 %v12785_v12, %v19377_v40  ;;  %v19380_v40 = vand.u32 4294901760, %v12790_v33 }
 0x13e   : > { %v12856_v48 = vsub.f32 %v12783_v32, %v19375_v62  ;;  %1415 = vmatprep.mubr.f32.mxu0 %v12352_v17  ;;  %v12888_v62 = vpack.c.bf16 %v2690_v25, %v2683_v26  ;;  %v19382_v17 = vld [vmem:[#allocation32_spill] sm:$0xff]  ;;  %v19383_v26 = vand.u32 4294901760, %v12811_v35 }
 0x13f   : > { %19378 = vst [vmem:[#allocation50_spill] sm:$0xff] %v12861_v54  ;;  %v2696_v43 = vsub.f32 %v12790_v33, %v19380_v40  ;;  %v19384_v40 = vand.u32 4294901760, %v12836_v19 }
 0x140   : > { %19376 = vst [vmem:[#allocation49_spill] sm:$0xff] %v12856_v48  ;;  %7937 = vmatmul.mubr.msk.f32.vlgmr.msra.gmra.mrb[64].mxu1 %vm229_vm1, %v19371_v61  ;;  %v2703_v25 = vsub.f32 %v12811_v35, %v19383_v26  ;;  %v19385_v26 = vand.u32 4294901760, %v12838_v59  ;;  %v19391_v51 = vand.u32 4294901760, %v12856_v48 }
 0x141   : > { %1418 = vmatmul.mubr.f32.gmra.mrb[60].mxu0 %v12382_v45  ;;  %7938 = vmatprep.mubr.msk.f32.mxu1 %vm234_vm4, %v19371_v61  ;;  %v2578_v45 = vand.u32 4294901760, %v2577_v3  ;;  %v12915_v18 = vsub.f32 %v12836_v19, %v19384_v40  ;;  %v2697_v22 = vand.u32 4294901760, %v2696_v43  ;;  %v12950_v40 = vld [vmem:[#allocation3 + $0x170] sm:$0xff] }
 0x142   : > { %1424 = vmatprep.mubr.f32.mxu0 %v12391_v7  ;;  %10489 = vmatpush3.bf16.msra.mxu1 %v12742_v6  ;;  %v12920_v10 = vsub.f32 %v12838_v59, %v19385_v26  ;;  %v12926_v7 = vsub.f32 %v12828_v20, %v19386_v41  ;;  %v19387_v6 = vand.u32 4294901760, %v12833_v4  ;;  %v19389_v41 = vand.u32 4294901760, %v12865_v28 }
 0x143   : > { %10491 = vmatprep.subr.bf16.mxu1 %v10490_v44  ;;  %v19388_v44 = vand.u32 4294901760, %v12863_v50  ;;  %v10500_v55 = vpack.c.bf16 %v2578_v45, %v2571_v57  ;;  %v19395_v57 = vand.u32 4294901760, %v12906_v46  ;;  %v13002_v45 = vsub.f32 %v12908_v9, %v19396_v21 }
 0x144   : > { %v12931_v3 = vsub.f32 %v12833_v4, %v19387_v6  ;;  %7939 = vmatmul.mubr.msk.f32.gmra.mrb[66].mxu1 %vm233_vm5, %v19371_v61  ;;  %v12946_v26 = vsub.f32 %v12865_v28, %v19389_v41  ;;  %v2710_v41 = vsub.f32 %v12856_v48, %v19391_v51  ;;  %v19392_v6 = vand.u32 4294901760, %v12861_v54 }
 0x145   : > { %v12941_v43 = vsub.f32 %v12863_v50, %v19388_v44  ;;  %1427 = vmatmul.mubr.f32.gmra.mrb[62].mxu0 %v12401_v0  ;;  %7940 = vmatprep.mubr.msk.f32.mxu1 %vm238_vm2, %v19371_v61  ;;  %v2704_v44 = vand.u32 4294901760, %v2703_v25  ;;  %v18638_v0 = vand.u32 4294901760, %v12915_v18  ;;  %v12976_v51 = vsub.f32 %v12882_v27, %v19393_v58  ;;  %v19397_v58 = vld [vmem:[#allocation31_spill] sm:$0xff] }
 0x146   : > { %v2717_v13 = vsub.f32 %v12861_v54, %v19392_v6  ;;  %7904 = vmatprep.mubr.msk.f32.mxu0 %vm230_vm0, %v19371_v61  ;;  %10493 = vmatpush3.bf16.msra.mxu1 %v10492_v39  ;;  %v2585_v25 = vand.u32 4294901760, %v12926_v7  ;;  %v2711_v39 = vand.u32 4294901760, %v2710_v41  ;;  %v19398_v1 = vand.u32 4294901760, %v12920_v10 }
 0x147   : > { %10495 = vmatprep.subr.bf16.mxu1 %v12842_v5  ;;  %v12997_v5 = vsub.f32 %v12906_v46, %v19395_v57  ;;  %v10502_v6 = vpack.c.bf16 %v2704_v44, %v2697_v22  ;;  %v2592_v57 = vand.u32 4294901760, %v12931_v3  ;;  %v2598_v8 = vsub.f32 %v12915_v18, %v18638_v0 }
 0x148   : > { %7941 = vmatmul.mubr.msk.f32.gmra.mrb[68].mxu1 %vm237_vm3, %v19371_v61  ;;  %v2718_v21 = vand.u32 4294901760, %v2717_v13  ;;  %v2605_v22 = vsub.f32 %v12920_v10, %v19398_v1  ;;  %v19399_v44 = vand.u32 4294901760, %v12950_v40  ;;  %v19400_v41 = vand.u32 4294901760, %v12952_v37 }
 0x149   : > { %7905 = vmatmul.mubr.msk.f32.vlgmr.msra.gmra.mrb[64].mxu0 %vm229_vm1, %v19371_v61  ;;  %7942 = vmatprep.mubr.msk.f32.mxu1 %vm242_vm6, %v19371_v61  ;;  %v19402_v3 = vand.u32 4294901760, %v12946_v26  ;;  %v19405_v1 = vand.u32 4294901760, %v12627_v15  ;;  %v2599_v15 = vand.u32 4294901760, %v2598_v8 }
 0x14a   : > { %10457 = vmatpush3.bf16.msra.mxu0 %v12676_v49  ;;  %7906 = vmatprep.mubr.msk.f32.mxu0 %vm234_vm4, %v19371_v61  ;;  %v13032_v13 = vsub.f32 %v12950_v40, %v19399_v44  ;;  %v13037_v0 = vsub.f32 %v12952_v37, %v19400_v41 }
 0x14b   : > { %10459 = vmatprep.subr.bf16.mxu0 %v12684_v47  ;;  %10497 = vmatpush3.bf16.msra.mxu1 %v12875_v31  ;;  %v19401_v31 = vand.u32 4294901760, %v12941_v43  ;;  %v2731_v7 = vsub.f32 %v12946_v26, %v19402_v3  ;;  %v19407_v3 = vand.u32 4294901760, %v12649_v60  ;;  %v19408_v47 = vand.u32 4294901760, %v12651_v23 }
 0x14c   : > { %7943 = vmatmul.mubr.msk.f32.gmra.mrb[70].mxu1 %vm241_vm7, %v19371_v61  ;;  %10499 = vmatprep.subr.bf16.mxu1 %v12888_v62  ;;  %v19403_v62 = vld [vmem:[#allocation36_spill] sm:$0xff]  ;;  %v10506_v23 = vpack.c.bf16 %v2718_v21, %v2711_v39  ;;  %v19414_v39 = vand.u32 4294901760, %v13002_v45  ;;  %v19423_v48 = vand.u32 4294901760, %v13032_v13 }
 0x14d   : > { %v2724_v44 = vsub.f32 %v12941_v43, %v19401_v31  ;;  %7907 = vmatmul.mubr.msk.f32.gmra.mrb[66].mxu0 %vm233_vm5, %v19371_v61  ;;  %7944 = vmatprep.mubr.msk.f32.mxu1 %vm246_vm8, %v19371_v61  ;;  %v19404_v31 = vand.u32 4294901760, %v12625_v42  ;;  %v13072_v41 = vpack.c.bf16 %v19408_v47, %v19407_v3  ;;  %v10504_v42 = vpack.c.bf16 %v2592_v57, %v2585_v25 }
 0x14e   : > { %7908 = vmatprep.mubr.msk.f32.mxu0 %vm238_vm2, %v19371_v61  ;;  %10461 = vmatpush3.bf16.msra.mxu0 %v12748_v29  ;;  %v19411_v47 = vand.u32 4294901760, %v12984_v38  ;;  %vm19412_vm0 = vcmp.eq.s32.totalorder %v19381_v30, %v19403_v62  ;;  %v2732_v25 = vand.u32 4294901760, %v2731_v7  ;;  %v19413_v57 = vand.u32 4294901760, %v12997_v5 }
 0x14f   : > { %v13066_v33 = vpack.c.bf16 %v19405_v1, %v19404_v31  ;;  %19409 = vst [vmem:[#allocation55_spill] sm:$0xff] %v13072_v41  ;;  %v2606_v1 = vand.u32 4294901760, %v2605_v22  ;;  %v19410_v31 = vand.u32 4294901760, %v12976_v51  ;;  %10463 = vmatprep.subr.bf16.mxu0 %v12822_v24  ;;  %10501 = vmatpush3.bf16.msra.mxu1 %v10500_v55  ;;  %v2725_v8 = vand.u32 4294901760, %v2724_v44  ;;  %v19415_v22 = vld [vmem:[#allocation37_spill] sm:$0xff]  ;;  %vm19435_vm5 = vmmov %vm19412_vm0 }
 0x150   : > { %v2619_v3 = vsub.f32 %v12984_v38, %v19411_v47  ;;  %7945 = vmatmul.mubr.msk.f32.gmra.mrb[72].mxu1 %vm19412_vm0, %v19371_v61  ;;  %10503 = vmatprep.subr.bf16.mxu1 %v10502_v6  ;;  %v2738_v55 = vsub.f32 %v12997_v5, %v19413_v57  ;;  %v2745_v21 = vsub.f32 %v13002_v45, %v19414_v39  ;;  %v19417_v7 = vand.u32 4294901760, %v12681_v16 }
 0x151   : > { %19406 = vst [vmem:[#allocation53_spill] sm:$0xff] %v13066_v33  ;;  %v2612_v60 = vsub.f32 %v12976_v51, %v19410_v31  ;;  %7909 = vmatmul.mubr.msk.f32.gmra.mrb[68].mxu0 %vm237_vm3, %v19371_v61  ;;  %vm19416_vm1 = vcmp.eq.s32.totalorder %v19372_v14, %v19415_v22  ;;  %v19418_v44 = vand.u32 4294901760, %v12703_v2  ;;  %v19420_v47 = vand.u32 4294901760, %v12718_v11 }
 0x152   : > { %7946 = vmatprep.mubr.msk.f32.mxu1 %vm19416_vm1, %v19371_v61  ;;  %7910 = vmatprep.mubr.msk.f32.mxu0 %vm242_vm6, %v19371_v61  ;;  %v19421_v57 = vand.u32 4294901760, %v12738_v34  ;;  %v10508_v6 = vpack.c.bf16 %v2606_v1, %v2599_v15  ;;  %v2620_v35 = vand.u32 4294901760, %v2619_v3  ;;  %v2626_v16 = vsub.f32 %v13032_v13, %v19423_v48  ;;  %v19426_v48 = vld [vmem:[#allocation38_spill] sm:$0xff]  ;;  %vm19437_vm6 = vmmov %vm19416_vm1 }
 0x153   : > { %10465 = vmatpush3.bf16.msra.mxu0 %v13066_v33  ;;  %v13119_v31 = vpack.c.bf16 %v19418_v44, %v19417_v7  ;;  %v2613_v20 = vand.u32 4294901760, %v2612_v60  ;;  %10505 = vmatpush3.bf16.msra.mxu1 %v10504_v42  ;;  %v19424_v2 = vand.u32 4294901760, %v13037_v0  ;;  %vm19425_vm2 = vcmp.eq.s32.totalorder %v19381_v30, %v19415_v22 }
 0x154   : > { %v13125_v39 = vpack.c.bf16 %v19421_v57, %v19420_v47  ;;  %10467 = vmatprep.subr.bf16.mxu0 %v13072_v41  ;;  %7947 = vmatmul.mubr.msk.f32.gmra.mrb[74].mxu1 %vm19425_vm2, %v19371_v61  ;;  %v10510_v34 = vpack.c.bf16 %v2732_v25, %v2725_v8  ;;  %v2739_v42 = vand.u32 4294901760, %v2738_v55  ;;  %v2746_v15 = vand.u32 4294901760, %v2745_v21 }
 0x155   : > { %19419 = vst [vmem:[#allocation56_spill] sm:$0xff] %v13119_v31  ;;  %v2633_v7 = vsub.f32 %v13037_v0, %v19424_v2  ;;  %10507 = vmatprep.subr.bf16.mxu1 %v10506_v23  ;;  %7911 = vmatmul.mubr.msk.f32.gmra.mrb[70].mxu0 %vm241_vm7, %v19371_v61  ;;  %vm19427_vm3 = vcmp.eq.s32.totalorder %v19372_v14, %v19426_v48  ;;  %v19428_v1 = vand.u32 4294901760, %v12763_v56  ;;  %v19429_v60 = vand.u32 4294901760, %v12765_v63 }
 0x156   : > { %19422 = vst [vmem:[#allocation57_spill] sm:$0xff] %v13125_v39  ;;  %7948 = vmatprep.mubr.msk.f32.mxu1 %vm19427_vm3, %v19371_v61  ;;  %7912 = vmatprep.mubr.msk.f32.mxu0 %vm246_vm8, %v19371_v61  ;;  %v19431_v3 = vand.u32 4294901760, %v12783_v32  ;;  %v19432_v8 = vand.u32 4294901760, %v12785_v12  ;;  %v10512_v55 = vpack.c.bf16 %v2620_v35, %v2613_v20  ;;  %v2627_v21 = vand.u32 4294901760, %v2626_v16  ;;  %v19436_v20 = vld [vmem:[#allocation40_spill] sm:$0xff]  ;;  %vm19445_vm8 = vmmov %vm19425_vm2 }
 0x157   : > { %10469 = vmatpush3.bf16.msra.mxu0 %v13119_v31  ;;  %v13157_v23 = vpack.c.bf16 %v19429_v60, %v19428_v1  ;;  %10509 = vmatpush3.bf16.msra.mxu1 %v10508_v6  ;;  %v2634_v44 = vand.u32 4294901760, %v2633_v7  ;;  %vm19434_vm4 = vcmp.eq.s32.totalorder %v19381_v30, %v19426_v48  ;;  %v10514_v56 = vpack.c.bf16 %v2746_v15, %v2739_v42  ;;  %vm19448_vm1 = vmmov %vm19427_vm3 }
 0x158   : > { %10471 = vmatprep.subr.bf16.mxu0 %v13125_v39  ;;  %v13164_v25 = vpack.c.bf16 %v19432_v8, %v19431_v3  ;;  %7949 = vmatmul.mubr.msk.f32.gmra.mrb[76].mxu1 %vm19434_vm4, %v19371_v61  ;;  %v19438_v12 = vand.u32 4294901760, %v12836_v19  ;;  %v19439_v35 = vand.u32 4294901760, %v12838_v59  ;;  %v19441_v47 = vand.u32 4294901760, %v12863_v50  ;;  %v19446_v59 = vld [vmem:[#allocation42_spill] sm:$0xff]  ;;  %vm19457_vm3 = vmmov %vm19434_vm4  ;;  %v19464_v3 = vld [vmem:[#allocation45_spill] sm:$0xff] }
 0x159   : > { %19430 = vst [vmem:[#allocation58_spill] sm:$0xff] %v13157_v23  ;;  %10511 = vmatprep.subr.bf16.mxu1 %v10510_v34  ;;  %7913 = vmatmul.mubr.msk.f32.gmra.mrb[72].mxu0 %vm19435_vm5, %v19371_v61  ;;  %v19442_v57 = vand.u32 4294901760, %v12865_v28  ;;  %v10516_v2 = vpack.c.bf16 %v2634_v44, %v2627_v21  ;;  %vm19444_vm7 = vcmp.eq.s32.totalorder %v19381_v30, %v19436_v20  ;;  %v19449_v50 = vand.u32 4294901760, %v12882_v27  ;;  %v19456_v27 = vld [vmem:[#allocation11_spill] sm:$0xff]  ;;  %v19476_v21 = vld [vmem:[#allocation48_spill] sm:$0xff] }
 0x15a   : > { %19433 = vst [vmem:[#allocation59_spill] sm:$0xff] %v13164_v25  ;;  %7950 = vmatprep.mubr.msk.f32.mxu1 %vm258_vm14, %v19371_v61  ;;  %7914 = vmatprep.mubr.msk.f32.mxu0 %vm19437_vm6, %v19371_v61  ;;  %v13191_v6 = vpack.c.bf16 %v19439_v35, %v19438_v12  ;;  %vm19447_vm0 = vcmp.eq.s32.totalorder %v19372_v14, %v19446_v59  ;;  %v19450_v28 = vand.u32 4294901760, %v12892_v53  ;;  %v19452_v42 = vand.u32 4294901760, %v12906_v46  ;;  %v19458_v53 = vld [vmem:[#allocation43_spill] sm:$0xff]  ;;  %vm19463_vm6 = vmmov %vm19444_vm7 }
 0x15b   : > { %10473 = vmatpush3.bf16.msra.mxu0 %v13157_v23  ;;  %v13198_v16 = vpack.c.bf16 %v19442_v57, %v19441_v47  ;;  %10513 = vmatpush3.bf16.msra.mxu1 %v10512_v55  ;;  %v19453_v15 = vand.u32 4294901760, %v12908_v9  ;;  %vm19455_vm2 = vcmp.eq.s32.totalorder %v19381_v30, %v19446_v59  ;;  %vm19459_vm4 = vcmp.eq.s32.totalorder %v19372_v14, %v19458_v53  ;;  %v19472_v55 = vld [vmem:[#allocation21_spill] sm:$0xff]  ;;  %v19483_v12 = vld [vmem:[#allocation51_spill] sm:$0xff]  ;;  %v19487_v57 = vld [vmem:[#allocation52_spill] sm:$0xff] }
 0x15c   : > { %19440 = vst [vmem:[#allocation60_spill] sm:$0xff] %v13191_v6  ;;  %10475 = vmatprep.subr.bf16.mxu0 %v13164_v25  ;;  %7951 = vmatmul.mubr.msk.f32.gmra.mrb[78].mxu1 %vm19444_vm7, %v19371_v61  ;;  %v13223_v7 = vpack.c.bf16 %v19450_v28, %v19449_v50  ;;  %v19460_v9 = vand.u32 4294901760, %v12950_v40  ;;  %v19461_v46 = vand.u32 4294901760, %v12952_v37  ;;  %vm19462_vm5 = vcmp.eq.s32.totalorder %v19381_v30, %v19458_v53  ;;  %vm19466_vm7 = vmmov %vm19447_vm0  ;;  %v19467_v37 = vld [vmem:[#allocation34_spill] sm:$0xff] }
 0x15d   : > { %19443 = vst [vmem:[#allocation61_spill] sm:$0xff] %v13198_v16  ;;  %10515 = vmatprep.subr.bf16.mxu1 %v10514_v56  ;;  %7915 = vmatmul.mubr.msk.f32.gmra.mrb[74].mxu0 %vm19445_vm8, %v19371_v61  ;;  %v13232_v1 = vpack.c.bf16 %v19453_v15, %v19452_v42  ;;  %v19468_v40 = vld [vmem:[#allocation30_spill] sm:$0xff]  ;;  %vm19470_vm8 = vcmp.eq.s32.totalorder %v19381_v30, %v19464_v3  ;;  %v13308_v44 = vadd.s32 384, %v19381_v30  ;;  %v13315_v56 = vadd.s32 256, %v19381_v30 }
 0x15e   : > { %7952 = vmatprep.mubr.msk.f32.mxu1 %vm19447_vm0, %v19371_v61  ;;  %7916 = vmatprep.mubr.msk.f32.mxu0 %vm19448_vm1, %v19371_v61  ;;  %19451 = vst [vmem:[#allocation62_spill] sm:$0xff] %v13223_v7  ;;  %v13256_v60 = vpack.c.bf16 %v19461_v46, %v19460_v9  ;;  %v19469_v8 = vpack.c.bf16 %v19467_v37, %v19468_v40  ;;  %vm19471_vm0 = vmmov %vm19455_vm2  ;;  %v19486_v35 = vmov 0.0  }
 0x15f   : > { %10477 = vmatpush3.bf16.msra.mxu0 %v13191_v6  ;;  %10517 = vmatpush3.bf16.msra.mxu1 %v10516_v2  ;;  %19454 = vst [vmem:[#allocation63_spill] sm:$0xff] %v13232_v1  ;;  %vm19473_vm1 = vcmp.eq.s32.totalorder %v19372_v14, %v19472_v55  ;;  %19478 = vst [vmem:[#allocation11_spill] sm:$0xff] %v13308_v44 }
 0x160   : > { %10479 = vmatprep.subr.bf16.mxu0 %v13198_v16  ;;  %7953 = vmatmul.mubr.msk.f32.gmra.mrb[80].mxu1 %vm19455_vm2, %v19371_v61  ;;  %vm19474_vm2 = vmmov %vm19459_vm4  ;;  %19480 = vst [vmem:[#allocation34_spill] sm:$0xff] %v13315_v56 }
 0x161   : > { %10551 = vmatprep.subr.bf16.mxu1 %v19456_v27  ;;  %7917 = vmatmul.mubr.msk.f32.gmra.mrb[76].mxu0 %vm19457_vm3, %v19371_v61  ;;  %vm19475_vm3 = vmmov %vm19462_vm5 }
 0x162   : > { %7954 = vmatprep.mubr.msk.f32.mxu1 %vm19459_vm4, %v19371_v61  ;;  %7918 = vmatprep.mubr.msk.f32.mxu0 %vm258_vm14, %v19371_v61  ;;  %vm19465_vm14 = vcmp.eq.s32.totalorder %v19372_v14, %v19464_v3  ;;  %vm19477_vm4 = vcmp.eq.s32.totalorder %v19372_v14, %v19476_v21 }
 0x163   : > { %10481 = vmatpush3.bf16.msra.mxu0 %v13223_v7 }
 0x164   : > { %10483 = vmatprep.subr.bf16.mxu0 %v13232_v1  ;;  %7955 = vmatmul.mubr.msk.f32.gmra.mrb[82].mxu1 %vm19462_vm5, %v19371_v61  ;;  %vm19479_vm5 = vmmov %vm19465_vm14 }
 0x165   : > { %7919 = vmatmul.mubr.msk.f32.gmra.mrb[78].mxu0 %vm19463_vm6, %v19371_v61  ;;  %7956 = vmatprep.mubr.msk.f32.mxu1 %vm19465_vm14, %v19371_v61  ;;  %vm19481_vm6 = vcmp.eq.s32.totalorder %v19381_v30, %v19476_v21  ;;  %vm19482_vm14 = vmmov %vm19470_vm8 }
 0x166   : > { %7920 = vmatprep.mubr.msk.f32.mxu0 %vm19466_vm7, %v19371_v61  ;;  %vm19484_vm7 = vcmp.eq.s32.totalorder %v19372_v14, %v19483_v12  ;;  %v19499_v14 = vld [vmem:[#allocation17_spill] sm:$0xff] }
 0x167   : > { %10485 = vmatpush3.bf16.msra.mxu0 %v13256_v60 }
 0x168   : > { %10519 = vmatprep.subr.bf16.mxu0 %v19469_v8  ;;  %7957 = vmatmul.mubr.msk.f32.gmra.mrb[84].mxu1 %vm19470_vm8, %v19371_v61  ;;  %vm232_vm8 = vcmp.eq.s32.totalorder %v13308_v44, %v19373_v36 }
 0x169   : > { %7921 = vmatmul.mubr.msk.f32.gmra.mrb[80].mxu0 %vm19471_vm0, %v19371_v61  ;;  %7958 = vmatprep.mubr.msk.f32.mxu1 %vm19473_vm1, %v19371_v61  ;;  %vm19485_vm0 = vmmov %vm19473_vm1  ;;  %vm231_vm1 = vcmp.eq.s32.totalorder %v13315_v56, %v19373_v36  ;;  %v7811_v47 = vsel %vm232_vm8, 1.0, %v19486_v35 }
 0x16a   : > { %7922 = vmatprep.mubr.msk.f32.mxu0 %vm19474_vm2, %v19371_v61  ;;  %vm19488_vm2 = vmmov %vm19477_vm4  ;;  %v7810_v2 = vsel %vm231_vm1, 1.0, %v19486_v35  ;;  %v13363_v50 = vsub.f32 %v7811_v47, %v7811_v47 }
 0x16b   : > { %v13383_v15 = vsub.f32 %v7810_v2, %v7810_v2 }
 0x16c   : > { %7959 = vmatmul.mubr.msk.f32.gmra.mrb[86].mxu1 %vm273_vm11, %v19371_v61  ;;  %19489 = vst [vmem:[#allocation30_spill] sm:$0xff] %v13363_v50  ;;  %v18649_v9 = vand.u32 4294901760, %v13363_v50 }
 0x16d   : > { %7923 = vmatmul.mubr.msk.f32.gmra.mrb[82].mxu0 %vm19475_vm3, %v19371_v61  ;;  %7960 = vmatprep.mubr.msk.f32.mxu1 %vm19477_vm4, %v19371_v61  ;;  %vm236_vm3 = vcmp.eq.s32.totalorder %v13308_v44, %v19382_v17  ;;  %vm235_vm4 = vcmp.eq.s32.totalorder %v13315_v56, %v19382_v17  ;;  %19492 = vst [vmem:[#allocation64_spill] sm:$0xff] %v13383_v15  ;;  %v18654_v2 = vand.u32 4294901760, %v13383_v15 }
 0x16e   : > { %7924 = vmatprep.mubr.msk.f32.mxu0 %vm19479_vm5, %v19371_v61  ;;  %v7815_v42 = vsel %vm236_vm3, 1.0, %v19486_v35  ;;  %vm19493_vm5 = vmmov %vm19484_vm7  ;;  %v7814_v8 = vsel %vm235_vm4, 1.0, %v19486_v35  ;;  %v2286_v34 = vsub.f32 %v13363_v50, %v18649_v9 }
 0x16f   : > { %v13396_v46 = vsub.f32 %v7815_v42, %v7815_v42  ;;  %v13423_v42 = vsub.f32 %v7814_v8, %v7814_v8  ;;  %v2292_v9 = vsub.f32 %v13383_v15, %v18654_v2 }
 0x170   : > { %7961 = vmatmul.mubr.msk.f32.gmra.mrb[88].mxu1 %vm19481_vm6, %v19371_v61  ;;  %v2287_v11 = vand.u32 4294901760, %v2286_v34 }
 0x171   : > { %7925 = vmatmul.mubr.msk.f32.gmra.mrb[84].mxu0 %vm19482_vm14, %v19371_v61  ;;  %7962 = vmatprep.mubr.msk.f32.mxu1 %vm19484_vm7, %v19371_v61  ;;  %19494 = vst [vmem:[#allocation65_spill] sm:$0xff] %v13396_v46  ;;  %vm239_vm14 = vcmp.eq.s32.totalorder %v13315_v56, %v19390_v52  ;;  %vm244_vm7 = vcmp.eq.s32.totalorder %v13308_v44, %v19397_v58  ;;  %19495 = vst [vmem:[#allocation66_spill] sm:$0xff] %v13423_v42  ;;  %v19501_v2 = vand.u32 4294901760, %v13423_v42 }
 0x172   : > { %7926 = vmatprep.mubr.msk.f32.mxu0 %vm19485_vm0, %v19371_v61  ;;  %v7818_v19 = vsel %vm239_vm14, 1.0, %v19486_v35  ;;  %v7823_v8 = vsel %vm244_vm7, 1.0, %v19486_v35  ;;  %vm18695_vm0 = vcmp.eq.s32.totalorder %v13308_v44, %v19426_v48 }
 0x173   : > { %v13465_v63 = vsub.f32 %v7823_v8, %v7823_v8  ;;  %v2307_v30 = vsub.f32 %v13423_v42, %v19501_v2  ;;  %v19508_v42 = vld [vmem:[#allocation12_spill] sm:$0xff] }
 0x174   : > { %7963 = vmatmul.mubr.msk.f32.gmra.mrb[90].mxu1 %vm281_vm9, %v19371_v61 }
 0x175   : > { %7927 = vmatmul.mubr.msk.f32.gmra.mrb[86].mxu0 %vm273_vm11, %v19371_v61  ;;  %7964 = vmatprep.mubr.msk.f32.mxu1 %vm286_vm15, %v19371_v61  ;;  %vm19490_vm11 = vmmov %vm19481_vm6  ;;  %vm240_vm6 = vcmp.eq.s32.totalorder %v13308_v44, %v19390_v52  ;;  %19498 = vst [vmem:[#allocation69_spill] sm:$0xff] %v13465_v63  ;;  %v19511_v15 = vand.u32 4294901760, %v13465_v63 }
 0x176   : > { %7928 = vmatprep.mubr.msk.f32.mxu0 %vm19488_vm2, %v19371_v61  ;;  %v7819_v47 = vsel %vm240_vm6, 1.0, %v19486_v35  ;;  %vm18694_vm2 = vcmp.eq.s32.totalorder %v13315_v56, %v19426_v48 }
 0x177   : > { %v13436_v32 = vsub.f32 %v7819_v47, %v7819_v47  ;;  %v13459_v47 = vsub.f32 %v7818_v19, %v7818_v19  ;;  %v19500_v19 = vand.u32 4294901760, %v13396_v46  ;;  %v2331_v28 = vsub.f32 %v13465_v63, %v19511_v15 }
 0x178   : > { %7965 = vmatmul.mubr.msk.f32.gmra.mrb[92].mxu1 %vm285_vm10, %v19371_v61  ;;  %v7835_v15 = vsel %vm18695_vm0, 1.0, %v19486_v35 }
 0x179   : > { %7929 = vmatmul.mubr.msk.f32.gmra.mrb[88].mxu0 %vm19490_vm11, %v19371_v61  ;;  %7966 = vmatprep.mubr.msk.f32.mxu1 %vm290_vm13, %v19371_v61  ;;  %19496 = vst [vmem:[#allocation67_spill] sm:$0xff] %v13436_v32  ;;  %19497 = vst [vmem:[#allocation68_spill] sm:$0xff] %v13459_v47  ;;  %v2301_v34 = vsub.f32 %v13396_v46, %v19500_v19  ;;  %v2293_v19 = vand.u32 4294901760, %v2292_v9  ;;  %v19502_v17 = vand.u32 4294901760, %v13436_v32 }
 0x17a   : > { %7930 = vmatprep.mubr.msk.f32.mxu0 %vm19493_vm5, %v19371_v61  ;;  %vm18699_vm11 = vcmp.eq.s32.totalorder %v13308_v44, %v19436_v20  ;;  %vm18703_vm5 = vcmp.eq.s32.totalorder %v13315_v56, %v19436_v20 }
 0x17b   : > { %v2302_v9 = vand.u32 4294901760, %v2301_v34  ;;  %v2316_v2 = vsub.f32 %v13436_v32, %v19502_v17  ;;  %v19503_v34 = vld [vmem:[#allocation35_spill] sm:$0xff]  ;;  %v2308_v32 = vand.u32 4294901760, %v2307_v30 }
 0x17c   : > { %7967 = vmatmul.mubr.msk.f32.gmra.mrb[94].mxu1 %vm289_vm12, %v19371_v61 }
 0x17d   : > { %7931 = vmatmul.mubr.msk.f32.gmra.mrb[90].mxu0 %vm281_vm9, %v19371_v61  ;;  %7968 = vmatprep.mubr.msk.f32.mxu1 %vm232_vm8, %v19371_v61  ;;  %vm243_vm9 = vcmp.eq.s32.totalorder %v13315_v56, %v19397_v58  ;;  %v2317_v30 = vand.u32 4294901760, %v2316_v2 }
 0x17e   : > { %7932 = vmatprep.mubr.msk.f32.mxu0 %vm286_vm15, %v19371_v61  ;;  %vm18677_vm15 = vcmp.eq.s32.totalorder %v13308_v44, %v19403_v62  ;;  %v7822_v36 = vsel %vm243_vm9, 1.0, %v19486_v35 }
 0x17f   : > { %v7827_v8 = vsel %vm18677_vm15, 1.0, %v19486_v35  ;;  %v13495_v50 = vsub.f32 %v7822_v36, %v7822_v36  ;;  %v19504_v36 = vld [vmem:[#allocation10_spill] sm:$0xff] }
 0x180   : > { %7969 = vmatmul.mubr.msk.f32.vlgmr.msra.gmra.mrb[96].mxu1 %vm231_vm1, %v19371_v61  ;;  %v19505_v17 = vpack.c.bf16 %v19503_v34, %v19504_v36 }
 0x181   : > { %7933 = vmatmul.mubr.msk.f32.gmra.mrb[92].mxu0 %vm285_vm10, %v19371_v61  ;;  %7970 = vmatprep.mubr.msk.f32.mxu1 %vm236_vm3, %v19371_v61  ;;  %vm247_vm10 = vcmp.eq.s32.totalorder %v13315_v56, %v19403_v62 }
 0x182   : > { %7934 = vmatprep.mubr.msk.f32.mxu0 %vm290_vm13, %v19371_v61  ;;  %10553 = vmatpush3.bf16.msra.mxu1 %v12676_v49  ;;  %vm18685_vm13 = vcmp.eq.s32.totalorder %v13308_v44, %v19415_v22  ;;  %v19509_v49 = vld [vmem:[#allocation33_spill] sm:$0xff] }
 0x183   : > { %10555 = vmatprep.subr.bf16.mxu1 %v19499_v14  ;;  %v13504_v14 = vsub.f32 %v7827_v8, %v7827_v8  ;;  %v7831_v8 = vsel %vm18685_vm13, 1.0, %v19486_v35  ;;  %v19510_v46 = vpack.c.bf16 %v19508_v42, %v19509_v49 }
 0x184   : > { %7971 = vmatmul.mubr.msk.f32.gmra.mrb[98].mxu1 %vm235_vm4, %v19371_v61 }
 0x185   : > { %7935 = vmatmul.mubr.msk.f32.gmra.mrb[94].mxu0 %vm289_vm12, %v19371_v61  ;;  %7972 = vmatprep.mubr.msk.f32.mxu1 %vm240_vm6, %v19371_v61  ;;  %vm18687_vm12 = vcmp.eq.s32.totalorder %v13315_v56, %v19415_v22  ;;  %v19517_v63 = vand.u32 4294901760, %v13504_v14 }
 0x186   : > { %2288 = vmatprep.mubr.f32.mxu0 %v2287_v11  ;;  %10557 = vmatpush3.bf16.msra.mxu1 %v12748_v29  ;;  %v7826_v11 = vsel %vm247_vm10, 1.0, %v19486_v35  ;;  %v18678_v29 = vand.u32 4294901760, %v13495_v50 }
 0x187   : > { %10559 = vmatprep.subr.bf16.mxu1 %v12822_v24  ;;  %v13534_v52 = vsub.f32 %v7826_v11, %v7826_v11  ;;  %v7830_v11 = vsel %vm18687_vm12, 1.0, %v19486_v35 }
 0x188   : > { %7973 = vmatmul.mubr.msk.f32.gmra.mrb[100].mxu1 %vm239_vm14, %v19371_v61 }
 0x189   : > { %2294 = vmatmul.mubr.f32.vlgmr.msra.gmra.mrb[96].mxu0 %v2293_v19  ;;  %7974 = vmatprep.mubr.msk.f32.mxu1 %vm244_vm7, %v19371_v61  ;;  %19506 = vst [vmem:[#allocation35_spill] sm:$0xff] %v13534_v52  ;;  %v19507_v19 = vand.u32 4294901760, %v13459_v47  ;;  %v18682_v58 = vand.u32 4294901760, %v13534_v52 }
 0x18a   : > { %10521 = vmatpush3.bf16.msra.mxu0 %v19505_v17  ;;  %2303 = vmatprep.mubr.f32.mxu0 %v2302_v9  ;;  %v19514_v17 = vld [vmem:[#allocation14_spill] sm:$0xff]  ;;  %v13574_v9 = vsub.f32 %v7830_v11, %v7830_v11 }
 0x18b   : > { %v2322_v24 = vsub.f32 %v13459_v47, %v19507_v19  ;;  %10523 = vmatprep.subr.bf16.mxu0 %v19510_v46  ;;  %10561 = vmatpush3.bf16.msra.mxu1 %v13066_v33  ;;  %v13556_v46 = vsub.f32 %v7831_v8, %v7831_v8  ;;  %v19513_v8 = vld [vmem:[#allocation9_spill] sm:$0xff]  ;;  %v13580_v33 = vsub.f32 %v7835_v15, %v7835_v15  ;;  %v19519_v47 = vld [vmem:[#allocation15_spill] sm:$0xff] }
 0x18c   : > { %7975 = vmatmul.mubr.msk.f32.gmra.mrb[102].mxu1 %vm243_vm9, %v19371_v61  ;;  %10563 = vmatprep.subr.bf16.mxu1 %v13072_v41  ;;  %v19515_v19 = vpack.c.bf16 %v19513_v8, %v19514_v17  ;;  %19516 = vst [vmem:[#allocation33_spill] sm:$0xff] %v13574_v9  ;;  %v2332_v41 = vand.u32 4294901760, %v2331_v28  ;;  %v7834_v28 = vsel %vm18694_vm2, 1.0, %v19486_v35  ;;  %v2352_v15 = vsub.f32 %v13534_v52, %v18682_v58  ;;  %v19526_v58 = vld [vmem:[#allocation41_spill] sm:$0xff]  ;;  %v19527_v52 = vld [vmem:[#allocation19_spill] sm:$0xff] }
 0x18d   : > { %19512 = vst [vmem:[#allocation10_spill] sm:$0xff] %v13556_v46  ;;  %2309 = vmatmul.mubr.f32.gmra.mrb[98].mxu0 %v2308_v32  ;;  %7976 = vmatprep.mubr.msk.f32.mxu1 %vm18677_vm15, %v19371_v61  ;;  %v2323_v2 = vand.u32 4294901760, %v2322_v24  ;;  %v2337_v32 = vsub.f32 %v13495_v50, %v18678_v29  ;;  %v19518_v24 = vld [vmem:[#allocation16_spill] sm:$0xff]  ;;  %vm18712_vm15 = vcmp.eq.s32.totalorder %v13308_v44, %v19446_v59  ;;  %v19522_v29 = vld [vmem:[#allocation18_spill] sm:$0xff] }
 0x18e   : > { %2318 = vmatprep.mubr.f32.mxu0 %v2317_v30  ;;  %10525 = vmatpush3.bf16.msra.mxu0 %v19515_v19  ;;  %v2346_v30 = vsub.f32 %v13504_v14, %v19517_v63  ;;  %v19520_v42 = vpack.c.bf16 %v19518_v24, %v19519_v47  ;;  %v7839_v63 = vsel %vm18699_vm11, 1.0, %v19486_v35  ;;  %v19521_v19 = vld [vmem:[#allocation13_spill] sm:$0xff]  ;;  %v2353_v22 = vand.u32 4294901760, %v2352_v15 }
 0x18f   : > { %10565 = vmatpush3.bf16.msra.mxu1 %v13119_v31  ;;  %v2338_v11 = vand.u32 4294901760, %v2337_v32  ;;  %v13623_v31 = vsub.f32 %v7839_v63, %v7839_v63  ;;  %v7843_v32 = vsel %vm18712_vm15, 1.0, %v19486_v35  ;;  %v19529_v63 = vand.u32 4294901760, %v13556_v46 }
 0x190   : > { %10527 = vmatprep.subr.bf16.mxu0 %v19520_v42  ;;  %7977 = vmatmul.mubr.msk.f32.gmra.mrb[104].mxu1 %vm247_vm10, %v19371_v61  ;;  %v19523_v42 = vpack.c.bf16 %v19521_v19, %v19522_v29  ;;  %v19531_v29 = vld [vmem:[#allocation44_spill] sm:$0xff] }
 0x191   : > { %10567 = vmatprep.subr.bf16.mxu1 %v13125_v39  ;;  %2324 = vmatmul.mubr.f32.gmra.mrb[100].mxu0 %v2323_v2  ;;  %v7838_v2 = vsel %vm18703_vm5, 1.0, %v19486_v35  ;;  %v13621_v39 = vsub.f32 %v7834_v28, %v7834_v28  ;;  %19525 = vst [vmem:[#allocation14_spill] sm:$0xff] %v13623_v31  ;;  %v2347_v28 = vand.u32 4294901760, %v2346_v30 }
 0x192   : > { %7978 = vmatprep.mubr.msk.f32.mxu1 %vm18685_vm13, %v19371_v61  ;;  %2333 = vmatprep.mubr.f32.mxu0 %v2332_v41  ;;  %v8454_v62 = vpop.f32.mrb[0].mxu1  ;;  %v2361_v41 = vsub.f32 %v13556_v46, %v19529_v63  ;;  %vm18713_vm13 = vcmp.eq.s32.totalorder %v13315_v56, %v19446_v59  ;;  %v13651_v30 = vsub.f32 %v7838_v2, %v7838_v2  ;;  %v19536_v46 = vld [vmem:[#allocation23_spill] sm:$0xff] }
 0x193   : > { %10529 = vmatpush3.bf16.msra.mxu0 %v19523_v42  ;;  %19524 = vst [vmem:[#allocation9_spill] sm:$0xff] %v13621_v39  ;;  %v19528_v42 = vpack.c.bf16 %v19526_v58, %v19527_v52  ;;  %10569 = vmatpush3.bf16.msra.mxu1 %v13157_v23  ;;  %v8455_v19 = vpop.f32.mrb[1].mxu1  ;;  %v13653_v63 = vsub.f32 %v7843_v32, %v7843_v32  ;;  %v19532_v23 = vld [vmem:[#allocation22_spill] sm:$0xff]  ;;  %v7842_v2 = vsel %vm18713_vm13, 1.0, %v19486_v35 }
 0x194   : > { %7979 = vmatmul.mubr.msk.f32.gmra.mrb[106].mxu1 %vm18687_vm12, %v19371_v61  ;;  %10571 = vmatprep.subr.bf16.mxu1 %v13164_v25  ;;  %19530 = vst [vmem:[#allocation16_spill] sm:$0xff] %v13651_v30  ;;  %vm18714_vm12 = vcmp.eq.s32.totalorder %v13308_v44, %v19458_v53  ;;  %v19533_v25 = vpack.c.bf16 %v19531_v29, %v19532_v23 }
 0x195   : > { %10531 = vmatprep.subr.bf16.mxu0 %v19528_v42  ;;  %v13645_v42 = vadd.f32 %v8455_v19, %v8454_v62  ;;  %2339 = vmatmul.mubr.f32.gmra.mrb[102].mxu0 %v2338_v11  ;;  %v19534_v11 = vand.u32 4294901760, %v13574_v9 }
 0x196   : > { %7980 = vmatprep.mubr.msk.f32.mxu1 %vm18695_vm0, %v19371_v61  ;;  %2348 = vmatprep.mubr.f32.mxu0 %v2347_v28  ;;  %v8457_v62 = vpop.f32.mrb[2].mxu1  ;;  %v19535_v28 = vld [vmem:[#allocation24_spill] sm:$0xff]  ;;  %vm18720_vm0 = vcmp.eq.s32.totalorder %v13308_v44, %v19464_v3 }
 0x197   : > { %10533 = vmatpush3.bf16.msra.mxu0 %v19533_v25  ;;  %v2367_v19 = vsub.f32 %v13574_v9, %v19534_v11  ;;  %v19537_v58 = vpack.c.bf16 %v19535_v28, %v19536_v46  ;;  %10573 = vmatpush3.bf16.msra.mxu1 %v13191_v6  ;;  %v8458_v25 = vpop.f32.mrb[3].mxu1  ;;  %v2362_v11 = vand.u32 4294901760, %v2361_v41  ;;  %v19538_v9 = vand.u32 4294901760, %v13580_v33 }
 0x198   : > { %7981 = vmatmul.mubr.msk.f32.gmra.mrb[108].mxu1 %vm18694_vm2, %v19371_v61  ;;  %10575 = vmatprep.subr.bf16.mxu1 %v13198_v16  ;;  %v13681_v32 = vadd.f32 %v8458_v25, %v8457_v62  ;;  %vm18718_vm2 = vcmp.eq.s32.totalorder %v13315_v56, %v19458_v53  ;;  %v13694_v41 = vsub.f32 %v7842_v2, %v7842_v2  ;;  %v19540_v62 = vld [vmem:[#allocation46_spill] sm:$0xff]  ;;  %v19542_v16 = vand.u32 4294901760, %v13621_v39 }
 0x199   : > { %10535 = vmatprep.subr.bf16.mxu0 %v19537_v58  ;;  %v2376_v29 = vsub.f32 %v13580_v33, %v19538_v9  ;;  %2354 = vmatmul.mubr.f32.gmra.mrb[104].mxu0 %v2353_v22  ;;  %v7847_v58 = vsel %vm18714_vm12, 1.0, %v19486_v35  ;;  %v19541_v25 = vpack.c.bf16 %v12833_v4, %v19540_v62  ;;  %v2368_v48 = vand.u32 4294901760, %v2367_v19 }
 0x19a   : > { %7982 = vmatprep.mubr.msk.f32.mxu1 %vm18699_vm11, %v19371_v61  ;;  %2363 = vmatprep.mubr.f32.mxu0 %v2362_v11  ;;  %19539 = vst [vmem:[#allocation15_spill] sm:$0xff] %v13694_v41  ;;  %v8460_v15 = vpop.f32.mrb[4].mxu1  ;;  %v2382_v6 = vsub.f32 %v13621_v39, %v19542_v16  ;;  %v19543_v9 = vand.u32 4294901760, %v13623_v31  ;;  %vm18721_vm11 = vcmp.eq.s32.totalorder %v13315_v56, %v19464_v3  ;;  %v19544_v11 = vld [vmem:[#allocation49_spill] sm:$0xff]  ;;  %v7851_v20 = vsel %vm18720_vm0, 1.0, %v19486_v35 }
 0x19b   : > { %10537 = vmatpush3.bf16.msra.mxu0 %v19541_v25  ;;  %v19545_v22 = vpack.c.bf16 %v12861_v54, %v19544_v11  ;;  %10577 = vmatpush3.bf16.msra.mxu1 %v13223_v7  ;;  %v8374_v25 = vpop.f32.mrb[0].mxu0  ;;  %v8461_v4 = vpop.f32.mrb[5].mxu1  ;;  %v2377_v16 = vand.u32 4294901760, %v2376_v29  ;;  %v13718_v19 = vsub.f32 %v7847_v58, %v7847_v58  ;;  %v19546_v29 = vand.u32 4294901760, %v13651_v30 }
 0x19c   : > { %v2391_v2 = vsub.f32 %v13623_v31, %v19543_v9  ;;  %7983 = vmatmul.mubr.msk.f32.gmra.mrb[110].mxu1 %vm18703_vm5, %v19371_v61  ;;  %v7846_v9 = vsel %vm18718_vm2, 1.0, %v19486_v35  ;;  %10579 = vmatprep.subr.bf16.mxu1 %v13232_v1  ;;  %v8375_v7 = vpop.f32.mrb[1].mxu0  ;;  %vm18725_vm5 = vcmp.eq.s32.totalorder %v13308_v44, %v19472_v55  ;;  %v7850_v1 = vsel %vm18721_vm11, 1.0, %v19486_v35 }
 0x19d   : > { %10539 = vmatprep.subr.bf16.mxu0 %v19545_v22  ;;  %v13725_v22 = vadd.f32 %v8461_v4, %v8460_v15  ;;  %2369 = vmatmul.mubr.f32.gmra.mrb[106].mxu0 %v2368_v48  ;;  %v2397_v58 = vsub.f32 %v13651_v30, %v19546_v29  ;;  %v8376_v4 = vadd.f32 %v8375_v7, %v8374_v25  ;;  %v19547_v48 = vand.u32 4294901760, %v13653_v63 }
 0x19e   : > { %7984 = vmatprep.mubr.msk.f32.mxu1 %vm18712_vm15, %v19371_v61  ;;  %2378 = vmatprep.mubr.f32.mxu0 %v2377_v16  ;;  %v19548_v30 = vpack.c.bf16 %v12920_v10, %v12915_v18  ;;  %v2383_v39 = vand.u32 4294901760, %v2382_v6  ;;  %v2392_v54 = vand.u32 4294901760, %v2391_v2  ;;  %v13751_v7 = vsub.f32 %v7846_v9, %v7846_v9 }
 0x19f   : > { %v2406_v15 = vsub.f32 %v13653_v63, %v19547_v48  ;;  %v8463_v31 = vpop.f32.mrb[6].mxu1  ;;  %vm18728_vm15 = vcmp.eq.s32.totalorder %v13315_v56, %v19472_v55  ;;  %v19550_v25 = vpack.c.bf16 %v12946_v26, %v12941_v43  ;;  %10581 = vmatpush3.bf16.msra.mxu1 %v13256_v60  ;;  %v13760_v16 = vadd.f32 %v13645_v42, %v8376_v4 }
 0x1a0   : > { %10541 = vmatpush3.bf16.msra.mxu0 %v19548_v30  ;;  %19549 = vst [vmem:[#allocation19_spill] sm:$0xff] %v13751_v7  ;;  %v8377_v48 = vpop.f32.mrb[2].mxu0  ;;  %v8464_v29 = vpop.f32.mrb[7].mxu1  ;;  %7985 = vmatmul.mubr.msk.f32.gmra.mrb[112].mxu1 %vm18713_vm13, %v19371_v61  ;;  %v13766_v6 = vsub.f32 %v7851_v20, %v7851_v20  ;;  %v7855_v30 = vsel %vm18725_vm5, 1.0, %v19486_v35  ;;  %v2398_v20 = vand.u32 4294901760, %v2397_v58  ;;  %v13780_v4 = vsub.f32 %v7850_v1, %v7850_v1 }
 0x1a1   : > { %10543 = vmatprep.subr.bf16.mxu0 %v19550_v25  ;;  %10615 = vmatprep.subr.bf16.mxu1 %v19456_v27  ;;  %v13774_v42 = vadd.f32 %v8464_v29, %v8463_v31  ;;  %v8378_v9 = vpop.f32.mrb[3].mxu0  ;;  %vm280_vm13 = vcmp.eq.s32.totalorder %v13308_v44, %v19476_v21  ;;  %v2407_v2 = vand.u32 4294901760, %v2406_v15  ;;  %v19553_v27 = vand.u32 4294901760, %v13694_v41 }
 0x1a2   : > { %19551 = vst [vmem:[#allocation22_spill] sm:$0xff] %v13766_v6  ;;  %2384 = vmatmul.mubr.f32.gmra.mrb[108].mxu0 %v2383_v39  ;;  %7986 = vmatprep.mubr.msk.f32.mxu1 %vm18714_vm12, %v19371_v61  ;;  %19552 = vst [vmem:[#allocation24_spill] sm:$0xff] %v13780_v4  ;;  %v8379_v25 = vadd.f32 %v8378_v9, %v8377_v48  ;;  %v7854_v39 = vsel %vm18728_vm15, 1.0, %v19486_v35  ;;  %v19554_v58 = vpack.c.bf16 %v12984_v38, %v12976_v51 }
 0x1a3   : > { %2393 = vmatprep.mubr.f32.mxu0 %v2392_v54  ;;  %v2412_v31 = vsub.f32 %v13694_v41, %v19553_v27  ;;  %v8466_v1 = vpop.f32.mrb[8].mxu1  ;;  %v13794_v29 = vsub.f32 %v7855_v30, %v7855_v30  ;;  %vm18732_vm12 = vcmp.eq.s32.totalorder %v13315_v56, %v19476_v21  ;;  %v19556_v54 = vpack.c.bf16 %v13002_v45, %v12997_v5 }
 0x1a4   : > { %10545 = vmatpush3.bf16.msra.mxu0 %v19554_v58  ;;  %v19557_v15 = vand.u32 4294901760, %v19468_v40  ;;  %v19558_v9 = vand.u32 4294901760, %v19467_v37  ;;  %v13807_v59 = vadd.f32 %v13681_v32, %v8379_v25  ;;  %v8380_v58 = vpop.f32.mrb[4].mxu0  ;;  %v8467_v30 = vpop.f32.mrb[9].mxu1  ;;  %7987 = vmatmul.mubr.msk.f32.gmra.mrb[114].mxu1 %vm18718_vm2, %v19371_v61  ;;  %v19559_v48 = vand.u32 4294901760, %v13718_v19 }
 0x1a5   : > { %19555 = vst [vmem:[#allocation23_spill] sm:$0xff] %v13794_v29  ;;  %10547 = vmatprep.subr.bf16.mxu0 %v19556_v54  ;;  %v7859_v37 = vsel %vm280_vm13, 1.0, %v19486_v35  ;;  %v13821_v32 = vadd.f32 %v8467_v30, %v8466_v1  ;;  %v8381_v25 = vpop.f32.mrb[5].mxu0  ;;  %7988 = vmatprep.mubr.msk.f32.mxu1 %vm18720_vm0, %v19371_v61  ;;  %v13827_v54 = vsub.f32 %v7854_v39, %v7854_v39  ;;  %v2413_v30 = vand.u32 4294901760, %v2412_v31 }
 0x1a6   : > { %v10582_v27 = vpack.c.bf16 %v19558_v9, %v19557_v15  ;;  %v2421_v41 = vsub.f32 %v13718_v19, %v19559_v48  ;;  %2399 = vmatmul.mubr.f32.gmra.mrb[110].mxu0 %v2398_v20  ;;  %v8382_v15 = vadd.f32 %v8381_v25, %v8380_v58  ;;  %v7858_v48 = vsel %vm18732_vm12, 1.0, %v19486_v35 }
 0x1a7   : > { %19560 = vst [vmem:[#allocation46_spill] sm:$0xff] %v13827_v54  ;;  %2408 = vmatprep.mubr.f32.mxu0 %v2407_v2  ;;  %vm284_vm2 = vcmp.eq.s32.totalorder %v13308_v44, %v19483_v12  ;;  %v19561_v20 = vpack.c.bf16 %v13037_v0, %v13032_v13  ;;  %v8469_v1 = vpop.f32.mrb[10].mxu1  ;;  %v19562_v39 = vand.u32 4294901760, %v13751_v7  ;;  %v13842_v58 = vsub.f32 %v7859_v37, %v7859_v37 }
 0x1a8   : > { %v13846_v9 = vadd.f32 %v13725_v22, %v8382_v15  ;;  %v8383_v40 = vpop.f32.mrb[6].mxu0  ;;  %v8470_v53 = vpop.f32.mrb[11].mxu1  ;;  %7989 = vmatmul.mubr.msk.f32.gmra.mrb[116].mxu1 %vm18721_vm11, %v19371_v61  ;;  %v2422_v31 = vand.u32 4294901760, %v2421_v41  ;;  %vm283_vm0 = vcmp.eq.s32.totalorder %v13315_v56, %v19483_v12  ;;  %v13861_v22 = vsub.f32 %v7858_v48, %v7858_v48 }
 0x1a9   : > { %10549 = vmatpush3.bf16.msra.mxu0 %v19561_v20  ;;  %v2427_v2 = vsub.f32 %v13751_v7, %v19562_v39  ;;  %19563 = vst [vmem:[#allocation49_spill] sm:$0xff] %v13842_v58  ;;  %v19565_v20 = vand.u32 4294901760, %v13766_v6  ;;  %v8471_v37 = vadd.f32 %v8470_v53, %v8469_v1  ;;  %7990 = vmatprep.mubr.msk.f32.mxu1 %vm18725_vm5, %v19371_v61  ;;  %v7863_v41 = vsel %vm284_vm2, 1.0, %v19486_v35 }
 0x1aa   : > { %10583 = vmatprep.subr.bf16.mxu0 %v10582_v27  ;;  %19564 = vst [vmem:[#allocation70_spill] sm:$0xff] %v13846_v9  ;;  %v8384_v27 = vpop.f32.mrb[7].mxu0  ;;  %2414 = vmatmul.mubr.f32.gmra.mrb[112].mxu0 %v2413_v30  ;;  %vm288_vm11 = vcmp.eq.s32.totalorder %v13308_v44, %v19487_v57  ;;  %v19567_v48 = vand.u32 4294901760, %v13794_v29  ;;  %vm287_vm5 = vcmp.eq.s32.totalorder %v13315_v56, %v19487_v57 }
 0x1ab   : > { %v2436_v39 = vsub.f32 %v13766_v6, %v19565_v20  ;;  %v8385_v15 = vadd.f32 %v8384_v27, %v8383_v40  ;;  %2423 = vmatprep.mubr.f32.mxu0 %v2422_v31  ;;  %v19566_v20 = vand.u32 4294901760, %v13780_v4  ;;  %v8472_v30 = vpop.f32.mrb[12].mxu1  ;;  %v2428_v25 = vand.u32 4294901760, %v2427_v2 }
 0x1ac   : > { %v2451_v3 = vsub.f32 %v13794_v29, %v19567_v48  ;;  %v7862_v40 = vsel %vm283_vm0, 1.0, %v19486_v35  ;;  %v8473_v1 = vpop.f32.mrb[13].mxu1  ;;  %7991 = vmatmul.mubr.msk.f32.gmra.mrb[118].mxu1 %vm18728_vm15, %v19371_v61  ;;  %v7866_v6 = vsel %vm287_vm5, 1.0, %v19486_v35 }
 0x1ad   : > { %v2442_v53 = vsub.f32 %v13780_v4, %v19566_v20  ;;  %v13882_v27 = vadd.f32 %v13774_v42, %v8385_v15  ;;  %v8386_v20 = vpop.f32.mrb[8].mxu0  ;;  %v2437_v2 = vand.u32 4294901760, %v2436_v39  ;;  %v13888_v4 = vsub.f32 %v7863_v41, %v7863_v41  ;;  %7992 = vmatprep.mubr.msk.f32.mxu1 %vm280_vm13, %v19371_v61  ;;  %v19569_v15 = vld [vmem:[#allocation54_spill] sm:$0xff] }
 0x1ae   : > { %v8474_v48 = vadd.f32 %v8473_v1, %v8472_v30  ;;  %v8387_v29 = vpop.f32.mrb[9].mxu0  ;;  %2429 = vmatmul.mubr.f32.gmra.mrb[114].mxu0 %v2428_v25  ;;  %v7867_v42 = vsel %vm288_vm11, 1.0, %v19486_v35  ;;  %vm292_vm15 = vcmp.eq.s32.totalorder %v13308_v44, %v19569_v15  ;;  %v13902_v31 = vsub.f32 %v7862_v40, %v7862_v40 }
 0x1af   : > { %19568 = vst [vmem:[#allocation71_spill] sm:$0xff] %v13882_v27  ;;  %v8388_v39 = vadd.f32 %v8387_v29, %v8386_v20  ;;  %2438 = vmatprep.mubr.f32.mxu0 %v2437_v2  ;;  %v2443_v41 = vand.u32 4294901760, %v2442_v53  ;;  %v19571_v25 = vand.u32 4294901760, %v13827_v54  ;;  %v8475_v30 = vpop.f32.mrb[14].mxu1  ;;  %v2452_v55 = vand.u32 4294901760, %v2451_v3 }
 0x1b0   : > { %19570 = vst [vmem:[#allocation72_spill] sm:$0xff] %v13902_v31  ;;  %v19572_v27 = vand.u32 4294901760, %v13842_v58  ;;  %v8389_v40 = vpop.f32.mrb[10].mxu0  ;;  %v8476_v20 = vpop.f32.mrb[15].mxu1  ;;  %7993 = vmatmul.mubr.msk.f32.gmra.mrb[120].mxu1 %vm18732_vm12, %v19371_v61  ;;  %v13922_v3 = vsub.f32 %v7867_v42, %v7867_v42  ;;  %vm291_vm12 = vcmp.eq.s32.totalorder %v13315_v56, %v19569_v15  ;;  %v19576_v2 = vand.u32 4294901760, %v13861_v22 }
 0x1b1   : > { %v2457_v1 = vsub.f32 %v13827_v54, %v19571_v25  ;;  %v13916_v53 = vadd.f32 %v13821_v32, %v8388_v39  ;;  %v8477_v25 = vadd.f32 %v8476_v20, %v8475_v30  ;;  %v8390_v29 = vpop.f32.mrb[11].mxu0  ;;  %7994 = vmatprep.mubr.msk.f32.mxu1 %vm284_vm2, %v19371_v61  ;;  %v13935_v39 = vsub.f32 %v7866_v6, %v7866_v6 }
 0x1b2   : > { %v2466_v9 = vsub.f32 %v13842_v58, %v19572_v27  ;;  %19574 = vst [vmem:[#allocation74_spill] sm:$0xff] %v13922_v3  ;;  %v7871_v27 = vsel %vm292_vm15, 1.0, %v19486_v35  ;;  %2444 = vmatmul.mubr.f32.gmra.mrb[116].mxu0 %v2443_v41  ;;  %v8391_v32 = vadd.f32 %v8390_v29, %v8389_v40  ;;  %v2472_v30 = vsub.f32 %v13861_v22, %v19576_v2 }
 0x1b3   : > { %19573 = vst [vmem:[#allocation73_spill] sm:$0xff] %v13916_v53  ;;  %2453 = vmatprep.mubr.f32.mxu0 %v2452_v55  ;;  %v2458_v42 = vand.u32 4294901760, %v2457_v1  ;;  %19575 = vst [vmem:[#allocation75_spill] sm:$0xff] %v13935_v39  ;;  %v8478_v21 = vpop.f32.mrb[16].mxu1  ;;  %v13940_v41 = vsub.f32 %v7871_v27, %v7871_v27  ;;  %v18740_v20 = vand.u32 4294901760, %v13902_v31  ;;  %v19578_v55 = vand.u32 4294901760, %v13888_v4 }
 0x1b4   : > { %v2467_v53 = vand.u32 4294901760, %v2466_v9  ;;  %v13943_v58 = vadd.f32 %v8471_v37, %v8391_v32  ;;  %v8392_v54 = vpop.f32.mrb[12].mxu0  ;;  %v8479_v7 = vpop.f32.mrb[17].mxu1  ;;  %7995 = vmatmul.mubr.msk.f32.gmra.mrb[122].mxu1 %vm283_vm0, %v19371_v61  ;;  %v7870_v9 = vsel %vm291_vm12, 1.0, %v19486_v35  ;;  %v2473_v2 = vand.u32 4294901760, %v2472_v30 }
 0x1b5   : > { %19577 = vst [vmem:[#allocation76_spill] sm:$0xff] %v13940_v41  ;;  %v2481_v6 = vsub.f32 %v13888_v4, %v19578_v55  ;;  %v8480_v37 = vadd.f32 %v8479_v7, %v8478_v21  ;;  %v8393_v29 = vpop.f32.mrb[13].mxu0  ;;  %7996 = vmatprep.mubr.msk.f32.mxu1 %vm288_vm11, %v19371_v61  ;;  %v13961_v32 = vsub.f32 %v7870_v9, %v7870_v9  ;;  %v18750_v9 = vand.u32 4294901760, %v13940_v41 }
 0x1b6   : > { %2459 = vmatmul.mubr.f32.gmra.mrb[118].mxu0 %v2458_v42  ;;  %v8394_v40 = vadd.f32 %v8393_v29, %v8392_v54  ;;  %v2487_v55 = vsub.f32 %v13902_v31, %v18740_v20 }
 0x1b7   : > { %2468 = vmatprep.mubr.f32.mxu0 %v2467_v53  ;;  %v8481_v27 = vpop.f32.mrb[18].mxu1  ;;  %19579 = vst [vmem:[#allocation77_spill] sm:$0xff] %v13961_v32  ;;  %v2482_v54 = vand.u32 4294901760, %v2481_v6  ;;  %v19581_v53 = vand.u32 4294901760, %v13922_v3  ;;  %v19582_v6 = vand.u32 4294901760, %v13935_v39  ;;  %v19586_v12 = vand.u32 4294901760, %v13961_v32 }
 0x1b8   : > { %v13967_v21 = vadd.f32 %v8474_v48, %v8394_v40  ;;  %v8395_v7 = vpop.f32.mrb[14].mxu0  ;;  %v8482_v42 = vpop.f32.mrb[19].mxu1  ;;  %7997 = vmatmul.mubr.msk.f32.gmra.mrb[124].mxu1 %vm287_vm5, %v19371_v61  ;;  %v2488_v1 = vand.u32 4294901760, %v2487_v55 }
 0x1b9   : > { %v2496_v30 = vsub.f32 %v13922_v3, %v19581_v53  ;;  %v8483_v29 = vadd.f32 %v8482_v42, %v8481_v27  ;;  %v8396_v20 = vpop.f32.mrb[15].mxu0  ;;  %7998 = vmatprep.mubr.msk.f32.mxu1 %vm292_vm15, %v19371_v61  ;;  %v2502_v57 = vsub.f32 %v13935_v39, %v19582_v6  ;;  %v2517_v15 = vsub.f32 %v13961_v32, %v19586_v12  ;;  %v14008_v12 = vld [vmem:[#allocation3 + $0x288] sm:$0xff]  ;;  %v19605_v39 = vld [vmem:[#allocation25_spill] sm:$0xff] }
 0x1ba   : > { %19580 = vst [vmem:[#allocation78_spill] sm:$0xff] %v13967_v21  ;;  %2474 = vmatmul.mubr.f32.gmra.mrb[120].mxu0 %v2473_v2  ;;  %v8397_v48 = vadd.f32 %v8396_v20, %v8395_v7  ;;  %v2511_v20 = vsub.f32 %v13940_v41, %v18750_v9 }
 0x1bb   : > { %2483 = vmatprep.mubr.f32.mxu0 %v2482_v54  ;;  %v8484_v40 = vpop.f32.mrb[20].mxu1  ;;  %v2497_v2 = vand.u32 4294901760, %v2496_v30  ;;  %v19584_v54 = vld [vmem:[#allocation30_spill] sm:$0xff]  ;;  %v2503_v53 = vand.u32 4294901760, %v2502_v57  ;;  %v19592_v57 = vld [vmem:[#allocation39_spill] sm:$0xff] }
 0x1bc   : > { %v13985_v35 = vadd.f32 %v8477_v25, %v8397_v48  ;;  %v8398_v27 = vpop.f32.mrb[16].mxu0  ;;  %v8485_v42 = vpop.f32.mrb[21].mxu1  ;;  %7999 = vmatmul.mubr.msk.f32.gmra.mrb[126].mxu1 %vm291_vm12, %v19371_v61  ;;  %v19585_v6 = vand.u32 4294901760, %v19584_v54  ;;  %v19588_v61 = vld [vmem:[#allocation64_spill] sm:$0xff] }
 0x1bd   : > { %v8486_v55 = vadd.f32 %v8485_v42, %v8484_v40  ;;  %v8399_v7 = vpop.f32.mrb[17].mxu0  ;;  %v19589_v9 = vand.u32 4294901760, %v19588_v61  ;;  %v2512_v40 = vand.u32 4294901760, %v2511_v20 }
 0x1be   : > { %19583 = vst [vmem:[#allocation79_spill] sm:$0xff] %v13985_v35  ;;  %2489 = vmatmul.mubr.f32.gmra.mrb[122].mxu0 %v2488_v1  ;;  %3233 = vmatprep.mubr.f32.mxu1 %v19585_v6  ;;  %v8400_v25 = vadd.f32 %v8399_v7, %v8398_v27  ;;  %v19590_v6 = vld [vmem:[#allocation65_spill] sm:$0xff]  ;;  %v19601_v35 = vld [vmem:[#allocation20_spill] sm:$0xff] }
 0x1bf   : > { %2498 = vmatprep.mubr.f32.mxu0 %v2497_v2  ;;  %v8487_v48 = vpop.f32.mrb[22].mxu1  ;;  %v19591_v27 = vand.u32 4294901760, %v19590_v6  ;;  %v14006_v7 = vld [vmem:[#allocation3 + $0x280] sm:$0xff] }
 0x1c0   : > { %v13999_v56 = vadd.f32 %v8480_v37, %v8400_v25  ;;  %v8401_v30 = vpop.f32.mrb[18].mxu0  ;;  %v8488_v44 = vpop.f32.mrb[23].mxu1  ;;  %3237 = vmatmul.mubr.f32.vlgmr.msra.gmra.mrb[128].mxu1 %v19589_v9  ;;  %v2518_v25 = vand.u32 4294901760, %v2517_v15  ;;  %v14011_v9 = vld [vmem:[#allocation3 + $0x200] sm:$0xff]  ;;  %v18758_v15 = vand.u32 4294901760, %v14008_v12 }
 0x1c1   : > { %v8489_v1 = vadd.f32 %v8488_v44, %v8487_v48  ;;  %v8402_v42 = vpop.f32.mrb[19].mxu0  ;;  %3244 = vmatprep.mubr.f32.mxu1 %v19591_v27  ;;  %10617 = vmatpush3.bf16.msra.mxu1 %v19592_v57  ;;  %v19595_v48 = vld [vmem:[#allocation66_spill] sm:$0xff]  ;;  %v19597_v57 = vld [vmem:[#allocation67_spill] sm:$0xff] }
 0x1c2   : > { %19587 = vst [vmem:[#allocation30_spill] sm:$0xff] %v13999_v56  ;;  %2504 = vmatmul.mubr.f32.gmra.mrb[124].mxu0 %v2503_v53  ;;  %v8403_v2 = vadd.f32 %v8402_v42, %v8401_v30  ;;  %v19593_v56 = vld [vmem:[#allocation17_spill] sm:$0xff]  ;;  %v19596_v27 = vand.u32 4294901760, %v19595_v48  ;;  %v14017_v30 = vld [vmem:[#allocation3 + $0x208] sm:$0xff]  ;;  %v19598_v32 = vand.u32 4294901760, %v19597_v57 }
 0x1c3   : > { %2513 = vmatprep.mubr.f32.mxu0 %v2512_v40  ;;  %v8490_v37 = vpop.f32.mrb[24].mxu1  ;;  %10619 = vmatprep.subr.bf16.mxu1 %v19593_v56 }
 0x1c4   : > { %v14013_v44 = vadd.f32 %v8483_v29, %v8403_v2  ;;  %v8404_v53 = vpop.f32.mrb[20].mxu0  ;;  %v8491_v20 = vpop.f32.mrb[25].mxu1  ;;  %3248 = vmatmul.mubr.f32.gmra.mrb[130].mxu1 %v19596_v27  ;;  %v19599_v2 = vand.u32 4294901760, %v19504_v36  ;;  %v19600_v27 = vand.u32 4294901760, %v19503_v34  ;;  %v19607_v34 = vld [vmem:[#allocation68_spill] sm:$0xff] }
 0x1c5   : > { %v14019_v40 = vadd.f32 %v8491_v20, %v8490_v37  ;;  %v8405_v42 = vpop.f32.mrb[21].mxu0  ;;  %3255 = vmatprep.mubr.f32.mxu1 %v19598_v32  ;;  %10621 = vmatpush3.bf16.msra.mxu1 %v19601_v35  ;;  %v19602_v20 = vand.u32 4294901760, %v19509_v49  ;;  %v19603_v32 = vld [vmem:[#allocation12_spill] sm:$0xff]  ;;  %v19609_v35 = vand.u32 4294901760, %v19514_v17  ;;  %v14046_v49 = vld [vmem:[#allocation3 + $0x290] sm:$0xff] }
 0x1c6   : > { %19594 = vst [vmem:[#allocation64_spill] sm:$0xff] %v14013_v44  ;;  %2519 = vmatmul.mubr.f32.gmra.mrb[126].mxu0 %v2518_v25  ;;  %v8406_v29 = vadd.f32 %v8405_v42, %v8404_v53  ;;  %v10584_v44 = vpack.c.bf16 %v19600_v27, %v19599_v2  ;;  %v19604_v41 = vand.u32 4294901760, %v19603_v32  ;;  %10623 = vmatprep.subr.bf16.mxu1 %v19605_v39  ;;  %v18757_v53 = vand.u32 4294901760, %v14017_v30  ;;  %v14048_v32 = vld [vmem:[#allocation3 + $0x298] sm:$0xff] }
 0x1c7   : > { %2991 = vmatprep.mubr.f32.mxu0 %v19584_v54  ;;  %v8493_v25 = vpop.f32.mrb[26].mxu1  ;;  %v19608_v2 = vand.u32 4294901760, %v19607_v34  ;;  %v19610_v27 = vand.u32 4294901760, %v19513_v8  ;;  %v14063_v8 = vsub.f32 %v14008_v12, %v18758_v15 }
 0x1c8   : > { %v10586_v56 = vpack.c.bf16 %v19604_v41, %v19602_v20  ;;  %v14038_v54 = vadd.f32 %v8486_v55, %v8406_v29  ;;  %v8407_v36 = vpop.f32.mrb[22].mxu0  ;;  %v8494_v42 = vpop.f32.mrb[27].mxu1  ;;  %v19611_v55 = vld [vmem:[#allocation69_spill] sm:$0xff]  ;;  %v19613_v20 = vand.u32 4294901760, %v14006_v7 }
 0x1c9   : > { %3259 = vmatmul.mubr.f32.gmra.mrb[132].mxu1 %v19608_v2  ;;  %v10588_v37 = vpack.c.bf16 %v19610_v27, %v19609_v35  ;;  %v14050_v41 = vadd.f32 %v8494_v42, %v8493_v25  ;;  %v8408_v39 = vpop.f32.mrb[23].mxu0  ;;  %v19612_v29 = vand.u32 4294901760, %v19611_v55  ;;  %19615 = vst [vmem:[#allocation17_spill] sm:$0xff] %v14063_v8  ;;  %v19616_v25 = vand.u32 4294901760, %v19519_v47 }
 0x1ca   : > { %19606 = vst [vmem:[#allocation65_spill] sm:$0xff] %v14038_v54  ;;  %2994 = vmatmul.mubr.f32.vlgmr.msra.gmra.mrb[128].mxu0 %v19588_v61  ;;  %v14058_v2 = vsub.f32 %v14006_v7, %v19613_v20  ;;  %v8409_v17 = vadd.f32 %v8408_v39, %v8407_v36  ;;  %v19617_v61 = vand.u32 4294901760, %v19518_v24  ;;  %v19618_v35 = vand.u32 4294901760, %v14011_v9  ;;  %v19620_v20 = vld [vmem:[#allocation53_spill] sm:$0xff]  ;;  %v14083_v24 = vld [vmem:[#allocation3 + $0x210] sm:$0xff]  ;;  %v14085_v36 = vld [vmem:[#allocation3 + $0x218] sm:$0xff] }
 0x1cb   : > { %3266 = vmatprep.mubr.f32.mxu1 %v19612_v29  ;;  %10585 = vmatpush3.bf16.msra.mxu0 %v10584_v44  ;;  %v8496_v29 = vpop.f32.mrb[28].mxu1  ;;  %v14079_v44 = vsub.f32 %v14017_v30, %v18757_v53  ;;  %v19625_v47 = vand.u32 4294901760, %v13504_v14  ;;  %v19631_v54 = vld [vmem:[#allocation41_spill] sm:$0xff] }
 0x1cc   : > { %19614 = vst [vmem:[#allocation39_spill] sm:$0xff] %v14058_v2  ;;  %3000 = vmatprep.mubr.f32.mxu0 %v19590_v6  ;;  %v10590_v42 = vpack.c.bf16 %v19617_v61, %v19616_v25  ;;  %v14073_v27 = vsub.f32 %v14011_v9, %v19618_v35  ;;  %10587 = vmatprep.subr.bf16.mxu0 %v10586_v56  ;;  %v8410_v56 = vpop.f32.mrb[24].mxu0  ;;  %v8497_v61 = vpop.f32.mrb[29].mxu1  ;;  %v19623_v35 = vand.u32 4294901760, %v13495_v50  ;;  %v19632_v21 = vand.u32 4294901760, %v19631_v54 }
 0x1cd   : > { %10625 = vmatpush3.bf16.msra.mxu1 %v19620_v20  ;;  %19621 = vst [vmem:[#allocation67_spill] sm:$0xff] %v14079_v44  ;;  %v14089_v25 = vadd.f32 %v8489_v1, %v8409_v17  ;;  %v19624_v20 = vld [vmem:[#allocation55_spill] sm:$0xff]  ;;  %v14094_v53 = vadd.f32 %v8497_v61, %v8496_v29  ;;  %v8411_v15 = vpop.f32.mrb[25].mxu0  ;;  %v19626_v17 = vld [vmem:[#allocation18_spill] sm:$0xff]  ;;  %v19644_v61 = vand.u32 4294901760, %v19532_v23  ;;  %v19645_v29 = vld [vmem:[#allocation44_spill] sm:$0xff] }
 0x1ce   : > { %19619 = vst [vmem:[#allocation66_spill] sm:$0xff] %v14073_v27  ;;  %3270 = vmatmul.mubr.f32.gmra.mrb[134].mxu1 %v19623_v35  ;;  %10627 = vmatprep.subr.bf16.mxu1 %v19624_v20  ;;  %v8412_v1 = vadd.f32 %v8411_v15, %v8410_v56  ;;  %v19627_v6 = vand.u32 4294901760, %v19626_v17  ;;  %v19628_v35 = vld [vmem:[#allocation13_spill] sm:$0xff]  ;;  %v19633_v15 = vld [vmem:[#allocation56_spill] sm:$0xff] }
 0x1cf   : > { %19622 = vst [vmem:[#allocation20_spill] sm:$0xff] %v14089_v25  ;;  %3003 = vmatmul.mubr.f32.gmra.mrb[130].mxu0 %v19595_v48  ;;  %3277 = vmatprep.mubr.f32.mxu1 %v19625_v47  ;;  %v19629_v25 = vand.u32 4294901760, %v19628_v35  ;;  %v8499_v48 = vpop.f32.mrb[30].mxu1  ;;  %v19630_v47 = vand.u32 4294901760, %v19527_v52  ;;  %v19641_v35 = vld [vmem:[#allocation57_spill] sm:$0xff] }
 0x1d0   : > { %3009 = vmatprep.mubr.f32.mxu0 %v19597_v57  ;;  %10589 = vmatpush3.bf16.msra.mxu0 %v10588_v37  ;;  %v19634_v37 = vand.u32 4294901760, %v14046_v49  ;;  %v8413_v52 = vpop.f32.mrb[26].mxu0  ;;  %v8500_v54 = vpop.f32.mrb[31].mxu1 }
 0x1d1   : > { %v10592_v20 = vpack.c.bf16 %v19629_v25, %v19627_v6  ;;  %10591 = vmatprep.subr.bf16.mxu0 %v10590_v42  ;;  %v10594_v39 = vpack.c.bf16 %v19632_v21, %v19630_v47  ;;  %10629 = vmatpush3.bf16.msra.mxu1 %v19633_v15  ;;  %v19636_v6 = vand.u32 4294901760, %v14048_v32  ;;  %v14125_v42 = vadd.f32 %v14019_v40, %v8412_v1  ;;  %v19639_v21 = vld [vmem:[#allocation35_spill] sm:$0xff]  ;;  %v14131_v15 = vld [vmem:[#allocation3 + $0x2a0] sm:$0xff]  ;;  %v19642_v40 = vld [vmem:[#allocation10_spill] sm:$0xff] }
 0x1d2   : > { %v14117_v56 = vsub.f32 %v14046_v49, %v19634_v37  ;;  %v19640_v17 = vand.u32 4294901760, %v19639_v21  ;;  %10631 = vmatprep.subr.bf16.mxu1 %v19641_v35  ;;  %v14133_v37 = vld [vmem:[#allocation3 + $0x2a8] sm:$0xff]  ;;  %v14135_v57 = vadd.f32 %v8500_v54, %v8499_v48  ;;  %v19643_v1 = vand.u32 4294901760, %v19642_v40 }
 0x1d3   : > { %v14122_v25 = vsub.f32 %v14048_v32, %v19636_v6  ;;  %19638 = vst [vmem:[#allocation68_spill] sm:$0xff] %v14125_v42  ;;  %v8414_v6 = vpop.f32.mrb[27].mxu0  ;;  %3012 = vmatmul.mubr.f32.gmra.mrb[132].mxu0 %v19607_v34  ;;  %v19647_v48 = vand.u32 4294901760, %v14083_v24  ;;  %v19649_v34 = vand.u32 4294901760, %v14085_v36  ;;  %v8614_v23 = vpop.f32.mrb[32].mxu1  ;;  %v14171_v35 = vld [vmem:[#allocation3 + $0x228] sm:$0xff] }
 0x1d4   : > { %19635 = vst [vmem:[#allocation12_spill] sm:$0xff] %v14117_v56  ;;  %3281 = vmatmul.mubr.f32.gmra.mrb[136].mxu1 %v19640_v17  ;;  %v19646_v17 = vand.u32 4294901760, %v19645_v29  ;;  %v8415_v47 = vadd.f32 %v8414_v6, %v8413_v52  ;;  %3018 = vmatprep.mubr.f32.mxu0 %v19611_v55  ;;  %v19651_v29 = vand.u32 4294901760, %v19536_v46  ;;  %v19653_v6 = vld [vmem:[#allocation58_spill] sm:$0xff]  ;;  %v19654_v55 = vand.u32 4294901760, %v14058_v2  ;;  %19655 = vst [vmem:[#allocation55_spill] sm:$0xff] %v14171_v35 }
 0x1d5   : > { %19637 = vst [vmem:[#allocation25_spill] sm:$0xff] %v14122_v25  ;;  %3288 = vmatprep.mubr.f32.mxu1 %v19643_v1  ;;  %10593 = vmatpush3.bf16.msra.mxu0 %v10592_v20  ;;  %v14150_v54 = vsub.f32 %v14083_v24, %v19647_v48  ;;  %v14155_v1 = vsub.f32 %v14085_v36, %v19649_v34  ;;  %v14169_v34 = vld [vmem:[#allocation3 + $0x220] sm:$0xff]  ;;  %v19666_v48 = vld [vmem:[#allocation50_spill] sm:$0xff] }
 0x1d6   : > { %v10596_v42 = vpack.c.bf16 %v19646_v17, %v19644_v61  ;;  %10595 = vmatprep.subr.bf16.mxu0 %v10594_v39  ;;  %v19652_v61 = vand.u32 4294901760, %v19535_v28  ;;  %10633 = vmatpush3.bf16.msra.mxu1 %v19653_v6  ;;  %v14165_v20 = vsub.f32 %v14058_v2, %v19654_v55  ;;  %v14174_v46 = vadd.f32 %v14050_v41, %v8415_v47  ;;  %v8416_v28 = vpop.f32.mrb[28].mxu0  ;;  %v8615_v39 = vpop.f32.mrb[33].mxu1  ;;  %v19659_v6 = vld [vmem:[#allocation59_spill] sm:$0xff] }
 0x1d7   : > { %19648 = vst [vmem:[#allocation69_spill] sm:$0xff] %v14150_v54  ;;  %19650 = vst [vmem:[#allocation53_spill] sm:$0xff] %v14155_v1  ;;  %10635 = vmatprep.subr.bf16.mxu1 %v19659_v6  ;;  %v19660_v55 = vand.u32 4294901760, %v14063_v8  ;;  %v14184_v2 = vadd.f32 %v8615_v39, %v8614_v23  ;;  %v8417_v3 = vpop.f32.mrb[29].mxu0  ;;  %3021 = vmatmul.mubr.f32.gmra.mrb[134].mxu0 %v13495_v50  ;;  %v19661_v41 = vand.u32 4294901760, %v13580_v33  ;;  %v19663_v6 = vld [vmem:[#allocation47_spill] sm:$0xff] }
 0x1d8   : > { %v10598_v52 = vpack.c.bf16 %v19652_v61, %v19651_v29  ;;  %19656 = vst [vmem:[#allocation18_spill] sm:$0xff] %v14174_v46  ;;  %v19657_v29 = vld [vmem:[#allocation33_spill] sm:$0xff]  ;;  %v8418_v47 = vadd.f32 %v8417_v3, %v8416_v28  ;;  %3027 = vmatprep.mubr.f32.mxu0 %v13504_v14  ;;  %v19664_v46 = vand.u32 4294901760, %v19663_v6  ;;  %v8617_v39 = vpop.f32.mrb[34].mxu1  ;;  %v19665_v50 = vand.u32 4294901760, %v19544_v11  ;;  %v19668_v3 = vld [vmem:[#allocation60_spill] sm:$0xff] }
 0x1d9   : > { %v19658_v61 = vand.u32 4294901760, %v19657_v29  ;;  %v4703_v17 = vsub.f32 %v14063_v8, %v19660_v55  ;;  %10597 = vmatpush3.bf16.msra.mxu0 %v10596_v42  ;;  %v19667_v31 = vand.u32 4294901760, %v19666_v48  ;;  %v19669_v14 = vand.u32 4294901760, %v14131_v15  ;;  %v8618_v11 = vpop.f32.mrb[35].mxu1 }
 0x1da   : > { %10599 = vmatprep.subr.bf16.mxu0 %v10598_v52  ;;  %10637 = vmatpush3.bf16.msra.mxu1 %v19668_v3  ;;  %v19671_v42 = vand.u32 4294901760, %v14133_v37  ;;  %v14212_v28 = vadd.f32 %v14094_v53, %v8418_v47  ;;  %v8419_v52 = vpop.f32.mrb[30].mxu0  ;;  %v4697_v6 = vand.u32 4294901760, %v14165_v20  ;;  %v14218_v3 = vld [vmem:[#allocation3 + $0x2b0] sm:$0xff]  ;;  %v14222_v23 = vadd.f32 %v8618_v11, %v8617_v39  ;;  %v19677_v53 = vld [vmem:[#allocation14_spill] sm:$0xff]  ;;  %v14254_v20 = vld [vmem:[#allocation3 + $0x238] sm:$0xff] }
 0x1db   : > { %3292 = vmatmul.mubr.f32.gmra.mrb[138].mxu1 %v19658_v61  ;;  %v19662_v61 = vand.u32 4294901760, %v19540_v62  ;;  %v14204_v62 = vsub.f32 %v14131_v15, %v19669_v14  ;;  %v14220_v14 = vld [vmem:[#allocation3 + $0x2b8] sm:$0xff]  ;;  %3030 = vmatmul.mubr.f32.gmra.mrb[136].mxu0 %v19639_v21  ;;  %v19678_v47 = vand.u32 4294901760, %v19677_v53  ;;  %v19679_v8 = vand.u32 4294901760, %v12915_v18  ;;  %v14244_v18 = vld [vmem:[#allocation3 + $0x230] sm:$0xff] }
 0x1dc   : > { %3299 = vmatprep.mubr.f32.mxu1 %v19661_v41  ;;  %v10602_v41 = vpack.c.bf16 %v19667_v31, %v19665_v50  ;;  %19673 = vst [vmem:[#allocation56_spill] sm:$0xff] %v14212_v28  ;;  %v19676_v31 = vld [vmem:[#allocation61_spill] sm:$0xff]  ;;  %v4704_v50 = vand.u32 4294901760, %v4703_v17  ;;  %3036 = vmatprep.mubr.f32.mxu0 %v19642_v40  ;;  %v19681_v39 = vand.u32 4294901760, %v14169_v34  ;;  %v19683_v21 = vand.u32 4294901760, %v14171_v35 }
 0x1dd   : > { %v10600_v55 = vpack.c.bf16 %v19664_v46, %v19662_v61  ;;  %19670 = vst [vmem:[#allocation13_spill] sm:$0xff] %v14204_v62  ;;  %v14209_v46 = vsub.f32 %v14133_v37, %v19671_v42  ;;  %v19674_v61 = vld [vmem:[#allocation9_spill] sm:$0xff]  ;;  %10639 = vmatprep.subr.bf16.mxu1 %v19676_v31  ;;  %v8420_v42 = vpop.f32.mrb[31].mxu0 }
 0x1de   : > { %v19675_v48 = vand.u32 4294901760, %v19674_v61  ;;  %v8421_v17 = vadd.f32 %v8420_v42, %v8419_v52  ;;  %v14237_v11 = vsub.f32 %v14169_v34, %v19681_v39  ;;  %v19686_v52 = vand.u32 4294901760, %v12946_v26  ;;  %v8534_v28 = vpop.f32.mrb[32].mxu0  ;;  %v19691_v26 = vld [vmem:[#allocation63_spill] sm:$0xff] }
 0x1df   : > { %19672 = vst [vmem:[#allocation41_spill] sm:$0xff] %v14209_v46  ;;  %10601 = vmatpush3.bf16.msra.mxu0 %v10600_v55  ;;  %v19687_v55 = vld [vmem:[#allocation62_spill] sm:$0xff]  ;;  %v8535_v39 = vpop.f32.mrb[33].mxu0 }
 0x1e0   : > { %3303 = vmatmul.mubr.f32.gmra.mrb[140].mxu1 %v19675_v48  ;;  %v19680_v48 = vand.u32 4294901760, %v12920_v10  ;;  %19682 = vst [vmem:[#allocation35_spill] sm:$0xff] %v14237_v11  ;;  %v8620_v10 = vpop.f32.mrb[36].mxu1  ;;  %10603 = vmatprep.subr.bf16.mxu0 %v10602_v41 }
 0x1e1   : > { %3310 = vmatprep.mubr.f32.mxu1 %v19678_v47  ;;  %v14242_v47 = vsub.f32 %v14171_v35, %v19683_v21  ;;  %10641 = vmatpush3.bf16.msra.mxu1 %v19687_v55  ;;  %v14257_v21 = vadd.f32 %v14135_v57, %v8421_v17  ;;  %v8621_v41 = vpop.f32.mrb[37].mxu1  ;;  %v19689_v35 = vld [vmem:[#allocation16_spill] sm:$0xff]  ;;  %v19692_v57 = vand.u32 4294901760, %v13653_v63  ;;  %v18770_v17 = vand.u32 4294901760, %v14244_v18 }
 0x1e2   : > { %v10604_v31 = vpack.c.bf16 %v19680_v48, %v19679_v8  ;;  %v19685_v8 = vand.u32 4294901760, %v12941_v43  ;;  %v19690_v43 = vand.u32 4294901760, %v19689_v35  ;;  %10643 = vmatprep.subr.bf16.mxu1 %v19691_v26  ;;  %v14265_v42 = vadd.f32 %v8621_v41, %v8620_v10  ;;  %3039 = vmatmul.mubr.f32.gmra.mrb[138].mxu0 %v19657_v29  ;;  %v8623_v55 = vpop.f32.mrb[38].mxu1 }
 0x1e3   : > { %19684 = vst [vmem:[#allocation57_spill] sm:$0xff] %v14242_v47  ;;  %19688 = vst [vmem:[#allocation10_spill] sm:$0xff] %v14257_v21  ;;  %v8536_v48 = vadd.f32 %v8535_v39, %v8534_v28  ;;  %3045 = vmatprep.mubr.f32.mxu0 %v13580_v33  ;;  %v19695_v10 = vand.u32 4294901760, %v12997_v5  ;;  %v19696_v41 = vand.u32 4294901760, %v13002_v45  ;;  %v18769_v29 = vand.u32 4294901760, %v14254_v20 }
 0x1e4   : > { %v10606_v40 = vpack.c.bf16 %v19686_v52, %v19685_v8  ;;  %3314 = vmatmul.mubr.f32.gmra.mrb[142].mxu1 %v19690_v43  ;;  %v10678_v8 = vpack.c.bf16 %v4704_v50, %v4697_v6  ;;  %v18768_v52 = vand.u32 4294901760, %v14079_v44  ;;  %10605 = vmatpush3.bf16.msra.mxu0 %v10604_v31  ;;  %v19693_v6 = vand.u32 4294901760, %v12976_v51 }
 0x1e5   : > { %3321 = vmatprep.mubr.f32.mxu1 %v19692_v57  ;;  %v19694_v50 = vand.u32 4294901760, %v12984_v38  ;;  %v10610_v26 = vpack.c.bf16 %v19696_v41, %v19695_v10  ;;  %10645 = vmatpush3.bf16.msra.mxu1 %v13256_v60  ;;  %v19697_v28 = vand.u32 4294901760, %v13032_v13  ;;  %v19698_v33 = vand.u32 4294901760, %v13037_v0  ;;  %v8624_v57 = vpop.f32.mrb[39].mxu1  ;;  %v19703_v60 = vld [vmem:[#allocation15_spill] sm:$0xff]  ;;  %v14305_v10 = vld [vmem:[#allocation3 + $0x2c0] sm:$0xff] }
 0x1e6   : > { %10607 = vmatprep.subr.bf16.mxu0 %v10606_v40  ;;  %v19699_v51 = vand.u32 4294901760, %v14218_v3  ;;  %v19701_v5 = vand.u32 4294901760, %v14220_v14  ;;  %v1294_v39 = vadd.f32 %v8536_v48, %v13760_v16  ;;  %v8537_v40 = vpop.f32.mrb[34].mxu0  ;;  %10679 = vmatprep.subr.bf16.mxu1 %v10678_v8  ;;  %v19705_v0 = vand.u32 4294901760, %v14073_v27  ;;  %v14307_v41 = vld [vmem:[#allocation3 + $0x2c8] sm:$0xff] }
 0x1e7   : > { %v10608_v43 = vpack.c.bf16 %v19694_v50, %v19693_v6  ;;  %v10612_v31 = vpack.c.bf16 %v19698_v33, %v19697_v28  ;;  %v19704_v6 = vand.u32 4294901760, %v19703_v60  ;;  %v4591_v50 = vsub.f32 %v14079_v44, %v18768_v52  ;;  %v8538_v16 = vpop.f32.mrb[35].mxu0  ;;  %3048 = vmatmul.mubr.f32.gmra.mrb[140].mxu0 %v19674_v61  ;;  %v19741_v44 = vld [vmem:[#allocation46_spill] sm:$0xff] }
 0x1e8   : > { %v14289_v38 = vsub.f32 %v14218_v3, %v19699_v51  ;;  %v14294_v45 = vsub.f32 %v14220_v14, %v19701_v5  ;;  %v4584_v13 = vsub.f32 %v14073_v27, %v19705_v0  ;;  %v14309_v28 = vadd.f32 %v8624_v57, %v8623_v55  ;;  %3054 = vmatprep.mubr.f32.mxu0 %v19677_v53  ;;  %v8626_v57 = vpop.f32.mrb[40].mxu1  ;;  %v8540_v52 = vpop.f32.mrb[36].mxu0  ;;  %v19713_v51 = vld [vmem:[#allocation19_spill] sm:$0xff] }
 0x1e9   : > { %3325 = vmatmul.mubr.f32.gmra.mrb[144].mxu1 %v19704_v6  ;;  %v19706_v48 = vand.u32 4294901760, %v13718_v19  ;;  %v18771_v8 = vand.u32 4294901760, %v14117_v56  ;;  %v14318_v33 = vsub.f32 %v14244_v18, %v18770_v17  ;;  %v8539_v5 = vadd.f32 %v8538_v16, %v8537_v40  ;;  %10609 = vmatpush3.bf16.msra.mxu0 %v10608_v43  ;;  %v14340_v43 = vld [vmem:[#allocation3 + $0x240] sm:$0xff]  ;;  %v8541_v17 = vpop.f32.mrb[37].mxu0 }
 0x1ea   : > { %19700 = vst [vmem:[#allocation44_spill] sm:$0xff] %v14289_v38  ;;  %19702 = vst [vmem:[#allocation58_spill] sm:$0xff] %v14294_v45  ;;  %v14324_v55 = vadd.f32 %v14184_v2, %v1294_v39  ;;  %v14329_v61 = vsub.f32 %v14254_v20, %v18769_v29  ;;  %10611 = vmatprep.subr.bf16.mxu0 %v10610_v26  ;;  %v19710_v6 = vand.u32 4294901760, %v14006_v7  ;;  %v19711_v0 = vand.u32 4294901760, %v14008_v12  ;;  %v14342_v39 = vld [vmem:[#allocation3 + $0x248] sm:$0xff]  ;;  %v8627_v26 = vpop.f32.mrb[41].mxu1 }
 0x1eb   : > { %3332 = vmatprep.mubr.f32.mxu1 %v19706_v48  ;;  %19707 = vst [vmem:[#allocation33_spill] sm:$0xff] %v14318_v33  ;;  %v18772_v40 = vand.u32 4294901760, %v14122_v25  ;;  %v1303_v16 = vadd.f32 %v8539_v5, %v13807_v59  ;;  %v19714_v7 = vand.u32 4294901760, %v19713_v51  ;;  %v4585_v12 = vand.u32 4294901760, %v4584_v13  ;;  %3057 = vmatmul.mubr.f32.gmra.mrb[142].mxu0 %v19689_v35  ;;  %v19715_v2 = vld [vmem:[#allocation22_spill] sm:$0xff]  ;;  %v8629_v35 = vpop.f32.mrb[42].mxu1 }
 0x1ec   : > { %19708 = vst [vmem:[#allocation59_spill] sm:$0xff] %v14324_v55  ;;  %19709 = vst [vmem:[#allocation47_spill] sm:$0xff] %v14329_v61  ;;  %v14335_v48 = vpack.c.bf16 %v19711_v0, %v19710_v6  ;;  %v4592_v6 = vand.u32 4294901760, %v4591_v50  ;;  %v14349_v29 = vadd.f32 %v8627_v26, %v8626_v57  ;;  %v19716_v53 = vand.u32 4294901760, %v19715_v2  ;;  %3063 = vmatprep.mubr.f32.mxu0 %v13653_v63  ;;  %v19740_v50 = vld [vmem:[#allocation71_spill] sm:$0xff] }
 0x1ed   : > { %3336 = vmatmul.mubr.f32.gmra.mrb[146].mxu1 %v19714_v7  ;;  %v14357_v59 = vsub.f32 %v14117_v56, %v18771_v8  ;;  %v8542_v5 = vadd.f32 %v8541_v17, %v8540_v52  ;;  %10613 = vmatpush3.bf16.msra.mxu0 %v10612_v31  ;;  %v14361_v13 = vadd.f32 %v14222_v23, %v1303_v16  ;;  %v19719_v26 = vand.u32 4294901760, %v14017_v30  ;;  %v19724_v16 = vld [vmem:[#allocation70_spill] sm:$0xff]  ;;  %v8543_v8 = vpop.f32.mrb[38].mxu0  ;;  %v8630_v30 = vpop.f32.mrb[43].mxu1  ;;  %v14397_v56 = vld [vmem:[#allocation3 + $0x2d0] sm:$0xff] }
 0x1ee   : > { %19712 = vst [vmem:[#allocation50_spill] sm:$0xff] %v14335_v48  ;;  %3343 = vmatprep.mubr.f32.mxu1 %v19716_v53  ;;  %10647 = vmatprep.subr.bf16.mxu0 %v14335_v48  ;;  %v19718_v53 = vand.u32 4294901760, %v14011_v9  ;;  %v4717_v63 = vsub.f32 %v14122_v25, %v18772_v40  ;;  %v19720_v23 = vand.u32 4294901760, %v14305_v10  ;;  %v19722_v17 = vand.u32 4294901760, %v14307_v41 }
 0x1ef   : > { %19717 = vst [vmem:[#allocation60_spill] sm:$0xff] %v14361_v13  ;;  %v1312_v9 = vadd.f32 %v8542_v5, %v19724_v16  ;;  %v14388_v0 = vpack.c.bf16 %v4592_v6, %v4585_v12  ;;  %v19727_v40 = vand.u32 4294901760, %v14046_v49  ;;  %v19728_v57 = vand.u32 4294901760, %v14048_v32  ;;  %v8544_v16 = vpop.f32.mrb[39].mxu0  ;;  %3066 = vmatmul.mubr.f32.gmra.mrb[144].mxu0 %v19703_v60 }
 0x1f0   : > { %v14370_v7 = vpack.c.bf16 %v19719_v26, %v19718_v53  ;;  %v14378_v52 = vsub.f32 %v14305_v10, %v19720_v23  ;;  %v14383_v31 = vsub.f32 %v14307_v41, %v19722_v17  ;;  %v19725_v53 = vld [vmem:[#allocation24_spill] sm:$0xff]  ;;  %v14401_v5 = vadd.f32 %v8630_v30, %v8629_v35  ;;  %3072 = vmatprep.mubr.f32.mxu0 %v13718_v19 }
 0x1f1   : > { %v19726_v26 = vand.u32 4294901760, %v19725_v53  ;;  %v14394_v23 = vpack.c.bf16 %v19728_v57, %v19727_v40  ;;  %v14399_v17 = vld [vmem:[#allocation3 + $0x2d8] sm:$0xff]  ;;  %v4711_v49 = vand.u32 4294901760, %v14357_v59  ;;  %v8545_v6 = vadd.f32 %v8544_v16, %v8543_v8  ;;  %v14432_v40 = vld [vmem:[#allocation3 + $0x250] sm:$0xff] }
 0x1f2   : > { %19721 = vst [vmem:[#allocation9_spill] sm:$0xff] %v14378_v52  ;;  %19723 = vst [vmem:[#allocation61_spill] sm:$0xff] %v14383_v31  ;;  %v14412_v57 = vadd.f32 %v14265_v42, %v1312_v9  ;;  %v19733_v35 = vand.u32 4294901760, %v14340_v43  ;;  %v19735_v30 = vand.u32 4294901760, %v14342_v39  ;;  %v19737_v32 = vand.u32 4294901760, %v14083_v24 }
 0x1f3   : > { %3347 = vmatmul.mubr.f32.gmra.mrb[148].mxu1 %v19726_v26  ;;  %19729 = vst [vmem:[#allocation14_spill] sm:$0xff] %v14394_v23  ;;  %v19730_v26 = vld [vmem:[#allocation23_spill] sm:$0xff]  ;;  %v19738_v8 = vand.u32 4294901760, %v14085_v36  ;;  %v4718_v19 = vand.u32 4294901760, %v4717_v63  ;;  %v1321_v25 = vadd.f32 %v8545_v6, %v19740_v50  ;;  %v19743_v24 = vand.u32 4294901760, %v14150_v54  ;;  %3075 = vmatmul.mubr.f32.gmra.mrb[146].mxu0 %v19713_v51  ;;  %v19744_v50 = vld [vmem:[#allocation49_spill] sm:$0xff] }
 0x1f4   : > { %v19731_v12 = vand.u32 4294901760, %v19730_v26  ;;  %19732 = vst [vmem:[#allocation62_spill] sm:$0xff] %v14412_v57  ;;  %v14417_v60 = vsub.f32 %v14340_v43, %v19733_v35  ;;  %v14422_v59 = vsub.f32 %v14342_v39, %v19735_v30  ;;  %v14434_v35 = vld [vmem:[#allocation3 + $0x258] sm:$0xff]  ;;  %v8546_v30 = vpop.f32.mrb[40].mxu0  ;;  %v19742_v57 = vand.u32 4294901760, %v19741_v44  ;;  %3081 = vmatprep.mubr.f32.mxu0 %v19715_v2 }
 0x1f5   : > { %v14428_v16 = vpack.c.bf16 %v19738_v8, %v19737_v32  ;;  %19739 = vst [vmem:[#allocation15_spill] sm:$0xff] %v14434_v35  ;;  %v4598_v36 = vsub.f32 %v14150_v54, %v19743_v24  ;;  %v8547_v9 = vpop.f32.mrb[41].mxu0  ;;  %v19745_v6 = vand.u32 4294901760, %v19744_v50  ;;  %v19746_v42 = vand.u32 4294901760, %v14155_v1  ;;  %v14488_v32 = vld [vmem:[#allocation3 + $0x2e0] sm:$0xff] }
 0x1f6   : > { %3354 = vmatprep.mubr.f32.mxu1 %v19731_v12  ;;  %19734 = vst [vmem:[#allocation16_spill] sm:$0xff] %v14417_v60  ;;  %19736 = vst [vmem:[#allocation63_spill] sm:$0xff] %v14422_v59  ;;  %v8632_v12 = vpop.f32.mrb[44].mxu1  ;;  %v19747_v13 = vand.u32 4294901760, %v14131_v15  ;;  %v19748_v24 = vand.u32 4294901760, %v14133_v37  ;;  %v14462_v51 = vadd.f32 %v14309_v28, %v1321_v25  ;;  %v19751_v37 = vand.u32 4294901760, %v14397_v56 }
 0x1f7   : > { %v8633_v27 = vpop.f32.mrb[45].mxu1  ;;  %3358 = vmatmul.mubr.f32.gmra.mrb[150].mxu1 %v19742_v57  ;;  %v4605_v57 = vsub.f32 %v14155_v1, %v19746_v42  ;;  %v19755_v25 = vld [vmem:[#allocation73_spill] sm:$0xff]  ;;  %v14481_v42 = vpack.c.bf16 %v4718_v19, %v4711_v49  ;;  %v4599_v15 = vand.u32 4294901760, %v4598_v36  ;;  %19758 = vst [vmem:[#allocation23_spill] sm:$0xff] %v14488_v32  ;;  %v14490_v1 = vld [vmem:[#allocation3 + $0x2e8] sm:$0xff]  ;;  %3084 = vmatmul.mubr.f32.gmra.mrb[148].mxu0 %v19725_v53  ;;  %v19761_v19 = vand.u32 4294901760, %v14209_v46 }
 0x1f8   : > { %v14445_v8 = vadd.f32 %v8633_v27, %v8632_v12  ;;  %3365 = vmatprep.mubr.f32.mxu1 %v19745_v6  ;;  %v14457_v63 = vpack.c.bf16 %v19748_v24, %v19747_v13  ;;  %v8548_v27 = vadd.f32 %v8547_v9, %v8546_v30  ;;  %19750 = vst [vmem:[#allocation22_spill] sm:$0xff] %v14462_v51  ;;  %v8635_v54 = vpop.f32.mrb[46].mxu1  ;;  %v19753_v9 = vand.u32 4294901760, %v14399_v17  ;;  %v8549_v30 = vpop.f32.mrb[42].mxu0  ;;  %v19771_v51 = vld [vmem:[#allocation72_spill] sm:$0xff] }
 0x1f9   : > { %v14471_v13 = vsub.f32 %v14397_v56, %v19751_v37  ;;  %v8636_v24 = vpop.f32.mrb[47].mxu1  ;;  %v19756_v6 = vand.u32 4294901760, %v13861_v22  ;;  %v19757_v12 = vand.u32 4294901760, %v14204_v62  ;;  %19759 = vst [vmem:[#allocation71_spill] sm:$0xff] %v14490_v1  ;;  %v4606_v49 = vand.u32 4294901760, %v4605_v57  ;;  %3090 = vmatprep.mubr.f32.mxu0 %v19730_v26 }
 0x1fa   : > { %19749 = vst [vmem:[#allocation19_spill] sm:$0xff] %v14457_v63  ;;  %v14476_v2 = vsub.f32 %v14399_v17, %v19753_v9  ;;  %v1330_v28 = vadd.f32 %v8548_v27, %v19755_v25  ;;  %v14492_v9 = vadd.f32 %v8636_v24, %v8635_v54  ;;  %v8550_v27 = vpop.f32.mrb[43].mxu0  ;;  %v19760_v25 = vand.u32 4294901760, %v13888_v4 }
 0x1fb   : > { %19752 = vst [vmem:[#allocation70_spill] sm:$0xff] %v14471_v13  ;;  %3369 = vmatmul.mubr.f32.gmra.mrb[152].mxu1 %v19756_v6  ;;  %v14486_v37 = vsub.f32 %v14204_v62, %v19757_v12  ;;  %v4731_v36 = vsub.f32 %v14209_v46, %v19761_v19  ;;  %v8551_v6 = vadd.f32 %v8550_v27, %v8549_v30  ;;  %v19763_v24 = vand.u32 4294901760, %v14432_v40  ;;  %v8638_v19 = vpop.f32.mrb[48].mxu1  ;;  %v14526_v12 = vld [vmem:[#allocation3 + $0x268] sm:$0xff]  ;;  %v8552_v46 = vpop.f32.mrb[44].mxu0 }
 0x1fc   : > { %19754 = vst [vmem:[#allocation24_spill] sm:$0xff] %v14476_v2  ;;  %3376 = vmatprep.mubr.f32.mxu1 %v19760_v25  ;;  %v14504_v54 = vadd.f32 %v14349_v29, %v1330_v28  ;;  %v19765_v57 = vand.u32 4294901760, %v14434_v35  ;;  %v19767_v62 = vand.u32 4294901760, %v14237_v11  ;;  %v19768_v26 = vand.u32 4294901760, %v14242_v47  ;;  %19770 = vst [vmem:[#allocation81_spill] sm:$0xff] %v14526_v12  ;;  %v8553_v27 = vpop.f32.mrb[45].mxu0  ;;  %3093 = vmatmul.mubr.f32.gmra.mrb[150].mxu0 %v19741_v44 }
 0x1fd   : > { %v14509_v53 = vsub.f32 %v14432_v40, %v19763_v24  ;;  %v14524_v24 = vld [vmem:[#allocation3 + $0x260] sm:$0xff]  ;;  %v19772_v48 = vand.u32 4294901760, %v19771_v51  ;;  %v8554_v21 = vadd.f32 %v8553_v27, %v8552_v46  ;;  %3099 = vmatprep.mubr.f32.mxu0 %v19744_v50  ;;  %v19780_v50 = vld [vmem:[#allocation78_spill] sm:$0xff]  ;;  %v19781_v27 = vld [vmem:[#allocation75_spill] sm:$0xff] }
 0x1fe   : > { %19762 = vst [vmem:[#allocation46_spill] sm:$0xff] %v14504_v54  ;;  %v14514_v25 = vsub.f32 %v14434_v35, %v19765_v57  ;;  %v4612_v30 = vsub.f32 %v14237_v11, %v19767_v62  ;;  %v4619_v29 = vsub.f32 %v14242_v47, %v19768_v26  ;;  %19769 = vst [vmem:[#allocation80_spill] sm:$0xff] %v14524_v24  ;;  %v8639_v54 = vpop.f32.mrb[49].mxu1  ;;  %v19773_v47 = vld [vmem:[#allocation74_spill] sm:$0xff] }
 0x1ff   : > { %19764 = vst [vmem:[#allocation49_spill] sm:$0xff] %v14509_v53  ;;  %v1339_v57 = vadd.f32 %v8551_v6, %v13943_v58  ;;  %3380 = vmatmul.mubr.f32.gmra.mrb[154].mxu1 %v19772_v48  ;;  %v14535_v28 = vadd.f32 %v8639_v54, %v8638_v19  ;;  %v19774_v55 = vand.u32 4294901760, %v19773_v47  ;;  %v14540_v58 = vpack.c.bf16 %v4606_v49, %v4599_v15  ;;  %v8641_v26 = vpop.f32.mrb[50].mxu1  ;;  %v8555_v49 = vpop.f32.mrb[46].mxu0 }
 0x200   : > { %19766 = vst [vmem:[#allocation73_spill] sm:$0xff] %v14514_v25  ;;  %v4725_v6 = vand.u32 4294901760, %v14486_v37  ;;  %v4732_v48 = vand.u32 4294901760, %v4731_v36  ;;  %v4613_v44 = vand.u32 4294901760, %v4612_v30  ;;  %v4620_v62 = vand.u32 4294901760, %v4619_v29  ;;  %v8642_v36 = vpop.f32.mrb[51].mxu1  ;;  %3102 = vmatmul.mubr.f32.gmra.mrb[152].mxu0 %v13861_v22 }
 0x201   : > { %3387 = vmatprep.mubr.f32.mxu1 %v19774_v55  ;;  %v14545_v11 = vadd.f32 %v14401_v5, %v1339_v57  ;;  %v19776_v55 = vand.u32 4294901760, %v14488_v32  ;;  %v19778_v37 = vand.u32 4294901760, %v14490_v1  ;;  %v1348_v5 = vadd.f32 %v8554_v21, %v19780_v50  ;;  %v19784_v29 = vld [vmem:[#allocation55_spill] sm:$0xff]  ;;  %v14576_v50 = vld [vmem:[#allocation3 + $0x2f8] sm:$0xff]  ;;  %3108 = vmatprep.mubr.f32.mxu0 %v13888_v4 }
 0x202   : > { %v19782_v57 = vand.u32 4294901760, %v19781_v27  ;;  %v19783_v30 = vand.u32 4294901760, %v14169_v34  ;;  %v19785_v19 = vand.u32 4294901760, %v19784_v29  ;;  %v14574_v21 = vld [vmem:[#allocation3 + $0x2f0] sm:$0xff]  ;;  %v19789_v34 = vld [vmem:[#allocation76_spill] sm:$0xff]  ;;  %v19792_v29 = vand.u32 4294901760, %v14220_v14 }
 0x203   : > { %19775 = vst [vmem:[#allocation72_spill] sm:$0xff] %v14545_v11  ;;  %v14552_v15 = vsub.f32 %v14488_v32, %v19776_v55  ;;  %v14557_v46 = vsub.f32 %v14490_v1, %v19778_v37  ;;  %v19787_v55 = vand.u32 4294901760, %v14289_v38  ;;  %v19788_v37 = vand.u32 4294901760, %v14294_v45 }
 0x204   : > { %3391 = vmatmul.mubr.f32.gmra.mrb[156].mxu1 %v19782_v57  ;;  %v14566_v54 = vpack.c.bf16 %v19785_v19, %v19783_v30  ;;  %v14578_v32 = vadd.f32 %v8642_v36, %v8641_v26  ;;  %v8556_v57 = vpop.f32.mrb[47].mxu0  ;;  %v19790_v19 = vand.u32 4294901760, %v19789_v34  ;;  %v19791_v30 = vand.u32 4294901760, %v14218_v3  ;;  %3111 = vmatmul.mubr.f32.gmra.mrb[154].mxu0 %v19771_v51 }
 0x205   : > { %19777 = vst [vmem:[#allocation74_spill] sm:$0xff] %v14552_v15  ;;  %19779 = vst [vmem:[#allocation82_spill] sm:$0xff] %v14557_v46  ;;  %v4738_v11 = vsub.f32 %v14289_v38, %v19787_v55  ;;  %v4745_v1 = vsub.f32 %v14294_v45, %v19788_v37  ;;  %v8557_v45 = vadd.f32 %v8556_v57, %v8555_v49  ;;  %v19795_v22 = vand.u32 4294901760, %v14524_v24  ;;  %v19800_v57 = vld [vmem:[#allocation79_spill] sm:$0xff]  ;;  %v8558_v38 = vpop.f32.mrb[48].mxu0 }
 0x206   : > { %19786 = vst [vmem:[#allocation78_spill] sm:$0xff] %v14566_v54  ;;  %3398 = vmatprep.mubr.f32.mxu1 %v19790_v19  ;;  %v14587_v55 = vpack.c.bf16 %v19792_v29, %v19791_v30  ;;  %v14594_v26 = vadd.f32 %v14445_v8, %v1348_v5  ;;  %v19797_v3 = vand.u32 4294901760, %v14526_v12  ;;  %v14606_v19 = vld [vmem:[#allocation3 + $0x270] sm:$0xff]  ;;  %v8644_v30 = vpop.f32.mrb[52].mxu1  ;;  %v14608_v29 = vpack.c.bf16 %v4732_v48, %v4725_v6  ;;  %v14614_v5 = vld [vmem:[#allocation3 + $0x278] sm:$0xff]  ;;  %v8559_v48 = vpop.f32.mrb[49].mxu0 }
 0x207   : > { %v14599_v36 = vsub.f32 %v14524_v24, %v19795_v22  ;;  %v14610_v49 = vpack.c.bf16 %v4620_v62, %v4613_v44  ;;  %19799 = vst [vmem:[#allocation84_spill] sm:$0xff] %v14614_v5  ;;  %v1357_v22 = vadd.f32 %v8557_v45, %v19800_v57  ;;  %v8645_v37 = vpop.f32.mrb[53].mxu1  ;;  %v4746_v24 = vand.u32 4294901760, %v4745_v1  ;;  %v19804_v8 = vld [vmem:[#allocation11_spill] sm:$0xff]  ;;  %3117 = vmatprep.mubr.f32.mxu0 %v19773_v47 }
 0x208   : > { %19793 = vst [vmem:[#allocation75_spill] sm:$0xff] %v14587_v55  ;;  %19794 = vst [vmem:[#allocation55_spill] sm:$0xff] %v14594_v26  ;;  %v14604_v14 = vsub.f32 %v14526_v12, %v19797_v3  ;;  %v19801_v26 = vld [vmem:[#allocation77_spill] sm:$0xff]  ;;  %v4739_v12 = vand.u32 4294901760, %v4738_v11  ;;  %v14621_v62 = vadd.f32 %v8645_v37, %v8644_v30  ;;  %v19803_v44 = vmov 1.0   ;;  %v8647_v6 = vpop.f32.mrb[54].mxu1  ;;  %3120 = vmatmul.mubr.f32.gmra.mrb[156].mxu0 %v19781_v27 }
 0x209   : > { %19796 = vst [vmem:[#allocation76_spill] sm:$0xff] %v14599_v36  ;;  %v19802_v3 = vand.u32 4294901760, %v19801_v26  ;;  %v19806_v45 = vand.u32 4294901760, %v14318_v33  ;;  %v14638_v51 = vadd.f32 %v14492_v9, %v1357_v22  ;;  %v8561_v22 = vpop.f32.mrb[50].mxu0  ;;  %v8648_v37 = vpop.f32.mrb[55].mxu1  ;;  %v19813_v30 = vld [vmem:[#allocation34_spill] sm:$0xff]  ;;  %3126 = vmatprep.mubr.f32.mxu0 %v19789_v34 }
 0x20a   : > { %19798 = vst [vmem:[#allocation83_spill] sm:$0xff] %v14604_v14  ;;  %v14662_v11 = vadd.f32 %v8648_v37, %v8647_v6  ;;  %v19818_v37 = vand.u32 4294901760, %v14614_v5 }
 0x20b   : > { %3402 = vmatmul.mubr.f32.gmra.mrb[158].mxu1 %v19802_v3  ;;  %v14631_v57 = vsub.f32 %v14318_v33, %v19806_v45  ;;  %v8560_v3 = vadd.f32 %v8559_v48, %v8558_v38  ;;  %19807 = vst [vmem:[#allocation79_spill] sm:$0xff] %v14638_v51  ;;  %v19808_v33 = vand.u32 4294901760, %v14574_v21  ;;  %v19810_v38 = vand.u32 4294901760, %v14576_v50  ;;  %v19812_v48 = vld [vmem:[#allocation30_spill] sm:$0xff]  ;;  %v8562_v51 = vpop.f32.mrb[51].mxu0 }
 0x20c   : > { %8032 = vmatprep.mubr.msk.f32.mxu1 %vm232_vm8, %v19803_v44  ;;  %v14658_v45 = vpack.c.bf16 %v4746_v24, %v4739_v12  ;;  %v8563_v6 = vadd.f32 %v8562_v51, %v8561_v22  ;;  %v19821_v51 = vand.u32 4294901760, %v14378_v52  ;;  %3129 = vmatmul.mubr.f32.gmra.mrb[158].mxu0 %v19801_v26 }
 0x20d   : > { %v14646_v1 = vsub.f32 %v14574_v21, %v19808_v33  ;;  %v14651_v47 = vsub.f32 %v14576_v50, %v19810_v38  ;;  %v1366_v9 = vadd.f32 %v8560_v3, %v19812_v48  ;;  %v19815_v48 = vand.u32 4294901760, %v14606_v19  ;;  %v8650_v33 = vpop.f32.mrb[56].mxu1  ;;  %8000 = vmatprep.mubr.msk.f32.mxu0 %vm232_vm8, %v19803_v44 }
 0x20e   : > { %v14685_v38 = vsub.f32 %v14614_v5, %v19818_v37  ;;  %v4752_v34 = vsub.f32 %v14378_v52, %v19821_v51  ;;  %v19824_v37 = vld [vmem:[#allocation64_spill] sm:$0xff]  ;;  %v4627_v26 = vand.u32 4294901760, %v14631_v57 }
 0x20f   : > { %19809 = vst [vmem:[#allocation77_spill] sm:$0xff] %v14646_v1  ;;  %19811 = vst [vmem:[#allocation29_spill] sm:$0xff] %v14651_v47  ;;  %8033 = vmatmul.mubr.msk.f32.vlgmr.msra.gmra.mrb[160].mxu1 %vm231_vm1, %v19803_v44  ;;  %v14673_v12 = vsub.f32 %v14606_v19, %v19815_v48  ;;  %v14680_v27 = vadd.f32 %v14535_v28, %v1366_v9  ;;  %v19820_v48 = vand.u32 4294901760, %v14329_v61  ;;  %v19823_v9 = vand.u32 4294901760, %v14417_v60 }
 0x210   : > { %8034 = vmatprep.mubr.msk.f32.mxu1 %vm236_vm3, %v19803_v44  ;;  %10681 = vmatpush3.bf16.msra.mxu1 %v14388_v0  ;;  %19819 = vst [vmem:[#allocation85_spill] sm:$0xff] %v14685_v38  ;;  %v19822_v0 = vand.u32 4294901760, %v14383_v31  ;;  %v1375_v35 = vadd.f32 %v8563_v6, %v19824_v37 }
 0x211   : > { %19816 = vst [vmem:[#allocation30_spill] sm:$0xff] %v14673_v12  ;;  %19817 = vst [vmem:[#allocation32_spill] sm:$0xff] %v14680_v27  ;;  %10683 = vmatprep.subr.bf16.mxu1 %v14481_v42  ;;  %v4633_v24 = vsub.f32 %v14329_v61, %v19820_v48  ;;  %v14700_v22 = vsub.f32 %v14417_v60, %v19823_v9  ;;  %v8564_v42 = vpop.f32.mrb[52].mxu0  ;;  %v8651_v27 = vpop.f32.mrb[57].mxu1  ;;  %v19825_v48 = vand.u32 4294901760, %v14422_v59  ;;  %8001 = vmatmul.mubr.msk.f32.vlgmr.msra.gmra.mrb[160].mxu0 %vm231_vm1, %v19803_v44 }
 0x212   : > { %v4759_v28 = vsub.f32 %v14383_v31, %v19822_v0  ;;  %v19826_v0 = vand.u32 4294901760, %v14471_v13  ;;  %v14715_v60 = vadd.f32 %v8651_v27, %v8650_v33  ;;  %v8565_v6 = vpop.f32.mrb[53].mxu0  ;;  %v19828_v31 = vand.u32 4294901760, %v14476_v2  ;;  %10649 = vmatpush3.bf16.msra.mxu0 %v14370_v7  ;;  %8002 = vmatprep.mubr.msk.f32.mxu0 %vm236_vm3, %v19803_v44 }
 0x213   : > { %8035 = vmatmul.mubr.msk.f32.gmra.mrb[162].mxu1 %vm235_vm4, %v19803_v44  ;;  %v4647_v51 = vsub.f32 %v14422_v59, %v19825_v48  ;;  %v18823_v33 = vand.u32 4294901760, %v14552_v15  ;;  %v14735_v27 = vadd.f32 %v14578_v32, %v1375_v35  ;;  %v4634_v9 = vand.u32 4294901760, %v4633_v24  ;;  %v19829_v59 = vld [vmem:[#allocation65_spill] sm:$0xff]  ;;  %v8567_v61 = vpop.f32.mrb[54].mxu0  ;;  %10651 = vmatprep.subr.bf16.mxu0 %v14394_v23 }
 0x214   : > { %v4766_v52 = vsub.f32 %v14471_v13, %v19826_v0  ;;  %8036 = vmatprep.mubr.msk.f32.mxu1 %vm240_vm6, %v19803_v44  ;;  %v4773_v48 = vsub.f32 %v14476_v2, %v19828_v31  ;;  %v8566_v13 = vadd.f32 %v8565_v6, %v8564_v42  ;;  %10685 = vmatpush3.bf16.msra.mxu1 %v14540_v58  ;;  %v8653_v31 = vpop.f32.mrb[58].mxu1  ;;  %v4753_v0 = vand.u32 4294901760, %v4752_v34 }
 0x215   : > { %10687 = vmatprep.subr.bf16.mxu1 %v14608_v29  ;;  %v4760_v42 = vand.u32 4294901760, %v4759_v28  ;;  %v4641_v6 = vand.u32 4294901760, %v14700_v22  ;;  %v8654_v5 = vpop.f32.mrb[59].mxu1  ;;  %v4648_v58 = vand.u32 4294901760, %v4647_v51  ;;  %v8568_v29 = vpop.f32.mrb[55].mxu0  ;;  %v19831_v24 = vand.u32 4294901760, %v14509_v53  ;;  %8003 = vmatmul.mubr.msk.f32.gmra.mrb[162].mxu0 %vm235_vm4, %v19803_v44 }
 0x216   : > { %v1384_v2 = vadd.f32 %v8566_v13, %v19829_v59  ;;  %v4767_v35 = vand.u32 4294901760, %v4766_v52  ;;  %v14745_v57 = vadd.f32 %v8654_v5, %v8653_v31  ;;  %v4774_v13 = vand.u32 4294901760, %v4773_v48  ;;  %v8656_v51 = vpop.f32.mrb[60].mxu1  ;;  %v8570_v32 = vpop.f32.mrb[56].mxu0  ;;  %8004 = vmatprep.mubr.msk.f32.mxu0 %vm240_vm6, %v19803_v44  ;;  %10653 = vmatpush3.bf16.msra.mxu0 %v14428_v16 }
 0x217   : > { %8037 = vmatmul.mubr.msk.f32.gmra.mrb[164].mxu1 %vm239_vm14, %v19803_v44  ;;  %v4654_v52 = vsub.f32 %v14509_v53, %v19831_v24  ;;  %v19832_v34 = vand.u32 4294901760, %v14514_v25  ;;  %v8569_v28 = vadd.f32 %v8568_v29, %v8567_v61  ;;  %v14769_v4 = vsub.f32 %v14552_v15, %v18823_v33  ;;  %v19833_v24 = vld [vmem:[#allocation20_spill] sm:$0xff]  ;;  %v8657_v53 = vpop.f32.mrb[61].mxu1  ;;  %10655 = vmatprep.subr.bf16.mxu0 %v14457_v63 }
 0x218   : > { %8038 = vmatprep.mubr.msk.f32.mxu1 %vm244_vm7, %v19803_v44  ;;  %v14772_v22 = vadd.f32 %v14621_v62, %v1384_v2  ;;  %10689 = vmatpush3.bf16.msra.mxu1 %v14610_v49  ;;  %v10692_v61 = vpack.c.bf16 %v4634_v9, %v4627_v26  ;;  %v10694_v48 = vpack.c.bf16 %v4760_v42, %v4753_v0  ;;  %v18829_v31 = vand.u32 4294901760, %v14599_v36  ;;  %v8571_v26 = vpop.f32.mrb[57].mxu0  ;;  %v19835_v42 = vld [vmem:[#allocation36_spill] sm:$0xff]  ;;  %v8659_v33 = vpop.f32.mrb[62].mxu1 }
 0x219   : > { %v4661_v5 = vsub.f32 %v14514_v25, %v19832_v34  ;;  %v18826_v29 = vand.u32 4294901760, %v14604_v14  ;;  %v1393_v34 = vadd.f32 %v8569_v28, %v19833_v24  ;;  %10691 = vmatprep.subr.bf16.mxu1 %v14658_v45  ;;  %v19834_v2 = vand.u32 4294901760, %v14557_v46  ;;  %8005 = vmatmul.mubr.msk.f32.gmra.mrb[164].mxu0 %vm239_vm14, %v19803_v44 }
 0x21a   : > { %v18824_v62 = vand.u32 4294901760, %v14646_v1  ;;  %v18825_v9 = vand.u32 4294901760, %v14651_v47  ;;  %v14789_v0 = vadd.f32 %v8657_v53, %v8656_v51  ;;  %vm19836_vm8 = vcmp.eq.s32.totalorder %v19804_v8, %v19835_v42  ;;  %8006 = vmatprep.mubr.msk.f32.mxu0 %vm244_vm7, %v19803_v44  ;;  %10657 = vmatpush3.bf16.msra.mxu0 %v14566_v54 }
 0x21b   : > { %8039 = vmatmul.mubr.msk.f32.gmra.mrb[166].mxu1 %vm243_vm9, %v19803_v44  ;;  %v4787_v49 = vsub.f32 %v14557_v46, %v19834_v2  ;;  %v10696_v45 = vpack.c.bf16 %v4648_v58, %v4641_v6  ;;  %v10698_v28 = vpack.c.bf16 %v4774_v13, %v4767_v35  ;;  %v4655_v24 = vand.u32 4294901760, %v4654_v52  ;;  %v19837_v13 = vld [vmem:[#allocation68_spill] sm:$0xff]  ;;  %10659 = vmatprep.subr.bf16.mxu0 %v14587_v55  ;;  %vm19850_vm6 = vmmov %vm19836_vm8 }
 0x21c   : > { %8040 = vmatprep.mubr.msk.f32.mxu1 %vm19836_vm8, %v19803_v44  ;;  %v8572_v2 = vadd.f32 %v8571_v26, %v8570_v32  ;;  %v4662_v53 = vand.u32 4294901760, %v4661_v5  ;;  %v4781_v3 = vand.u32 4294901760, %v14769_v4  ;;  %v14806_v51 = vadd.f32 %v14662_v11, %v1393_v34  ;;  %10693 = vmatpush3.bf16.msra.mxu1 %v10692_v61  ;;  %v8573_v11 = vpop.f32.mrb[58].mxu0  ;;  %v8660_v5 = vpop.f32.mrb[63].mxu1 }
 0x21d   : > { %v4668_v6 = vsub.f32 %v14599_v36, %v18829_v31  ;;  %v4675_v58 = vsub.f32 %v14604_v14, %v18826_v29  ;;  %v18828_v35 = vand.u32 4294901760, %v14673_v12  ;;  %v18827_v32 = vand.u32 4294901760, %v14685_v38  ;;  %10695 = vmatprep.subr.bf16.mxu1 %v10694_v48  ;;  %v19838_v48 = vld [vmem:[#allocation37_spill] sm:$0xff]  ;;  %8007 = vmatmul.mubr.msk.f32.gmra.mrb[166].mxu0 %vm243_vm9, %v19803_v44  ;;  %v19940_v14 = vld [vmem:[#allocation32_spill] sm:$0xff] }
 0x21e   : > { %v1402_v52 = vadd.f32 %v8572_v2, %v19837_v13  ;;  %v4788_v4 = vand.u32 4294901760, %v4787_v49  ;;  %v4794_v61 = vsub.f32 %v14646_v1, %v18824_v62  ;;  %v4801_v34 = vsub.f32 %v14651_v47, %v18825_v9  ;;  %v8574_v2 = vpop.f32.mrb[59].mxu0  ;;  %8008 = vmatprep.mubr.msk.f32.mxu0 %vm19850_vm6, %v19803_v44 }
 0x21f   : > { %8041 = vmatmul.mubr.msk.f32.gmra.mrb[168].mxu1 %vm247_vm10, %v19803_v44  ;;  %v14828_v26 = vadd.f32 %v8660_v5, %v8659_v33  ;;  %vm19839_vm1 = vcmp.eq.s32.totalorder %v19804_v8, %v19838_v48  ;;  %v19840_v49 = vand.u32 4294901760, %v14244_v18  ;;  %v19841_v13 = vand.u32 4294901760, %v14254_v20  ;;  %v8774_v20 = vpop.f32.mrb[64].mxu1 }
 0x220   : > { %8042 = vmatprep.mubr.msk.f32.mxu1 %vm19839_vm1, %v19803_v44  ;;  %v19843_v33 = vand.u32 4294901760, %v14305_v10  ;;  %v19844_v5 = vand.u32 4294901760, %v14307_v41  ;;  %v8575_v29 = vadd.f32 %v8574_v2, %v8573_v11  ;;  %v10700_v37 = vpack.c.bf16 %v4662_v53, %v4655_v24  ;;  %10697 = vmatpush3.bf16.msra.mxu1 %v10696_v45  ;;  %v8576_v24 = vpop.f32.mrb[60].mxu0  ;;  %v8775_v53 = vpop.f32.mrb[65].mxu1  ;;  %vm19861_vm9 = vmmov %vm19839_vm1 }
 0x221   : > { %v14842_v62 = vpack.c.bf16 %v19841_v13, %v19840_v49  ;;  %v14856_v18 = vadd.f32 %v14715_v60, %v1402_v52  ;;  %v4669_v10 = vand.u32 4294901760, %v4668_v6  ;;  %v4676_v41 = vand.u32 4294901760, %v4675_v58  ;;  %v19846_v49 = vld [vmem:[#allocation18_spill] sm:$0xff]  ;;  %10699 = vmatprep.subr.bf16.mxu1 %v10698_v28  ;;  %v8577_v52 = vpop.f32.mrb[61].mxu0  ;;  %8009 = vmatmul.mubr.msk.f32.gmra.mrb[168].mxu0 %vm247_vm10, %v19803_v44 }
 0x222   : > { %v14848_v9 = vpack.c.bf16 %v19844_v5, %v19843_v33  ;;  %v4682_v11 = vsub.f32 %v14673_v12, %v18828_v35  ;;  %v4689_v2 = vsub.f32 %v14685_v38, %v18827_v32  ;;  %v1411_v13 = vadd.f32 %v8575_v29, %v19846_v49  ;;  %v19848_v29 = vld [vmem:[#allocation38_spill] sm:$0xff]  ;;  %8010 = vmatprep.mubr.msk.f32.mxu0 %vm19861_vm9, %v19803_v44  ;;  %v19928_v12 = vld [vmem:[#allocation55_spill] sm:$0xff] }
 0x223   : > { %19842 = vst [vmem:[#allocation64_spill] sm:$0xff] %v14842_v62  ;;  %vm19847_vm3 = vcmp.eq.s32.totalorder %v19813_v30, %v19838_v48  ;;  %v10702_v60 = vpack.c.bf16 %v4788_v4, %v4781_v3  ;;  %v4795_v45 = vand.u32 4294901760, %v4794_v61  ;;  %v4802_v6 = vand.u32 4294901760, %v4801_v34  ;;  %10661 = vmatpush3.bf16.msra.mxu0 %v14842_v62  ;;  %v8777_v61 = vpop.f32.mrb[66].mxu1 }
 0x224   : > { %19845 = vst [vmem:[#allocation28_spill] sm:$0xff] %v14848_v9  ;;  %8043 = vmatmul.mubr.msk.f32.gmra.mrb[170].mxu1 %vm19847_vm3, %v19803_v44  ;;  %v14870_v58 = vadd.f32 %v8775_v53, %v8774_v20  ;;  %vm19849_vm4 = vcmp.eq.s32.totalorder %v19804_v8, %v19848_v29  ;;  %v8578_v33 = vadd.f32 %v8577_v52, %v8576_v24  ;;  %v19851_v28 = vand.u32 4294901760, %v14340_v43  ;;  %v19857_v53 = vld [vmem:[#allocation56_spill] sm:$0xff]  ;;  %v8579_v52 = vpop.f32.mrb[62].mxu0  ;;  %vm19873_vm8 = vmmov %vm19847_vm3 }
 0x225   : > { %8044 = vmatprep.mubr.msk.f32.mxu1 %vm19849_vm4, %v19803_v44  ;;  %v19852_v3 = vand.u32 4294901760, %v14342_v39  ;;  %v14892_v59 = vadd.f32 %v14745_v57, %v1411_v13  ;;  %10663 = vmatprep.subr.bf16.mxu0 %v14848_v9  ;;  %v19854_v34 = vand.u32 4294901760, %v14397_v56  ;;  %v19855_v5 = vand.u32 4294901760, %v14399_v17  ;;  %v8580_v13 = vpop.f32.mrb[63].mxu0  ;;  %v19859_v17 = vld [vmem:[#allocation40_spill] sm:$0xff]  ;;  %vm19876_vm3 = vmmov %vm19849_vm4 }
 0x226   : > { %10701 = vmatpush3.bf16.msra.mxu1 %v10700_v37  ;;  %v10704_v49 = vpack.c.bf16 %v4676_v41, %v4669_v10  ;;  %v4683_v24 = vand.u32 4294901760, %v4682_v11  ;;  %v4690_v43 = vand.u32 4294901760, %v4689_v2  ;;  %v1420_v39 = vadd.f32 %v8578_v33, %v19857_v53  ;;  %v19863_v41 = vld [vmem:[#allocation15_spill] sm:$0xff]  ;;  %v8694_v53 = vpop.f32.mrb[64].mxu0  ;;  %8011 = vmatmul.mubr.msk.f32.gmra.mrb[170].mxu0 %vm19873_vm8, %v19803_v44 }
 0x227   : > { %v14889_v4 = vpack.c.bf16 %v19852_v3, %v19851_v28  ;;  %v14899_v20 = vpack.c.bf16 %v19855_v5, %v19854_v34  ;;  %v8778_v28 = vpop.f32.mrb[67].mxu1  ;;  %vm19858_vm14 = vcmp.eq.s32.totalorder %v19813_v30, %v19848_v29  ;;  %10703 = vmatprep.subr.bf16.mxu1 %v10702_v60  ;;  %v10706_v57 = vpack.c.bf16 %v4802_v6, %v4795_v45  ;;  %v19866_v45 = vld [vmem:[#allocation23_spill] sm:$0xff]  ;;  %v19871_v5 = vld [vmem:[#allocation10_spill] sm:$0xff] }
 0x228   : > { %8045 = vmatmul.mubr.msk.f32.gmra.mrb[172].mxu1 %vm19858_vm14, %v19803_v44  ;;  %v8779_v56 = vadd.f32 %v8778_v28, %v8777_v61  ;;  %vm19860_vm7 = vcmp.eq.s32.totalorder %v19804_v8, %v19859_v17  ;;  %v8581_v37 = vadd.f32 %v8580_v13, %v8579_v52  ;;  %v19862_v10 = vand.u32 4294901760, %v14432_v40  ;;  %v8780_v60 = vpop.f32.mrb[68].mxu1  ;;  %v19868_v33 = vld [vmem:[#allocation71_spill] sm:$0xff]  ;;  %8012 = vmatprep.mubr.msk.f32.mxu0 %vm19876_vm3, %v19803_v44  ;;  %vm19888_vm6 = vmmov %vm19858_vm14 }
 0x229   : > { %19853 = vst [vmem:[#allocation65_spill] sm:$0xff] %v14889_v4  ;;  %19856 = vst [vmem:[#allocation31_spill] sm:$0xff] %v14899_v20  ;;  %8046 = vmatprep.mubr.msk.f32.mxu1 %vm19860_vm7, %v19803_v44  ;;  %10665 = vmatpush3.bf16.msra.mxu0 %v14889_v4  ;;  %v19864_v11 = vand.u32 4294901760, %v19863_v41  ;;  %v14926_v42 = vadd.f32 %v14789_v0, %v1420_v39  ;;  %v19867_v6 = vand.u32 4294901760, %v19866_v45  ;;  %v19869_v3 = vand.u32 4294901760, %v19868_v33  ;;  %v8781_v52 = vpop.f32.mrb[69].mxu1 }
 0x22a   : > { %10667 = vmatprep.subr.bf16.mxu0 %v14899_v20  ;;  %10705 = vmatpush3.bf16.msra.mxu1 %v10704_v49  ;;  %v10708_v34 = vpack.c.bf16 %v4690_v43, %v4683_v24  ;;  %v1429_v40 = vadd.f32 %v8581_v37, %v19871_v5  ;;  %vm19872_vm10 = vcmp.eq.s32.totalorder %v19813_v30, %v19859_v17  ;;  %v8695_v39 = vpop.f32.mrb[65].mxu0  ;;  %v19874_v49 = vld [vmem:[#allocation42_spill] sm:$0xff]  ;;  %v19877_v43 = vld [vmem:[#allocation80_spill] sm:$0xff]  ;;  %v19882_v41 = vand.u32 4294901760, %v14574_v21  ;;  %v19885_v45 = vld [vmem:[#allocation59_spill] sm:$0xff] }
 0x22b   : > { %v14923_v2 = vpack.c.bf16 %v19864_v11, %v19862_v10  ;;  %v14933_v61 = vpack.c.bf16 %v19869_v3, %v19867_v6  ;;  %10707 = vmatprep.subr.bf16.mxu1 %v10706_v57  ;;  %v8782_v0 = vadd.f32 %v8781_v52, %v8780_v60  ;;  %vm19875_vm1 = vcmp.eq.s32.totalorder %v19804_v8, %v19874_v49  ;;  %v19879_v57 = vld [vmem:[#allocation81_spill] sm:$0xff]  ;;  %v8783_v10 = vpop.f32.mrb[70].mxu1  ;;  %v8697_v33 = vpop.f32.mrb[66].mxu0  ;;  %v19889_v21 = vld [vmem:[#allocation43_spill] sm:$0xff] }
 0x22c   : > { %8047 = vmatmul.mubr.msk.f32.gmra.mrb[174].mxu1 %vm19872_vm10, %v19803_v44  ;;  %v8696_v24 = vadd.f32 %v8695_v39, %v8694_v53  ;;  %v19878_v28 = vand.u32 4294901760, %v19877_v43  ;;  %v19880_v13 = vand.u32 4294901760, %v19879_v57  ;;  %v14960_v48 = vadd.f32 %v14828_v26, %v1429_v40  ;;  %v8784_v3 = vpop.f32.mrb[71].mxu1  ;;  %v19887_v26 = vld [vmem:[#allocation50_spill] sm:$0xff]  ;;  %v8698_v40 = vpop.f32.mrb[67].mxu0  ;;  %8013 = vmatmul.mubr.msk.f32.gmra.mrb[172].mxu0 %vm19888_vm6, %v19803_v44  ;;  %v19892_v53 = vld [vmem:[#allocation84_spill] sm:$0xff] }
 0x22d   : > { %19865 = vst [vmem:[#allocation20_spill] sm:$0xff] %v14923_v2  ;;  %19870 = vst [vmem:[#allocation36_spill] sm:$0xff] %v14933_v61  ;;  %8048 = vmatprep.mubr.msk.f32.mxu1 %vm19875_vm1, %v19803_v44  ;;  %10669 = vmatpush3.bf16.msra.mxu0 %v14923_v2  ;;  %v19883_v11 = vand.u32 4294901760, %v14576_v50  ;;  %vm19886_vm4 = vcmp.eq.s32.totalorder %v19813_v30, %v19874_v49  ;;  %v8785_v5 = vadd.f32 %v8784_v3, %v8783_v10  ;;  %v19895_v43 = vld [vmem:[#allocation60_spill] sm:$0xff]  ;;  %v8700_v57 = vpop.f32.mrb[68].mxu0  ;;  %v19903_v3 = vld [vmem:[#allocation62_spill] sm:$0xff]  ;;  %v15045_v49 = vpop.permute.xlu0 %3939 }
 0x22e   : > { %v14957_v37 = vpack.c.bf16 %v19880_v13, %v19878_v28  ;;  %10671 = vmatprep.subr.bf16.mxu0 %v14933_v61  ;;  %10709 = vmatpush3.bf16.msra.mxu1 %v10708_v34  ;;  %v1870_v6 = vadd.f32 %v8696_v24, %v19885_v45  ;;  %vm19890_vm14 = vcmp.eq.s32.totalorder %v19804_v8, %v19889_v21  ;;  %v19891_v34 = vand.u32 4294901760, %v14606_v19  ;;  %v8786_v24 = vpop.f32.mrb[72].mxu1  ;;  %v8701_v10 = vpop.f32.mrb[69].mxu0 }
 0x22f   : > { %v14967_v60 = vpack.c.bf16 %v19883_v11, %v19882_v41  ;;  %10743 = vmatprep.subr.bf16.mxu1 %v19887_v26  ;;  %v8699_v50 = vadd.f32 %v8698_v40, %v8697_v33  ;;  %8014 = vmatprep.mubr.msk.f32.mxu0 %vm19860_vm7, %v19803_v44  ;;  %v19893_v52 = vand.u32 4294901760, %v19892_v53  ;;  %v8787_v13 = vpop.f32.mrb[73].mxu1  ;;  %vm19896_vm9 = vcmp.eq.s32.totalorder %v19813_v30, %v19889_v21  ;;  %v19901_v33 = vld [vmem:[#allocation39_spill] sm:$0xff]  ;;  %v19916_v21 = vld [vmem:[#allocation46_spill] sm:$0xff] }
 0x230   : > { %19881 = vst [vmem:[#allocation68_spill] sm:$0xff] %v14957_v37  ;;  %8049 = vmatmul.mubr.msk.f32.gmra.mrb[176].mxu1 %vm19886_vm4, %v19803_v44  ;;  %v14995_v29 = vadd.f32 %v14870_v58, %v1870_v6  ;;  %v8788_v19 = vadd.f32 %v8787_v13, %v8786_v24  ;;  %8015 = vmatmul.mubr.msk.f32.gmra.mrb[174].mxu0 %vm19872_vm10, %v19803_v44  ;;  %v19897_v58 = vld [vmem:[#allocation45_spill] sm:$0xff]  ;;  %v8789_v45 = vpop.f32.mrb[74].mxu1  ;;  %19910 = vst [vmem:[#allocation40_spill] sm:$0xff] %v15045_v49 }
 0x231   : > { %19884 = vst [vmem:[#allocation37_spill] sm:$0xff] %v14967_v60  ;;  %8050 = vmatprep.mubr.msk.f32.mxu1 %vm19890_vm14, %v19803_v44  ;;  %10673 = vmatpush3.bf16.msra.mxu0 %v14957_v37  ;;  %v14992_v39 = vpack.c.bf16 %v19893_v52, %v19891_v34  ;;  %v1877_v28 = vadd.f32 %v8699_v50, %v19895_v43  ;;  %v19900_v6 = vld [vmem:[#allocation17_spill] sm:$0xff]  ;;  %v8703_v50 = vpop.f32.mrb[70].mxu0  ;;  %v8790_v34 = vpop.f32.mrb[75].mxu1 }
 0x232   : > { %10675 = vmatprep.subr.bf16.mxu0 %v14967_v60  ;;  %vm19898_vm8 = vcmp.eq.s32.totalorder %v19804_v8, %v19897_v58  ;;  %v8702_v41 = vadd.f32 %v8701_v10, %v8700_v57  ;;  %8016 = vmatprep.mubr.msk.f32.mxu0 %vm19875_vm1, %v19803_v44  ;;  %v19902_v17 = vpack.c.bf16 %v19900_v6, %v19901_v33  ;;  %v8704_v52 = vpop.f32.mrb[71].mxu0  ;;  %v19908_v57 = vld [vmem:[#allocation22_spill] sm:$0xff] }
 0x233   : > { %19894 = vst [vmem:[#allocation18_spill] sm:$0xff] %v14992_v39  ;;  %v15016_v11 = vadd.f32 %v8779_v56, %v1877_v28  ;;  %vm19904_vm3 = vcmp.eq.s32.totalorder %v19813_v30, %v19897_v58  ;;  %v8791_v53 = vadd.f32 %v8790_v34, %v8789_v45  ;;  %v19905_v56 = vld [vmem:[#allocation21_spill] sm:$0xff]  ;;  %v8705_v24 = vadd.f32 %v8704_v52, %v8703_v50  ;;  %v8792_v28 = vpop.f32.mrb[76].mxu1  ;;  %v8706_v10 = vpop.f32.mrb[72].mxu0  ;;  %vm19912_vm10 = vmmov %vm19898_vm8  ;;  %v19915_v52 = vld [vmem:[#allocation26_spill] sm:$0xff] }
 0x234   : > { %8051 = vmatmul.mubr.msk.f32.gmra.mrb[178].mxu1 %vm19896_vm9, %v19803_v44  ;;  %v1884_v40 = vadd.f32 %v8702_v41, %v19903_v3  ;;  %8017 = vmatmul.mubr.msk.f32.gmra.mrb[176].mxu0 %vm19886_vm4, %v19803_v44  ;;  %vm19906_vm6 = vcmp.eq.s32.totalorder %v19804_v8, %v19905_v56  ;;  %v8793_v41 = vpop.f32.mrb[77].mxu1  ;;  %vm19909_vm7 = vcmp.eq.s32.totalorder %v19813_v30, %v19905_v56  ;;  %v15061_v50 = vpop.permute.xlu1 %3942  ;;  %v19921_v58 = vmov 0.0   ;;  %v19951_v8 = vld [vmem:[#allocation66_spill] sm:$0xff] }
 0x235   : > { %8052 = vmatprep.mubr.msk.f32.mxu1 %vm19898_vm8, %v19803_v44  ;;  %10677 = vmatpush3.bf16.msra.mxu0 %v14992_v39  ;;  %19899 = vst [vmem:[#allocation38_spill] sm:$0xff] %v15016_v11  ;;  %v1891_v13 = vadd.f32 %v8705_v24, %v19908_v57  ;;  %v8794_v45 = vadd.f32 %v8793_v41, %v8792_v28  ;;  %19914 = vst [vmem:[#allocation23_spill] sm:$0xff] %v15061_v50  ;;  %v8795_v34 = vpop.f32.mrb[78].mxu1 }
 0x236   : > { %10711 = vmatprep.subr.bf16.mxu0 %v19902_v17  ;;  %8018 = vmatprep.mubr.msk.f32.mxu0 %vm19890_vm14, %v19803_v44  ;;  %v15038_v43 = vadd.f32 %v8782_v0, %v1884_v40  ;;  %v8707_v17 = vpop.f32.mrb[73].mxu0  ;;  %v19911_v0 = vld [vmem:[#allocation48_spill] sm:$0xff]  ;;  %vm3986_vm8 = vcmp.eq.s32.totalorder %v19915_v52, %v15045_v49  ;;  %v8796_v57 = vpop.f32.mrb[79].mxu1 }
 0x237   : > { %v8708_v3 = vadd.f32 %v8707_v17, %v8706_v10  ;;  %v15059_v40 = vadd.f32 %v8785_v5, %v1891_v13  ;;  %v8709_v28 = vpop.f32.mrb[74].mxu0  ;;  %vm19917_vm1 = vcmp.eq.s32.totalorder %v19813_v30, %v19911_v0  ;;  %v15070_v10 = vadd.f32 %v8796_v57, %v8795_v34  ;;  %v19919_v13 = vld [vmem:[#allocation27_spill] sm:$0xff]  ;;  %v19922_v57 = vld [vmem:[#allocation72_spill] sm:$0xff] }
 0x238   : > { %8053 = vmatmul.mubr.msk.f32.gmra.mrb[180].mxu1 %vm19904_vm3, %v19803_v44  ;;  %19907 = vst [vmem:[#allocation56_spill] sm:$0xff] %v15038_v43  ;;  %8019 = vmatmul.mubr.msk.f32.gmra.mrb[178].mxu0 %vm19896_vm9, %v19803_v44  ;;  %v8710_v41 = vpop.f32.mrb[75].mxu0  ;;  %vm3987_vm4 = vcmp.eq.s32.totalorder %v19919_v13, %v15045_v49  ;;  %vm3991_vm14 = vcmp.eq.s32.totalorder %v19919_v13, %v15061_v50  ;;  %v8080_v34 = vsel %vm3986_vm8, 1.0, %v19921_v58 }
 0x239   : > { %8054 = vmatprep.mubr.msk.f32.mxu1 %vm19906_vm6, %v19803_v44  ;;  %8020 = vmatprep.mubr.msk.f32.mxu0 %vm19912_vm10, %v19803_v44  ;;  %19913 = vst [vmem:[#allocation15_spill] sm:$0xff] %v15059_v40  ;;  %v1898_v24 = vadd.f32 %v8708_v3, %v19916_v21  ;;  %v8711_v17 = vadd.f32 %v8710_v41, %v8709_v28  ;;  %v8798_v21 = vpop.f32.mrb[80].mxu1  ;;  %v8712_v35 = vpop.f32.mrb[76].mxu0  ;;  %vm19929_vm10 = vmmov %vm19917_vm1 }
 0x23a   : > { %v8799_v28 = vpop.f32.mrb[81].mxu1  ;;  %v8713_v31 = vpop.f32.mrb[77].mxu0  ;;  %vm3990_vm9 = vcmp.eq.s32.totalorder %v19915_v52, %v15061_v50 }
 0x23b   : > { %v15088_v3 = vadd.f32 %v8788_v19, %v1898_v24  ;;  %v1905_v32 = vadd.f32 %v8711_v17, %v19922_v57  ;;  %v8081_v19 = vsel %vm3987_vm4, 1.0, %v19921_v58  ;;  %v15103_v24 = vpop.permute.xlu0 %3945  ;;  %v15105_v41 = vadd.f32 %v8799_v28, %v8798_v21  ;;  %v15123_v28 = vpop.permute.xlu1 %3948 }
 0x23c   : > { %8055 = vmatmul.mubr.msk.f32.gmra.mrb[182].mxu1 %vm19909_vm7, %v19803_v44  ;;  %8021 = vmatmul.mubr.msk.f32.gmra.mrb[180].mxu0 %vm19904_vm3, %v19803_v44  ;;  %19923 = vst [vmem:[#allocation10_spill] sm:$0xff] %v15103_v24  ;;  %v8085_v57 = vsel %vm3991_vm14, 1.0, %v19921_v58  ;;  %v15121_v21 = vsub.f32 %v8080_v34, %v8080_v34  ;;  %19926 = vst [vmem:[#allocation80_spill] sm:$0xff] %v15123_v28  ;;  %v8801_v40 = vpop.f32.mrb[82].mxu1  ;;  %v15131_v43 = vsub.f32 %v8081_v19, %v8081_v19  ;;  %v8715_v11 = vpop.f32.mrb[78].mxu0 }
 0x23d   : > { %8056 = vmatprep.mubr.msk.f32.mxu1 %vm280_vm13, %v19803_v44  ;;  %8022 = vmatprep.mubr.msk.f32.mxu0 %vm19906_vm6, %v19803_v44  ;;  %19920 = vst [vmem:[#allocation71_spill] sm:$0xff] %v15088_v3  ;;  %v8714_v3 = vadd.f32 %v8713_v31, %v8712_v35  ;;  %v15129_v56 = vadd.f32 %v8791_v53, %v1905_v32  ;;  %v8802_v6 = vpop.f32.mrb[83].mxu1  ;;  %v8084_v35 = vsel %vm3990_vm9, 1.0, %v19921_v58 }
 0x23e   : > { %19925 = vst [vmem:[#allocation42_spill] sm:$0xff] %v15121_v21  ;;  %v15138_v31 = vsub.f32 %v8085_v57, %v8085_v57  ;;  %v15146_v32 = vadd.f32 %v8802_v6, %v8801_v40  ;;  %vm3999_vm3 = vcmp.eq.s32.totalorder %v19919_v13, %v15123_v28  ;;  %v8804_v40 = vpop.f32.mrb[84].mxu1  ;;  %v15167_v34 = vsub.f32 %v8084_v35, %v8084_v35 }
 0x23f   : > { %19927 = vst [vmem:[#allocation81_spill] sm:$0xff] %v15129_v56  ;;  %v1912_v38 = vadd.f32 %v8714_v3, %v19928_v12  ;;  %v8716_v12 = vpop.f32.mrb[79].mxu0  ;;  %v8805_v33 = vpop.f32.mrb[85].mxu1 }
 0x240   : > { %8057 = vmatmul.mubr.msk.f32.gmra.mrb[184].mxu1 %vm19917_vm1, %v19803_v44  ;;  %8023 = vmatmul.mubr.msk.f32.gmra.mrb[182].mxu0 %vm19909_vm7, %v19803_v44  ;;  %vm3994_vm1 = vcmp.eq.s32.totalorder %v19915_v52, %v15103_v24  ;;  %v8717_v3 = vadd.f32 %v8716_v12, %v8715_v11  ;;  %19932 = vst [vmem:[#allocation43_spill] sm:$0xff] %v15167_v34  ;;  %v19933_v11 = vld [vmem:[#allocation79_spill] sm:$0xff]  ;;  %v8718_v56 = vpop.f32.mrb[80].mxu0  ;;  %v15198_v57 = vpop.permute.xlu0 %3951 }
 0x241   : > { %8058 = vmatprep.mubr.msk.f32.mxu1 %vm284_vm2, %v19803_v44  ;;  %8024 = vmatprep.mubr.msk.f32.mxu0 %vm280_vm13, %v19803_v44  ;;  %vm3995_vm13 = vcmp.eq.s32.totalorder %v19919_v13, %v15103_v24  ;;  %v15165_v0 = vadd.f32 %v8794_v45, %v1912_v38  ;;  %v8088_v38 = vsel %vm3994_vm1, 1.0, %v19921_v58  ;;  %v8093_v45 = vsel %vm3999_vm3, 1.0, %v19921_v58  ;;  %19934 = vst [vmem:[#allocation84_spill] sm:$0xff] %v15198_v57  ;;  %v15212_v35 = vpop.permute.xlu1 %3954 }
 0x242   : > { %v8089_v19 = vsel %vm3995_vm13, 1.0, %v19921_v58  ;;  %v1919_v12 = vadd.f32 %v8717_v3, %v19933_v11  ;;  %v15188_v3 = vadd.f32 %v8805_v33, %v8804_v40  ;;  %v8719_v11 = vpop.f32.mrb[81].mxu0  ;;  %v19935_v33 = vand.u32 4294901760, %v15121_v21  ;;  %19936 = vst [vmem:[#allocation60_spill] sm:$0xff] %v15212_v35 }
 0x243   : > { %19931 = vst [vmem:[#allocation59_spill] sm:$0xff] %v15165_v0  ;;  %v8720_v6 = vadd.f32 %v8719_v11, %v8718_v56  ;;  %v8807_v0 = vpop.f32.mrb[86].mxu1  ;;  %v15214_v1 = vsub.f32 %v8089_v19, %v8089_v19  ;;  %v19937_v56 = vand.u32 4294901760, %v15131_v43  ;;  %v15219_v47 = vsub.f32 %v8088_v38, %v8088_v38 }
 0x244   : > { %8059 = vmatmul.mubr.msk.f32.gmra.mrb[186].mxu1 %vm283_vm0, %v19803_v44  ;;  %8025 = vmatmul.mubr.msk.f32.gmra.mrb[184].mxu0 %vm19929_vm10, %v19803_v44  ;;  %v15207_v40 = vsub.f32 %v15121_v21, %v19935_v33  ;;  %v15210_v5 = vadd.f32 %v15070_v10, %v1919_v12  ;;  %v15221_v36 = vsub.f32 %v8093_v45, %v8093_v45  ;;  %v8721_v33 = vpop.f32.mrb[82].mxu0  ;;  %v8808_v21 = vpop.f32.mrb[87].mxu1  ;;  %v19941_v10 = vand.u32 4294901760, %v15138_v31 }
 0x245   : > { %8060 = vmatprep.mubr.msk.f32.mxu1 %vm288_vm11, %v19803_v44  ;;  %8026 = vmatprep.mubr.msk.f32.mxu0 %vm284_vm2, %v19803_v44  ;;  %v4342_v11 = vsub.f32 %v15131_v43, %v19937_v56  ;;  %19938 = vst [vmem:[#allocation45_spill] sm:$0xff] %v15219_v47  ;;  %v1926_v26 = vadd.f32 %v8720_v6, %v19940_v14  ;;  %v18844_v12 = vand.u32 4294901760, %v15167_v34  ;;  %v8722_v45 = vpop.f32.mrb[83].mxu0  ;;  %v19945_v56 = vand.u32 4294901760, %v15214_v1 }
 0x246   : > { %19939 = vst [vmem:[#allocation62_spill] sm:$0xff] %v15221_v36  ;;  %v4357_v19 = vsub.f32 %v15138_v31, %v19941_v10  ;;  %v15234_v38 = vadd.f32 %v8808_v21, %v8807_v0  ;;  %vm18871_vm2 = vcmp.eq.s32.totalorder %v19919_v13, %v15198_v57  ;;  %v8723_v14 = vadd.f32 %v8722_v45, %v8721_v33  ;;  %v8810_v21 = vpop.f32.mrb[88].mxu1  ;;  %v8724_v10 = vpop.f32.mrb[84].mxu0 }
 0x247   : > { %v15256_v17 = vadd.f32 %v15105_v41, %v1926_v26  ;;  %v4343_v6 = vand.u32 4294901760, %v4342_v11  ;;  %v4349_v0 = vand.u32 4294901760, %v15207_v40  ;;  %v8811_v45 = vpop.f32.mrb[89].mxu1  ;;  %v4363_v41 = vsub.f32 %v15167_v34, %v18844_v12  ;;  %v15277_v40 = vpop.permute.xlu0 %3957 }
 0x248   : > { %8061 = vmatmul.mubr.msk.f32.gmra.mrb[188].mxu1 %vm287_vm5, %v19803_v44  ;;  %8027 = vmatmul.mubr.msk.f32.gmra.mrb[186].mxu0 %vm283_vm0, %v19803_v44  ;;  %vm3998_vm0 = vcmp.eq.s32.totalorder %v19915_v52, %v15123_v28  ;;  %v1933_v33 = vadd.f32 %v8723_v14, %v14735_v27  ;;  %v8097_v27 = vsel %vm18871_vm2, 1.0, %v19921_v58  ;;  %19942 = vst [vmem:[#allocation21_spill] sm:$0xff] %v15277_v40  ;;  %v8725_v14 = vpop.f32.mrb[85].mxu0  ;;  %v4358_v53 = vand.u32 4294901760, %v4357_v19  ;;  %v8813_v50 = vpop.f32.mrb[90].mxu1  ;;  %v19960_v28 = vld [vmem:[#allocation53_spill] sm:$0xff] }
 0x249   : > { %8062 = vmatprep.mubr.msk.f32.mxu1 %vm292_vm15, %v19803_v44  ;;  %8028 = vmatprep.mubr.msk.f32.mxu0 %vm288_vm11, %v19803_v44  ;;  %vm18870_vm11 = vcmp.eq.s32.totalorder %v19915_v52, %v15198_v57  ;;  %v8092_v26 = vsel %vm3998_vm0, 1.0, %v19921_v58  ;;  %v15279_v11 = vadd.f32 %v8811_v45, %v8810_v21  ;;  %v8726_v45 = vadd.f32 %v8725_v14, %v8724_v10  ;;  %v8814_v10 = vpop.f32.mrb[91].mxu1 }
 0x24a   : > { %v8096_v12 = vsel %vm18870_vm11, 1.0, %v19921_v58  ;;  %v15301_v30 = vadd.f32 %v15146_v32, %v1933_v33  ;;  %v15303_v49 = vsub.f32 %v8092_v26, %v8092_v26  ;;  %v15305_v34 = vsub.f32 %v8097_v27, %v8097_v27 }
 0x24b   : > { %v1940_v19 = vadd.f32 %v8726_v45, %v14772_v22  ;;  %v15318_v32 = vsub.f32 %v8096_v12, %v8096_v12  ;;  %v15326_v26 = vadd.f32 %v8814_v10, %v8813_v50  ;;  %v4364_v22 = vand.u32 4294901760, %v4363_v41  ;;  %v19950_v45 = vld [vmem:[#allocation67_spill] sm:$0xff] }
 0x24c   : > { %8063 = vmatmul.mubr.msk.f32.gmra.mrb[190].mxu1 %vm291_vm12, %v19803_v44  ;;  %8029 = vmatmul.mubr.msk.f32.gmra.mrb[188].mxu0 %vm287_vm5, %v19803_v44  ;;  %vm18874_vm5 = vcmp.eq.s32.totalorder %v19919_v13, %v15212_v35  ;;  %19943 = vst [vmem:[#allocation22_spill] sm:$0xff] %v15303_v49  ;;  %19944 = vst [vmem:[#allocation48_spill] sm:$0xff] %v15305_v34  ;;  %v19949_v12 = vand.u32 4294901760, %v15219_v47  ;;  %v19952_v24 = vpack.c.bf16 %v19950_v45, %v19951_v8 }
 0x24d   : > { %8144 = vmatprep.mubr.msk.f32.mxu1 %vm3987_vm4, %v19803_v44  ;;  %8030 = vmatprep.mubr.msk.f32.mxu0 %vm292_vm15, %v19803_v44  ;;  %v8101_v21 = vsel %vm18874_vm5, 1.0, %v19921_v58  ;;  %vm18888_vm15 = vcmp.eq.s32.totalorder %v19915_v52, %v15212_v35  ;;  %19946 = vst [vmem:[#allocation46_spill] sm:$0xff] %v15318_v32  ;;  %v19953_v50 = vand.u32 4294901760, %v15221_v36  ;;  %v15346_v41 = vadd.f32 %v15188_v3, %v1940_v19 }
 0x24e   : > { %v15320_v33 = vsub.f32 %v8101_v21, %v8101_v21  ;;  %v4378_v14 = vsub.f32 %v15219_v47, %v19949_v12  ;;  %v8100_v10 = vsel %vm18888_vm15, 1.0, %v19921_v58  ;;  %vm18886_vm6 = vcmp.eq.s32.totalorder %v19915_v52, %v15277_v40 }
 0x24f   : > { %19954 = vst [vmem:[#allocation52_spill] sm:$0xff] %v15346_v41 }
 0x250   : > { %8145 = vmatmul.mubr.msk.f32.vlgmr.msra.gmra.mrb[192].mxu1 %vm3986_vm8, %v19803_v44  ;;  %8031 = vmatmul.mubr.msk.f32.gmra.mrb[190].mxu0 %vm291_vm12, %v19803_v44  ;;  %19947 = vst [vmem:[#allocation51_spill] sm:$0xff] %v15320_v33  ;;  %vm18887_vm12 = vcmp.eq.s32.totalorder %v19919_v13, %v15277_v40 }
 0x251   : > { %8146 = vmatprep.mubr.msk.f32.mxu1 %vm3991_vm14, %v19803_v44  ;;  %10745 = vmatpush3.bf16.msra.mxu1 %v14370_v7 }
 0x252   : > { %10747 = vmatprep.subr.bf16.mxu1 %v14394_v23  ;;  %4344 = vmatprep.mubr.f32.mxu0 %v4343_v6  ;;  %v4372_v23 = vsub.f32 %v15214_v1, %v19945_v56  ;;  %v8727_v6 = vpop.f32.mrb[86].mxu0  ;;  %v15324_v56 = vpop.permute.xlu1 %3960 }
 0x253   : > { %19948 = vst [vmem:[#allocation72_spill] sm:$0xff] %v15324_v56  ;;  %v8728_v27 = vpop.f32.mrb[87].mxu0  ;;  %vm18899_vm7 = vcmp.eq.s32.totalorder %v19919_v13, %v15324_v56  ;;  %vm18897_vm10 = vcmp.eq.s32.totalorder %v19915_v52, %v15324_v56 }
 0x254   : > { %8147 = vmatmul.mubr.msk.f32.gmra.mrb[194].mxu1 %vm3990_vm9, %v19803_v44  ;;  %4350 = vmatmul.mubr.f32.vlgmr.msra.gmra.mrb[192].mxu0 %v4349_v0  ;;  %v8729_v21 = vadd.f32 %v8728_v27, %v8727_v6  ;;  %v4387_v0 = vsub.f32 %v15221_v36, %v19953_v50  ;;  %v4373_v12 = vand.u32 4294901760, %v4372_v23  ;;  %v19955_v6 = vld [vmem:[#allocation25_spill] sm:$0xff]  ;;  %v19956_v27 = vld [vmem:[#allocation12_spill] sm:$0xff]  ;;  %v8730_v19 = vpop.f32.mrb[88].mxu0  ;;  %v15378_v23 = vpop.permute.xlu0 %3963 }
 0x255   : > { %8148 = vmatprep.mubr.msk.f32.mxu1 %vm3995_vm13, %v19803_v44  ;;  %10749 = vmatpush3.bf16.msra.mxu1 %v14428_v16  ;;  %v19957_v47 = vpack.c.bf16 %v19955_v6, %v19956_v27  ;;  %19959 = vst [vmem:[#allocation54_spill] sm:$0xff] %v15378_v23 }
 0x256   : > { %10751 = vmatprep.subr.bf16.mxu1 %v14457_v63  ;;  %10713 = vmatpush3.bf16.msra.mxu0 %v19952_v24  ;;  %v8816_v63 = vpop.f32.mrb[92].mxu1  ;;  %v1947_v3 = vadd.f32 %v8729_v21, %v14806_v51  ;;  %v8731_v24 = vpop.f32.mrb[89].mxu0  ;;  %v4379_v51 = vand.u32 4294901760, %v4378_v14  ;;  %v15374_v21 = vsub.f32 %v8100_v10, %v8100_v10 }
 0x257   : > { %4359 = vmatprep.mubr.f32.mxu0 %v4358_v53  ;;  %10715 = vmatprep.subr.bf16.mxu0 %v19957_v47  ;;  %v8105_v53 = vsel %vm18887_vm12, 1.0, %v19921_v58  ;;  %v8817_v36 = vpop.f32.mrb[93].mxu1  ;;  %v8732_v47 = vadd.f32 %v8731_v24, %v8730_v19  ;;  %v15388_v14 = vpop.permute.xlu1 %3966 }
 0x258   : > { %8149 = vmatmul.mubr.msk.f32.gmra.mrb[196].mxu1 %vm3994_vm1, %v19803_v44  ;;  %v15368_v50 = vadd.f32 %v8817_v36, %v8816_v63  ;;  %4365 = vmatmul.mubr.f32.gmra.mrb[194].mxu0 %v4364_v22  ;;  %19958 = vst [vmem:[#allocation55_spill] sm:$0xff] %v15374_v21  ;;  %v19961_v63 = vld [vmem:[#allocation69_spill] sm:$0xff]  ;;  %v4388_v22 = vand.u32 4294901760, %v4387_v0  ;;  %19964 = vst [vmem:[#allocation32_spill] sm:$0xff] %v15388_v14  ;;  %v8819_v10 = vpop.f32.mrb[94].mxu1  ;;  %v15393_v24 = vsub.f32 %v8105_v53, %v8105_v53 }
 0x259   : > { %8150 = vmatprep.mubr.msk.f32.mxu1 %vm3999_vm3, %v19803_v44  ;;  %10753 = vmatpush3.bf16.msra.mxu1 %v14566_v54  ;;  %v19962_v36 = vpack.c.bf16 %v19960_v28, %v19961_v63  ;;  %v19965_v54 = vand.u32 4294901760, %v15303_v49  ;;  %v8104_v0 = vsel %vm18886_vm6, 1.0, %v19921_v58  ;;  %v8820_v53 = vpop.f32.mrb[95].mxu1 }
 0x25a   : > { %10755 = vmatprep.subr.bf16.mxu1 %v14587_v55  ;;  %4374 = vmatprep.mubr.f32.mxu0 %v4373_v12  ;;  %v15386_v55 = vadd.f32 %v15234_v38, %v1947_v3  ;;  %19966 = vst [vmem:[#allocation67_spill] sm:$0xff] %v15393_v24  ;;  %v19967_v12 = vand.u32 4294901760, %v15305_v34  ;;  %v19968_v38 = vld [vmem:[#allocation41_spill] sm:$0xff] }
 0x25b   : > { %10717 = vmatpush3.bf16.msra.mxu0 %v19962_v36  ;;  %v4393_v41 = vsub.f32 %v15303_v49, %v19965_v54  ;;  %v19969_v3 = vld [vmem:[#allocation13_spill] sm:$0xff]  ;;  %v8733_v54 = vpop.f32.mrb[90].mxu0 }
 0x25c   : > { %8151 = vmatmul.mubr.msk.f32.gmra.mrb[198].mxu1 %vm3998_vm0, %v19803_v44  ;;  %19963 = vst [vmem:[#allocation79_spill] sm:$0xff] %v15386_v55  ;;  %v4402_v19 = vsub.f32 %v15305_v34, %v19967_v12  ;;  %v19970_v36 = vpack.c.bf16 %v19968_v38, %v19969_v3  ;;  %v1954_v55 = vadd.f32 %v8732_v47, %v14856_v18  ;;  %v19971_v12 = vand.u32 4294901760, %v15318_v32  ;;  %v8734_v57 = vpop.f32.mrb[91].mxu0 }
 0x25d   : > { %8152 = vmatprep.mubr.msk.f32.mxu1 %vm18871_vm2, %v19803_v44  ;;  %10757 = vmatpush3.bf16.msra.mxu1 %v14842_v62  ;;  %v19972_v62 = vand.u32 4294901760, %v15320_v33  ;;  %v15426_v47 = vadd.f32 %v8820_v53, %v8819_v10  ;;  %vm4018_vm2 = vcmp.eq.s32.totalorder %v19915_v52, %v15378_v23  ;;  %v19973_v10 = vld [vmem:[#allocation57_spill] sm:$0xff]  ;;  %v4394_v49 = vand.u32 4294901760, %v4393_v41 }
 0x25e   : > { %10719 = vmatprep.subr.bf16.mxu0 %v19970_v36  ;;  %v15414_v34 = vsub.f32 %v15318_v32, %v19971_v12  ;;  %v8109_v36 = vsel %vm18899_vm7, 1.0, %v19921_v58  ;;  %10759 = vmatprep.subr.bf16.mxu1 %v14848_v9  ;;  %v8108_v12 = vsel %vm18897_vm10, 1.0, %v19921_v58  ;;  %v15447_v9 = vadd.f32 %v15279_v11, %v1954_v55  ;;  %v8934_v32 = vpop.f32.mrb[96].mxu1 }
 0x25f   : > { %v15423_v18 = vsub.f32 %v15320_v33, %v19972_v62  ;;  %4380 = vmatmul.mubr.f32.gmra.mrb[196].mxu0 %v4379_v51  ;;  %v8735_v62 = vadd.f32 %v8734_v57, %v8733_v54  ;;  %v19974_v51 = vld [vmem:[#allocation35_spill] sm:$0xff]  ;;  %v15449_v38 = vsub.f32 %v8104_v0, %v8104_v0  ;;  %v15451_v3 = vsub.f32 %v8109_v36, %v8109_v36  ;;  %v19980_v54 = vld [vmem:[#allocation44_spill] sm:$0xff]  ;;  %v8736_v33 = vpop.f32.mrb[92].mxu0  ;;  %v19986_v57 = vld [vmem:[#allocation33_spill] sm:$0xff] }
 0x260   : > { %8153 = vmatmul.mubr.msk.f32.gmra.mrb[200].mxu1 %vm18870_vm11, %v19803_v44  ;;  %vm18907_vm11 = vcmp.eq.s32.totalorder %v19919_v13, %v15378_v23  ;;  %4389 = vmatprep.mubr.f32.mxu0 %v4388_v22  ;;  %v19975_v53 = vpack.c.bf16 %v19973_v10, %v19974_v51  ;;  %19976 = vst [vmem:[#allocation66_spill] sm:$0xff] %v15447_v9  ;;  %v19979_v22 = vld [vmem:[#allocation58_spill] sm:$0xff]  ;;  %v8935_v51 = vpop.f32.mrb[97].mxu1  ;;  %v4403_v55 = vand.u32 4294901760, %v4402_v19  ;;  %v4409_v19 = vand.u32 4294901760, %v15414_v34  ;;  %v20019_v23 = vld [vmem:[#allocation76_spill] sm:$0xff] }
 0x261   : > { %8154 = vmatprep.mubr.msk.f32.mxu1 %vm18874_vm5, %v19803_v44  ;;  %vm18921_vm5 = vcmp.eq.s32.totalorder %v19919_v13, %v15388_v14  ;;  %19977 = vst [vmem:[#allocation25_spill] sm:$0xff] %v15449_v38  ;;  %19978 = vst [vmem:[#allocation12_spill] sm:$0xff] %v15451_v3  ;;  %v19981_v10 = vpack.c.bf16 %v19979_v22, %v19980_v54  ;;  %10761 = vmatpush3.bf16.msra.mxu1 %v14889_v4  ;;  %v8113_v41 = vsel %vm18907_vm11, 1.0, %v19921_v58  ;;  %v8937_v4 = vpop.f32.mrb[98].mxu1 }
 0x262   : > { %10721 = vmatpush3.bf16.msra.mxu0 %v19975_v53  ;;  %v1961_v53 = vadd.f32 %v8735_v62, %v14892_v59  ;;  %v15463_v11 = vsub.f32 %v8108_v12, %v8108_v12  ;;  %10763 = vmatprep.subr.bf16.mxu1 %v14899_v20  ;;  %v15470_v0 = vadd.f32 %v8935_v51, %v8934_v32  ;;  %v8737_v59 = vpop.f32.mrb[93].mxu0  ;;  %v8112_v36 = vsel %vm4018_vm2, 1.0, %v19921_v58  ;;  %v15485_v12 = vpop.permute.xlu0 %3969  ;;  %v19985_v51 = vld [vmem:[#allocation47_spill] sm:$0xff] }
 0x263   : > { %10723 = vmatprep.subr.bf16.mxu0 %v19981_v10  ;;  %4395 = vmatmul.mubr.f32.gmra.mrb[198].mxu0 %v4394_v49  ;;  %v8117_v32 = vsel %vm18921_vm5, 1.0, %v19921_v58  ;;  %19983 = vst [vmem:[#allocation69_spill] sm:$0xff] %v15485_v12  ;;  %v8738_v49 = vadd.f32 %v8737_v59, %v8736_v33  ;;  %v4418_v62 = vand.u32 4294901760, %v15423_v18  ;;  %v19984_v10 = vand.u32 4294901760, %v15374_v21  ;;  %v19991_v59 = vld [vmem:[#allocation61_spill] sm:$0xff] }
 0x264   : > { %8155 = vmatmul.mubr.msk.f32.gmra.mrb[202].mxu1 %vm18888_vm15, %v19803_v44  ;;  %19982 = vst [vmem:[#allocation53_spill] sm:$0xff] %v15463_v11  ;;  %4404 = vmatprep.mubr.f32.mxu0 %v4403_v55  ;;  %v19987_v35 = vpack.c.bf16 %v19985_v51, %v19986_v57  ;;  %v15495_v20 = vadd.f32 %v15326_v26, %v1961_v53  ;;  %v19990_v22 = vand.u32 4294901760, %v15393_v24  ;;  %v8739_v26 = vpop.f32.mrb[94].mxu0  ;;  %v8938_v53 = vpop.f32.mrb[99].mxu1 }
 0x265   : > { %8156 = vmatprep.mubr.msk.f32.mxu1 %vm18887_vm12, %v19803_v44  ;;  %v4423_v34 = vsub.f32 %v15374_v21, %v19984_v10  ;;  %v15497_v9 = vsub.f32 %v8113_v41, %v8113_v41  ;;  %v19992_v10 = vld [vmem:[#allocation9_spill] sm:$0xff]  ;;  %10765 = vmatpush3.bf16.msra.mxu1 %v14923_v2  ;;  %v15515_v41 = vsub.f32 %v8117_v32, %v8117_v32  ;;  %v8740_v18 = vpop.f32.mrb[95].mxu0  ;;  %v8940_v55 = vpop.f32.mrb[100].mxu1 }
 0x266   : > { %10725 = vmatpush3.bf16.msra.mxu0 %v19987_v35  ;;  %19988 = vst [vmem:[#allocation44_spill] sm:$0xff] %v15495_v20  ;;  %v4432_v33 = vsub.f32 %v15393_v24, %v19990_v22  ;;  %v19993_v21 = vpack.c.bf16 %v19991_v59, %v19992_v10  ;;  %v1968_v35 = vadd.f32 %v8738_v49, %v14926_v42  ;;  %v15529_v42 = vpop.permute.xlu1 %3972  ;;  %v20003_v24 = vld [vmem:[#allocation70_spill] sm:$0xff] }
 0x267   : > { %19989 = vst [vmem:[#allocation47_spill] sm:$0xff] %v15497_v9  ;;  %v15513_v22 = vsub.f32 %v8112_v36, %v8112_v36  ;;  %19995 = vst [vmem:[#allocation61_spill] sm:$0xff] %v15515_v41  ;;  %10767 = vmatprep.subr.bf16.mxu1 %v14933_v61  ;;  %4410 = vmatmul.mubr.f32.gmra.mrb[200].mxu0 %v4409_v19  ;;  %vm18926_vm12 = vcmp.eq.s32.totalorder %v19919_v13, %v15485_v12  ;;  %v4424_v32 = vand.u32 4294901760, %v4423_v34  ;;  %v19998_v19 = vld [vmem:[#allocation16_spill] sm:$0xff] }
 0x268   : > { %10727 = vmatprep.subr.bf16.mxu0 %v19993_v21  ;;  %8157 = vmatmul.mubr.msk.f32.gmra.mrb[204].mxu1 %vm18886_vm6, %v19803_v44  ;;  %v15519_v21 = vadd.f32 %v8938_v53, %v8937_v4  ;;  %vm18922_vm6 = vcmp.eq.s32.totalorder %v19915_v52, %v15388_v14  ;;  %19996 = vst [vmem:[#allocation9_spill] sm:$0xff] %v15529_v42  ;;  %v19997_v4 = vld [vmem:[#allocation63_spill] sm:$0xff]  ;;  %v4433_v40 = vand.u32 4294901760, %v4432_v33  ;;  %v20000_v61 = vand.u32 4294901760, %v15449_v38  ;;  %v8941_v33 = vpop.f32.mrb[101].mxu1 }
 0x269   : > { %19994 = vst [vmem:[#allocation33_spill] sm:$0xff] %v15513_v22  ;;  %8158 = vmatprep.mubr.msk.f32.mxu1 %vm18899_vm7, %v19803_v44  ;;  %v8741_v36 = vadd.f32 %v8740_v18, %v8739_v26  ;;  %4419 = vmatprep.mubr.f32.mxu0 %v4418_v62  ;;  %vm18925_vm15 = vcmp.eq.s32.totalorder %v19915_v52, %v15485_v12  ;;  %v20001_v18 = vand.u32 4294901760, %v15451_v3  ;;  %v20002_v26 = vld [vmem:[#allocation24_spill] sm:$0xff] }
 0x26a   : > { %v19999_v49 = vpack.c.bf16 %v19997_v4, %v19998_v19  ;;  %v15537_v53 = vadd.f32 %v15368_v50, %v1968_v35  ;;  %v4438_v2 = vsub.f32 %v15449_v38, %v20000_v61  ;;  %v20004_v20 = vpack.c.bf16 %v20002_v26, %v20003_v24  ;;  %10769 = vmatpush3.bf16.msra.mxu1 %v14957_v37  ;;  %v8854_v35 = vpop.f32.mrb[96].mxu0  ;;  %v8943_v37 = vpop.f32.mrb[102].mxu1 }
 0x26b   : > { %v4447_v62 = vsub.f32 %v15451_v3, %v20001_v18  ;;  %v1975_v50 = vadd.f32 %v8741_v36, %v14960_v48  ;;  %v8116_v61 = vsel %vm18922_vm6, 1.0, %v19921_v58  ;;  %v8121_v48 = vsel %vm18926_vm12, 1.0, %v19921_v58  ;;  %10771 = vmatprep.subr.bf16.mxu1 %v14967_v60  ;;  %v15567_v36 = vpop.permute.xlu0 %3975  ;;  %v8855_v34 = vpop.f32.mrb[97].mxu0  ;;  %4425 = vmatmul.mubr.f32.gmra.mrb[202].mxu0 %v4424_v32  ;;  %v20007_v32 = vld [vmem:[#allocation49_spill] sm:$0xff] }
 0x26c   : > { %10729 = vmatpush3.bf16.msra.mxu0 %v19999_v49  ;;  %8159 = vmatmul.mubr.msk.f32.gmra.mrb[206].mxu1 %vm18897_vm10, %v19803_v44  ;;  %v20005_v49 = vand.u32 4294901760, %v15463_v11  ;;  %20006 = vst [vmem:[#allocation63_spill] sm:$0xff] %v15567_v36  ;;  %v15569_v18 = vadd.f32 %v8941_v33, %v8940_v55  ;;  %vm4031_vm10 = vcmp.eq.s32.totalorder %v19919_v13, %v15529_v42  ;;  %v18915_v55 = vand.u32 4294901760, %v15515_v41 }
 0x26d   : > { %10731 = vmatprep.subr.bf16.mxu0 %v20004_v20  ;;  %8160 = vmatprep.mubr.msk.f32.mxu1 %vm18907_vm11, %v19803_v44  ;;  %v8856_v60 = vadd.f32 %v8855_v34, %v8854_v35  ;;  %vm18933_vm7 = vcmp.eq.s32.totalorder %v19915_v52, %v15529_v42  ;;  %v20008_v33 = vpack.c.bf16 %v14514_v25, %v20007_v32  ;;  %v4439_v3 = vand.u32 4294901760, %v4438_v2 }
 0x26e   : > { %v4453_v20 = vsub.f32 %v15463_v11, %v20005_v49  ;;  %v8120_v49 = vsel %vm18925_vm15, 1.0, %v19921_v58  ;;  %4434 = vmatprep.mubr.f32.mxu0 %v4433_v40  ;;  %v15589_v11 = vadd.f32 %v15426_v47, %v1975_v50  ;;  %v15591_v56 = vsub.f32 %v8116_v61, %v8116_v61  ;;  %10773 = vmatpush3.bf16.msra.mxu1 %v14992_v39  ;;  %v8857_v47 = vpop.f32.mrb[98].mxu0  ;;  %v8944_v50 = vpop.f32.mrb[103].mxu1 }
 0x26f   : > { %v15593_v38 = vsub.f32 %v8121_v48, %v8121_v48  ;;  %v20012_v40 = vand.u32 4294901760, %v15497_v9  ;;  %v20013_v35 = vpack.c.bf16 %v14557_v46, %v14552_v15  ;;  %v4448_v2 = vand.u32 4294901760, %v4447_v62  ;;  %v20015_v48 = vld [vmem:[#allocation50_spill] sm:$0xff]  ;;  %4440 = vmatmul.mubr.f32.gmra.mrb[204].mxu0 %v4439_v3  ;;  %v15629_v3 = vpop.permute.xlu1 %3978 }
 0x270   : > { %10733 = vmatpush3.bf16.msra.mxu0 %v20008_v33  ;;  %20009 = vst [vmem:[#allocation16_spill] sm:$0xff] %v15589_v11  ;;  %20010 = vst [vmem:[#allocation24_spill] sm:$0xff] %v15591_v56  ;;  %v2296_v33 = vadd.f32 %v8856_v60, %v14995_v29  ;;  %8161 = vmatmul.mubr.msk.f32.gmra.mrb[208].mxu1 %vm4018_vm2, %v19803_v44  ;;  %v15607_v61 = vsub.f32 %v8120_v49, %v8120_v49  ;;  %v20016_v60 = vand.u32 4294901760, %v15513_v22 }
 0x271   : > { %20011 = vst [vmem:[#allocation70_spill] sm:$0xff] %v15593_v38  ;;  %v4462_v34 = vsub.f32 %v15497_v9, %v20012_v40  ;;  %10735 = vmatprep.subr.bf16.mxu0 %v20013_v35  ;;  %vm18934_vm11 = vcmp.eq.s32.totalorder %v19919_v13, %v15567_v36  ;;  %10807 = vmatprep.subr.bf16.mxu1 %v20015_v48  ;;  %v8858_v35 = vpop.f32.mrb[99].mxu0  ;;  %v8125_v62 = vsel %vm4031_vm10, 1.0, %v19921_v58  ;;  %20017 = vst [vmem:[#allocation50_spill] sm:$0xff] %v15629_v3  ;;  %v8946_v9 = vpop.f32.mrb[104].mxu1 }
 0x272   : > { %20014 = vst [vmem:[#allocation49_spill] sm:$0xff] %v15607_v61  ;;  %v15612_v40 = vadd.f32 %v8944_v50, %v8943_v37  ;;  %8162 = vmatprep.mubr.msk.f32.mxu1 %vm18921_vm5, %v19803_v44  ;;  %v4468_v29 = vsub.f32 %v15513_v22, %v20016_v60  ;;  %v8124_v37 = vsel %vm18933_vm7, 1.0, %v19921_v58  ;;  %v8859_v49 = vadd.f32 %v8858_v35, %v8857_v47  ;;  %v20018_v60 = vld [vmem:[#allocation83_spill] sm:$0xff]  ;;  %v20023_v35 = vld [vmem:[#allocation77_spill] sm:$0xff]  ;;  %v8860_v46 = vpop.f32.mrb[100].mxu0  ;;  %v8947_v11 = vpop.f32.mrb[105].mxu1 }
 0x273   : > { %4449 = vmatprep.mubr.f32.mxu0 %v4448_v2  ;;  %v4454_v50 = vand.u32 4294901760, %v4453_v20  ;;  %v4477_v48 = vsub.f32 %v15515_v41, %v18915_v55  ;;  %v20020_v22 = vpack.c.bf16 %v20018_v60, %v20019_v23  ;;  %v15638_v39 = vadd.f32 %v15470_v0, %v2296_v33  ;;  %v20022_v2 = vld [vmem:[#allocation29_spill] sm:$0xff]  ;;  %v20025_v41 = vld [vmem:[#allocation39_spill] sm:$0xff]  ;;  %v20029_v33 = vld [vmem:[#allocation38_spill] sm:$0xff] }
 0x274   : > { %v8129_v47 = vsel %vm18934_vm11, 1.0, %v19921_v58  ;;  %v20024_v55 = vpack.c.bf16 %v20022_v2, %v20023_v35  ;;  %v20026_v60 = vand.u32 4294901760, %v20025_v41  ;;  %8163 = vmatmul.mubr.msk.f32.gmra.mrb[210].mxu1 %vm18922_vm6, %v19803_v44  ;;  %v4463_v15 = vand.u32 4294901760, %v4462_v34  ;;  %v8861_v41 = vpop.f32.mrb[101].mxu0 }
 0x275   : > { %10737 = vmatpush3.bf16.msra.mxu0 %v20020_v22  ;;  %20021 = vst [vmem:[#allocation86_spill] sm:$0xff] %v15638_v39  ;;  %v20027_v22 = vld [vmem:[#allocation17_spill] sm:$0xff]  ;;  %v2311_v39 = vadd.f32 %v8859_v49, %v20029_v33  ;;  %v15658_v20 = vsub.f32 %v8125_v62, %v8125_v62  ;;  %v15660_v25 = vsub.f32 %v8124_v37, %v8124_v37  ;;  %v4469_v34 = vand.u32 4294901760, %v4468_v29 }
 0x276   : > { %10739 = vmatprep.subr.bf16.mxu0 %v20024_v55  ;;  %v20028_v23 = vand.u32 4294901760, %v20027_v22  ;;  %v15662_v55 = vadd.f32 %v8947_v11, %v8946_v9  ;;  %4455 = vmatmul.mubr.f32.gmra.mrb[206].mxu0 %v4454_v50  ;;  %vm18944_vm5 = vcmp.eq.s32.totalorder %v19915_v52, %v15567_v36  ;;  %vm4039_vm6 = vcmp.eq.s32.totalorder %v19919_v13, %v15629_v3  ;;  %v20033_v9 = vld [vmem:[#allocation85_spill] sm:$0xff]  ;;  %v20034_v11 = vld [vmem:[#allocation30_spill] sm:$0xff]  ;;  %v15680_v50 = vpop.permute.xlu0 %3981 }
 0x277   : > { %20030 = vst [vmem:[#allocation29_spill] sm:$0xff] %v15658_v20  ;;  %20031 = vst [vmem:[#allocation77_spill] sm:$0xff] %v15660_v25  ;;  %8164 = vmatprep.mubr.msk.f32.mxu1 %vm18926_vm12, %v19803_v44  ;;  %4464 = vmatprep.mubr.f32.mxu0 %v4463_v15  ;;  %v15672_v62 = vsub.f32 %v8129_v47, %v8129_v47  ;;  %v20035_v37 = vpack.c.bf16 %v20033_v9, %v20034_v11  ;;  %v4478_v22 = vand.u32 4294901760, %v4477_v48  ;;  %v20040_v47 = vld [vmem:[#allocation56_spill] sm:$0xff] }
 0x278   : > { %v10774_v0 = vpack.c.bf16 %v20028_v23, %v20026_v60  ;;  %v8862_v23 = vadd.f32 %v8861_v41, %v8860_v46  ;;  %v15678_v49 = vadd.f32 %v15519_v21, %v2311_v39  ;;  %20037 = vst [vmem:[#allocation38_spill] sm:$0xff] %v15680_v50  ;;  %v8949_v60 = vpop.f32.mrb[106].mxu1  ;;  %v20038_v33 = vand.u32 4294901760, %v15591_v56  ;;  %8165 = vmatmul.mubr.msk.f32.gmra.mrb[212].mxu1 %vm18925_vm15, %v19803_v44 }
 0x279   : > { %20032 = vst [vmem:[#allocation39_spill] sm:$0xff] %v15672_v62  ;;  %10741 = vmatpush3.bf16.msra.mxu0 %v20035_v37  ;;  %v20039_v15 = vand.u32 4294901760, %v15593_v38  ;;  %v8863_v37 = vpop.f32.mrb[102].mxu0  ;;  %v8950_v39 = vpop.f32.mrb[107].mxu1  ;;  %v8128_v21 = vsel %vm18944_vm5, 1.0, %v19921_v58  ;;  %v8133_v48 = vsel %vm4039_vm6, 1.0, %v19921_v58  ;;  %8166 = vmatprep.mubr.msk.f32.mxu1 %vm4031_vm10, %v19803_v44  ;;  %vm4038_vm15 = vcmp.eq.s32.totalorder %v19915_v52, %v15629_v3 }
 0x27a   : > { %20036 = vst [vmem:[#allocation17_spill] sm:$0xff] %v15678_v49  ;;  %v4483_v14 = vsub.f32 %v15591_v56, %v20038_v33  ;;  %10775 = vmatprep.subr.bf16.mxu0 %v10774_v0  ;;  %v2326_v41 = vadd.f32 %v8862_v23, %v20040_v47  ;;  %v15703_v23 = vadd.f32 %v8950_v39, %v8949_v60  ;;  %v8864_v33 = vpop.f32.mrb[103].mxu0  ;;  %v18943_v60 = vand.u32 4294901760, %v15672_v62  ;;  %v8952_v0 = vpop.f32.mrb[108].mxu1 }
 0x27b   : > { %v4492_v46 = vsub.f32 %v15593_v38, %v20039_v15  ;;  %4470 = vmatmul.mubr.f32.gmra.mrb[208].mxu0 %v4469_v34  ;;  %v8865_v47 = vadd.f32 %v8864_v33, %v8863_v37  ;;  %vm4043_vm12 = vcmp.eq.s32.totalorder %v19919_v13, %v15680_v50  ;;  %v15718_v34 = vpop.permute.xlu1 %3984  ;;  %v15720_v12 = vsub.f32 %v8128_v21, %v8128_v21  ;;  %v8866_v56 = vpop.f32.mrb[104].mxu0 }
 0x27c   : > { %4479 = vmatprep.mubr.f32.mxu0 %v4478_v22  ;;  %v15716_v39 = vadd.f32 %v15569_v18, %v2326_v41  ;;  %20041 = vst [vmem:[#allocation85_spill] sm:$0xff] %v15718_v34  ;;  %v4484_v29 = vand.u32 4294901760, %v4483_v14  ;;  %v20042_v38 = vand.u32 4294901760, %v15607_v61  ;;  %v15725_v37 = vsub.f32 %v8133_v48, %v8133_v48  ;;  %v20044_v22 = vld [vmem:[#allocation15_spill] sm:$0xff]  ;;  %v8953_v49 = vpop.f32.mrb[109].mxu1  ;;  %8167 = vmatmul.mubr.msk.f32.gmra.mrb[214].mxu1 %vm18933_vm7, %v19803_v44  ;;  %v8867_v48 = vpop.f32.mrb[105].mxu0 }
 0x27d   : > { %v2341_v33 = vadd.f32 %v8865_v47, %v20044_v22  ;;  %v4493_v18 = vand.u32 4294901760, %v4492_v46  ;;  %v20045_v14 = vand.u32 4294901760, %v15658_v20  ;;  %v15739_v21 = vadd.f32 %v8953_v49, %v8952_v0  ;;  %8168 = vmatprep.mubr.msk.f32.mxu1 %vm18934_vm11, %v19803_v44 }
 0x27e   : > { %v4498_v15 = vsub.f32 %v15607_v61, %v20042_v38  ;;  %20043 = vst [vmem:[#allocation30_spill] sm:$0xff] %v15725_v37  ;;  %v8132_v38 = vsel %vm4038_vm15, 1.0, %v19921_v58  ;;  %v20046_v46 = vand.u32 4294901760, %v15660_v25  ;;  %v8137_v22 = vsel %vm4043_vm12, 1.0, %v19921_v58 }
 0x27f   : > { %v4507_v41 = vsub.f32 %v15658_v20, %v20045_v14  ;;  %4485 = vmatmul.mubr.f32.gmra.mrb[210].mxu0 %v4484_v29  ;;  %vm4042_vm7 = vcmp.eq.s32.totalorder %v19915_v52, %v15680_v50  ;;  %v8868_v49 = vadd.f32 %v8867_v48, %v8866_v56  ;;  %v4522_v29 = vsub.f32 %v15672_v62, %v18943_v60  ;;  %v8955_v14 = vpop.f32.mrb[110].mxu1  ;;  %v20048_v56 = vld [vmem:[#allocation71_spill] sm:$0xff]  ;;  %v8869_v48 = vpop.f32.mrb[106].mxu0 }
 0x280   : > { %v4513_v47 = vsub.f32 %v15660_v25, %v20046_v46  ;;  %4494 = vmatprep.mubr.f32.mxu0 %v4493_v18  ;;  %vm4047_vm11 = vcmp.eq.s32.totalorder %v19919_v13, %v15718_v34  ;;  %v15760_v0 = vadd.f32 %v15612_v40, %v2341_v33  ;;  %v4499_v46 = vand.u32 4294901760, %v4498_v15  ;;  %v8956_v61 = vpop.f32.mrb[111].mxu1  ;;  %8169 = vmatmul.mubr.msk.f32.gmra.mrb[216].mxu1 %vm18944_vm5, %v19803_v44 }
 0x281   : > { %v15762_v42 = vsub.f32 %v8132_v38, %v8132_v38  ;;  %v18949_v25 = vand.u32 4294901760, %v15720_v12  ;;  %v2356_v18 = vadd.f32 %v8868_v49, %v20048_v56  ;;  %v4508_v60 = vand.u32 4294901760, %v4507_v41  ;;  %v8870_v38 = vpop.f32.mrb[107].mxu0  ;;  %8170 = vmatprep.mubr.msk.f32.mxu1 %vm4039_vm6, %v19803_v44 }
 0x282   : > { %20047 = vst [vmem:[#allocation56_spill] sm:$0xff] %v15760_v0  ;;  %v15771_v40 = vsub.f32 %v8137_v22, %v8137_v22  ;;  %v8136_v15 = vsel %vm4042_vm7, 1.0, %v19921_v58  ;;  %v15777_v33 = vadd.f32 %v8956_v61, %v8955_v14  ;;  %v8141_v41 = vsel %vm4047_vm11, 1.0, %v19921_v58 }
 0x283   : > { %4500 = vmatmul.mubr.f32.gmra.mrb[212].mxu0 %v4499_v46  ;;  %vm4046_vm5 = vcmp.eq.s32.totalorder %v19915_v52, %v15718_v34  ;;  %v8871_v22 = vadd.f32 %v8870_v38, %v8869_v48  ;;  %v4514_v49 = vand.u32 4294901760, %v4513_v47  ;;  %v4523_v61 = vand.u32 4294901760, %v4522_v29  ;;  %v8958_v46 = vpop.f32.mrb[112].mxu1  ;;  %v20051_v48 = vld [vmem:[#allocation81_spill] sm:$0xff]  ;;  %v8872_v47 = vpop.f32.mrb[108].mxu0  ;;  %v20059_v34 = vld [vmem:[#allocation42_spill] sm:$0xff] }
 0x284   : > { %4509 = vmatprep.mubr.f32.mxu0 %v4508_v60  ;;  %v15790_v14 = vadd.f32 %v15662_v55, %v2356_v18  ;;  %v15792_v56 = vsub.f32 %v8136_v15, %v8136_v15  ;;  %v4528_v20 = vsub.f32 %v15720_v12, %v18949_v25  ;;  %v20050_v36 = vand.u32 4294901760, %v15725_v37  ;;  %v8959_v29 = vpop.f32.mrb[113].mxu1  ;;  %8171 = vmatmul.mubr.msk.f32.gmra.mrb[218].mxu1 %vm4038_vm15, %v19803_v44  ;;  %v8873_v38 = vpop.f32.mrb[109].mxu0 }
 0x285   : > { %v2371_v60 = vadd.f32 %v8871_v22, %v20051_v48  ;;  %v15806_v55 = vsub.f32 %v8141_v41, %v8141_v41  ;;  %v8140_v18 = vsel %vm4046_vm5, 1.0, %v19921_v58  ;;  %v8960_v15 = vadd.f32 %v8959_v29, %v8958_v46  ;;  %8172 = vmatprep.mubr.msk.f32.mxu1 %vm4043_vm12, %v19803_v44  ;;  %v8961_v48 = vpop.f32.mrb[114].mxu1  ;;  %v20055_v29 = vld [vmem:[#allocation59_spill] sm:$0xff]  ;;  %v8875_v3 = vpop.f32.mrb[110].mxu0 }
 0x286   : > { %20049 = vst [vmem:[#allocation15_spill] sm:$0xff] %v15792_v56  ;;  %v4537_v62 = vsub.f32 %v15725_v37, %v20050_v36  ;;  %v8874_v22 = vadd.f32 %v8873_v38, %v8872_v47  ;;  %v4529_v25 = vand.u32 4294901760, %v4528_v20  ;;  %v15820_v0 = vsub.f32 %v8140_v18, %v8140_v18  ;;  %v8962_v37 = vpop.f32.mrb[115].mxu1 }
 0x287   : > { %20052 = vst [vmem:[#allocation71_spill] sm:$0xff] %v15806_v55  ;;  %4515 = vmatmul.mubr.f32.gmra.mrb[214].mxu0 %v4514_v49  ;;  %v15818_v41 = vadd.f32 %v15703_v23, %v2371_v60  ;;  %v20054_v58 = vand.u32 4294901760, %v15762_v42  ;;  %v18955_v49 = vand.u32 4294901760, %v15792_v56  ;;  %v20056_v20 = vand.u32 4294901760, %v15771_v40 }
 0x288   : > { %4524 = vmatprep.mubr.f32.mxu0 %v4523_v61  ;;  %20053 = vst [vmem:[#allocation81_spill] sm:$0xff] %v15820_v0  ;;  %v2386_v36 = vadd.f32 %v8874_v22, %v20055_v29  ;;  %8173 = vmatmul.mubr.msk.f32.gmra.mrb[220].mxu1 %vm4042_vm7, %v19803_v44  ;;  %v4538_v23 = vand.u32 4294901760, %v4537_v62  ;;  %v18956_v60 = vand.u32 4294901760, %v15806_v55  ;;  %v8963_v47 = vadd.f32 %v8962_v37, %v8961_v48  ;;  %v8964_v62 = vpop.f32.mrb[116].mxu1 }
 0x289   : > { %v4543_v46 = vsub.f32 %v15762_v42, %v20054_v58  ;;  %v4552_v61 = vsub.f32 %v15771_v40, %v20056_v20  ;;  %v8876_v58 = vpop.f32.mrb[111].mxu0  ;;  %8174 = vmatprep.mubr.msk.f32.mxu1 %vm4047_vm11, %v19803_v44  ;;  %v4558_v29 = vsub.f32 %v15792_v56, %v18955_v49  ;;  %v18961_v37 = vand.u32 4294901760, %v15820_v0  ;;  %v8965_v20 = vpop.f32.mrb[117].mxu1 }
 0x28a   : > { %v8877_v18 = vadd.f32 %v8876_v58, %v8875_v3  ;;  %v15840_v38 = vadd.f32 %v15739_v21, %v2386_v36  ;;  %v8878_v48 = vpop.f32.mrb[112].mxu0  ;;  %v4567_v21 = vsub.f32 %v15806_v55, %v18956_v60  ;;  %v15854_v36 = vadd.f32 %v8965_v20, %v8964_v62 }
 0x28b   : > { %4530 = vmatmul.mubr.f32.gmra.mrb[216].mxu0 %v4529_v25  ;;  %v4544_v22 = vand.u32 4294901760, %v4543_v46  ;;  %v4553_v3 = vand.u32 4294901760, %v4552_v61  ;;  %v8879_v46 = vpop.f32.mrb[113].mxu0  ;;  %v4559_v49 = vand.u32 4294901760, %v4558_v29  ;;  %v4573_v61 = vsub.f32 %v15820_v0, %v18961_v37 }
 0x28c   : > { %4539 = vmatprep.mubr.f32.mxu0 %v4538_v23  ;;  %v2401_v25 = vadd.f32 %v8877_v18, %v15210_v5  ;;  %8175 = vmatmul.mubr.msk.f32.gmra.mrb[222].mxu1 %vm4046_vm5, %v19803_v44  ;;  %v20057_v23 = vand.u32 4294901760, %v15131_v43  ;;  %v8880_v5 = vadd.f32 %v8879_v46, %v8878_v48  ;;  %v8967_v18 = vpop.f32.mrb[118].mxu1  ;;  %v8881_v62 = vpop.f32.mrb[114].mxu0  ;;  %v4568_v50 = vand.u32 4294901760, %v4567_v21  ;;  %v20063_v46 = vld [vmem:[#allocation14_spill] sm:$0xff] }
 0x28d   : > { %v8968_v20 = vpop.f32.mrb[119].mxu1  ;;  %v8882_v48 = vpop.f32.mrb[115].mxu0  ;;  %v16013_v44 = vld [vmem:[#allocation3 + $0x3a8] sm:$0xff] }
 0x28e   : > { %5289 = vmatprep.mubr.f32.mxu1 %v20057_v23  ;;  %v15859_v58 = vadd.f32 %v15777_v33, %v2401_v25  ;;  %v2416_v60 = vadd.f32 %v8880_v5, %v15256_v17  ;;  %v15867_v23 = vadd.f32 %v8968_v20, %v8967_v18  ;;  %v20061_v33 = vand.u32 4294901760, %v15138_v31  ;;  %v8970_v17 = vpop.f32.mrb[120].mxu1  ;;  %v8884_v21 = vpop.f32.mrb[116].mxu0  ;;  %v20064_v20 = vld [vmem:[#allocation43_spill] sm:$0xff] }
 0x28f   : > { %4545 = vmatmul.mubr.f32.gmra.mrb[218].mxu0 %v4544_v22  ;;  %v20060_v22 = vand.u32 4294901760, %v20059_v34  ;;  %v8883_v29 = vadd.f32 %v8882_v48, %v8881_v62  ;;  %v8971_v18 = vpop.f32.mrb[121].mxu1 }
 0x290   : > { %4554 = vmatprep.mubr.f32.mxu0 %v4553_v3  ;;  %20058 = vst [vmem:[#allocation59_spill] sm:$0xff] %v15859_v58  ;;  %v15872_v25 = vadd.f32 %v8960_v15, %v2416_v60  ;;  %v4574_v3 = vand.u32 4294901760, %v4573_v61  ;;  %v20066_v15 = vand.u32 4294901760, %v15214_v1  ;;  %v20068_v61 = vand.u32 4294901760, %v19950_v45  ;;  %v20083_v45 = vld [vmem:[#allocation41_spill] sm:$0xff] }
 0x291   : > { %5293 = vmatmul.mubr.f32.vlgmr.msra.gmra.mrb[224].mxu1 %v20060_v22  ;;  %v2431_v5 = vadd.f32 %v8883_v29, %v15301_v30  ;;  %v20065_v22 = vand.u32 4294901760, %v20064_v20  ;;  %v20067_v30 = vand.u32 4294901760, %v19951_v8  ;;  %v15894_v29 = vld [vmem:[#allocation3 + $0x300] sm:$0xff] }
 0x292   : > { %5300 = vmatprep.mubr.f32.mxu1 %v20061_v33  ;;  %10809 = vmatpush3.bf16.msra.mxu1 %v14370_v7  ;;  %20062 = vst [vmem:[#allocation42_spill] sm:$0xff] %v15872_v25  ;;  %v15880_v33 = vld [vmem:[#allocation3 + $0x388] sm:$0xff]  ;;  %v8885_v7 = vpop.f32.mrb[117].mxu0  ;;  %v20100_v25 = vld [vmem:[#allocation75_spill] sm:$0xff] }
 0x293   : > { %4560 = vmatmul.mubr.f32.gmra.mrb[220].mxu0 %v4559_v49  ;;  %10811 = vmatprep.subr.bf16.mxu1 %v20063_v46  ;;  %v15878_v49 = vld [vmem:[#allocation3 + $0x380] sm:$0xff]  ;;  %v8886_v60 = vadd.f32 %v8885_v7, %v8884_v21  ;;  %v10776_v62 = vpack.c.bf16 %v20068_v61, %v20067_v30  ;;  %v15892_v48 = vadd.f32 %v8963_v47, %v2431_v5  ;;  %v20070_v46 = vand.u32 4294901760, %v19956_v27  ;;  %v8887_v47 = vpop.f32.mrb[118].mxu0  ;;  %v15908_v30 = vld [vmem:[#allocation3 + $0x390] sm:$0xff] }
 0x294   : > { %4569 = vmatprep.mubr.f32.mxu0 %v4568_v50  ;;  %v15882_v50 = vadd.f32 %v8971_v18, %v8970_v17  ;;  %v15896_v17 = vld [vmem:[#allocation3 + $0x308] sm:$0xff]  ;;  %v20071_v21 = vand.u32 4294901760, %v19955_v6  ;;  %v20074_v7 = vld [vmem:[#allocation45_spill] sm:$0xff]  ;;  %v8888_v27 = vpop.f32.mrb[119].mxu0 }
 0x295   : > { %5304 = vmatmul.mubr.f32.gmra.mrb[226].mxu1 %v20065_v22  ;;  %20069 = vst [vmem:[#allocation14_spill] sm:$0xff] %v15892_v48  ;;  %v20073_v22 = vld [vmem:[#allocation52_spill] sm:$0xff]  ;;  %v20076_v6 = vld [vmem:[#allocation62_spill] sm:$0xff] }
 0x296   : > { %5311 = vmatprep.mubr.f32.mxu1 %v20066_v15  ;;  %10813 = vmatpush3.bf16.msra.mxu1 %v14428_v16  ;;  %v10778_v18 = vpack.c.bf16 %v20071_v21, %v20070_v46  ;;  %v2446_v16 = vadd.f32 %v8886_v60, %v20073_v22  ;;  %v20075_v15 = vand.u32 4294901760, %v20074_v7  ;;  %v20077_v46 = vand.u32 4294901760, %v20076_v6  ;;  %v15917_v60 = vld [vmem:[#allocation3 + $0x398] sm:$0xff]  ;;  %v20085_v48 = vld [vmem:[#allocation78_spill] sm:$0xff] }
 0x297   : > { %4575 = vmatmul.mubr.f32.gmra.mrb[222].mxu0 %v4574_v3  ;;  %v8973_v3 = vpop.f32.mrb[122].mxu1  ;;  %v8889_v22 = vadd.f32 %v8888_v27, %v8887_v47  ;;  %v8890_v47 = vpop.f32.mrb[120].mxu0 }
 0x298   : > { %5047 = vmatprep.mubr.f32.mxu0 %v15131_v43  ;;  %v20072_v43 = vld [vmem:[#allocation19_spill] sm:$0xff]  ;;  %v8974_v5 = vpop.f32.mrb[123].mxu1 }
 0x299   : > { %10815 = vmatprep.subr.bf16.mxu1 %v20072_v43  ;;  %5315 = vmatmul.mubr.f32.gmra.mrb[228].mxu1 %v20075_v15  ;;  %v15910_v61 = vadd.f32 %v8974_v5, %v8973_v3  ;;  %v20078_v15 = vand.u32 4294901760, %v19961_v63  ;;  %v20079_v3 = vand.u32 4294901760, %v19960_v28  ;;  %v8976_v37 = vpop.f32.mrb[124].mxu1  ;;  %v20084_v43 = vand.u32 4294901760, %v20083_v45  ;;  %v20091_v45 = vld [vmem:[#allocation22_spill] sm:$0xff] }
 0x29a   : > { %5322 = vmatprep.mubr.f32.mxu1 %v20077_v46  ;;  %v20081_v46 = vld [vmem:[#allocation13_spill] sm:$0xff]  ;;  %10817 = vmatpush3.bf16.msra.mxu1 %v20085_v48  ;;  %v20088_v28 = vand.u32 4294901760, %v15880_v33  ;;  %v8977_v27 = vpop.f32.mrb[125].mxu1  ;;  %v20093_v48 = vld [vmem:[#allocation35_spill] sm:$0xff] }
 0x29b   : > { %5050 = vmatmul.mubr.f32.vlgmr.msra.gmra.mrb[224].mxu0 %v20059_v34  ;;  %v10780_v5 = vpack.c.bf16 %v20079_v3, %v20078_v15  ;;  %v15925_v34 = vadd.f32 %v15854_v36, %v2446_v16  ;;  %v20082_v21 = vand.u32 4294901760, %v20081_v46  ;;  %v20095_v15 = vld [vmem:[#allocation57_spill] sm:$0xff]  ;;  %10819 = vmatprep.subr.bf16.mxu1 %v20100_v25  ;;  %v18964_v36 = vand.u32 4294901760, %v15917_v60  ;;  %v15971_v25 = vld [vmem:[#allocation3 + $0x310] sm:$0xff] }
 0x29c   : > { %10777 = vmatpush3.bf16.msra.mxu0 %v10776_v62  ;;  %5056 = vmatprep.mubr.f32.mxu0 %v15138_v31  ;;  %v20086_v62 = vand.u32 4294901760, %v15878_v49  ;;  %v15940_v63 = vsub.f32 %v15880_v33, %v20088_v28  ;;  %v20096_v3 = vand.u32 4294901760, %v20095_v15  ;;  %v20108_v15 = vld [vmem:[#allocation64_spill] sm:$0xff] }
 0x29d   : > { %20080 = vst [vmem:[#allocation43_spill] sm:$0xff] %v15925_v34  ;;  %10779 = vmatprep.subr.bf16.mxu0 %v10778_v18  ;;  %v10782_v8 = vpack.c.bf16 %v20084_v43, %v20082_v21  ;;  %v20090_v18 = vld [vmem:[#allocation79_spill] sm:$0xff]  ;;  %v20092_v21 = vand.u32 4294901760, %v20091_v45  ;;  %v20094_v43 = vand.u32 4294901760, %v20093_v48  ;;  %v20098_v34 = vld [vmem:[#allocation58_spill] sm:$0xff]  ;;  %v20103_v48 = vand.u32 4294901760, %v15894_v29 }
 0x29e   : > { %v15935_v31 = vsub.f32 %v15878_v49, %v20086_v62  ;;  %20089 = vst [vmem:[#allocation52_spill] sm:$0xff] %v15940_v63  ;;  %v2461_v16 = vadd.f32 %v8889_v22, %v20090_v18  ;;  %v20097_v62 = vand.u32 4294901760, %v19980_v54  ;;  %v20099_v52 = vand.u32 4294901760, %v20098_v34  ;;  %v8891_v18 = vpop.f32.mrb[121].mxu0  ;;  %10821 = vmatpush3.bf16.msra.mxu1 %v20108_v15  ;;  %v20114_v15 = vld [vmem:[#allocation28_spill] sm:$0xff] }
 0x29f   : > { %5326 = vmatmul.mubr.f32.gmra.mrb[230].mxu1 %v20092_v21  ;;  %v10784_v46 = vpack.c.bf16 %v20096_v3, %v20094_v43  ;;  %v15956_v22 = vadd.f32 %v8977_v27, %v8976_v37  ;;  %5059 = vmatmul.mubr.f32.gmra.mrb[226].mxu0 %v20064_v20  ;;  %v20101_v21 = vld [vmem:[#allocation48_spill] sm:$0xff]  ;;  %v15964_v43 = vsub.f32 %v15894_v29, %v20103_v48  ;;  %v20105_v54 = vand.u32 4294901760, %v15896_v17  ;;  %v8979_v27 = vpop.f32.mrb[126].mxu1  ;;  %v16002_v3 = vld [vmem:[#allocation3 + $0x3a0] sm:$0xff] }
 0x2a0   : > { %20087 = vst [vmem:[#allocation19_spill] sm:$0xff] %v15935_v31  ;;  %v10786_v28 = vpack.c.bf16 %v20099_v52, %v20097_v62  ;;  %v20102_v13 = vand.u32 4294901760, %v20101_v21  ;;  %v15973_v37 = vld [vmem:[#allocation3 + $0x318] sm:$0xff]  ;;  %v8892_v34 = vadd.f32 %v8891_v18, %v8890_v47  ;;  %5065 = vmatprep.mubr.f32.mxu0 %v15214_v1  ;;  %10781 = vmatpush3.bf16.msra.mxu0 %v10780_v5  ;;  %v20109_v48 = vand.u32 4294901760, %v15908_v30  ;;  %v8980_v18 = vpop.f32.mrb[127].mxu1 }
 0x2a1   : > { %20104 = vst [vmem:[#allocation45_spill] sm:$0xff] %v15964_v43  ;;  %v15969_v52 = vsub.f32 %v15896_v17, %v20105_v54  ;;  %10783 = vmatprep.subr.bf16.mxu0 %v10782_v8  ;;  %v20112_v54 = vld [vmem:[#allocation46_spill] sm:$0xff]  ;;  %10823 = vmatprep.subr.bf16.mxu1 %v20114_v15  ;;  %v15998_v20 = vsub.f32 %v15917_v60, %v18964_v36  ;;  %v20118_v15 = vand.u32 4294901760, %v19986_v57  ;;  %v20122_v57 = vand.u32 4294901760, %v19991_v59  ;;  %v20129_v59 = vld [vmem:[#allocation31_spill] sm:$0xff] }
 0x2a2   : > { %5333 = vmatprep.mubr.f32.mxu1 %v20102_v13  ;;  %v15977_v13 = vadd.f32 %v15867_v23, %v2461_v16  ;;  %v15987_v47 = vsub.f32 %v15908_v30, %v20109_v48  ;;  %v20111_v23 = vld [vmem:[#allocation66_spill] sm:$0xff]  ;;  %v8893_v16 = vpop.f32.mrb[122].mxu0  ;;  %v20113_v8 = vand.u32 4294901760, %v20112_v54  ;;  %v16004_v1 = vadd.f32 %v8980_v18, %v8979_v27  ;;  %v9094_v18 = vpop.f32.mrb[128].mxu1 }
 0x2a3   : > { %20106 = vst [vmem:[#allocation62_spill] sm:$0xff] %v15969_v52  ;;  %v2476_v5 = vadd.f32 %v8892_v34, %v20111_v23  ;;  %20115 = vst [vmem:[#allocation78_spill] sm:$0xff] %v15998_v20  ;;  %v8894_v34 = vpop.f32.mrb[123].mxu0  ;;  %5068 = vmatmul.mubr.f32.gmra.mrb[228].mxu0 %v20074_v7  ;;  %v20116_v23 = vld [vmem:[#allocation51_spill] sm:$0xff]  ;;  %v9095_v7 = vpop.f32.mrb[129].mxu1 }
 0x2a4   : > { %20107 = vst [vmem:[#allocation13_spill] sm:$0xff] %v15977_v13  ;;  %20110 = vst [vmem:[#allocation41_spill] sm:$0xff] %v15987_v47  ;;  %5337 = vmatmul.mubr.f32.gmra.mrb[232].mxu1 %v20113_v8  ;;  %v20117_v8 = vand.u32 4294901760, %v20116_v23  ;;  %v20119_v13 = vand.u32 4294901760, %v19985_v51  ;;  %v8895_v48 = vadd.f32 %v8894_v34, %v8893_v16  ;;  %5074 = vmatprep.mubr.f32.mxu0 %v20076_v6  ;;  %v20124_v16 = vand.u32 4294901760, %v15935_v31  ;;  %v20126_v34 = vld [vmem:[#allocation44_spill] sm:$0xff] }
 0x2a5   : > { %10785 = vmatpush3.bf16.msra.mxu0 %v10784_v46  ;;  %v16017_v27 = vadd.f32 %v15882_v50, %v2476_v5  ;;  %v20125_v46 = vand.u32 4294901760, %v15940_v63 }
 0x2a6   : > { %5344 = vmatprep.mubr.f32.mxu1 %v20117_v8  ;;  %v10788_v36 = vpack.c.bf16 %v20119_v13, %v20118_v15  ;;  %10787 = vmatprep.subr.bf16.mxu0 %v10786_v28  ;;  %v20121_v8 = vand.u32 4294901760, %v19992_v10  ;;  %v20123_v13 = vld [vmem:[#allocation65_spill] sm:$0xff]  ;;  %v6398_v6 = vsub.f32 %v15935_v31, %v20124_v16  ;;  %v2491_v15 = vadd.f32 %v8895_v48, %v20126_v34  ;;  %v8896_v28 = vpop.f32.mrb[124].mxu0  ;;  %v20127_v10 = vld [vmem:[#allocation55_spill] sm:$0xff] }
 0x2a7   : > { %20120 = vst [vmem:[#allocation79_spill] sm:$0xff] %v16017_v27  ;;  %10825 = vmatpush3.bf16.msra.mxu1 %v20123_v13  ;;  %v6405_v50 = vsub.f32 %v15940_v63, %v20125_v46  ;;  %v20128_v62 = vand.u32 4294901760, %v20127_v10  ;;  %v20132_v13 = vand.u32 4294901760, %v15973_v37  ;;  %v18970_v46 = vand.u32 4294901760, %v16013_v44  ;;  %v8897_v34 = vpop.f32.mrb[125].mxu0  ;;  %5077 = vmatmul.mubr.f32.gmra.mrb[230].mxu0 %v20091_v45  ;;  %v16057_v63 = vld [vmem:[#allocation3 + $0x320] sm:$0xff] }
 0x2a8   : > { %v10790_v51 = vpack.c.bf16 %v20122_v57, %v20121_v8  ;;  %10827 = vmatprep.subr.bf16.mxu1 %v20129_v59  ;;  %v20130_v8 = vand.u32 4294901760, %v15971_v25  ;;  %v16048_v48 = vadd.f32 %v9095_v7, %v9094_v18  ;;  %v20136_v59 = vand.u32 4294901760, %v19998_v19  ;;  %v16059_v27 = vld [vmem:[#allocation3 + $0x328] sm:$0xff]  ;;  %5083 = vmatprep.mubr.f32.mxu0 %v20101_v21  ;;  %v9097_v18 = vpop.f32.mrb[130].mxu1  ;;  %v20144_v45 = vld [vmem:[#allocation25_spill] sm:$0xff] }
 0x2a9   : > { %5348 = vmatmul.mubr.f32.gmra.mrb[234].mxu1 %v20128_v62  ;;  %v16045_v16 = vsub.f32 %v15973_v37, %v20132_v13  ;;  %v20134_v62 = vld [vmem:[#allocation67_spill] sm:$0xff]  ;;  %v8898_v13 = vadd.f32 %v8897_v34, %v8896_v28  ;;  %10789 = vmatpush3.bf16.msra.mxu0 %v10788_v36  ;;  %v16063_v7 = vadd.f32 %v15910_v61, %v2491_v15  ;;  %v20139_v19 = vand.u32 4294901760, %v20003_v24  ;;  %v8899_v15 = vpop.f32.mrb[126].mxu0  ;;  %v9098_v34 = vpop.f32.mrb[131].mxu1  ;;  %v20146_v24 = vld [vmem:[#allocation36_spill] sm:$0xff] }
 0x2aa   : > { %v16040_v57 = vsub.f32 %v15971_v25, %v20130_v8  ;;  %v20135_v5 = vand.u32 4294901760, %v20134_v62  ;;  %v20137_v8 = vand.u32 4294901760, %v19997_v4  ;;  %10791 = vmatprep.subr.bf16.mxu0 %v10790_v51  ;;  %v20140_v4 = vand.u32 4294901760, %v20002_v26 }
 0x2ab   : > { %20133 = vst [vmem:[#allocation35_spill] sm:$0xff] %v16045_v16  ;;  %20138 = vst [vmem:[#allocation57_spill] sm:$0xff] %v16063_v7  ;;  %v6406_v28 = vand.u32 4294901760, %v6405_v50  ;;  %v20142_v21 = vand.u32 4294901760, %v16002_v3  ;;  %v2506_v61 = vadd.f32 %v8898_v13, %v15537_v53  ;;  %v20145_v51 = vand.u32 4294901760, %v20144_v45  ;;  %v8900_v13 = vpop.f32.mrb[127].mxu0  ;;  %5086 = vmatmul.mubr.f32.gmra.mrb[232].mxu0 %v20112_v54 }
 0x2ac   : > { %20131 = vst [vmem:[#allocation22_spill] sm:$0xff] %v16040_v57  ;;  %5355 = vmatprep.mubr.f32.mxu1 %v20135_v5  ;;  %v10792_v31 = vpack.c.bf16 %v20137_v8, %v20136_v59  ;;  %v10794_v5 = vpack.c.bf16 %v20140_v4, %v20139_v19  ;;  %v20141_v59 = vld [vmem:[#allocation20_spill] sm:$0xff]  ;;  %v6399_v8 = vand.u32 4294901760, %v6398_v6  ;;  %v16084_v26 = vsub.f32 %v16013_v44, %v18970_v46  ;;  %v16088_v19 = vld [vmem:[#allocation3 + $0x3b0] sm:$0xff]  ;;  %v20153_v6 = vld [vmem:[#allocation74_spill] sm:$0xff] }
 0x2ad   : > { %10829 = vmatpush3.bf16.msra.mxu1 %v20141_v59  ;;  %v16075_v36 = vsub.f32 %v16002_v3, %v20142_v21  ;;  %v16090_v4 = vld [vmem:[#allocation3 + $0x3b8] sm:$0xff]  ;;  %v16092_v53 = vadd.f32 %v9098_v34, %v9097_v18  ;;  %v20154_v0 = vand.u32 4294901760, %v20153_v6  ;;  %v20155_v50 = vld [vmem:[#allocation82_spill] sm:$0xff]  ;;  %v8901_v56 = vadd.f32 %v8900_v13, %v8899_v15  ;;  %5092 = vmatprep.mubr.f32.mxu0 %v20116_v23  ;;  %v16109_v54 = vld [vmem:[#allocation3 + $0x330] sm:$0xff]  ;;  %v9100_v34 = vpop.f32.mrb[132].mxu1  ;;  %v9014_v13 = vpop.f32.mrb[128].mxu0 }
 0x2ae   : > { %5359 = vmatmul.mubr.f32.gmra.mrb[236].mxu1 %v20145_v51  ;;  %10831 = vmatprep.subr.bf16.mxu1 %v20146_v24  ;;  %20147 = vst [vmem:[#allocation75_spill] sm:$0xff] %v16084_v26  ;;  %v20148_v59 = vld [vmem:[#allocation12_spill] sm:$0xff]  ;;  %v20150_v51 = vand.u32 4294901760, %v20007_v32  ;;  %v20151_v24 = vld [vmem:[#allocation73_spill] sm:$0xff]  ;;  %v20156_v58 = vand.u32 4294901760, %v20155_v50  ;;  %v16107_v18 = vadd.f32 %v15956_v22, %v2506_v61  ;;  %v20160_v6 = vld [vmem:[#allocation83_spill] sm:$0xff] }
 0x2af   : > { %20143 = vst [vmem:[#allocation58_spill] sm:$0xff] %v16075_v36  ;;  %v20149_v21 = vand.u32 4294901760, %v20148_v59  ;;  %v20152_v46 = vand.u32 4294901760, %v20151_v24  ;;  %10793 = vmatpush3.bf16.msra.mxu0 %v10792_v31  ;;  %v16120_v23 = vld [vmem:[#allocation3 + $0x338] sm:$0xff]  ;;  %v9101_v24 = vpop.f32.mrb[133].mxu1  ;;  %v20164_v32 = vld [vmem:[#allocation53_spill] sm:$0xff] }
 0x2b0   : > { %v10798_v55 = vpack.c.bf16 %v20156_v58, %v20154_v0  ;;  %20157 = vst [vmem:[#allocation48_spill] sm:$0xff] %v16107_v18  ;;  %10795 = vmatprep.subr.bf16.mxu0 %v10794_v5  ;;  %v20162_v0 = vld [vmem:[#allocation68_spill] sm:$0xff]  ;;  %v10870_v58 = vpack.c.bf16 %v6406_v28, %v6399_v8  ;;  %v20165_v5 = vand.u32 4294901760, %v20164_v32  ;;  %v20169_v8 = vand.u32 4294901760, %v16059_v27  ;;  %5095 = vmatmul.mubr.f32.gmra.mrb[234].mxu0 %v20127_v10 }
 0x2b1   : > { %5366 = vmatprep.mubr.f32.mxu1 %v20149_v21  ;;  %v10796_v7 = vpack.c.bf16 %v20152_v46, %v20150_v51  ;;  %v20158_v46 = vld [vmem:[#allocation76_spill] sm:$0xff]  ;;  %v20161_v51 = vand.u32 4294901760, %v20160_v6  ;;  %10833 = vmatpush3.bf16.msra.mxu1 %v20162_v0  ;;  %v20171_v0 = vld [vmem:[#allocation47_spill] sm:$0xff]  ;;  %v20176_v31 = vand.u32 4294901760, %v20033_v9 }
 0x2b2   : > { %v20159_v21 = vand.u32 4294901760, %v20158_v46  ;;  %v20163_v61 = vld [vmem:[#allocation16_spill] sm:$0xff]  ;;  %5370 = vmatmul.mubr.f32.gmra.mrb[238].mxu1 %v20165_v5  ;;  %v20166_v46 = vld [vmem:[#allocation37_spill] sm:$0xff]  ;;  %v16134_v28 = vsub.f32 %v16059_v27, %v20169_v8  ;;  %v20173_v5 = vand.u32 4294901760, %v20023_v35  ;;  %v18978_v8 = vand.u32 4294901760, %v16109_v54  ;;  %5101 = vmatprep.mubr.f32.mxu0 %v20134_v62  ;;  %v9103_v35 = vpop.f32.mrb[134].mxu1 }
 0x2b3   : > { %v2521_v15 = vadd.f32 %v8901_v56, %v20163_v61  ;;  %10835 = vmatprep.subr.bf16.mxu1 %v20166_v46  ;;  %v9015_v56 = vpop.f32.mrb[129].mxu0  ;;  %v20172_v61 = vand.u32 4294901760, %v20171_v0  ;;  %v20174_v46 = vand.u32 4294901760, %v20022_v2  ;;  %10797 = vmatpush3.bf16.msra.mxu0 %v10796_v7 }
 0x2b4   : > { %v10800_v50 = vpack.c.bf16 %v20161_v51, %v20159_v21  ;;  %v20167_v21 = vand.u32 4294901760, %v16057_v63  ;;  %20170 = vst [vmem:[#allocation66_spill] sm:$0xff] %v16134_v28  ;;  %v16136_v51 = vadd.f32 %v9101_v24, %v9100_v34  ;;  %v9016_v34 = vadd.f32 %v9015_v56, %v9014_v13  ;;  %10799 = vmatprep.subr.bf16.mxu0 %v10798_v55  ;;  %v9104_v55 = vpop.f32.mrb[135].mxu1 }
 0x2b5   : > { %5377 = vmatprep.mubr.f32.mxu1 %v20172_v61  ;;  %v10802_v22 = vpack.c.bf16 %v20174_v46, %v20173_v5  ;;  %v16152_v10 = vadd.f32 %v16004_v1, %v2521_v15  ;;  %v18977_v24 = vand.u32 4294901760, %v16120_v23  ;;  %v20179_v13 = vand.u32 4294901760, %v16088_v19  ;;  %v20183_v15 = vld [vmem:[#allocation86_spill] sm:$0xff]  ;;  %v9017_v61 = vpop.f32.mrb[130].mxu0  ;;  %v20184_v5 = vld [vmem:[#allocation33_spill] sm:$0xff]  ;;  %5104 = vmatmul.mubr.f32.gmra.mrb[236].mxu0 %v20144_v45 }
 0x2b6   : > { %v16129_v6 = vsub.f32 %v16057_v63, %v20167_v21  ;;  %v20175_v21 = vand.u32 4294901760, %v20034_v11  ;;  %v20178_v11 = vld [vmem:[#allocation18_spill] sm:$0xff]  ;;  %v20181_v1 = vand.u32 4294901760, %v16090_v4  ;;  %v2996_v56 = vadd.f32 %v9016_v34, %v20183_v15  ;;  %5110 = vmatprep.mubr.f32.mxu0 %v20148_v59 }
 0x2b7   : > { %20177 = vst [vmem:[#allocation46_spill] sm:$0xff] %v16152_v10  ;;  %10837 = vmatpush3.bf16.msra.mxu1 %v20178_v11  ;;  %v16163_v62 = vsub.f32 %v16088_v19, %v20179_v13  ;;  %v20185_v46 = vand.u32 4294901760, %v20184_v5  ;;  %v20187_v11 = vand.u32 4294901760, %v15880_v33  ;;  %v20189_v13 = vand.u32 4294901760, %v15894_v29  ;;  %v16188_v15 = vld [vmem:[#allocation3 + $0x3c8] sm:$0xff]  ;;  %v20191_v33 = vld [vmem:[#allocation61_spill] sm:$0xff]  ;;  %10801 = vmatpush3.bf16.msra.mxu0 %v10800_v50 }
 0x2b8   : > { %20168 = vst [vmem:[#allocation64_spill] sm:$0xff] %v16129_v6  ;;  %v10804_v18 = vpack.c.bf16 %v20176_v31, %v20175_v21  ;;  %v16168_v7 = vsub.f32 %v16090_v4, %v20181_v1  ;;  %v20186_v21 = vand.u32 4294901760, %v15878_v49  ;;  %v20190_v31 = vand.u32 4294901760, %v15896_v17  ;;  %10871 = vmatprep.subr.bf16.mxu1 %v10870_v58  ;;  %v16186_v1 = vld [vmem:[#allocation3 + $0x3c0] sm:$0xff]  ;;  %v9018_v49 = vpop.f32.mrb[131].mxu0  ;;  %10803 = vmatprep.subr.bf16.mxu0 %v10802_v22 }
 0x2b9   : > { %20180 = vst [vmem:[#allocation28_spill] sm:$0xff] %v16163_v62  ;;  %5381 = vmatmul.mubr.f32.gmra.mrb[240].mxu1 %v20185_v46  ;;  %v16190_v46 = vadd.f32 %v9104_v55, %v9103_v35  ;;  %v16199_v17 = vsub.f32 %v16109_v54, %v18978_v8  ;;  %v16205_v35 = vadd.f32 %v16048_v48, %v2996_v56  ;;  %v9106_v55 = vpop.f32.mrb[136].mxu1  ;;  %v16220_v50 = vld [vmem:[#allocation3 + $0x340] sm:$0xff]  ;;  %v16222_v56 = vld [vmem:[#allocation3 + $0x348] sm:$0xff]  ;;  %v20200_v8 = vld [vmem:[#allocation24_spill] sm:$0xff] }
 0x2ba   : > { %20182 = vst [vmem:[#allocation51_spill] sm:$0xff] %v16168_v7  ;;  %v16177_v2 = vpack.c.bf16 %v20187_v11, %v20186_v21  ;;  %v16183_v9 = vpack.c.bf16 %v20190_v31, %v20189_v13  ;;  %v20192_v21 = vand.u32 4294901760, %v20191_v33  ;;  %v9019_v31 = vadd.f32 %v9018_v49, %v9017_v61  ;;  %20198 = vst [vmem:[#allocation67_spill] sm:$0xff] %v16222_v56  ;;  %v20199_v49 = vld [vmem:[#allocation17_spill] sm:$0xff]  ;;  %v9107_v22 = vpop.f32.mrb[137].mxu1 }
 0x2bb   : > { %20193 = vst [vmem:[#allocation44_spill] sm:$0xff] %v16199_v17  ;;  %20194 = vst [vmem:[#allocation55_spill] sm:$0xff] %v16205_v35  ;;  %v16210_v45 = vsub.f32 %v16120_v23, %v18977_v24  ;;  %v20196_v11 = vand.u32 4294901760, %v15964_v43  ;;  %v9020_v24 = vpop.f32.mrb[132].mxu0  ;;  %v20201_v29 = vand.u32 4294901760, %v20200_v8  ;;  %v16231_v59 = vadd.f32 %v9107_v22, %v9106_v55  ;;  %5113 = vmatmul.mubr.f32.gmra.mrb[238].mxu0 %v20164_v32 }
 0x2bc   : > { %20188 = vst [vmem:[#allocation65_spill] sm:$0xff] %v16177_v2  ;;  %5388 = vmatprep.mubr.f32.mxu1 %v20192_v21  ;;  %v20197_v21 = vand.u32 4294901760, %v15969_v52  ;;  %v3005_v58 = vadd.f32 %v9019_v31, %v20199_v49  ;;  %v9021_v48 = vpop.f32.mrb[133].mxu0  ;;  %v20204_v31 = vand.u32 4294901760, %v15987_v47  ;;  %5119 = vmatprep.mubr.f32.mxu0 %v20171_v0  ;;  %v20209_v0 = vand.u32 4294901760, %v16188_v15 }
 0x2bd   : > { %20195 = vst [vmem:[#allocation31_spill] sm:$0xff] %v16210_v45  ;;  %v6286_v13 = vsub.f32 %v15964_v43, %v20196_v11  ;;  %5392 = vmatmul.mubr.f32.gmra.mrb[242].mxu1 %v20201_v29  ;;  %v20202_v43 = vld [vmem:[#allocation70_spill] sm:$0xff]  ;;  %v20205_v29 = vand.u32 4294901760, %v15998_v20  ;;  %v9022_v34 = vadd.f32 %v9021_v48, %v9020_v24  ;;  %10805 = vmatpush3.bf16.msra.mxu0 %v10804_v18  ;;  %v9023_v24 = vpop.f32.mrb[134].mxu0  ;;  %v20211_v48 = vld [vmem:[#allocation49_spill] sm:$0xff] }
 0x2be   : > { %v6293_v61 = vsub.f32 %v15969_v52, %v20197_v21  ;;  %v20203_v52 = vand.u32 4294901760, %v20202_v43  ;;  %v6412_v49 = vsub.f32 %v15987_v47, %v20204_v31  ;;  %v16244_v55 = vadd.f32 %v16092_v53, %v3005_v58  ;;  %10839 = vmatprep.subr.bf16.mxu0 %v16177_v2 }
 0x2bf   : > { %v6419_v11 = vsub.f32 %v15998_v20, %v20205_v29  ;;  %v6287_v21 = vand.u32 4294901760, %v6286_v13  ;;  %v20207_v47 = vand.u32 4294901760, %v16186_v1  ;;  %v16257_v18 = vsub.f32 %v16188_v15, %v20209_v0  ;;  %5122 = vmatmul.mubr.f32.gmra.mrb[240].mxu0 %v20184_v5 }
 0x2c0   : > { %5399 = vmatprep.mubr.f32.mxu1 %v20203_v52  ;;  %20206 = vst [vmem:[#allocation20_spill] sm:$0xff] %v16244_v55  ;;  %v9109_v52 = vpop.f32.mrb[138].mxu1  ;;  %v6294_v31 = vand.u32 4294901760, %v6293_v61  ;;  %v3014_v53 = vadd.f32 %v9022_v34, %v15716_v39  ;;  %v20212_v22 = vand.u32 4294901760, %v20211_v48  ;;  %v20213_v13 = vand.u32 4294901760, %v15908_v30  ;;  %v16274_v39 = vld [vmem:[#allocation3 + $0x3d0] sm:$0xff]  ;;  %5128 = vmatprep.mubr.f32.mxu0 %v20191_v33 }
 0x2c1   : > { %v16252_v29 = vsub.f32 %v16186_v1, %v20207_v47  ;;  %20210 = vst [vmem:[#allocation36_spill] sm:$0xff] %v16257_v18  ;;  %v9110_v58 = vpop.f32.mrb[139].mxu1  ;;  %v20214_v61 = vand.u32 4294901760, %v15917_v60  ;;  %v20216_v47 = vand.u32 4294901760, %v16040_v57  ;;  %v20217_v0 = vand.u32 4294901760, %v16045_v16  ;;  %v16276_v34 = vld [vmem:[#allocation3 + $0x3d8] sm:$0xff] }
 0x2c2   : > { %5403 = vmatmul.mubr.f32.gmra.mrb[244].mxu1 %v20212_v22  ;;  %v16278_v2 = vadd.f32 %v9110_v58, %v9109_v52  ;;  %v9024_v22 = vpop.f32.mrb[135].mxu0  ;;  %v20218_v30 = vld [vmem:[#allocation29_spill] sm:$0xff]  ;;  %v20221_v52 = vand.u32 4294901760, %v16220_v50  ;;  %v20223_v5 = vand.u32 4294901760, %v16222_v56  ;;  %v20226_v33 = vand.u32 4294901760, %v15973_v37 }
 0x2c3   : > { %20208 = vst [vmem:[#allocation25_spill] sm:$0xff] %v16252_v29  ;;  %v16266_v32 = vpack.c.bf16 %v20214_v61, %v20213_v13  ;;  %v6300_v20 = vsub.f32 %v16040_v57, %v20216_v47  ;;  %v6307_v55 = vsub.f32 %v16045_v16, %v20217_v0  ;;  %v20219_v60 = vand.u32 4294901760, %v20218_v30  ;;  %v16311_v47 = vld [vmem:[#allocation3 + $0x358] sm:$0xff]  ;;  %5131 = vmatmul.mubr.f32.gmra.mrb[242].mxu0 %v20200_v8 }
 0x2c4   : > { %v6413_v13 = vand.u32 4294901760, %v6412_v49  ;;  %v6420_v61 = vand.u32 4294901760, %v6419_v11  ;;  %v9025_v57 = vadd.f32 %v9024_v22, %v9023_v24  ;;  %v16287_v0 = vadd.f32 %v16136_v51, %v3014_v53  ;;  %v9112_v11 = vpop.f32.mrb[140].mxu1  ;;  %20228 = vst [vmem:[#allocation83_spill] sm:$0xff] %v16311_v47  ;;  %v20229_v16 = vld [vmem:[#allocation56_spill] sm:$0xff]  ;;  %v20232_v53 = vld [vmem:[#allocation39_spill] sm:$0xff]  ;;  %5137 = vmatprep.mubr.f32.mxu0 %v20202_v43 }
 0x2c5   : > { %20215 = vst [vmem:[#allocation12_spill] sm:$0xff] %v16266_v32  ;;  %5410 = vmatprep.mubr.f32.mxu1 %v20219_v60  ;;  %v16292_v58 = vsub.f32 %v16220_v50, %v20221_v52  ;;  %v16297_v60 = vsub.f32 %v16222_v56, %v20223_v5  ;;  %v16299_v49 = vpack.c.bf16 %v6294_v31, %v6287_v21  ;;  %v20225_v24 = vand.u32 4294901760, %v15971_v25  ;;  %v16309_v52 = vld [vmem:[#allocation3 + $0x350] sm:$0xff]  ;;  %v9113_v35 = vpop.f32.mrb[141].mxu1  ;;  %v20230_v21 = vld [vmem:[#allocation77_spill] sm:$0xff] }
 0x2c6   : > { %20220 = vst [vmem:[#allocation73_spill] sm:$0xff] %v16287_v0  ;;  %v3023_v5 = vadd.f32 %v9025_v57, %v20229_v16  ;;  %v9026_v0 = vpop.f32.mrb[136].mxu0  ;;  %v20231_v31 = vand.u32 4294901760, %v20230_v21  ;;  %v6301_v25 = vand.u32 4294901760, %v6300_v20  ;;  %v6308_v10 = vand.u32 4294901760, %v6307_v55 }
 0x2c7   : > { %20222 = vst [vmem:[#allocation74_spill] sm:$0xff] %v16292_v58  ;;  %20224 = vst [vmem:[#allocation82_spill] sm:$0xff] %v16297_v60  ;;  %v16305_v22 = vpack.c.bf16 %v20226_v33, %v20225_v24  ;;  %v16318_v24 = vadd.f32 %v9113_v35, %v9112_v11  ;;  %v9027_v33 = vpop.f32.mrb[137].mxu0  ;;  %v20233_v51 = vand.u32 4294901760, %v20232_v53  ;;  %v16323_v56 = vpack.c.bf16 %v6420_v61, %v6413_v13  ;;  %v9115_v11 = vpop.f32.mrb[142].mxu1  ;;  %v16358_v61 = vld [vmem:[#allocation3 + $0x3e8] sm:$0xff] }
 0x2c8   : > { %5414 = vmatmul.mubr.f32.gmra.mrb[246].mxu1 %v20231_v31  ;;  %v20234_v57 = vand.u32 4294901760, %v16002_v3  ;;  %v20235_v16 = vand.u32 4294901760, %v16013_v44  ;;  %v9028_v20 = vadd.f32 %v9027_v33, %v9026_v0  ;;  %v16333_v35 = vadd.f32 %v16190_v46, %v3023_v5  ;;  %v9116_v5 = vpop.f32.mrb[143].mxu1  ;;  %20243 = vst [vmem:[#allocation47_spill] sm:$0xff] %v16358_v61  ;;  %5140 = vmatmul.mubr.f32.gmra.mrb[244].mxu0 %v20211_v48 }
 0x2c9   : > { %20227 = vst [vmem:[#allocation76_spill] sm:$0xff] %v16305_v22  ;;  %5421 = vmatprep.mubr.f32.mxu1 %v20233_v51  ;;  %v18994_v55 = vand.u32 4294901760, %v16309_v52  ;;  %v18995_v8 = vand.u32 4294901760, %v16311_v47  ;;  %v20238_v3 = vand.u32 4294901760, %v16274_v39  ;;  %v20240_v0 = vand.u32 4294901760, %v16276_v34  ;;  %v9029_v51 = vpop.f32.mrb[138].mxu0  ;;  %5146 = vmatprep.mubr.f32.mxu0 %v20218_v30 }
 0x2ca   : > { %v16329_v31 = vpack.c.bf16 %v20235_v16, %v20234_v57  ;;  %20237 = vst [vmem:[#allocation16_spill] sm:$0xff] %v16333_v35  ;;  %v3032_v46 = vadd.f32 %v9028_v20, %v15790_v14  ;;  %v20242_v33 = vand.u32 4294901760, %v15720_v12  ;;  %v16352_v57 = vpack.c.bf16 %v6308_v10, %v6301_v25  ;;  %v20244_v14 = vld [vmem:[#allocation30_spill] sm:$0xff]  ;;  %v16391_v25 = vld [vmem:[#allocation3 + $0x360] sm:$0xff] }
 0x2cb   : > { %v16342_v44 = vsub.f32 %v16274_v39, %v20238_v3  ;;  %v16347_v43 = vsub.f32 %v16276_v34, %v20240_v0  ;;  %v16356_v3 = vld [vmem:[#allocation3 + $0x3e0] sm:$0xff]  ;;  %v16360_v13 = vadd.f32 %v9116_v5, %v9115_v11  ;;  %v9030_v0 = vpop.f32.mrb[139].mxu0  ;;  %v20245_v20 = vand.u32 4294901760, %v20244_v14  ;;  %v9118_v5 = vpop.f32.mrb[144].mxu1  ;;  %20251 = vst [vmem:[#allocation61_spill] sm:$0xff] %v16391_v25 }
 0x2cc   : > { %20236 = vst [vmem:[#allocation68_spill] sm:$0xff] %v16329_v31  ;;  %5425 = vmatmul.mubr.f32.gmra.mrb[248].mxu1 %v20242_v33  ;;  %v9031_v37 = vadd.f32 %v9030_v0, %v9029_v51  ;;  %v16371_v16 = vadd.f32 %v16231_v59, %v3032_v46  ;;  %v16376_v48 = vsub.f32 %v16309_v52, %v18994_v55  ;;  %v20250_v30 = vand.u32 4294901760, %v16084_v26  ;;  %v16393_v55 = vld [vmem:[#allocation3 + $0x368] sm:$0xff]  ;;  %v9032_v10 = vpop.f32.mrb[140].mxu0  ;;  %v9119_v33 = vpop.f32.mrb[145].mxu1 }
 0x2cd   : > { %20239 = vst [vmem:[#allocation53_spill] sm:$0xff] %v16342_v44  ;;  %20241 = vst [vmem:[#allocation37_spill] sm:$0xff] %v16347_v43  ;;  %5432 = vmatprep.mubr.f32.mxu1 %v20245_v20  ;;  %v16381_v11 = vsub.f32 %v16311_v47, %v18995_v8  ;;  %v20249_v20 = vand.u32 4294901760, %v16075_v36  ;;  %v9033_v35 = vpop.f32.mrb[141].mxu0  ;;  %5149 = vmatmul.mubr.f32.gmra.mrb[246].mxu0 %v20230_v21  ;;  %v9121_v0 = vpop.f32.mrb[146].mxu1  ;;  %v20260_v47 = vand.u32 4294901760, %v16356_v3 }
 0x2ce   : > { %20246 = vst [vmem:[#allocation18_spill] sm:$0xff] %v16371_v16  ;;  %20247 = vst [vmem:[#allocation86_spill] sm:$0xff] %v16376_v48  ;;  %v6433_v59 = vsub.f32 %v16084_v26, %v20250_v30  ;;  %v3041_v8 = vadd.f32 %v9031_v37, %v15818_v41  ;;  %v20253_v16 = vand.u32 4294901760, %v15762_v42  ;;  %v20255_v30 = vand.u32 4294901760, %v16134_v28  ;;  %5155 = vmatprep.mubr.f32.mxu0 %v20232_v53  ;;  %v9035_v53 = vpop.f32.mrb[142].mxu0 }
 0x2cf   : > { %20248 = vst [vmem:[#allocation33_spill] sm:$0xff] %v16381_v11  ;;  %v6426_v51 = vsub.f32 %v16075_v36, %v20249_v20  ;;  %20252 = vst [vmem:[#allocation17_spill] sm:$0xff] %v16393_v55  ;;  %v20254_v20 = vand.u32 4294901760, %v16129_v6  ;;  %v16406_v26 = vadd.f32 %v9119_v33, %v9118_v5  ;;  %v20256_v41 = vand.u32 4294901760, %v15771_v40 }
 0x2d0   : > { %5436 = vmatmul.mubr.f32.gmra.mrb[250].mxu1 %v20253_v16  ;;  %v6321_v46 = vsub.f32 %v16134_v28, %v20255_v30  ;;  %v20257_v37 = vand.u32 4294901760, %v16163_v62  ;;  %v9034_v30 = vadd.f32 %v9033_v35, %v9032_v10  ;;  %v16419_v33 = vadd.f32 %v16278_v2, %v3041_v8  ;;  %v9122_v8 = vpop.f32.mrb[147].mxu1  ;;  %v20264_v10 = vld [vmem:[#allocation15_spill] sm:$0xff] }
 0x2d1   : > { %v6314_v36 = vsub.f32 %v16129_v6, %v20254_v20  ;;  %5443 = vmatprep.mubr.f32.mxu1 %v20256_v41  ;;  %v20258_v20 = vand.u32 4294901760, %v16168_v7  ;;  %v6427_v41 = vand.u32 4294901760, %v6426_v51  ;;  %v6434_v28 = vand.u32 4294901760, %v6433_v59  ;;  %5158 = vmatmul.mubr.f32.gmra.mrb[248].mxu0 %v15720_v12 }
 0x2d2   : > { %v6440_v16 = vsub.f32 %v16163_v62, %v20257_v37  ;;  %20259 = vst [vmem:[#allocation24_spill] sm:$0xff] %v16419_v33  ;;  %v16426_v37 = vsub.f32 %v16356_v3, %v20260_v47  ;;  %v3050_v2 = vadd.f32 %v9034_v30, %v15840_v38  ;;  %v20265_v5 = vand.u32 4294901760, %v20264_v10  ;;  %v16444_v33 = vld [vmem:[#allocation3 + $0x3f8] sm:$0xff]  ;;  %v9036_v38 = vpop.f32.mrb[143].mxu0  ;;  %v20269_v30 = vld [vmem:[#allocation71_spill] sm:$0xff]  ;;  %5164 = vmatprep.mubr.f32.mxu0 %v20244_v14 }
 0x2d3   : > { %v6447_v6 = vsub.f32 %v16168_v7, %v20258_v20  ;;  %v20262_v20 = vand.u32 4294901760, %v16358_v61  ;;  %v20266_v51 = vand.u32 4294901760, %v16057_v63  ;;  %v20267_v59 = vand.u32 4294901760, %v16059_v27  ;;  %v16442_v7 = vld [vmem:[#allocation3 + $0x3f0] sm:$0xff]  ;;  %v9038_v27 = vpop.f32.mrb[144].mxu0 }
 0x2d4   : > { %20261 = vst [vmem:[#allocation70_spill] sm:$0xff] %v16426_v37  ;;  %5447 = vmatmul.mubr.f32.gmra.mrb[252].mxu1 %v20265_v5  ;;  %v6315_v47 = vand.u32 4294901760, %v6314_v36  ;;  %v6322_v62 = vand.u32 4294901760, %v6321_v46  ;;  %v6441_v5 = vand.u32 4294901760, %v6440_v16  ;;  %v16455_v36 = vadd.f32 %v16318_v24, %v3050_v2  ;;  %v9124_v16 = vpop.f32.mrb[148].mxu1 }
 0x2d5   : > { %v16431_v35 = vsub.f32 %v16358_v61, %v20262_v20  ;;  %v16440_v21 = vpack.c.bf16 %v20267_v59, %v20266_v51  ;;  %v16446_v20 = vadd.f32 %v9122_v8, %v9121_v0  ;;  %v20270_v61 = vand.u32 4294901760, %v20269_v30  ;;  %5167 = vmatmul.mubr.f32.gmra.mrb[250].mxu0 %v15762_v42  ;;  %v20284_v59 = vld [vmem:[#allocation27_spill] sm:$0xff] }
 0x2d6   : > { %v6448_v63 = vand.u32 4294901760, %v6447_v6  ;;  %v9037_v51 = vadd.f32 %v9036_v38, %v9035_v53  ;;  %20271 = vst [vmem:[#allocation56_spill] sm:$0xff] %v16455_v36  ;;  %v20272_v46 = vand.u32 4294901760, %v16391_v25  ;;  %v20274_v12 = vand.u32 4294901760, %v16393_v55  ;;  %v16467_v6 = vld [vmem:[#allocation3 + $0x370] sm:$0xff]  ;;  %v16479_v38 = vld [vmem:[#allocation3 + $0x378] sm:$0xff]  ;;  %5173 = vmatprep.mubr.f32.mxu0 %v15771_v40 }
 0x2d7   : > { %20263 = vst [vmem:[#allocation49_spill] sm:$0xff] %v16431_v35  ;;  %20268 = vst [vmem:[#allocation29_spill] sm:$0xff] %v16440_v21  ;;  %5454 = vmatprep.mubr.f32.mxu1 %v20270_v61  ;;  %v16469_v8 = vpack.c.bf16 %v6434_v28, %v6427_v41  ;;  %v20276_v14 = vand.u32 4294901760, %v16088_v19  ;;  %v20277_v24 = vand.u32 4294901760, %v16090_v4  ;;  %v19012_v53 = vand.u32 4294901760, %v16442_v7  ;;  %v9125_v36 = vpop.f32.mrb[149].mxu1 }
 0x2d8   : > { %v16460_v0 = vsub.f32 %v16391_v25, %v20272_v46  ;;  %v16465_v61 = vsub.f32 %v16393_v55, %v20274_v12  ;;  %20279 = vst [vmem:[#allocation15_spill] sm:$0xff] %v16479_v38  ;;  %v20280_v46 = vld [vmem:[#allocation59_spill] sm:$0xff]  ;;  %v20281_v55 = vld [vmem:[#allocation81_spill] sm:$0xff]  ;;  %v16484_v28 = vpack.c.bf16 %v6322_v62, %v6315_v47  ;;  %v16489_v41 = vadd.f32 %v9125_v36, %v9124_v16  ;;  %v9127_v4 = vpop.f32.mrb[150].mxu1  ;;  %v20291_v62 = vld [vmem:[#allocation26_spill] sm:$0xff] }
 0x2d9   : > { %v16475_v2 = vpack.c.bf16 %v20277_v24, %v20276_v14  ;;  %v3059_v12 = vadd.f32 %v9037_v51, %v20280_v46  ;;  %v20282_v25 = vand.u32 4294901760, %v20281_v55  ;;  %v9039_v14 = vpop.f32.mrb[145].mxu0  ;;  %v20283_v24 = vmov 1.0   ;;  %v20285_v51 = vld [vmem:[#allocation40_spill] sm:$0xff]  ;;  %v9128_v36 = vpop.f32.mrb[151].mxu1  ;;  %5176 = vmatmul.mubr.f32.gmra.mrb[252].mxu0 %v20264_v10 }
 0x2da   : > { %20273 = vst [vmem:[#allocation77_spill] sm:$0xff] %v16460_v0  ;;  %20275 = vst [vmem:[#allocation39_spill] sm:$0xff] %v16465_v61  ;;  %v16496_v46 = vpack.c.bf16 %v6448_v63, %v6441_v5  ;;  %v9040_v47 = vadd.f32 %v9039_v14, %v9038_v27  ;;  %v16511_v63 = vsub.f32 %v16442_v7, %v19012_v53  ;;  %v20288_v27 = vand.u32 4294901760, %v16444_v33  ;;  %v20290_v14 = vld [vmem:[#allocation42_spill] sm:$0xff]  ;;  %v9130_v53 = vpop.f32.mrb[152].mxu1 }
 0x2db   : > { %20278 = vst [vmem:[#allocation30_spill] sm:$0xff] %v16475_v2  ;;  %5458 = vmatmul.mubr.f32.gmra.mrb[254].mxu1 %v20282_v25  ;;  %v16503_v16 = vadd.f32 %v16360_v13, %v3059_v12  ;;  %v9041_v12 = vpop.f32.mrb[146].mxu0  ;;  %v20292_v5 = vand.u32 4294901760, %v16199_v17  ;;  %5182 = vmatprep.mubr.f32.mxu0 %v20269_v30 }
 0x2dc   : > { %8208 = vmatprep.mubr.msk.f32.mxu1 %vm3987_vm4, %v20283_v24  ;;  %20287 = vst [vmem:[#allocation59_spill] sm:$0xff] %v16511_v63  ;;  %v16516_v40 = vsub.f32 %v16444_v33, %v20288_v27  ;;  %v3068_v13 = vadd.f32 %v9040_v47, %v20290_v14  ;;  %v16530_v27 = vadd.f32 %v9128_v36, %v9127_v4  ;;  %v9042_v25 = vpop.f32.mrb[147].mxu0  ;;  %v20293_v47 = vld [vmem:[#allocation23_spill] sm:$0xff]  ;;  %v20297_v36 = vand.u32 4294901760, %v16479_v38 }
 0x2dd   : > { %20286 = vst [vmem:[#allocation71_spill] sm:$0xff] %v16503_v16  ;;  %v16526_v19 = vsub.f32 %v16199_v17, %v20292_v5  ;;  %v20294_v16 = vand.u32 4294901760, %v16467_v6  ;;  %v9043_v4 = vadd.f32 %v9042_v25, %v9041_v12  ;;  %v20300_v25 = vand.u32 4294901760, %v16252_v29  ;;  %5185 = vmatmul.mubr.f32.gmra.mrb[254].mxu0 %v20281_v55 }
 0x2de   : > { %20289 = vst [vmem:[#allocation81_spill] sm:$0xff] %v16516_v40  ;;  %v16548_v10 = vadd.f32 %v16406_v26, %v3068_v13  ;;  %v16553_v14 = vsub.f32 %v16479_v38, %v20297_v36  ;;  %v20302_v13 = vand.u32 4294901760, %v16292_v58  ;;  %v20303_v36 = vld [vmem:[#allocation14_spill] sm:$0xff]  ;;  %8176 = vmatprep.mubr.msk.f32.mxu0 %vm3987_vm4, %v20283_v24 }
 0x2df   : > { %8209 = vmatmul.mubr.msk.f32.vlgmr.msra.gmra.mrb[0].mxu1 %vm3986_vm8, %v20283_v24  ;;  %v16541_v5 = vsub.f32 %v16467_v6, %v20294_v16  ;;  %v20299_v16 = vand.u32 4294901760, %v16210_v45  ;;  %v6454_v30 = vsub.f32 %v16252_v29, %v20300_v25  ;;  %v3077_v17 = vadd.f32 %v9043_v4, %v20303_v36  ;;  %v20306_v36 = vld [vmem:[#allocation10_spill] sm:$0xff] }
 0x2e0   : > { %8210 = vmatprep.mubr.msk.f32.mxu1 %vm3991_vm14, %v20283_v24  ;;  %10873 = vmatpush3.bf16.msra.mxu1 %v16299_v49  ;;  %20296 = vst [vmem:[#allocation42_spill] sm:$0xff] %v16548_v10  ;;  %20298 = vst [vmem:[#allocation26_spill] sm:$0xff] %v16553_v14  ;;  %v20301_v49 = vand.u32 4294901760, %v16257_v18  ;;  %v16568_v12 = vsub.f32 %v16292_v58, %v20302_v13  ;;  %v9131_v10 = vpop.f32.mrb[153].mxu1  ;;  %v6329_v55 = vand.u32 4294901760, %v16526_v19 }
 0x2e1   : > { %20295 = vst [vmem:[#allocation27_spill] sm:$0xff] %v16541_v5  ;;  %10875 = vmatprep.subr.bf16.mxu1 %v16323_v56  ;;  %v6335_v42 = vsub.f32 %v16210_v45, %v20299_v16  ;;  %v9044_v56 = vpop.f32.mrb[148].mxu0  ;;  %v20304_v16 = vand.u32 4294901760, %v16297_v60  ;;  %v16583_v58 = vadd.f32 %v9131_v10, %v9130_v53  ;;  %v19034_v53 = vand.u32 4294901760, %v16426_v37  ;;  %8177 = vmatmul.mubr.msk.f32.vlgmr.msra.gmra.mrb[0].mxu0 %vm3986_vm8, %v20283_v24 }
 0x2e2   : > { %v6461_v26 = vsub.f32 %v16257_v18, %v20301_v49  ;;  %v20305_v49 = vand.u32 4294901760, %v16342_v44  ;;  %v9045_v4 = vpop.f32.mrb[149].mxu0  ;;  %v20307_v18 = vand.u32 4294901760, %v16347_v43  ;;  %v16603_v10 = vadd.f32 %v16446_v20, %v3077_v17  ;;  %10841 = vmatpush3.bf16.msra.mxu0 %v16183_v9  ;;  %8178 = vmatprep.mubr.msk.f32.mxu0 %vm3991_vm14, %v20283_v24 }
 0x2e3   : > { %8211 = vmatmul.mubr.msk.f32.gmra.mrb[2].mxu1 %vm3990_vm9, %v20283_v24  ;;  %v6349_v25 = vsub.f32 %v16297_v60, %v20304_v16  ;;  %v6336_v13 = vand.u32 4294901760, %v6335_v42  ;;  %v20308_v60 = vld [vmem:[#allocation43_spill] sm:$0xff]  ;;  %v9047_v45 = vpop.f32.mrb[150].mxu0  ;;  %v20310_v42 = vand.u32 4294901760, %v16376_v48  ;;  %10843 = vmatprep.subr.bf16.mxu0 %v16266_v32 }
 0x2e4   : > { %v6468_v29 = vsub.f32 %v16342_v44, %v20305_v49  ;;  %8212 = vmatprep.mubr.msk.f32.mxu1 %vm3995_vm13, %v20283_v24  ;;  %v6475_v16 = vsub.f32 %v16347_v43, %v20307_v18  ;;  %v9046_v44 = vadd.f32 %v9045_v4, %v9044_v56  ;;  %10877 = vmatpush3.bf16.msra.mxu1 %v16352_v57  ;;  %v9133_v18 = vpop.f32.mrb[154].mxu1  ;;  %v6455_v49 = vand.u32 4294901760, %v6454_v30 }
 0x2e5   : > { %10879 = vmatprep.subr.bf16.mxu1 %v16469_v8  ;;  %v6462_v56 = vand.u32 4294901760, %v6461_v26  ;;  %v6343_v4 = vand.u32 4294901760, %v16568_v12  ;;  %v9134_v38 = vpop.f32.mrb[155].mxu1  ;;  %v6350_v57 = vand.u32 4294901760, %v6349_v25  ;;  %v9048_v8 = vpop.f32.mrb[151].mxu0  ;;  %v20311_v30 = vand.u32 4294901760, %v16381_v11  ;;  %8179 = vmatmul.mubr.msk.f32.gmra.mrb[2].mxu0 %vm3990_vm9, %v20283_v24 }
 0x2e6   : > { %v3086_v43 = vadd.f32 %v9046_v44, %v20308_v60  ;;  %v6469_v17 = vand.u32 4294901760, %v6468_v29  ;;  %v16613_v19 = vadd.f32 %v9134_v38, %v9133_v18  ;;  %v20309_v60 = vld [vmem:[#allocation80_spill] sm:$0xff]  ;;  %v6476_v44 = vand.u32 4294901760, %v6475_v16  ;;  %v9136_v16 = vpop.f32.mrb[156].mxu1  ;;  %8180 = vmatprep.mubr.msk.f32.mxu0 %vm3995_vm13, %v20283_v24  ;;  %10845 = vmatpush3.bf16.msra.mxu0 %v16305_v22 }
 0x2e7   : > { %8213 = vmatmul.mubr.msk.f32.gmra.mrb[4].mxu1 %vm3994_vm1, %v20283_v24  ;;  %v6356_v29 = vsub.f32 %v16376_v48, %v20310_v42  ;;  %v6363_v38 = vsub.f32 %v16381_v11, %v20311_v30  ;;  %v9049_v26 = vadd.f32 %v9048_v8, %v9047_v45  ;;  %v16637_v12 = vsub.f32 %v16426_v37, %v19034_v53  ;;  %v20312_v30 = vld [vmem:[#allocation13_spill] sm:$0xff]  ;;  %v9050_v48 = vpop.f32.mrb[152].mxu0  ;;  %v9137_v11 = vpop.f32.mrb[157].mxu1 }
 0x2e8   : > { %8214 = vmatprep.mubr.msk.f32.mxu1 %vm3999_vm3, %v20283_v24  ;;  %v16640_v25 = vadd.f32 %v16489_v41, %v3086_v43  ;;  %10881 = vmatpush3.bf16.msra.mxu1 %v16484_v28  ;;  %v10884_v45 = vpack.c.bf16 %v6336_v13, %v6329_v55  ;;  %v10886_v18 = vpack.c.bf16 %v6462_v56, %v6455_v49  ;;  %v19037_v8 = vand.u32 4294901760, %v16460_v0  ;;  %v9051_v55 = vpop.f32.mrb[153].mxu0  ;;  %v20314_v56 = vld [vmem:[#allocation84_spill] sm:$0xff]  ;;  %v9139_v13 = vpop.f32.mrb[158].mxu1 }
 0x2e9   : > { %v19035_v42 = vand.u32 4294901760, %v16465_v61  ;;  %v3095_v20 = vadd.f32 %v9049_v26, %v20312_v30  ;;  %10883 = vmatprep.subr.bf16.mxu1 %v16496_v46  ;;  %v20313_v43 = vand.u32 4294901760, %v16431_v35  ;;  %v19036_v41 = vand.u32 4294901760, %v16511_v63  ;;  %10847 = vmatprep.subr.bf16.mxu0 %v16329_v31 }
 0x2ea   : > { %v16657_v49 = vadd.f32 %v9137_v11, %v9136_v16  ;;  %vm20315_vm8 = vcmp.eq.s32.totalorder %v20284_v59, %v20314_v56  ;;  %v10888_v46 = vpack.c.bf16 %v6350_v57, %v6343_v4  ;;  %v10890_v26 = vpack.c.bf16 %v6476_v44, %v6469_v17  ;;  %v20316_v44 = vld [vmem:[#allocation79_spill] sm:$0xff]  ;;  %8181 = vmatmul.mubr.msk.f32.gmra.mrb[4].mxu0 %vm3994_vm1, %v20283_v24 }
 0x2eb   : > { %8215 = vmatmul.mubr.msk.f32.gmra.mrb[6].mxu1 %vm3998_vm0, %v20283_v24  ;;  %v6489_v28 = vsub.f32 %v16431_v35, %v20313_v43  ;;  %v6357_v30 = vand.u32 4294901760, %v6356_v29  ;;  %v9052_v43 = vadd.f32 %v9051_v55, %v9050_v48  ;;  %v6364_v11 = vand.u32 4294901760, %v6363_v38  ;;  %8182 = vmatprep.mubr.msk.f32.mxu0 %vm3999_vm3, %v20283_v24  ;;  %vm20332_vm1 = vmmov %vm20315_vm8 }
 0x2ec   : > { %8216 = vmatprep.mubr.msk.f32.mxu1 %vm20315_vm8, %v20283_v24  ;;  %v6483_v16 = vand.u32 4294901760, %v16637_v12  ;;  %v16674_v53 = vadd.f32 %v16530_v27, %v3095_v20  ;;  %10885 = vmatpush3.bf16.msra.mxu1 %v10884_v45  ;;  %v6370_v48 = vsub.f32 %v16460_v0, %v19037_v8  ;;  %v6377_v4 = vsub.f32 %v16465_v61, %v19035_v42  ;;  %v9053_v27 = vpop.f32.mrb[154].mxu0  ;;  %v9140_v20 = vpop.f32.mrb[159].mxu1 }
 0x2ed   : > { %v19038_v57 = vand.u32 4294901760, %v16541_v5  ;;  %v3104_v29 = vadd.f32 %v9052_v43, %v20316_v44  ;;  %vm20317_vm4 = vcmp.eq.s32.totalorder %v20291_v62, %v20314_v56  ;;  %10887 = vmatprep.subr.bf16.mxu1 %v10886_v18  ;;  %v6490_v38 = vand.u32 4294901760, %v6489_v28  ;;  %v9054_v43 = vpop.f32.mrb[155].mxu0  ;;  %v20319_v18 = vld [vmem:[#allocation60_spill] sm:$0xff]  ;;  %10849 = vmatpush3.bf16.msra.mxu0 %v16440_v21 }
 0x2ee   : > { %v6496_v12 = vsub.f32 %v16511_v63, %v19036_v41  ;;  %v20318_v45 = vand.u32 4294901760, %v16516_v40  ;;  %v16696_v42 = vadd.f32 %v9140_v20, %v9139_v13  ;;  %vm20320_vm14 = vcmp.eq.s32.totalorder %v20284_v59, %v20319_v18  ;;  %10851 = vmatprep.subr.bf16.mxu0 %v16475_v2  ;;  %8183 = vmatmul.mubr.msk.f32.gmra.mrb[6].mxu0 %vm3998_vm0, %v20283_v24  ;;  %vm20341_vm0 = vmmov %vm20317_vm4  ;;  %v20409_v63 = vld [vmem:[#allocation56_spill] sm:$0xff] }
 0x2ef   : > { %8217 = vmatmul.mubr.msk.f32.gmra.mrb[8].mxu1 %vm20317_vm4, %v20283_v24  ;;  %v20321_v28 = vand.u32 4294901760, %v16109_v54  ;;  %v20322_v44 = vand.u32 4294901760, %v16120_v23  ;;  %v20324_v13 = vand.u32 4294901760, %v16186_v1  ;;  %v20325_v20 = vand.u32 4294901760, %v16188_v15  ;;  %v9254_v23 = vpop.f32.mrb[160].mxu1  ;;  %8184 = vmatprep.mubr.msk.f32.mxu0 %vm20332_vm1, %v20283_v24  ;;  %vm20344_vm4 = vmmov %vm20320_vm14 }
 0x2f0   : > { %v6503_v55 = vsub.f32 %v16516_v40, %v20318_v45  ;;  %8218 = vmatprep.mubr.msk.f32.mxu1 %vm20320_vm14, %v20283_v24  ;;  %v9055_v8 = vadd.f32 %v9054_v43, %v9053_v27  ;;  %v10892_v17 = vpack.c.bf16 %v6364_v11, %v6357_v30  ;;  %v16724_v54 = vadd.f32 %v16583_v58, %v3104_v29  ;;  %v9056_v30 = vpop.f32.mrb[156].mxu0  ;;  %v9255_v11 = vpop.f32.mrb[161].mxu1 }
 0x2f1   : > { %v16710_v41 = vpack.c.bf16 %v20322_v44, %v20321_v28  ;;  %v16716_v45 = vpack.c.bf16 %v20325_v20, %v20324_v13  ;;  %10889 = vmatpush3.bf16.msra.mxu1 %v10888_v46  ;;  %v6371_v1 = vand.u32 4294901760, %v6370_v48  ;;  %v6378_v15 = vand.u32 4294901760, %v6377_v4  ;;  %v20328_v44 = vld [vmem:[#allocation57_spill] sm:$0xff]  ;;  %v9057_v29 = vpop.f32.mrb[157].mxu0 }
 0x2f2   : > { %v6384_v27 = vsub.f32 %v16541_v5, %v19038_v57  ;;  %v20327_v43 = vand.u32 4294901760, %v16553_v14  ;;  %v3113_v13 = vadd.f32 %v9055_v8, %v20328_v44  ;;  %vm20329_vm9 = vcmp.eq.s32.totalorder %v20291_v62, %v20319_v18  ;;  %10891 = vmatprep.subr.bf16.mxu1 %v10890_v26  ;;  %v20330_v8 = vld [vmem:[#allocation21_spill] sm:$0xff]  ;;  %v20339_v57 = vld [vmem:[#allocation48_spill] sm:$0xff]  ;;  %8185 = vmatmul.mubr.msk.f32.gmra.mrb[8].mxu0 %vm20341_vm0, %v20283_v24 }
 0x2f3   : > { %20323 = vst [vmem:[#allocation14_spill] sm:$0xff] %v16710_v41  ;;  %20326 = vst [vmem:[#allocation43_spill] sm:$0xff] %v16716_v45  ;;  %8219 = vmatmul.mubr.msk.f32.gmra.mrb[10].mxu1 %vm20329_vm9, %v20283_v24  ;;  %v10894_v58 = vpack.c.bf16 %v6490_v38, %v6483_v16  ;;  %v6497_v46 = vand.u32 4294901760, %v6496_v12  ;;  %v6504_v48 = vand.u32 4294901760, %v6503_v55  ;;  %v16738_v4 = vadd.f32 %v9255_v11, %v9254_v23  ;;  %v20334_v16 = vld [vmem:[#allocation67_spill] sm:$0xff]  ;;  %v9257_v23 = vpop.f32.mrb[162].mxu1 }
 0x2f4   : > { %v6391_v28 = vsub.f32 %v16553_v14, %v20327_v43  ;;  %vm20331_vm13 = vcmp.eq.s32.totalorder %v20284_v59, %v20330_v8  ;;  %v9058_v20 = vadd.f32 %v9057_v29, %v9056_v30  ;;  %10853 = vmatpush3.bf16.msra.mxu0 %v16710_v41  ;;  %v20333_v26 = vand.u32 4294901760, %v16220_v50  ;;  %8186 = vmatprep.mubr.msk.f32.mxu0 %vm20344_vm4, %v20283_v24  ;;  %v20403_v5 = vld [vmem:[#allocation24_spill] sm:$0xff] }
 0x2f5   : > { %8220 = vmatprep.mubr.msk.f32.mxu1 %vm20331_vm13, %v20283_v24  ;;  %v20335_v38 = vand.u32 4294901760, %v20334_v16  ;;  %v16760_v55 = vadd.f32 %v16613_v19, %v3113_v13  ;;  %10855 = vmatprep.subr.bf16.mxu0 %v16716_v45  ;;  %v20336_v43 = vand.u32 4294901760, %v16274_v39  ;;  %v20337_v44 = vand.u32 4294901760, %v16276_v34  ;;  %v20342_v34 = vld [vmem:[#allocation72_spill] sm:$0xff] }
 0x2f6   : > { %10893 = vmatpush3.bf16.msra.mxu1 %v10892_v17  ;;  %v10896_v11 = vpack.c.bf16 %v6378_v15, %v6371_v1  ;;  %v6385_v29 = vand.u32 4294901760, %v6384_v27  ;;  %v6392_v50 = vand.u32 4294901760, %v6391_v28  ;;  %v3122_v16 = vadd.f32 %v9058_v20, %v20339_v57  ;;  %v20346_v1 = vld [vmem:[#allocation83_spill] sm:$0xff]  ;;  %8187 = vmatmul.mubr.msk.f32.gmra.mrb[10].mxu0 %vm20329_vm9, %v20283_v24 }
 0x2f7   : > { %v16757_v12 = vpack.c.bf16 %v20335_v38, %v20333_v26  ;;  %v16767_v30 = vpack.c.bf16 %v20337_v44, %v20336_v43  ;;  %v9059_v26 = vpop.f32.mrb[158].mxu0  ;;  %v9258_v38 = vpop.f32.mrb[163].mxu1  ;;  %vm20340_vm3 = vcmp.eq.s32.totalorder %v20291_v62, %v20330_v8  ;;  %10895 = vmatprep.subr.bf16.mxu1 %v10894_v58  ;;  %v10898_v19 = vpack.c.bf16 %v6504_v48, %v6497_v46  ;;  %v20350_v48 = vld [vmem:[#allocation47_spill] sm:$0xff]  ;;  %v20353_v44 = vld [vmem:[#allocation46_spill] sm:$0xff] }
 0x2f8   : > { %8221 = vmatmul.mubr.msk.f32.gmra.mrb[12].mxu1 %vm20340_vm3, %v20283_v24  ;;  %v9259_v39 = vadd.f32 %v9258_v38, %v9257_v23  ;;  %v9060_v13 = vpop.f32.mrb[159].mxu0  ;;  %vm20343_vm8 = vcmp.eq.s32.totalorder %v20284_v59, %v20342_v34  ;;  %v20345_v17 = vand.u32 4294901760, %v16309_v52  ;;  %v20347_v15 = vand.u32 4294901760, %v20346_v1  ;;  %v9260_v58 = vpop.f32.mrb[164].mxu1 }
 0x2f9   : > { %20338 = vst [vmem:[#allocation13_spill] sm:$0xff] %v16767_v30  ;;  %8222 = vmatprep.mubr.msk.f32.mxu1 %vm20343_vm8, %v20283_v24  ;;  %v9061_v57 = vadd.f32 %v9060_v13, %v9059_v26  ;;  %10857 = vmatpush3.bf16.msra.mxu0 %v16757_v12  ;;  %v16794_v28 = vadd.f32 %v16657_v49, %v3122_v16  ;;  %v20349_v46 = vand.u32 4294901760, %v16356_v3  ;;  %v20351_v20 = vand.u32 4294901760, %v20350_v48  ;;  %v9174_v26 = vpop.f32.mrb[160].mxu0  ;;  %v9261_v38 = vpop.f32.mrb[165].mxu1  ;;  %v20355_v3 = vld [vmem:[#allocation54_spill] sm:$0xff] }
 0x2fa   : > { %v16791_v27 = vpack.c.bf16 %v20347_v15, %v20345_v17  ;;  %10859 = vmatprep.subr.bf16.mxu0 %v16767_v30  ;;  %10897 = vmatpush3.bf16.msra.mxu1 %v10896_v11  ;;  %v10900_v43 = vpack.c.bf16 %v6392_v50, %v6385_v29  ;;  %vm20354_vm14 = vcmp.eq.s32.totalorder %v20291_v62, %v20342_v34  ;;  %v9175_v16 = vpop.f32.mrb[161].mxu0  ;;  %v20358_v29 = vld [vmem:[#allocation61_spill] sm:$0xff]  ;;  %v9263_v1 = vpop.f32.mrb[166].mxu1  ;;  %v20363_v15 = vand.u32 4294901760, %v16442_v7  ;;  %v20366_v48 = vld [vmem:[#allocation55_spill] sm:$0xff]  ;;  %v20368_v7 = vld [vmem:[#allocation32_spill] sm:$0xff] }
 0x2fb   : > { %v16801_v23 = vpack.c.bf16 %v20351_v20, %v20349_v46  ;;  %v3131_v52 = vadd.f32 %v9061_v57, %v20353_v44  ;;  %10899 = vmatprep.subr.bf16.mxu1 %v10898_v19  ;;  %v9262_v49 = vadd.f32 %v9261_v38, %v9260_v58  ;;  %vm20356_vm13 = vcmp.eq.s32.totalorder %v20284_v59, %v20355_v3  ;;  %v20360_v19 = vld [vmem:[#allocation17_spill] sm:$0xff]  ;;  %v9177_v44 = vpop.f32.mrb[162].mxu0 }
 0x2fc   : > { %20348 = vst [vmem:[#allocation79_spill] sm:$0xff] %v16791_v27  ;;  %8223 = vmatmul.mubr.msk.f32.gmra.mrb[14].mxu1 %vm20354_vm14, %v20283_v24  ;;  %v9176_v11 = vadd.f32 %v9175_v16, %v9174_v26  ;;  %vm20357_vm1 = vcmp.eq.s32.totalorder %v20284_v59, %v20330_v8  ;;  %v20359_v50 = vand.u32 4294901760, %v20358_v29  ;;  %v20361_v13 = vand.u32 4294901760, %v20360_v19  ;;  %v9264_v26 = vpop.f32.mrb[167].mxu1  ;;  %v9178_v38 = vpop.f32.mrb[163].mxu0 }
 0x2fd   : > { %20352 = vst [vmem:[#allocation57_spill] sm:$0xff] %v16801_v23  ;;  %8224 = vmatprep.mubr.msk.f32.mxu1 %vm20356_vm13, %v20283_v24  ;;  %8188 = vmatprep.mubr.msk.f32.mxu0 %vm20357_vm1, %v20283_v24  ;;  %v16828_v17 = vadd.f32 %v16696_v42, %v3131_v52  ;;  %v20364_v58 = vand.u32 4294901760, %v16444_v33  ;;  %v20367_v42 = vld [vmem:[#allocation65_spill] sm:$0xff]  ;;  %v9265_v52 = vadd.f32 %v9264_v26, %v9263_v1  ;;  %v20371_v16 = vand.u32 4294901760, %v16467_v6  ;;  %v9266_v19 = vpop.f32.mrb[168].mxu1  ;;  %v9180_v1 = vpop.f32.mrb[164].mxu0 }
 0x2fe   : > { %10861 = vmatpush3.bf16.msra.mxu0 %v16791_v27  ;;  %v16825_v57 = vpack.c.bf16 %v20361_v13, %v20359_v50  ;;  %10901 = vmatpush3.bf16.msra.mxu1 %v10900_v43  ;;  %v3572_v20 = vadd.f32 %v9176_v11, %v20366_v48  ;;  %vm20369_vm0 = vcmp.eq.s32.totalorder %v20284_v59, %v20368_v7  ;;  %v20372_v11 = vld [vmem:[#allocation15_spill] sm:$0xff]  ;;  %v20375_v13 = vld [vmem:[#allocation20_spill] sm:$0xff]  ;;  %v9181_v48 = vpop.f32.mrb[165].mxu0  ;;  %v20377_v6 = vld [vmem:[#allocation69_spill] sm:$0xff] }
 0x2ff   : > { %10863 = vmatprep.subr.bf16.mxu0 %v16801_v23  ;;  %v16835_v46 = vpack.c.bf16 %v20364_v58, %v20363_v15  ;;  %10935 = vmatprep.subr.bf16.mxu1 %v20367_v42  ;;  %v9179_v43 = vadd.f32 %v9178_v38, %v9177_v44  ;;  %v20373_v29 = vand.u32 4294901760, %v20372_v11  ;;  %v9267_v15 = vpop.f32.mrb[169].mxu1  ;;  %vm20376_vm4 = vcmp.eq.s32.totalorder %v20291_v62, %v20368_v7  ;;  %v20380_v38 = vld [vmem:[#allocation52_spill] sm:$0xff]  ;;  %v20383_v11 = vld [vmem:[#allocation73_spill] sm:$0xff] }
 0x300   : > { %20362 = vst [vmem:[#allocation67_spill] sm:$0xff] %v16825_v57  ;;  %8225 = vmatmul.mubr.msk.f32.gmra.mrb[16].mxu1 %vm4018_vm2, %v20283_v24  ;;  %8189 = vmatmul.mubr.msk.f32.gmra.mrb[12].mxu0 %vm20340_vm3, %v20283_v24  ;;  %v16852_v33 = vadd.f32 %v16738_v4, %v3572_v20  ;;  %v9268_v58 = vadd.f32 %v9267_v15, %v9266_v19  ;;  %v9269_v26 = vpop.f32.mrb[170].mxu1  ;;  %v9183_v19 = vpop.f32.mrb[166].mxu0  ;;  %vm20387_vm3 = vmmov %vm20369_vm0 }
 0x301   : > { %20365 = vst [vmem:[#allocation48_spill] sm:$0xff] %v16835_v46  ;;  %8226 = vmatprep.mubr.msk.f32.mxu1 %vm20369_vm0, %v20283_v24  ;;  %8190 = vmatprep.mubr.msk.f32.mxu0 %vm20343_vm8, %v20283_v24  ;;  %v16863_v50 = vpack.c.bf16 %v20373_v29, %v20371_v16  ;;  %v3579_v4 = vadd.f32 %v9179_v43, %v20375_v13  ;;  %v20381_v43 = vld [vmem:[#allocation19_spill] sm:$0xff]  ;;  %v9270_v13 = vpop.f32.mrb[171].mxu1  ;;  %vm20390_vm0 = vmmov %vm20376_vm4 }
 0x302   : > { %20370 = vst [vmem:[#allocation83_spill] sm:$0xff] %v16852_v33  ;;  %10865 = vmatpush3.bf16.msra.mxu0 %v16825_v57  ;;  %vm20378_vm9 = vcmp.eq.s32.totalorder %v20284_v59, %v20377_v6  ;;  %v9182_v44 = vadd.f32 %v9181_v48, %v9180_v1  ;;  %v20382_v16 = vpack.c.bf16 %v20380_v38, %v20381_v43  ;;  %v20385_v1 = vld [vmem:[#allocation9_spill] sm:$0xff] }
 0x303   : > { %20374 = vst [vmem:[#allocation47_spill] sm:$0xff] %v16863_v50  ;;  %10867 = vmatprep.subr.bf16.mxu0 %v16835_v46  ;;  %v16879_v20 = vadd.f32 %v9259_v39, %v3579_v4  ;;  %vm20384_vm1 = vcmp.eq.s32.totalorder %v20291_v62, %v20377_v6  ;;  %v9271_v39 = vadd.f32 %v9270_v13, %v9269_v26  ;;  %v9184_v4 = vpop.f32.mrb[167].mxu0  ;;  %v20388_v26 = vld [vmem:[#allocation16_spill] sm:$0xff] }
 0x304   : > { %8227 = vmatmul.mubr.msk.f32.gmra.mrb[18].mxu1 %vm20376_vm4, %v20283_v24  ;;  %8191 = vmatmul.mubr.msk.f32.gmra.mrb[14].mxu0 %vm20354_vm14, %v20283_v24  ;;  %v3586_v29 = vadd.f32 %v9182_v44, %v20383_v11  ;;  %v9185_v48 = vadd.f32 %v9184_v4, %v9183_v19  ;;  %v9272_v44 = vpop.f32.mrb[172].mxu1  ;;  %v9186_v11 = vpop.f32.mrb[168].mxu0  ;;  %vm20394_vm4 = vmmov %vm20378_vm9 }
 0x305   : > { %8228 = vmatprep.mubr.msk.f32.mxu1 %vm20378_vm9, %v20283_v24  ;;  %20379 = vst [vmem:[#allocation46_spill] sm:$0xff] %v16879_v20  ;;  %8192 = vmatprep.mubr.msk.f32.mxu0 %vm20356_vm13, %v20283_v24  ;;  %v9273_v13 = vpop.f32.mrb[173].mxu1  ;;  %v9187_v33 = vpop.f32.mrb[169].mxu0  ;;  %vm20398_vm13 = vmmov %vm20384_vm1 }
 0x306   : > { %10869 = vmatpush3.bf16.msra.mxu0 %v16863_v50  ;;  %v16902_v15 = vadd.f32 %v9262_v49, %v3586_v29  ;;  %v9274_v20 = vadd.f32 %v9273_v13, %v9272_v44  ;;  %v20391_v49 = vld [vmem:[#allocation63_spill] sm:$0xff]  ;;  %v9188_v19 = vadd.f32 %v9187_v33, %v9186_v11  ;;  %v9275_v4 = vpop.f32.mrb[174].mxu1 }
 0x307   : > { %10903 = vmatprep.subr.bf16.mxu0 %v20382_v16  ;;  %v3593_v16 = vadd.f32 %v9185_v48, %v20388_v26  ;;  %vm20392_vm8 = vcmp.eq.s32.totalorder %v20284_v59, %v20391_v49  ;;  %v20395_v48 = vld [vmem:[#allocation18_spill] sm:$0xff]  ;;  %v9189_v26 = vpop.f32.mrb[170].mxu0  ;;  %v9276_v13 = vpop.f32.mrb[175].mxu1  ;;  %vm20396_vm14 = vcmp.eq.s32.totalorder %v20291_v62, %v20391_v49  ;;  %v20400_v11 = vld [vmem:[#allocation11_spill] sm:$0xff] }
 0x308   : > { %8229 = vmatmul.mubr.msk.f32.gmra.mrb[20].mxu1 %vm20384_vm1, %v20283_v24  ;;  %8193 = vmatmul.mubr.msk.f32.gmra.mrb[16].mxu0 %vm4018_vm2, %v20283_v24  ;;  %20386 = vst [vmem:[#allocation61_spill] sm:$0xff] %v16902_v15  ;;  %vm20389_vm2 = vcmp.eq.s32.totalorder %v20291_v62, %v20385_v1  ;;  %v3600_v44 = vadd.f32 %v9188_v19, %v20395_v48  ;;  %v20397_v15 = vld [vmem:[#allocation34_spill] sm:$0xff]  ;;  %v9190_v33 = vpop.f32.mrb[171].mxu0 }
 0x309   : > { %8230 = vmatprep.mubr.msk.f32.mxu1 %vm4031_vm10, %v20283_v24  ;;  %8194 = vmatprep.mubr.msk.f32.mxu0 %vm20387_vm3, %v20283_v24  ;;  %v16921_v29 = vadd.f32 %v9265_v52, %v3593_v16  ;;  %vm3988_vm9 = vcmp.eq.s32.totalorder %v20397_v15, %v20285_v51  ;;  %v9277_v52 = vadd.f32 %v9276_v13, %v9275_v4  ;;  %v9278_v4 = vpop.f32.mrb[176].mxu1  ;;  %v20402_v13 = vmov 0.0   ;;  %v9192_v38 = vpop.f32.mrb[172].mxu0  ;;  %vm20407_vm3 = vmmov %vm20392_vm8 }
 0x30a   : > { %vm3989_vm1 = vcmp.eq.s32.totalorder %v20400_v11, %v20285_v51  ;;  %v16944_v19 = vadd.f32 %v9268_v58, %v3600_v44  ;;  %v9191_v48 = vadd.f32 %v9190_v33, %v9189_v26  ;;  %v9279_v43 = vpop.f32.mrb[177].mxu1  ;;  %v9193_v26 = vpop.f32.mrb[173].mxu0  ;;  %v20429_v51 = vld [vmem:[#allocation62_spill] sm:$0xff] }
 0x30b   : > { %20393 = vst [vmem:[#allocation17_spill] sm:$0xff] %v16921_v29  ;;  %v8082_v29 = vsel %vm3988_vm9, 1.0, %v20402_v13  ;;  %v8083_v58 = vsel %vm3989_vm1, 1.0, %v20402_v13  ;;  %v16963_v44 = vadd.f32 %v9279_v43, %v9278_v4  ;;  %v9281_v4 = vpop.f32.mrb[178].mxu1  ;;  %v9195_v0 = vpop.f32.mrb[174].mxu0 }
 0x30c   : > { %8231 = vmatmul.mubr.msk.f32.gmra.mrb[22].mxu1 %vm20389_vm2, %v20283_v24  ;;  %8195 = vmatmul.mubr.msk.f32.gmra.mrb[18].mxu0 %vm20390_vm0, %v20283_v24  ;;  %20401 = vst [vmem:[#allocation55_spill] sm:$0xff] %v16944_v19  ;;  %v3607_v14 = vadd.f32 %v9191_v48, %v20403_v5  ;;  %v20405_v5 = vld [vmem:[#allocation38_spill] sm:$0xff]  ;;  %v9194_v48 = vadd.f32 %v9193_v26, %v9192_v38  ;;  %v9282_v61 = vpop.f32.mrb[179].mxu1  ;;  %v9196_v38 = vpop.f32.mrb[175].mxu0 }
 0x30d   : > { %8232 = vmatprep.mubr.msk.f32.mxu1 %vm20392_vm8, %v20283_v24  ;;  %8196 = vmatprep.mubr.msk.f32.mxu0 %vm20394_vm4, %v20283_v24  ;;  %v16981_v43 = vsub.f32 %v8082_v29, %v8082_v29  ;;  %v16983_v19 = vsub.f32 %v8083_v58, %v8083_v58  ;;  %vm3992_vm0 = vcmp.eq.s32.totalorder %v20397_v15, %v20293_v47  ;;  %vm20410_vm4 = vmmov %vm20396_vm14  ;;  %v9284_v26 = vpop.f32.mrb[180].mxu1 }
 0x30e   : > { %v16973_v33 = vadd.f32 %v9271_v39, %v3607_v14  ;;  %v3614_v40 = vadd.f32 %v9194_v48, %v20409_v63  ;;  %vm4000_vm8 = vcmp.eq.s32.totalorder %v20397_v15, %v20309_v60  ;;  %v16994_v14 = vadd.f32 %v9282_v61, %v9281_v4  ;;  %v20411_v63 = vld [vmem:[#allocation85_spill] sm:$0xff]  ;;  %v9285_v58 = vpop.f32.mrb[181].mxu1 }
 0x30f   : > { %20408 = vst [vmem:[#allocation20_spill] sm:$0xff] %v16981_v43  ;;  %v9197_v61 = vadd.f32 %v9196_v38, %v9195_v0  ;;  %v8086_v0 = vsel %vm3992_vm0, 1.0, %v20402_v13  ;;  %v9198_v38 = vpop.f32.mrb[176].mxu0  ;;  %v20415_v16 = vand.u32 4294901760, %v16981_v43  ;;  %v9287_v50 = vpop.f32.mrb[182].mxu1  ;;  %v20417_v37 = vand.u32 4294901760, %v16983_v19 }
 0x310   : > { %8233 = vmatmul.mubr.msk.f32.gmra.mrb[24].mxu1 %vm20396_vm14, %v20283_v24  ;;  %8197 = vmatmul.mubr.msk.f32.gmra.mrb[20].mxu0 %vm20398_vm13, %v20283_v24  ;;  %20406 = vst [vmem:[#allocation15_spill] sm:$0xff] %v16973_v33  ;;  %v17008_v29 = vadd.f32 %v9274_v20, %v3614_v40  ;;  %vm3997_vm14 = vcmp.eq.s32.totalorder %v20400_v11, %v20306_v36  ;;  %v8094_v40 = vsel %vm4000_vm8, 1.0, %v20402_v13  ;;  %v20413_v20 = vld [vmem:[#allocation71_spill] sm:$0xff]  ;;  %v9199_v33 = vpop.f32.mrb[177].mxu0 }
 0x311   : > { %8234 = vmatprep.mubr.msk.f32.mxu1 %vm4039_vm6, %v20283_v24  ;;  %8198 = vmatprep.mubr.msk.f32.mxu0 %vm4031_vm10, %v20283_v24  ;;  %vm20404_vm10 = vmmov %vm20389_vm2  ;;  %vm3993_vm2 = vcmp.eq.s32.totalorder %v20400_v11, %v20293_v47  ;;  %vm3996_vm13 = vcmp.eq.s32.totalorder %v20397_v15, %v20306_v36  ;;  %v3621_v4 = vadd.f32 %v9197_v61, %v20413_v20  ;;  %v8091_v61 = vsel %vm3997_vm14, 1.0, %v20402_v13 }
 0x312   : > { %v8087_v39 = vsel %vm3993_vm2, 1.0, %v20402_v13  ;;  %20412 = vst [vmem:[#allocation73_spill] sm:$0xff] %v17008_v29  ;;  %v17035_v29 = vadd.f32 %v9285_v58, %v9284_v26  ;;  %v9200_v26 = vadd.f32 %v9199_v33, %v9198_v38  ;;  %v17061_v20 = vsub.f32 %v8086_v0, %v8086_v0  ;;  %v20418_v33 = vld [vmem:[#allocation42_spill] sm:$0xff]  ;;  %v9201_v38 = vpop.f32.mrb[178].mxu0 }
 0x313   : > { %v17033_v48 = vsub.f32 %v8087_v39, %v8087_v39  ;;  %v8090_v39 = vsel %vm3996_vm13, 1.0, %v20402_v13  ;;  %v17055_v58 = vadd.f32 %v9277_v52, %v3621_v4  ;;  %v17066_v49 = vsub.f32 %v16981_v43, %v20415_v16 }
 0x314   : > { %8235 = vmatmul.mubr.msk.f32.gmra.mrb[26].mxu1 %vm4038_vm15, %v20283_v24  ;;  %8199 = vmatmul.mubr.msk.f32.gmra.mrb[22].mxu0 %vm20404_vm10, %v20283_v24  ;;  %v17068_v42 = vsub.f32 %v8094_v40, %v8094_v40  ;;  %v6044_v52 = vsub.f32 %v16983_v19, %v20417_v37  ;;  %v3628_v4 = vadd.f32 %v9200_v26, %v20418_v33  ;;  %v9202_v26 = vpop.f32.mrb[179].mxu0 }
 0x315   : > { %8236 = vmatprep.mubr.msk.f32.mxu1 %vm4043_vm12, %v20283_v24  ;;  %8200 = vmatprep.mubr.msk.f32.mxu0 %vm20407_vm3, %v20283_v24  ;;  %20414 = vst [vmem:[#allocation16_spill] sm:$0xff] %v17055_v58  ;;  %v9288_v58 = vpop.f32.mrb[183].mxu1  ;;  %v17078_v0 = vsub.f32 %v8091_v61, %v8091_v61  ;;  %v17085_v43 = vsub.f32 %v8090_v39, %v8090_v39  ;;  %v20423_v59 = vand.u32 4294901760, %v17033_v48 }
 0x316   : > { %20416 = vst [vmem:[#allocation18_spill] sm:$0xff] %v17068_v42  ;;  %v17087_v37 = vadd.f32 %v9288_v58, %v9287_v50  ;;  %v17102_v50 = vadd.f32 %v16963_v44, %v3628_v4  ;;  %v9203_v61 = vadd.f32 %v9202_v26, %v9201_v38  ;;  %v9290_v39 = vpop.f32.mrb[184].mxu1  ;;  %v6045_v58 = vand.u32 4294901760, %v6044_v52  ;;  %v9204_v4 = vpop.f32.mrb[180].mxu0 }
 0x317   : > { %20419 = vst [vmem:[#allocation24_spill] sm:$0xff] %v17078_v0  ;;  %20420 = vst [vmem:[#allocation56_spill] sm:$0xff] %v17085_v43  ;;  %v9291_v38 = vpop.f32.mrb[185].mxu1  ;;  %v6059_v26 = vsub.f32 %v17033_v48, %v20423_v59  ;;  %v9205_v59 = vpop.f32.mrb[181].mxu0  ;;  %vm19083_vm10 = vcmp.eq.s32.totalorder %v20400_v11, %v20319_v18  ;;  %vm19089_vm3 = vcmp.eq.s32.totalorder %v20400_v11, %v20330_v8 }
 0x318   : > { %8237 = vmatmul.mubr.msk.f32.gmra.mrb[28].mxu1 %vm4042_vm7, %v20283_v24  ;;  %8201 = vmatmul.mubr.msk.f32.gmra.mrb[24].mxu0 %vm20410_vm4, %v20283_v24  ;;  %20421 = vst [vmem:[#allocation71_spill] sm:$0xff] %v17102_v50  ;;  %v3635_v44 = vadd.f32 %v9203_v61, %v16603_v10  ;;  %v6051_v10 = vand.u32 4294901760, %v17066_v49  ;;  %v17135_v40 = vadd.f32 %v9291_v38, %v9290_v39  ;;  %v9293_v62 = vpop.f32.mrb[186].mxu1  ;;  %v20425_v38 = vand.u32 4294901760, %v17061_v20 }
 0x319   : > { %8238 = vmatprep.mubr.msk.f32.mxu1 %vm4047_vm11, %v20283_v24  ;;  %8202 = vmatprep.mubr.msk.f32.mxu0 %vm4039_vm6, %v20283_v24  ;;  %vm4001_vm6 = vcmp.eq.s32.totalorder %v20400_v11, %v20309_v60  ;;  %v9206_v39 = vadd.f32 %v9205_v59, %v9204_v4  ;;  %v9294_v4 = vpop.f32.mrb[187].mxu1  ;;  %v6060_v59 = vand.u32 4294901760, %v6059_v26  ;;  %v8103_v26 = vsel %vm19083_vm10, 1.0, %v20402_v13 }
 0x31a   : > { %v8095_v16 = vsel %vm4001_vm6, 1.0, %v20402_v13  ;;  %v6065_v50 = vsub.f32 %v17061_v20, %v20425_v38  ;;  %vm19094_vm4 = vcmp.eq.s32.totalorder %v20400_v11, %v20342_v34 }
 0x31b   : > { %v17111_v33 = vsub.f32 %v8095_v16, %v8095_v16  ;;  %v17150_v16 = vadd.f32 %v16994_v14, %v3635_v44  ;;  %v9207_v44 = vpop.f32.mrb[182].mxu0 }
 0x31c   : > { %8239 = vmatmul.mubr.msk.f32.gmra.mrb[30].mxu1 %vm4046_vm5, %v20283_v24  ;;  %8203 = vmatmul.mubr.msk.f32.gmra.mrb[26].mxu0 %vm4038_vm15, %v20283_v24  ;;  %vm19075_vm15 = vcmp.eq.s32.totalorder %v20400_v11, %v20314_v56  ;;  %v6066_v36 = vand.u32 4294901760, %v6065_v50 }
 0x31d   : > { %8240 = vmatprep.mubr.msk.f32.mxu1 %vm3989_vm1, %v20283_v24  ;;  %8204 = vmatprep.mubr.msk.f32.mxu0 %vm4043_vm12, %v20283_v24  ;;  %vm19074_vm12 = vcmp.eq.s32.totalorder %v20397_v15, %v20314_v56  ;;  %20422 = vst [vmem:[#allocation42_spill] sm:$0xff] %v17111_v33  ;;  %v8099_v52 = vsel %vm19075_vm15, 1.0, %v20402_v13  ;;  %20424 = vst [vmem:[#allocation87_spill] sm:$0xff] %v17150_v16  ;;  %v20430_v16 = vld [vmem:[#allocation45_spill] sm:$0xff] }
 0x31e   : > { %v8098_v61 = vsel %vm19074_vm12, 1.0, %v20402_v13  ;;  %v17158_v47 = vsub.f32 %v8099_v52, %v8099_v52  ;;  %v20427_v52 = vand.u32 4294901760, %v17078_v0 }
 0x31f   : > { %v17163_v14 = vsub.f32 %v8098_v61, %v8098_v61 }
 0x320   : > { %8241 = vmatmul.mubr.msk.f32.vlgmr.msra.gmra.mrb[32].mxu1 %vm3988_vm9, %v20283_v24  ;;  %8205 = vmatmul.mubr.msk.f32.gmra.mrb[28].mxu0 %vm4042_vm7, %v20283_v24  ;;  %vm19084_vm7 = vcmp.eq.s32.totalorder %v20397_v15, %v20319_v18  ;;  %20426 = vst [vmem:[#allocation88_spill] sm:$0xff] %v17158_v47  ;;  %v6074_v38 = vsub.f32 %v17078_v0, %v20427_v52 }
 0x321   : > { %8242 = vmatprep.mubr.msk.f32.mxu1 %vm3993_vm2, %v20283_v24  ;;  %8206 = vmatprep.mubr.msk.f32.mxu0 %vm4047_vm11, %v20283_v24  ;;  %vm19095_vm11 = vcmp.eq.s32.totalorder %v20397_v15, %v20342_v34  ;;  %v8102_v49 = vsel %vm19084_vm7, 1.0, %v20402_v13  ;;  %v20482_v34 = vld [vmem:[#allocation33_spill] sm:$0xff] }
 0x322   : > { %10937 = vmatpush3.bf16.msra.mxu1 %v16183_v9  ;;  %v8110_v61 = vsel %vm19095_vm11, 1.0, %v20402_v13 }
 0x323   : > { %10939 = vmatprep.subr.bf16.mxu1 %v16266_v32 }
 0x324   : > { %8243 = vmatmul.mubr.msk.f32.gmra.mrb[34].mxu1 %vm3992_vm0, %v20283_v24  ;;  %8207 = vmatmul.mubr.msk.f32.gmra.mrb[30].mxu0 %vm4046_vm5, %v20283_v24  ;;  %vm19090_vm5 = vcmp.eq.s32.totalorder %v20397_v15, %v20330_v8 }
 0x325   : > { %8244 = vmatprep.mubr.msk.f32.mxu1 %vm3997_vm14, %v20283_v24  ;;  %6046 = vmatprep.mubr.f32.mxu0 %v6045_v58  ;;  %v3642_v58 = vadd.f32 %v9206_v39, %v16640_v25  ;;  %v17179_v25 = vadd.f32 %v9294_v4, %v9293_v62  ;;  %v9208_v39 = vpop.f32.mrb[183].mxu0  ;;  %v20431_v62 = vpack.c.bf16 %v20429_v51, %v20430_v16  ;;  %v9296_v4 = vpop.f32.mrb[188].mxu1 }
 0x326   : > { %10941 = vmatpush3.bf16.msra.mxu1 %v16305_v22  ;;  %v9209_v32 = vadd.f32 %v9208_v39, %v9207_v44  ;;  %v20433_v22 = vld [vmem:[#allocation41_spill] sm:$0xff]  ;;  %v20436_v44 = vand.u32 4294901760, %v17111_v33 }
 0x327   : > { %10943 = vmatprep.subr.bf16.mxu1 %v16329_v31  ;;  %v17190_v52 = vadd.f32 %v17035_v29, %v3642_v58  ;;  %v20432_v31 = vld [vmem:[#allocation78_spill] sm:$0xff]  ;;  %v20435_v29 = vand.u32 4294901760, %v17085_v43 }
 0x328   : > { %8245 = vmatmul.mubr.msk.f32.gmra.mrb[36].mxu1 %vm3996_vm13, %v20283_v24  ;;  %6052 = vmatmul.mubr.f32.vlgmr.msra.gmra.mrb[32].mxu0 %v6051_v10  ;;  %v20434_v0 = vpack.c.bf16 %v20432_v31, %v20433_v22  ;;  %v6089_v39 = vsub.f32 %v17111_v33, %v20436_v44  ;;  %v3649_v50 = vadd.f32 %v9209_v32, %v16674_v53  ;;  %v9210_v10 = vpop.f32.mrb[184].mxu0  ;;  %v8107_v53 = vsel %vm19089_vm3, 1.0, %v20402_v13 }
 0x329   : > { %8246 = vmatprep.mubr.msk.f32.mxu1 %vm4001_vm6, %v20283_v24  ;;  %20428 = vst [vmem:[#allocation89_spill] sm:$0xff] %v17190_v52  ;;  %10905 = vmatpush3.bf16.msra.mxu0 %v20431_v62  ;;  %v6080_v58 = vsub.f32 %v17085_v43, %v20435_v29  ;;  %v17209_v62 = vsub.f32 %v8102_v49, %v8102_v49  ;;  %v9297_v52 = vpop.f32.mrb[189].mxu1  ;;  %v8106_v49 = vsel %vm19090_vm5, 1.0, %v20402_v13  ;;  %v9211_v32 = vpop.f32.mrb[185].mxu0  ;;  %v20443_v43 = vand.u32 4294901760, %v17068_v42 }
 0x32a   : > { %6061 = vmatprep.mubr.f32.mxu0 %v6060_v59  ;;  %10907 = vmatprep.subr.bf16.mxu0 %v20434_v0  ;;  %v6075_v0 = vand.u32 4294901760, %v6074_v38  ;;  %v17216_v29 = vsub.f32 %v8103_v26, %v8103_v26  ;;  %v17223_v44 = vadd.f32 %v9297_v52, %v9296_v4  ;;  %v17235_v38 = vsub.f32 %v8110_v61, %v8110_v61  ;;  %v20441_v4 = vld [vmem:[#allocation22_spill] sm:$0xff] }
 0x32b   : > { %10945 = vmatpush3.bf16.msra.mxu1 %v16440_v21  ;;  %20437 = vst [vmem:[#allocation62_spill] sm:$0xff] %v17209_v62  ;;  %v17238_v26 = vadd.f32 %v17087_v37, %v3649_v50  ;;  %v9212_v52 = vadd.f32 %v9211_v32, %v9210_v10  ;;  %v6081_v21 = vand.u32 4294901760, %v6080_v58  ;;  %v6090_v33 = vand.u32 4294901760, %v6089_v39  ;;  %v20445_v50 = vld [vmem:[#allocation75_spill] sm:$0xff]  ;;  %v20446_v10 = vld [vmem:[#allocation58_spill] sm:$0xff]  ;;  %v9213_v32 = vpop.f32.mrb[186].mxu0 }
 0x32c   : > { %8247 = vmatmul.mubr.msk.f32.gmra.mrb[38].mxu1 %vm4000_vm8, %v20283_v24  ;;  %10947 = vmatprep.subr.bf16.mxu1 %v16475_v2  ;;  %20438 = vst [vmem:[#allocation45_spill] sm:$0xff] %v17235_v38  ;;  %v9299_v2 = vpop.f32.mrb[190].mxu1  ;;  %v6095_v31 = vsub.f32 %v17068_v42, %v20443_v43  ;;  %v20444_v61 = vand.u32 4294901760, %v17158_v47  ;;  %v17259_v43 = vsub.f32 %v8107_v53, %v8107_v53  ;;  %v8111_v58 = vsel %vm19094_vm4, 1.0, %v20402_v13  ;;  %v20456_v42 = vld [vmem:[#allocation28_spill] sm:$0xff] }
 0x32d   : > { %6067 = vmatmul.mubr.f32.gmra.mrb[34].mxu0 %v6066_v36  ;;  %8248 = vmatprep.mubr.msk.f32.mxu1 %vm19075_vm15, %v20283_v24  ;;  %20439 = vst [vmem:[#allocation41_spill] sm:$0xff] %v17238_v26  ;;  %v20440_v36 = vld [vmem:[#allocation35_spill] sm:$0xff]  ;;  %v9300_v60 = vpop.f32.mrb[191].mxu1  ;;  %vm19103_vm15 = vcmp.eq.s32.totalorder %v20397_v15, %v20355_v3  ;;  %v20453_v53 = vand.u32 4294901760, %v17163_v14 }
 0x32e   : > { %6076 = vmatprep.mubr.f32.mxu0 %v6075_v0  ;;  %v20442_v59 = vpack.c.bf16 %v20440_v36, %v20441_v4  ;;  %v6104_v37 = vsub.f32 %v17158_v47, %v20444_v61  ;;  %v20447_v0 = vpack.c.bf16 %v20445_v50, %v20446_v10  ;;  %v17267_v61 = vsub.f32 %v8106_v49, %v8106_v49  ;;  %v9414_v39 = vpop.f32.mrb[192].mxu1  ;;  %v20455_v47 = vld [vmem:[#allocation51_spill] sm:$0xff] }
 0x32f   : > { %10949 = vmatpush3.bf16.msra.mxu1 %v16710_v41  ;;  %v6096_v26 = vand.u32 4294901760, %v6095_v31  ;;  %v17289_v41 = vsub.f32 %v8111_v58, %v8111_v58  ;;  %v20457_v50 = vpack.c.bf16 %v20455_v47, %v20456_v42  ;;  %v20458_v31 = vand.u32 4294901760, %v17216_v29 }
 0x330   : > { %10909 = vmatpush3.bf16.msra.mxu0 %v20442_v59  ;;  %v3656_v59 = vadd.f32 %v9212_v52, %v16724_v54  ;;  %8249 = vmatmul.mubr.msk.f32.gmra.mrb[40].mxu1 %vm19074_vm12, %v20283_v24  ;;  %20448 = vst [vmem:[#allocation35_spill] sm:$0xff] %v17267_v61  ;;  %v17269_v54 = vadd.f32 %v9300_v60, %v9299_v2  ;;  %v9214_v52 = vpop.f32.mrb[187].mxu0  ;;  %v20450_v60 = vld [vmem:[#allocation66_spill] sm:$0xff]  ;;  %v6105_v56 = vand.u32 4294901760, %v6104_v37 }
 0x331   : > { %10911 = vmatprep.subr.bf16.mxu0 %v20447_v0  ;;  %10951 = vmatprep.subr.bf16.mxu1 %v16716_v45  ;;  %vm19104_vm12 = vcmp.eq.s32.totalorder %v20400_v11, %v20355_v3  ;;  %v9215_v2 = vadd.f32 %v9214_v52, %v9213_v32  ;;  %v6110_v45 = vsub.f32 %v17163_v14, %v20453_v53  ;;  %v20459_v52 = vand.u32 4294901760, %v17209_v62 }
 0x332   : > { %6082 = vmatmul.mubr.f32.gmra.mrb[36].mxu0 %v6081_v21  ;;  %8250 = vmatprep.mubr.msk.f32.mxu1 %vm19083_vm10, %v20283_v24  ;;  %v17281_v49 = vadd.f32 %v17135_v40, %v3656_v59  ;;  %v20451_v21 = vld [vmem:[#allocation64_spill] sm:$0xff]  ;;  %20454 = vst [vmem:[#allocation58_spill] sm:$0xff] %v17289_v41  ;;  %v9415_v59 = vpop.f32.mrb[193].mxu1  ;;  %v6119_v37 = vsub.f32 %v17216_v29, %v20458_v31 }
 0x333   : > { %6091 = vmatprep.mubr.f32.mxu0 %v6090_v33  ;;  %v20452_v0 = vpack.c.bf16 %v20450_v60, %v20451_v21  ;;  %10953 = vmatpush3.bf16.msra.mxu1 %v16757_v12  ;;  %v3663_v40 = vadd.f32 %v9215_v2, %v16760_v55  ;;  %v9216_v33 = vpop.f32.mrb[188].mxu0  ;;  %vm19113_vm10 = vcmp.eq.s32.totalorder %v20397_v15, %v20368_v7  ;;  %v8114_v2 = vsel %vm19103_vm15, 1.0, %v20402_v13  ;;  %v9417_v32 = vpop.f32.mrb[194].mxu1 }
 0x334   : > { %20449 = vst [vmem:[#allocation22_spill] sm:$0xff] %v17281_v49  ;;  %8251 = vmatmul.mubr.msk.f32.gmra.mrb[42].mxu1 %vm19084_vm7, %v20283_v24  ;;  %10955 = vmatprep.subr.bf16.mxu1 %v16767_v30  ;;  %v17311_v55 = vadd.f32 %v9415_v59, %v9414_v39  ;;  %v9217_v58 = vpop.f32.mrb[189].mxu0  ;;  %v6125_v53 = vsub.f32 %v17209_v62, %v20459_v52  ;;  %v20462_v59 = vld [vmem:[#allocation44_spill] sm:$0xff]  ;;  %v6111_v49 = vand.u32 4294901760, %v6110_v45 }
 0x335   : > { %10913 = vmatpush3.bf16.msra.mxu0 %v20452_v0  ;;  %8252 = vmatprep.mubr.msk.f32.mxu1 %vm19089_vm3, %v20283_v24  ;;  %v17325_v0 = vadd.f32 %v17179_v25, %v3663_v40  ;;  %v9218_v39 = vadd.f32 %v9217_v58, %v9216_v33  ;;  %vm19114_vm7 = vcmp.eq.s32.totalorder %v20400_v11, %v20368_v7  ;;  %v20465_v62 = vld [vmem:[#allocation36_spill] sm:$0xff]  ;;  %v20466_v25 = vld [vmem:[#allocation25_spill] sm:$0xff]  ;;  %v9219_v45 = vpop.f32.mrb[190].mxu0  ;;  %v6120_v58 = vand.u32 4294901760, %v6119_v37 }
 0x336   : > { %10915 = vmatprep.subr.bf16.mxu0 %v20457_v50  ;;  %v8115_v50 = vsel %vm19104_vm12, 1.0, %v20402_v13  ;;  %6097 = vmatmul.mubr.f32.gmra.mrb[38].mxu0 %v6096_v26  ;;  %v20461_v26 = vld [vmem:[#allocation31_spill] sm:$0xff]  ;;  %v20467_v40 = vpack.c.bf16 %v20465_v62, %v20466_v25  ;;  %v17353_v30 = vsub.f32 %v8114_v2, %v8114_v2  ;;  %vm19119_vm3 = vcmp.eq.s32.totalorder %v20397_v15, %v20377_v6 }
 0x337   : > { %20460 = vst [vmem:[#allocation66_spill] sm:$0xff] %v17325_v0  ;;  %6106 = vmatprep.mubr.f32.mxu0 %v6105_v56  ;;  %v20463_v31 = vpack.c.bf16 %v20461_v26, %v20462_v59  ;;  %v17332_v52 = vsub.f32 %v8115_v50, %v8115_v50  ;;  %10957 = vmatpush3.bf16.msra.mxu1 %v16791_v27  ;;  %v8118_v56 = vsel %vm19113_vm10, 1.0, %v20402_v13  ;;  %v9418_v50 = vpop.f32.mrb[195].mxu1  ;;  %v8119_v37 = vsel %vm19114_vm7, 1.0, %v20402_v13 }
 0x338   : > { %v3670_v33 = vadd.f32 %v9218_v39, %v16794_v28  ;;  %8253 = vmatmul.mubr.msk.f32.gmra.mrb[44].mxu1 %vm19090_vm5, %v20283_v24  ;;  %10959 = vmatprep.subr.bf16.mxu1 %v16801_v23  ;;  %20469 = vst [vmem:[#allocation51_spill] sm:$0xff] %v17353_v30  ;;  %v17357_v28 = vadd.f32 %v9418_v50, %v9417_v32  ;;  %v9220_v39 = vpop.f32.mrb[191].mxu0  ;;  %v20472_v50 = vld [vmem:[#allocation74_spill] sm:$0xff]  ;;  %v9420_v0 = vpop.f32.mrb[196].mxu1  ;;  %v6126_v8 = vand.u32 4294901760, %v6125_v53  ;;  %v20474_v23 = vand.u32 4294901760, %v17267_v61 }
 0x339   : > { %10917 = vmatpush3.bf16.msra.mxu0 %v20463_v31  ;;  %20464 = vst [vmem:[#allocation64_spill] sm:$0xff] %v17332_v52  ;;  %v20468_v31 = vand.u32 4294901760, %v17259_v43  ;;  %8254 = vmatprep.mubr.msk.f32.mxu1 %vm19094_vm4, %v20283_v24  ;;  %vm19120_vm5 = vcmp.eq.s32.totalorder %v20400_v11, %v20377_v6  ;;  %vm19127_vm4 = vcmp.eq.s32.totalorder %v20397_v15, %v20385_v1  ;;  %v9334_v53 = vpop.f32.mrb[192].mxu0 }
 0x33a   : > { %10919 = vmatprep.subr.bf16.mxu0 %v20467_v40  ;;  %6112 = vmatmul.mubr.f32.gmra.mrb[40].mxu0 %v6111_v49  ;;  %v17368_v2 = vadd.f32 %v17223_v44, %v3670_v33  ;;  %v20471_v49 = vld [vmem:[#allocation82_spill] sm:$0xff]  ;;  %v6140_v27 = vsub.f32 %v17267_v61, %v20474_v23  ;;  %v20475_v44 = vand.u32 4294901760, %v17289_v41 }
 0x33b   : > { %v6134_v40 = vsub.f32 %v17259_v43, %v20468_v31  ;;  %v9221_v31 = vadd.f32 %v9220_v39, %v9219_v45  ;;  %6121 = vmatprep.mubr.f32.mxu0 %v6120_v58  ;;  %v20473_v18 = vpack.c.bf16 %v20471_v49, %v20472_v50  ;;  %v20476_v58 = vld [vmem:[#allocation37_spill] sm:$0xff]  ;;  %10961 = vmatpush3.bf16.msra.mxu1 %v16825_v57 }
 0x33c   : > { %20470 = vst [vmem:[#allocation28_spill] sm:$0xff] %v17368_v2  ;;  %v6149_v33 = vsub.f32 %v17289_v41, %v20475_v44  ;;  %v20477_v39 = vld [vmem:[#allocation53_spill] sm:$0xff]  ;;  %v9421_v2 = vpop.f32.mrb[197].mxu1  ;;  %8255 = vmatmul.mubr.msk.f32.gmra.mrb[46].mxu1 %vm19095_vm11, %v20283_v24  ;;  %v17394_v44 = vsub.f32 %v8119_v37, %v8119_v37  ;;  %10963 = vmatprep.subr.bf16.mxu1 %v16835_v46  ;;  %v20483_v46 = vld [vmem:[#allocation86_spill] sm:$0xff] }
 0x33d   : > { %10921 = vmatpush3.bf16.msra.mxu0 %v20473_v18  ;;  %v20478_v32 = vpack.c.bf16 %v20476_v58, %v20477_v39  ;;  %v3677_v18 = vadd.f32 %v9221_v31, %v16828_v17  ;;  %v6135_v23 = vand.u32 4294901760, %v6134_v40  ;;  %v17401_v45 = vadd.f32 %v9421_v2, %v9420_v0  ;;  %v9335_v17 = vpop.f32.mrb[193].mxu0  ;;  %8256 = vmatprep.mubr.msk.f32.mxu1 %vm19104_vm12, %v20283_v24  ;;  %v9423_v61 = vpop.f32.mrb[198].mxu1 }
 0x33e   : > { %20479 = vst [vmem:[#allocation31_spill] sm:$0xff] %v17394_v44  ;;  %6127 = vmatmul.mubr.f32.gmra.mrb[42].mxu0 %v6126_v8  ;;  %v8123_v40 = vsel %vm19120_vm5, 1.0, %v20402_v13  ;;  %vm19128_vm11 = vcmp.eq.s32.totalorder %v20400_v11, %v20385_v1  ;;  %v9336_v0 = vadd.f32 %v9335_v17, %v9334_v53  ;;  %v20481_v8 = vand.u32 4294901760, %v17235_v38  ;;  %v20487_v53 = vld [vmem:[#allocation70_spill] sm:$0xff]  ;;  %v20489_v17 = vld [vmem:[#allocation47_spill] sm:$0xff]  ;;  %v9337_v31 = vpop.f32.mrb[194].mxu0 }
 0x33f   : > { %10923 = vmatprep.subr.bf16.mxu0 %v20478_v32  ;;  %v8122_v32 = vsel %vm19119_vm3, 1.0, %v20402_v13  ;;  %v17414_v37 = vadd.f32 %v17269_v54, %v3677_v18  ;;  %6136 = vmatprep.mubr.f32.mxu0 %v6135_v23  ;;  %v20484_v57 = vpack.c.bf16 %v20482_v34, %v20483_v46  ;;  %v17423_v41 = vsub.f32 %v8118_v56, %v8118_v56 }
 0x340   : > { %v6155_v2 = vsub.f32 %v17235_v38, %v20481_v8  ;;  %v6141_v58 = vand.u32 4294901760, %v6140_v27  ;;  %v6150_v39 = vand.u32 4294901760, %v6149_v33  ;;  %v20486_v54 = vand.u32 4294901760, %v17332_v52  ;;  %10965 = vmatpush3.bf16.msra.mxu1 %v20489_v17 }
 0x341   : > { %20480 = vst [vmem:[#allocation44_spill] sm:$0xff] %v17414_v37  ;;  %10925 = vmatpush3.bf16.msra.mxu0 %v20484_v57  ;;  %20485 = vst [vmem:[#allocation36_spill] sm:$0xff] %v17423_v41  ;;  %v20488_v23 = vpack.c.bf16 %v16431_v35, %v20487_v53  ;;  %v17433_v8 = vadd.f32 %v17311_v55, %v9336_v0  ;;  %v9424_v57 = vpop.f32.mrb[199].mxu1  ;;  %8257 = vmatmul.mubr.msk.f32.gmra.mrb[48].mxu1 %vm19103_vm15, %v20283_v24  ;;  %v8127_v56 = vsel %vm19128_vm11, 1.0, %v20402_v13  ;;  %v20493_v37 = vld [vmem:[#allocation63_spill] sm:$0xff]  ;;  %v20499_v35 = vld [vmem:[#allocation81_spill] sm:$0xff] }
 0x342   : > { %v6164_v18 = vsub.f32 %v17332_v52, %v20486_v54  ;;  %v17439_v27 = vsub.f32 %v8123_v40, %v8123_v40  ;;  %v20492_v54 = vld [vmem:[#allocation65_spill] sm:$0xff]  ;;  %v8126_v55 = vsel %vm19127_vm4, 1.0, %v20402_v13  ;;  %v17451_v0 = vsub.f32 %v8122_v32, %v8122_v32  ;;  %v9338_v40 = vpop.f32.mrb[195].mxu0  ;;  %6142 = vmatmul.mubr.f32.gmra.mrb[44].mxu0 %v6141_v58  ;;  %8258 = vmatprep.mubr.msk.f32.mxu1 %vm19114_vm7, %v20283_v24  ;;  %v20500_v53 = vld [vmem:[#allocation59_spill] sm:$0xff] }
 0x343   : > { %10927 = vmatprep.subr.bf16.mxu0 %v20488_v23  ;;  %20490 = vst [vmem:[#allocation25_spill] sm:$0xff] %v17433_v8  ;;  %10999 = vmatprep.subr.bf16.mxu1 %v20492_v54  ;;  %v17453_v23 = vadd.f32 %v9424_v57, %v9423_v61  ;;  %vm4037_vm15 = vcmp.eq.s32.totalorder %v20400_v11, %v20493_v37  ;;  %v6156_v33 = vand.u32 4294901760, %v6155_v2  ;;  %v20494_v32 = vand.u32 4294901760, %v17353_v30  ;;  %v20495_v57 = vld [vmem:[#allocation39_spill] sm:$0xff]  ;;  %v20496_v58 = vld [vmem:[#allocation77_spill] sm:$0xff]  ;;  %v9426_v8 = vpop.f32.mrb[200].mxu1 }
 0x344   : > { %20491 = vst [vmem:[#allocation82_spill] sm:$0xff] %v17439_v27  ;;  %vm4036_vm12 = vcmp.eq.s32.totalorder %v20397_v15, %v20493_v37  ;;  %v9339_v54 = vadd.f32 %v9338_v40, %v9337_v31  ;;  %6151 = vmatprep.mubr.f32.mxu0 %v6150_v39  ;;  %v20497_v3 = vpack.c.bf16 %v20495_v57, %v20496_v58  ;;  %v6165_v17 = vand.u32 4294901760, %v6164_v18  ;;  %v20502_v39 = vld [vmem:[#allocation19_spill] sm:$0xff]  ;;  %v20504_v31 = vld [vmem:[#allocation52_spill] sm:$0xff] }
 0x345   : > { %v6170_v61 = vsub.f32 %v17353_v30, %v20494_v32  ;;  %v17469_v52 = vsub.f32 %v8127_v56, %v8127_v56  ;;  %v19118_v38 = vand.u32 4294901760, %v17423_v41  ;;  %v20501_v34 = vpack.c.bf16 %v20499_v35, %v20500_v53  ;;  %v9340_v30 = vpop.f32.mrb[196].mxu0  ;;  %8259 = vmatmul.mubr.msk.f32.gmra.mrb[50].mxu1 %vm19113_vm10, %v20283_v24 }
 0x346   : > { %10929 = vmatpush3.bf16.msra.mxu0 %v20497_v3  ;;  %v20503_v2 = vand.u32 4294901760, %v20502_v39  ;;  %v20505_v40 = vand.u32 4294901760, %v20504_v31  ;;  %v17480_v32 = vadd.f32 %v17357_v28, %v9339_v54  ;;  %v9427_v3 = vpop.f32.mrb[201].mxu1  ;;  %v20507_v18 = vand.u32 4294901760, %v17394_v44  ;;  %8260 = vmatprep.mubr.msk.f32.mxu1 %vm19120_vm5, %v20283_v24  ;;  %v20509_v31 = vld [vmem:[#allocation50_spill] sm:$0xff] }
 0x347   : > { %20498 = vst [vmem:[#allocation74_spill] sm:$0xff] %v17469_v52  ;;  %10931 = vmatprep.subr.bf16.mxu0 %v20501_v34  ;;  %v8131_v34 = vsel %vm4037_vm15, 1.0, %v20402_v13  ;;  %v17494_v28 = vsub.f32 %v8126_v55, %v8126_v55  ;;  %v9428_v54 = vadd.f32 %v9427_v3, %v9426_v8  ;;  %6157 = vmatmul.mubr.f32.gmra.mrb[46].mxu0 %v6156_v33  ;;  %v20510_v8 = vld [vmem:[#allocation26_spill] sm:$0xff]  ;;  %v20511_v33 = vld [vmem:[#allocation27_spill] sm:$0xff]  ;;  %v9429_v3 = vpop.f32.mrb[202].mxu1  ;;  %v6171_v39 = vand.u32 4294901760, %v6170_v61 }
 0x348   : > { %v10966_v46 = vpack.c.bf16 %v20505_v40, %v20503_v2  ;;  %20506 = vst [vmem:[#allocation65_spill] sm:$0xff] %v17480_v32  ;;  %v6179_v56 = vsub.f32 %v17394_v44, %v20507_v18  ;;  %v9341_v2 = vpop.f32.mrb[197].mxu0  ;;  %vm4040_vm10 = vcmp.eq.s32.totalorder %v20397_v15, %v20509_v31  ;;  %v8130_v40 = vsel %vm4036_vm12, 1.0, %v20402_v13  ;;  %6166 = vmatprep.mubr.f32.mxu0 %v6165_v17 }
 0x349   : > { %20508 = vst [vmem:[#allocation39_spill] sm:$0xff] %v17494_v28  ;;  %v9342_v18 = vadd.f32 %v9341_v2, %v9340_v30  ;;  %vm4041_vm7 = vcmp.eq.s32.totalorder %v20400_v11, %v20509_v31  ;;  %v20512_v55 = vpack.c.bf16 %v20510_v8, %v20511_v33  ;;  %v6185_v7 = vsub.f32 %v17423_v41, %v19118_v38  ;;  %v9343_v17 = vpop.f32.mrb[198].mxu0  ;;  %v9430_v2 = vpop.f32.mrb[203].mxu1 }
 0x34a   : > { %v17514_v32 = vsub.f32 %v8131_v34, %v8131_v34  ;;  %v19126_v44 = vand.u32 4294901760, %v17451_v0  ;;  %8261 = vmatmul.mubr.msk.f32.gmra.mrb[52].mxu1 %vm19119_vm3, %v20283_v24  ;;  %v6180_v61 = vand.u32 4294901760, %v6179_v56  ;;  %v8135_v56 = vsel %vm4041_vm7, 1.0, %v20402_v13 }
 0x34b   : > { %10933 = vmatpush3.bf16.msra.mxu0 %v20512_v55  ;;  %v17518_v30 = vadd.f32 %v17401_v45, %v9342_v18  ;;  %v20515_v55 = vand.u32 4294901760, %v17439_v27  ;;  %v9431_v45 = vadd.f32 %v9430_v2, %v9429_v3  ;;  %v9344_v18 = vpop.f32.mrb[199].mxu0  ;;  %8262 = vmatprep.mubr.msk.f32.mxu1 %vm19128_vm11, %v20283_v24  ;;  %vm4044_vm3 = vcmp.eq.s32.totalorder %v20397_v15, %v20405_v5 }
 0x34c   : > { %20513 = vst [vmem:[#allocation77_spill] sm:$0xff] %v17514_v32  ;;  %10967 = vmatprep.subr.bf16.mxu0 %v10966_v46  ;;  %v8134_v46 = vsel %vm4040_vm10, 1.0, %v20402_v13  ;;  %6172 = vmatmul.mubr.f32.gmra.mrb[48].mxu0 %v6171_v39  ;;  %v9345_v34 = vadd.f32 %v9344_v18, %v9343_v17  ;;  %vm4045_vm5 = vcmp.eq.s32.totalorder %v20400_v11, %v20405_v5  ;;  %v9432_v39 = vpop.f32.mrb[204].mxu1  ;;  %v6186_v3 = vand.u32 4294901760, %v6185_v7 }
 0x34d   : > { %20514 = vst [vmem:[#allocation81_spill] sm:$0xff] %v17518_v30  ;;  %v6194_v38 = vsub.f32 %v17439_v27, %v20515_v55  ;;  %v17540_v55 = vsub.f32 %v8130_v40, %v8130_v40  ;;  %6181 = vmatprep.mubr.f32.mxu0 %v6180_v61  ;;  %v6200_v2 = vsub.f32 %v17451_v0, %v19126_v44  ;;  %v9346_v27 = vpop.f32.mrb[200].mxu0  ;;  %v9433_v41 = vpop.f32.mrb[205].mxu1  ;;  %v20517_v61 = vand.u32 4294901760, %v17469_v52 }
 0x34e   : > { %v17552_v40 = vadd.f32 %v17453_v23, %v9345_v34  ;;  %8263 = vmatmul.mubr.msk.f32.gmra.mrb[54].mxu1 %vm19127_vm4, %v20283_v24  ;;  %v17558_v7 = vsub.f32 %v8135_v56, %v8135_v56  ;;  %v17563_v44 = vsub.f32 %v8134_v46, %v8134_v46  ;;  %v9434_v30 = vadd.f32 %v9433_v41, %v9432_v39  ;;  %v9347_v6 = vpop.f32.mrb[201].mxu0  ;;  %v9435_v34 = vpop.f32.mrb[206].mxu1 }
 0x34f   : > { %v6195_v17 = vand.u32 4294901760, %v6194_v38  ;;  %v6209_v18 = vsub.f32 %v17469_v52, %v20517_v61  ;;  %8264 = vmatprep.mubr.msk.f32.mxu1 %vm4037_vm15, %v20283_v24  ;;  %v8139_v38 = vsel %vm4045_vm5, 1.0, %v20402_v13  ;;  %vm4048_vm4 = vcmp.eq.s32.totalorder %v20397_v15, %v20411_v63  ;;  %v9349_v52 = vpop.f32.mrb[202].mxu0 }
 0x350   : > { %20516 = vst [vmem:[#allocation59_spill] sm:$0xff] %v17552_v40  ;;  %6187 = vmatmul.mubr.f32.gmra.mrb[50].mxu0 %v6186_v3  ;;  %v8138_v41 = vsel %vm4044_vm3, 1.0, %v20402_v13  ;;  %v9348_v23 = vadd.f32 %v9347_v6, %v9346_v27  ;;  %vm4049_vm11 = vcmp.eq.s32.totalorder %v20400_v11, %v20411_v63  ;;  %v6201_v46 = vand.u32 4294901760, %v6200_v2  ;;  %v9436_v6 = vpop.f32.mrb[207].mxu1  ;;  %v20523_v11 = vld [vmem:[#allocation20_spill] sm:$0xff] }
 0x351   : > { %6196 = vmatprep.mubr.f32.mxu0 %v6195_v17  ;;  %v20518_v56 = vand.u32 4294901760, %v17494_v28  ;;  %v20519_v3 = vand.u32 4294901760, %v17514_v32  ;;  %v19137_v1 = vand.u32 4294901760, %v17540_v55  ;;  %v6210_v27 = vand.u32 4294901760, %v6209_v18 }
 0x352   : > { %v17588_v40 = vadd.f32 %v9428_v54, %v9348_v23  ;;  %8265 = vmatmul.mubr.msk.f32.gmra.mrb[56].mxu1 %vm4036_vm12, %v20283_v24  ;;  %v17594_v2 = vsub.f32 %v8139_v38, %v8139_v38  ;;  %v8143_v54 = vsel %vm4049_vm11, 1.0, %v20402_v13  ;;  %v8142_v18 = vsel %vm4048_vm4, 1.0, %v20402_v13 }
 0x353   : > { %v6215_v39 = vsub.f32 %v17494_v28, %v20518_v56  ;;  %v6224_v61 = vsub.f32 %v17514_v32, %v20519_v3  ;;  %v9437_v56 = vadd.f32 %v9436_v6, %v9435_v34  ;;  %v9350_v28 = vpop.f32.mrb[203].mxu0  ;;  %8266 = vmatprep.mubr.msk.f32.mxu1 %vm4041_vm7, %v20283_v24  ;;  %v17609_v38 = vsub.f32 %v8138_v41, %v8138_v41  ;;  %v9438_v34 = vpop.f32.mrb[208].mxu1 }
 0x354   : > { %20520 = vst [vmem:[#allocation19_spill] sm:$0xff] %v17588_v40  ;;  %6202 = vmatmul.mubr.f32.gmra.mrb[52].mxu0 %v6201_v46  ;;  %v9351_v23 = vadd.f32 %v9350_v28, %v9349_v52  ;;  %v6230_v6 = vsub.f32 %v17540_v55, %v19137_v1  ;;  %v19138_v17 = vand.u32 4294901760, %v17563_v44  ;;  %v9352_v40 = vpop.f32.mrb[204].mxu0  ;;  %v9439_v32 = vpop.f32.mrb[209].mxu1  ;;  %v17621_v13 = vsub.f32 %v8143_v54, %v8143_v54 }
 0x355   : > { %6211 = vmatprep.mubr.f32.mxu0 %v6210_v27  ;;  %v6216_v46 = vand.u32 4294901760, %v6215_v39  ;;  %v6225_v3 = vand.u32 4294901760, %v6224_v61  ;;  %v20521_v52 = vand.u32 4294901760, %v17558_v7  ;;  %v19139_v41 = vand.u32 4294901760, %v17594_v2  ;;  %v9353_v61 = vpop.f32.mrb[205].mxu0 }
 0x356   : > { %v17615_v37 = vadd.f32 %v9431_v45, %v9351_v23  ;;  %8267 = vmatmul.mubr.msk.f32.gmra.mrb[58].mxu1 %vm4040_vm10, %v20283_v24  ;;  %v9440_v39 = vadd.f32 %v9439_v32, %v9438_v34  ;;  %v9354_v45 = vadd.f32 %v9353_v61, %v9352_v40  ;;  %v17631_v27 = vsub.f32 %v8142_v18, %v8142_v18  ;;  %v9441_v23 = vpop.f32.mrb[210].mxu1  ;;  %v9355_v34 = vpop.f32.mrb[206].mxu0 }
 0x357   : > { %v6239_v28 = vsub.f32 %v17558_v7, %v20521_v52  ;;  %8268 = vmatprep.mubr.msk.f32.mxu1 %vm4045_vm5, %v20283_v24  ;;  %v19141_v54 = vand.u32 4294901760, %v17609_v38  ;;  %v6231_v1 = vand.u32 4294901760, %v6230_v6  ;;  %v6245_v52 = vsub.f32 %v17563_v44, %v19138_v17  ;;  %v9356_v61 = vpop.f32.mrb[207].mxu0 }
 0x358   : > { %6217 = vmatmul.mubr.f32.gmra.mrb[54].mxu0 %v6216_v46  ;;  %v17637_v32 = vadd.f32 %v9434_v30, %v9354_v45  ;;  %v9442_v46 = vpop.f32.mrb[211].mxu1  ;;  %v6254_v18 = vsub.f32 %v17594_v2, %v19139_v41  ;;  %v9357_v30 = vadd.f32 %v9356_v61, %v9355_v34  ;;  %v19147_v45 = vand.u32 4294901760, %v17631_v27 }
 0x359   : > { %6226 = vmatprep.mubr.f32.mxu0 %v6225_v3  ;;  %v6240_v40 = vand.u32 4294901760, %v6239_v28  ;;  %v19146_v3 = vand.u32 4294901760, %v17621_v13  ;;  %v9443_v6 = vadd.f32 %v9442_v46, %v9441_v23  ;;  %v6260_v28 = vsub.f32 %v17609_v38, %v19141_v54  ;;  %v9444_v17 = vpop.f32.mrb[212].mxu1  ;;  %v9358_v23 = vpop.f32.mrb[208].mxu0 }
 0x35a   : > { %8269 = vmatmul.mubr.msk.f32.gmra.mrb[60].mxu1 %vm4044_vm3, %v20283_v24  ;;  %v6246_v41 = vand.u32 4294901760, %v6245_v52  ;;  %v17655_v5 = vadd.f32 %v9437_v56, %v9357_v30  ;;  %v9445_v46 = vpop.f32.mrb[213].mxu1  ;;  %v9359_v61 = vpop.f32.mrb[209].mxu0  ;;  %v20522_v54 = vand.u32 4294901760, %v16983_v19  ;;  %v6275_v52 = vsub.f32 %v17631_v27, %v19147_v45 }
 0x35b   : > { %8270 = vmatprep.mubr.msk.f32.mxu1 %vm4049_vm11, %v20283_v24  ;;  %v6269_v34 = vsub.f32 %v17621_v13, %v19146_v3  ;;  %v9360_v56 = vadd.f32 %v9359_v61, %v9358_v23  ;;  %v9447_v30 = vpop.f32.mrb[214].mxu1  ;;  %v6261_v63 = vand.u32 4294901760, %v6260_v28  ;;  %v20524_v3 = vand.u32 4294901760, %v20523_v11 }
 0x35c   : > { %6232 = vmatmul.mubr.f32.gmra.mrb[56].mxu0 %v6231_v1  ;;  %v6255_v1 = vand.u32 4294901760, %v6254_v18  ;;  %v9361_v18 = vpop.f32.mrb[210].mxu0  ;;  %v9448_v15 = vpop.f32.mrb[215].mxu1  ;;  %v6276_v28 = vand.u32 4294901760, %v6275_v52  ;;  %v20531_v52 = vand.u32 4294901760, %v20429_v51 }
 0x35d   : > { %6241 = vmatprep.mubr.f32.mxu0 %v6240_v40  ;;  %v9446_v40 = vadd.f32 %v9445_v46, %v9444_v17  ;;  %v17669_v31 = vadd.f32 %v9440_v39, %v9360_v56  ;;  %v6270_v17 = vand.u32 4294901760, %v6269_v34  ;;  %v9362_v46 = vpop.f32.mrb[211].mxu0  ;;  %v20526_v39 = vld [vmem:[#allocation12_spill] sm:$0xff] }
 0x35e   : > { %8271 = vmatmul.mubr.msk.f32.gmra.mrb[62].mxu1 %vm4048_vm4, %v20283_v24  ;;  %v9363_v23 = vadd.f32 %v9362_v46, %v9361_v18  ;;  %v9364_v56 = vpop.f32.mrb[212].mxu0  ;;  %v20528_v34 = vld [vmem:[#allocation24_spill] sm:$0xff] }
 0x35f   : > { %6991 = vmatprep.mubr.f32.mxu1 %v20522_v54  ;;  %v20525_v54 = vand.u32 4294901760, %v17033_v48 }
 0x360   : > { %6247 = vmatmul.mubr.f32.gmra.mrb[58].mxu0 %v6246_v41  ;;  %v9449_v41 = vadd.f32 %v9448_v15, %v9447_v30  ;;  %v17677_v61 = vadd.f32 %v9443_v6, %v9363_v23  ;;  %v20529_v30 = vand.u32 4294901760, %v20528_v34  ;;  %v20534_v23 = vld [vmem:[#allocation78_spill] sm:$0xff] }
 0x361   : > { %6256 = vmatprep.mubr.f32.mxu0 %v6255_v1  ;;  %v9450_v1 = vpop.f32.mrb[216].mxu1 }
 0x362   : > { %6995 = vmatmul.mubr.f32.vlgmr.msra.gmra.mrb[64].mxu1 %v20524_v3  ;;  %v9451_v45 = vpop.f32.mrb[217].mxu1  ;;  %v20527_v3 = vand.u32 4294901760, %v17061_v20 }
 0x363   : > { %7002 = vmatprep.mubr.f32.mxu1 %v20525_v54  ;;  %11001 = vmatpush3.bf16.msra.mxu1 %v16183_v9  ;;  %v9452_v15 = vadd.f32 %v9451_v45, %v9450_v1  ;;  %v20530_v9 = vand.u32 4294901760, %v20430_v16  ;;  %v9453_v46 = vpop.f32.mrb[218].mxu1  ;;  %v20533_v54 = vand.u32 4294901760, %v20433_v22  ;;  %v20535_v45 = vand.u32 4294901760, %v20534_v23 }
 0x364   : > { %6262 = vmatmul.mubr.f32.gmra.mrb[60].mxu0 %v6261_v63  ;;  %11003 = vmatprep.subr.bf16.mxu1 %v20526_v39  ;;  %v9365_v63 = vpop.f32.mrb[213].mxu0 }
 0x365   : > { %6271 = vmatprep.mubr.f32.mxu0 %v6270_v17  ;;  %v9366_v18 = vadd.f32 %v9365_v63, %v9364_v56  ;;  %v10968_v6 = vpack.c.bf16 %v20531_v52, %v20530_v9  ;;  %v20532_v17 = vld [vmem:[#allocation76_spill] sm:$0xff]  ;;  %v10970_v1 = vpack.c.bf16 %v20535_v45, %v20533_v54  ;;  %v9367_v56 = vpop.f32.mrb[214].mxu0  ;;  %v20541_v52 = vand.u32 4294901760, %v20441_v4  ;;  %v20549_v4 = vld [vmem:[#allocation30_spill] sm:$0xff] }
 0x366   : > { %7006 = vmatmul.mubr.f32.gmra.mrb[66].mxu1 %v20527_v3  ;;  %v9454_v3 = vpop.f32.mrb[219].mxu1  ;;  %v9368_v51 = vpop.f32.mrb[215].mxu0  ;;  %v20543_v54 = vand.u32 4294901760, %v20446_v10 }
 0x367   : > { %7013 = vmatprep.mubr.f32.mxu1 %v20529_v30  ;;  %11005 = vmatpush3.bf16.msra.mxu1 %v20532_v17  ;;  %v17694_v39 = vadd.f32 %v9446_v40, %v9366_v18  ;;  %v9455_v16 = vadd.f32 %v9454_v3, %v9453_v46  ;;  %v20539_v30 = vld [vmem:[#allocation42_spill] sm:$0xff]  ;;  %v9369_v22 = vadd.f32 %v9368_v51, %v9367_v56  ;;  %v20542_v40 = vand.u32 4294901760, %v20440_v36  ;;  %v9456_v17 = vpop.f32.mrb[220].mxu1  ;;  %v20544_v46 = vld [vmem:[#allocation75_spill] sm:$0xff]  ;;  %v9370_v56 = vpop.f32.mrb[216].mxu0 }
 0x368   : > { %6277 = vmatmul.mubr.f32.gmra.mrb[62].mxu0 %v6276_v28  ;;  %v20536_v28 = vld [vmem:[#allocation68_spill] sm:$0xff]  ;;  %v20540_v9 = vand.u32 4294901760, %v20539_v30  ;;  %v20545_v23 = vand.u32 4294901760, %v20544_v46  ;;  %v20547_v3 = vld [vmem:[#allocation18_spill] sm:$0xff] }
 0x369   : > { %6749 = vmatprep.mubr.f32.mxu0 %v16983_v19  ;;  %11007 = vmatprep.subr.bf16.mxu1 %v20536_v28  ;;  %v20537_v19 = vld [vmem:[#allocation56_spill] sm:$0xff]  ;;  %v10972_v18 = vpack.c.bf16 %v20542_v40, %v20541_v52  ;;  %v17711_v28 = vadd.f32 %v9449_v41, %v9369_v22  ;;  %v20552_v41 = vand.u32 4294901760, %v20451_v21  ;;  %v20554_v40 = vand.u32 4294901760, %v20456_v42  ;;  %v20558_v21 = vld [vmem:[#allocation43_spill] sm:$0xff] }
 0x36a   : > { %v20538_v63 = vand.u32 4294901760, %v20537_v19  ;;  %v10974_v45 = vpack.c.bf16 %v20545_v23, %v20543_v54  ;;  %v20559_v42 = vand.u32 4294901760, %v17216_v29 }
 0x36c   : > { %7017 = vmatmul.mubr.f32.gmra.mrb[68].mxu1 %v20538_v63  ;;  %6752 = vmatmul.mubr.f32.vlgmr.msra.gmra.mrb[64].mxu0 %v20523_v11  ;;  %v20546_v11 = vld [vmem:[#allocation29_spill] sm:$0xff]  ;;  %v9371_v63 = vpop.f32.mrb[217].mxu0 }
 0x36d   : > { %7024 = vmatprep.mubr.f32.mxu1 %v20540_v9  ;;  %10969 = vmatpush3.bf16.msra.mxu0 %v10968_v6  ;;  %v9457_v6 = vpop.f32.mrb[221].mxu1  ;;  %v9372_v51 = vadd.f32 %v9371_v63, %v9370_v56  ;;  %v20553_v9 = vand.u32 4294901760, %v20450_v60  ;;  %v9373_v23 = vpop.f32.mrb[218].mxu0 }
 0x36e   : > { %6758 = vmatprep.mubr.f32.mxu0 %v17033_v48  ;;  %10971 = vmatprep.subr.bf16.mxu0 %v10970_v1  ;;  %v20548_v48 = vand.u32 4294901760, %v20547_v3  ;;  %v9458_v36 = vadd.f32 %v9457_v6, %v9456_v17  ;;  %v20550_v1 = vld [vmem:[#allocation88_spill] sm:$0xff]  ;;  %v9459_v52 = vpop.f32.mrb[222].mxu1  ;;  %v20555_v17 = vand.u32 4294901760, %v20455_v47 }
 0x36f   : > { %11009 = vmatpush3.bf16.msra.mxu1 %v20546_v11  ;;  %v20551_v10 = vand.u32 4294901760, %v20550_v1  ;;  %v10976_v22 = vpack.c.bf16 %v20553_v9, %v20552_v41  ;;  %v17729_v46 = vadd.f32 %v9452_v15, %v9372_v51  ;;  %v9460_v11 = vpop.f32.mrb[223].mxu1  ;;  %v20560_v15 = vand.u32 4294901760, %v20462_v59  ;;  %v20566_v59 = vld [vmem:[#allocation13_spill] sm:$0xff] }
 0x370   : > { %7028 = vmatmul.mubr.f32.gmra.mrb[70].mxu1 %v20548_v48  ;;  %11011 = vmatprep.subr.bf16.mxu1 %v20549_v4  ;;  %v10978_v54 = vpack.c.bf16 %v20555_v17, %v20554_v40  ;;  %v9461_v60 = vadd.f32 %v9460_v11, %v9459_v52  ;;  %v9574_v6 = vpop.f32.mrb[224].mxu1  ;;  %v20562_v48 = vand.u32 4294901760, %v20466_v25  ;;  %v20563_v4 = vand.u32 4294901760, %v20465_v62  ;;  %v20570_v40 = vld [vmem:[#allocation53_spill] sm:$0xff] }
 0x371   : > { %6761 = vmatmul.mubr.f32.gmra.mrb[66].mxu0 %v17061_v20  ;;  %7035 = vmatprep.mubr.f32.mxu1 %v20551_v10  ;;  %v20556_v20 = vld [vmem:[#allocation14_spill] sm:$0xff]  ;;  %v9575_v51 = vpop.f32.mrb[225].mxu1  ;;  %v20567_v25 = vand.u32 4294901760, %v17259_v43  ;;  %v20571_v17 = vand.u32 4294901760, %v20570_v40 }
 0x372   : > { %6767 = vmatprep.mubr.f32.mxu0 %v20528_v34  ;;  %10973 = vmatpush3.bf16.msra.mxu0 %v10972_v18  ;;  %v20557_v34 = vand.u32 4294901760, %v17163_v14  ;;  %v9374_v18 = vpop.f32.mrb[219].mxu0  ;;  %v10982_v63 = vpack.c.bf16 %v20563_v4, %v20562_v48  ;;  %v9577_v52 = vpop.f32.mrb[226].mxu1 }
 0x373   : > { %10975 = vmatprep.subr.bf16.mxu0 %v10974_v45  ;;  %11013 = vmatpush3.bf16.msra.mxu1 %v20556_v20  ;;  %v9375_v47 = vadd.f32 %v9374_v18, %v9373_v23  ;;  %v20561_v45 = vand.u32 4294901760, %v20461_v26  ;;  %v9376_v10 = vpop.f32.mrb[220].mxu0  ;;  %v9576_v26 = vadd.f32 %v9575_v51, %v9574_v6  ;;  %v20582_v6 = vld [vmem:[#allocation33_spill] sm:$0xff] }
 0x374   : > { %7039 = vmatmul.mubr.f32.gmra.mrb[72].mxu1 %v20557_v34  ;;  %11015 = vmatprep.subr.bf16.mxu1 %v20558_v21  ;;  %v9377_v9 = vpop.f32.mrb[221].mxu0  ;;  %v9578_v21 = vpop.f32.mrb[227].mxu1  ;;  %v20583_v48 = vand.u32 4294901760, %v20582_v6 }
 0x375   : > { %6770 = vmatmul.mubr.f32.gmra.mrb[68].mxu0 %v20537_v19  ;;  %7046 = vmatprep.mubr.f32.mxu1 %v20559_v42  ;;  %v10980_v56 = vpack.c.bf16 %v20561_v45, %v20560_v15  ;;  %v17747_v19 = vadd.f32 %v9455_v16, %v9375_v47  ;;  %v9378_v62 = vadd.f32 %v9377_v9, %v9376_v10  ;;  %v20569_v16 = vand.u32 4294901760, %v20471_v49  ;;  %v9379_v34 = vpop.f32.mrb[222].mxu0  ;;  %v20578_v47 = vld [vmem:[#allocation58_spill] sm:$0xff] }
 0x376   : > { %6776 = vmatprep.mubr.f32.mxu0 %v20539_v30  ;;  %10977 = vmatpush3.bf16.msra.mxu0 %v10976_v22  ;;  %v20564_v30 = vld [vmem:[#allocation62_spill] sm:$0xff]  ;;  %v9579_v49 = vadd.f32 %v9578_v21, %v9577_v52  ;;  %v9380_v42 = vpop.f32.mrb[223].mxu0  ;;  %v20579_v15 = vand.u32 4294901760, %v20578_v47  ;;  %v20596_v21 = vld [vmem:[#allocation47_spill] sm:$0xff] }
 0x377   : > { %10979 = vmatprep.subr.bf16.mxu0 %v10978_v54  ;;  %11017 = vmatpush3.bf16.msra.mxu1 %v16757_v12  ;;  %v20565_v41 = vand.u32 4294901760, %v20564_v30  ;;  %v20568_v12 = vand.u32 4294901760, %v20472_v50  ;;  %v20572_v54 = vld [vmem:[#allocation37_spill] sm:$0xff]  ;;  %v17765_v11 = vadd.f32 %v9458_v36, %v9378_v62  ;;  %v9381_v45 = vadd.f32 %v9380_v42, %v9379_v34  ;;  %v20580_v36 = vld [vmem:[#allocation86_spill] sm:$0xff]  ;;  %v9494_v62 = vpop.f32.mrb[224].mxu0 }
 0x378   : > { %11019 = vmatprep.subr.bf16.mxu1 %v20566_v59  ;;  %v20573_v20 = vand.u32 4294901760, %v20572_v54  ;;  %v20577_v50 = vld [vmem:[#allocation57_spill] sm:$0xff]  ;;  %v20584_v10 = vld [vmem:[#allocation70_spill] sm:$0xff]  ;;  %v9495_v40 = vpop.f32.mrb[225].mxu0 }
 0x379   : > { %7050 = vmatmul.mubr.f32.gmra.mrb[74].mxu1 %v20565_v41  ;;  %6779 = vmatmul.mubr.f32.gmra.mrb[70].mxu0 %v20547_v3  ;;  %v10984_v22 = vpack.c.bf16 %v20569_v16, %v20568_v12  ;;  %v20574_v3 = vld [vmem:[#allocation79_spill] sm:$0xff]  ;;  %v20585_v51 = vand.u32 4294901760, %v20584_v10  ;;  %v20586_v41 = vld [vmem:[#allocation49_spill] sm:$0xff] }
 0x37a   : > { %7057 = vmatprep.mubr.f32.mxu1 %v20567_v25  ;;  %6785 = vmatprep.mubr.f32.mxu0 %v20550_v1  ;;  %v10986_v23 = vpack.c.bf16 %v20573_v20, %v20571_v17  ;;  %v20575_v1 = vld [vmem:[#allocation35_spill] sm:$0xff]  ;;  %v20587_v59 = vand.u32 4294901760, %v20586_v41  ;;  %v17783_v25 = vadd.f32 %v9461_v60, %v9381_v45  ;;  %v20592_v17 = vld [vmem:[#allocation64_spill] sm:$0xff]  ;;  %v9496_v20 = vadd.f32 %v9495_v40, %v9494_v62  ;;  %v20599_v42 = vld [vmem:[#allocation25_spill] sm:$0xff]  ;;  %v9497_v45 = vpop.f32.mrb[226].mxu0 }
 0x37b   : > { %10981 = vmatpush3.bf16.msra.mxu0 %v10980_v56  ;;  %11021 = vmatpush3.bf16.msra.mxu1 %v20574_v3  ;;  %v20576_v18 = vand.u32 4294901760, %v20575_v1  ;;  %v20581_v56 = vand.u32 4294901760, %v20580_v36  ;;  %v20593_v54 = vand.u32 4294901760, %v20592_v17  ;;  %v20594_v60 = vand.u32 4294901760, %v20496_v58  ;;  %v9498_v6 = vpop.f32.mrb[227].mxu0  ;;  %v20606_v41 = vld [vmem:[#allocation65_spill] sm:$0xff] }
 0x37c   : > { %10983 = vmatprep.subr.bf16.mxu0 %v10982_v63  ;;  %11023 = vmatprep.subr.bf16.mxu1 %v20577_v50  ;;  %v9580_v63 = vpop.f32.mrb[228].mxu1  ;;  %v10990_v9 = vpack.c.bf16 %v20587_v59, %v20585_v51  ;;  %v20611_v40 = vld [vmem:[#allocation81_spill] sm:$0xff] }
 0x37d   : > { %7061 = vmatmul.mubr.f32.gmra.mrb[76].mxu1 %v20576_v18  ;;  %6788 = vmatmul.mubr.f32.gmra.mrb[72].mxu0 %v17163_v14  ;;  %v10988_v4 = vpack.c.bf16 %v20583_v48, %v20581_v56  ;;  %v20588_v14 = vld [vmem:[#allocation67_spill] sm:$0xff]  ;;  %v9581_v12 = vpop.f32.mrb[229].mxu1  ;;  %v20597_v18 = vand.u32 4294901760, %v20500_v53  ;;  %v20605_v53 = vand.u32 4294901760, %v20510_v8 }
 0x37e   : > { %7068 = vmatprep.mubr.f32.mxu1 %v20579_v15  ;;  %6794 = vmatprep.mubr.f32.mxu0 %v17216_v29  ;;  %v20589_v29 = vld [vmem:[#allocation45_spill] sm:$0xff]  ;;  %v9582_v52 = vadd.f32 %v9581_v12, %v9580_v63  ;;  %v9583_v34 = vpop.f32.mrb[230].mxu1  ;;  %v5052_v15 = vadd.f32 %v9496_v20, %v20599_v42 }
 0x37f   : > { %10985 = vmatpush3.bf16.msra.mxu0 %v10984_v22  ;;  %11025 = vmatpush3.bf16.msra.mxu1 %v20588_v14  ;;  %v20590_v16 = vand.u32 4294901760, %v20589_v29  ;;  %v20591_v22 = vld [vmem:[#allocation48_spill] sm:$0xff]  ;;  %v9584_v36 = vpop.f32.mrb[231].mxu1 }
 0x380   : > { %10987 = vmatprep.subr.bf16.mxu0 %v10986_v23  ;;  %11027 = vmatprep.subr.bf16.mxu1 %v20591_v22  ;;  %v20595_v23 = vand.u32 4294901760, %v20495_v57  ;;  %v9585_v58 = vadd.f32 %v9584_v36, %v9583_v34  ;;  %v20602_v57 = vld [vmem:[#allocation31_spill] sm:$0xff]  ;;  %v17812_v10 = vadd.f32 %v9576_v26, %v5052_v15  ;;  %v9586_v51 = vpop.f32.mrb[232].mxu1  ;;  %v20607_v14 = vld [vmem:[#allocation36_spill] sm:$0xff] }
 0x381   : > { %7072 = vmatmul.mubr.f32.gmra.mrb[78].mxu1 %v20590_v16  ;;  %6797 = vmatmul.mubr.f32.gmra.mrb[74].mxu0 %v20564_v30  ;;  %v20598_v30 = vand.u32 4294901760, %v20499_v35  ;;  %v20603_v48 = vand.u32 4294901760, %v20602_v57  ;;  %v20604_v35 = vand.u32 4294901760, %v20511_v33  ;;  %v20608_v62 = vand.u32 4294901760, %v20607_v14 }
 0x382   : > { %7079 = vmatprep.mubr.f32.mxu1 %v20593_v54  ;;  %6803 = vmatprep.mubr.f32.mxu0 %v17259_v43  ;;  %v10992_v3 = vpack.c.bf16 %v20595_v23, %v20594_v60  ;;  %v20600_v43 = vld [vmem:[#allocation51_spill] sm:$0xff]  ;;  %v20612_v23 = vand.u32 4294901760, %v17451_v0 }
 0x383   : > { %10989 = vmatpush3.bf16.msra.mxu0 %v10988_v4  ;;  %11029 = vmatpush3.bf16.msra.mxu1 %v20596_v21  ;;  %v10994_v50 = vpack.c.bf16 %v20598_v30, %v20597_v18  ;;  %v20601_v56 = vand.u32 4294901760, %v20600_v43  ;;  %v9499_v4 = vadd.f32 %v9498_v6, %v9497_v45  ;;  %v10996_v63 = vpack.c.bf16 %v20605_v53, %v20604_v35  ;;  %v20615_v30 = vld [vmem:[#allocation59_spill] sm:$0xff] }
 0x384   : > { %10991 = vmatprep.subr.bf16.mxu0 %v10990_v9  ;;  %v9500_v9 = vpop.f32.mrb[228].mxu0  ;;  %v20616_v45 = vld [vmem:[#allocation39_spill] sm:$0xff] }
 0x385   : > { %7083 = vmatmul.mubr.f32.gmra.mrb[80].mxu1 %v20601_v56  ;;  %6806 = vmatmul.mubr.f32.gmra.mrb[76].mxu0 %v20575_v1  ;;  %v5061_v59 = vadd.f32 %v9499_v4, %v20606_v41  ;;  %v9587_v1 = vpop.f32.mrb[233].mxu1  ;;  %v9501_v16 = vpop.f32.mrb[229].mxu0  ;;  %v20617_v36 = vand.u32 4294901760, %v20616_v45  ;;  %v20620_v35 = vld [vmem:[#allocation19_spill] sm:$0xff]  ;;  %v20621_v41 = vand.u32 4294901760, %v17540_v55 }
 0x386   : > { %7090 = vmatprep.mubr.f32.mxu1 %v20603_v48  ;;  %6812 = vmatprep.mubr.f32.mxu0 %v20578_v47  ;;  %v9588_v12 = vadd.f32 %v9587_v1, %v9586_v51  ;;  %v20609_v47 = vld [vmem:[#allocation82_spill] sm:$0xff]  ;;  %v9502_v8 = vadd.f32 %v9501_v16, %v9500_v9  ;;  %v9589_v22 = vpop.f32.mrb[234].mxu1  ;;  %v9503_v20 = vpop.f32.mrb[230].mxu0  ;;  %v20622_v1 = vand.u32 4294901760, %v17558_v7 }
 0x387   : > { %10993 = vmatpush3.bf16.msra.mxu0 %v10992_v3  ;;  %v20610_v33 = vand.u32 4294901760, %v20609_v47  ;;  %v17821_v26 = vadd.f32 %v9579_v49, %v5061_v59  ;;  %v9590_v60 = vpop.f32.mrb[235].mxu1  ;;  %v9504_v34 = vpop.f32.mrb[231].mxu0 }
 0x388   : > { %10995 = vmatprep.subr.bf16.mxu0 %v10994_v50  ;;  %v5070_v54 = vadd.f32 %v9502_v8, %v20611_v40  ;;  %v9591_v3 = vadd.f32 %v9590_v60, %v9589_v22  ;;  %v9505_v18 = vadd.f32 %v9504_v34, %v9503_v20  ;;  %v9506_v42 = vpop.f32.mrb[232].mxu0  ;;  %v20623_v8 = vand.u32 4294901760, %v17563_v44 }
 0x389   : > { %7094 = vmatmul.mubr.f32.gmra.mrb[82].mxu1 %v20608_v62  ;;  %6815 = vmatmul.mubr.f32.gmra.mrb[78].mxu0 %v20589_v29  ;;  %v20613_v29 = vld [vmem:[#allocation74_spill] sm:$0xff]  ;;  %v9507_v6 = vpop.f32.mrb[233].mxu0  ;;  %v20625_v34 = vand.u32 4294901760, %v17609_v38 }
 0x38a   : > { %7101 = vmatprep.mubr.f32.mxu1 %v20610_v33  ;;  %6821 = vmatprep.mubr.f32.mxu0 %v20592_v17  ;;  %v20614_v21 = vand.u32 4294901760, %v20613_v29  ;;  %v17830_v49 = vadd.f32 %v9582_v52, %v5070_v54  ;;  %v9592_v17 = vpop.f32.mrb[236].mxu1  ;;  %v5079_v50 = vadd.f32 %v9505_v18, %v20615_v30  ;;  %v9508_v4 = vadd.f32 %v9507_v6, %v9506_v42 }
 0x38b   : > { %10997 = vmatpush3.bf16.msra.mxu0 %v10996_v63  ;;  %v9593_v15 = vpop.f32.mrb[237].mxu1  ;;  %v9509_v63 = vpop.f32.mrb[234].mxu0  ;;  %v20626_v18 = vand.u32 4294901760, %v17621_v13 }
 0x38c   : > { %v9594_v56 = vadd.f32 %v9593_v15, %v9592_v17  ;;  %v17839_v52 = vadd.f32 %v9585_v58, %v5079_v50  ;;  %v5088_v53 = vadd.f32 %v9508_v4, %v20620_v35  ;;  %v9510_v9 = vpop.f32.mrb[235].mxu0  ;;  %v20627_v15 = vand.u32 4294901760, %v17631_v27 }
 0x38d   : > { %7105 = vmatmul.mubr.f32.gmra.mrb[84].mxu1 %v20612_v23  ;;  %6824 = vmatmul.mubr.f32.gmra.mrb[80].mxu0 %v20600_v43  ;;  %v20618_v43 = vld [vmem:[#allocation77_spill] sm:$0xff] }
 0x38e   : > { %7112 = vmatprep.mubr.f32.mxu1 %v20614_v21  ;;  %6830 = vmatprep.mubr.f32.mxu0 %v20602_v57  ;;  %v20619_v48 = vand.u32 4294901760, %v20618_v43  ;;  %v9595_v57 = vpop.f32.mrb[238].mxu1  ;;  %v17848_v58 = vadd.f32 %v9588_v12, %v5088_v53 }
 0x38f   : > { %v9596_v51 = vpop.f32.mrb[239].mxu1 }
 0x390   : > { %v9597_v59 = vadd.f32 %v9596_v51, %v9595_v57  ;;  %v9598_v62 = vpop.f32.mrb[240].mxu1  ;;  %v20630_v57 = vld [vmem:[#allocation34_spill] sm:$0xff] }
 0x391   : > { %7116 = vmatmul.mubr.f32.gmra.mrb[86].mxu1 %v20617_v36  ;;  %6833 = vmatmul.mubr.f32.gmra.mrb[82].mxu0 %v20607_v14  ;;  %v9511_v14 = vadd.f32 %v9510_v9, %v9509_v63  ;;  %v9599_v33 = vpop.f32.mrb[241].mxu1 }
 0x392   : > { %7123 = vmatprep.mubr.f32.mxu1 %v20619_v48  ;;  %6839 = vmatprep.mubr.f32.mxu0 %v20609_v47  ;;  %v9512_v47 = vpop.f32.mrb[236].mxu0  ;;  %v9600_v22 = vadd.f32 %v9599_v33, %v9598_v62  ;;  %v9601_v20 = vpop.f32.mrb[242].mxu1 }
 0x393   : > { %v5097_v16 = vadd.f32 %v9511_v14, %v17615_v37  ;;  %v9513_v40 = vpop.f32.mrb[237].mxu0  ;;  %v9602_v23 = vpop.f32.mrb[243].mxu1 }
 0x394   : > { %v9514_v54 = vadd.f32 %v9513_v40, %v9512_v47  ;;  %v9515_v60 = vpop.f32.mrb[238].mxu0 }
 0x395   : > { %7127 = vmatmul.mubr.f32.gmra.mrb[88].mxu1 %v20621_v41  ;;  %6842 = vmatmul.mubr.f32.gmra.mrb[84].mxu0 %v17451_v0  ;;  %v20624_v0 = vand.u32 4294901760, %v17594_v2  ;;  %v17857_v12 = vadd.f32 %v9591_v3, %v5097_v16  ;;  %v9516_v21 = vpop.f32.mrb[239].mxu0  ;;  %v9604_v30 = vpop.f32.mrb[244].mxu1 }
 0x396   : > { %7134 = vmatprep.mubr.f32.mxu1 %v20622_v1  ;;  %6848 = vmatprep.mubr.f32.mxu0 %v20613_v29  ;;  %v5106_v37 = vadd.f32 %v9514_v54, %v17637_v32  ;;  %v9603_v29 = vadd.f32 %v9602_v23, %v9601_v20  ;;  %v9517_v17 = vadd.f32 %v9516_v21, %v9515_v60  ;;  %v9518_v50 = vpop.f32.mrb[240].mxu0  ;;  %v9605_v42 = vpop.f32.mrb[245].mxu1  ;;  %v20634_v23 = vld [vmem:[#allocation84_spill] sm:$0xff] }
 0x397   : > { %v9519_v36 = vpop.f32.mrb[241].mxu0 }
 0x398   : > { %v17866_v3 = vadd.f32 %v9594_v56, %v5106_v37  ;;  %v5115_v32 = vadd.f32 %v9517_v17, %v17655_v5  ;;  %v9521_v48 = vpop.f32.mrb[242].mxu0 }
 0x399   : > { %7138 = vmatmul.mubr.f32.gmra.mrb[90].mxu1 %v20623_v8  ;;  %6851 = vmatmul.mubr.f32.gmra.mrb[86].mxu0 %v20616_v45  ;;  %v9606_v45 = vadd.f32 %v9605_v42, %v9604_v30  ;;  %v9522_v35 = vpop.f32.mrb[243].mxu0 }
 0x39a   : > { %7145 = vmatprep.mubr.f32.mxu1 %v20624_v0  ;;  %6857 = vmatprep.mubr.f32.mxu0 %v20618_v43  ;;  %v17877_v56 = vadd.f32 %v9597_v59, %v5115_v32 }
 0x39b   : > { %v9607_v5 = vpop.f32.mrb[246].mxu1  ;;  %v9524_v41 = vpop.f32.mrb[244].mxu0 }
 0x39c   : > { %v9608_v4 = vpop.f32.mrb[247].mxu1  ;;  %v9525_v9 = vpop.f32.mrb[245].mxu0 }
 0x39d   : > { %7149 = vmatmul.mubr.f32.gmra.mrb[92].mxu1 %v20625_v34  ;;  %6860 = vmatmul.mubr.f32.gmra.mrb[88].mxu0 %v17540_v55  ;;  %v20628_v55 = vld [vmem:[#allocation11_spill] sm:$0xff] }
 0x39e   : > { %7156 = vmatprep.mubr.f32.mxu1 %v20626_v18  ;;  %6866 = vmatprep.mubr.f32.mxu0 %v17558_v7  ;;  %v9520_v7 = vadd.f32 %v9519_v36, %v9518_v50  ;;  %v20637_v50 = vld [vmem:[#allocation60_spill] sm:$0xff] }
 0x39f   : > { %v9610_v63 = vpop.f32.mrb[248].mxu1 }
 0x3a0   : > { %v5124_v43 = vadd.f32 %v9520_v7, %v17669_v31  ;;  %v9611_v59 = vpop.f32.mrb[249].mxu1  ;;  %v9527_v16 = vpop.f32.mrb[246].mxu0 }
 0x3a1   : > { %7160 = vmatmul.mubr.f32.gmra.mrb[94].mxu1 %v20627_v15  ;;  %6869 = vmatmul.mubr.f32.gmra.mrb[90].mxu0 %v17563_v44  ;;  %v9609_v44 = vadd.f32 %v9608_v4, %v9607_v5  ;;  %v9528_v33 = vpop.f32.mrb[247].mxu0 }
 0x3a2   : > { %8304 = vmatprep.mubr.msk.f32.mxu1 %vm3989_vm1, %v20283_v24  ;;  %6875 = vmatprep.mubr.f32.mxu0 %v17594_v2  ;;  %v9523_v2 = vadd.f32 %v9522_v35, %v9521_v48  ;;  %v17890_v31 = vadd.f32 %v9600_v22, %v5124_v43  ;;  %v20640_v43 = vld [vmem:[#allocation21_spill] sm:$0xff] }
 0x3a3   : > { %v9613_v14 = vpop.f32.mrb[250].mxu1 }
 0x3a4   : > { %v5133_v51 = vadd.f32 %v9523_v2, %v17677_v61  ;;  %v9614_v47 = vpop.f32.mrb[251].mxu1  ;;  %v9530_v54 = vpop.f32.mrb[248].mxu0 }
 0x3a5   : > { %8305 = vmatmul.mubr.msk.f32.vlgmr.msra.gmra.mrb[96].mxu1 %vm3988_vm9, %v20283_v24  ;;  %6878 = vmatmul.mubr.f32.gmra.mrb[92].mxu0 %v17609_v38  ;;  %v9612_v38 = vadd.f32 %v9611_v59, %v9610_v63  ;;  %v9531_v60 = vpop.f32.mrb[249].mxu0 }
 0x3a6   : > { %8306 = vmatprep.mubr.msk.f32.mxu1 %vm3993_vm2, %v20283_v24  ;;  %6884 = vmatprep.mubr.f32.mxu0 %v17621_v13  ;;  %v9526_v13 = vadd.f32 %v9525_v9, %v9524_v41  ;;  %v17906_v61 = vadd.f32 %v9603_v29, %v5133_v51  ;;  %v20645_v51 = vld [vmem:[#allocation72_spill] sm:$0xff] }
 0x3a7   : > { %v9616_v40 = vpop.f32.mrb[252].mxu1 }
 0x3a8   : > { %v5142_v62 = vadd.f32 %v9526_v13, %v17694_v39  ;;  %v9529_v39 = vadd.f32 %v9528_v33, %v9527_v16  ;;  %v9617_v20 = vpop.f32.mrb[253].mxu1  ;;  %v9533_v18 = vpop.f32.mrb[250].mxu0 }
 0x3a9   : > { %8307 = vmatmul.mubr.msk.f32.gmra.mrb[98].mxu1 %vm3992_vm0, %v20283_v24  ;;  %6887 = vmatmul.mubr.f32.gmra.mrb[94].mxu0 %v17631_v27  ;;  %v9615_v27 = vadd.f32 %v9614_v47, %v9613_v14  ;;  %v9618_v37 = vadd.f32 %v9617_v20, %v9616_v40  ;;  %v9534_v32 = vpop.f32.mrb[251].mxu0 }
 0x3aa   : > { %8308 = vmatprep.mubr.msk.f32.mxu1 %vm3997_vm14, %v20283_v24  ;;  %8272 = vmatprep.mubr.msk.f32.mxu0 %vm3989_vm1, %v20283_v24  ;;  %v17925_v22 = vadd.f32 %v9606_v45, %v5142_v62  ;;  %v5151_v0 = vadd.f32 %v9529_v39, %v17711_v28  ;;  %v9532_v28 = vadd.f32 %v9531_v60, %v9530_v54  ;;  %v20649_v62 = vld [vmem:[#allocation54_spill] sm:$0xff] }
 0x3ab   : > { %vm20636_vm1 = vcmp.eq.s32.totalorder %v20630_v57, %v20634_v23 }
 0x3ac   : > { %v17944_v34 = vadd.f32 %v9609_v44, %v5151_v0  ;;  %v5160_v21 = vadd.f32 %v9532_v28, %v17729_v46  ;;  %v9535_v46 = vadd.f32 %v9534_v32, %v9533_v18  ;;  %v9536_v36 = vpop.f32.mrb[252].mxu0  ;;  %v20654_v0 = vld [vmem:[#allocation32_spill] sm:$0xff] }
 0x3ad   : > { %8309 = vmatmul.mubr.msk.f32.gmra.mrb[100].mxu1 %vm3996_vm13, %v20283_v24  ;;  %8273 = vmatmul.mubr.msk.f32.vlgmr.msra.gmra.mrb[96].mxu0 %vm3988_vm9, %v20283_v24  ;;  %vm20635_vm9 = vcmp.eq.s32.totalorder %v20628_v55, %v20634_v23  ;;  %v9537_v5 = vpop.f32.mrb[253].mxu0 }
 0x3ae   : > { %8310 = vmatprep.mubr.msk.f32.mxu1 %vm4001_vm6, %v20283_v24  ;;  %8274 = vmatprep.mubr.msk.f32.mxu0 %vm3993_vm2, %v20283_v24  ;;  %v9619_v29 = vpop.f32.mrb[254].mxu1  ;;  %vm20638_vm2 = vcmp.eq.s32.totalorder %v20628_v55, %v20637_v50  ;;  %v17963_v42 = vadd.f32 %v9612_v38, %v5160_v21  ;;  %v5169_v45 = vadd.f32 %v9535_v46, %v17747_v19  ;;  %v20659_v21 = vld [vmem:[#allocation69_spill] sm:$0xff] }
 0x3af   : > { %v9620_v17 = vpop.f32.mrb[255].mxu1  ;;  %v9538_v19 = vadd.f32 %v9537_v5, %v9536_v36 }
 0x3b0   : > { %v9621_v30 = vadd.f32 %v9620_v17, %v9619_v29  ;;  %v17982_v48 = vadd.f32 %v9615_v27, %v5169_v45  ;;  %v9539_v35 = vpop.f32.mrb[254].mxu0  ;;  %v20664_v45 = vld [vmem:[#allocation9_spill] sm:$0xff] }
 0x3b1   : > { %8311 = vmatmul.mubr.msk.f32.gmra.mrb[102].mxu1 %vm4000_vm8, %v20283_v24  ;;  %8275 = vmatmul.mubr.msk.f32.gmra.mrb[98].mxu0 %vm3992_vm0, %v20283_v24  ;;  %vm20639_vm0 = vcmp.eq.s32.totalorder %v20630_v57, %v20637_v50  ;;  %v5178_v44 = vadd.f32 %v9538_v19, %v17765_v11  ;;  %v9540_v63 = vpop.f32.mrb[255].mxu0 }
 0x3b2   : > { %8312 = vmatprep.mubr.msk.f32.mxu1 %vm20635_vm9, %v20283_v24  ;;  %8276 = vmatprep.mubr.msk.f32.mxu0 %vm3997_vm14, %v20283_v24  ;;  %v9734_v15 = vpop.f32.mrb[0].mxu1  ;;  %vm20641_vm14 = vcmp.eq.s32.totalorder %v20628_v55, %v20640_v43  ;;  %v9541_v11 = vadd.f32 %v9540_v63, %v9539_v35 }
 0x3b3   : > { %v9735_v6 = vpop.f32.mrb[1].mxu1  ;;  %v18001_v41 = vadd.f32 %v9618_v37, %v5178_v44 }
 0x3b4   : > { %v9736_v7 = vadd.f32 %v9735_v6, %v9734_v15  ;;  %v5187_v38 = vadd.f32 %v9541_v11, %v17783_v25  ;;  %v9654_v9 = vpop.f32.mrb[0].mxu0 }
 0x3b5   : > { %8313 = vmatmul.mubr.msk.f32.gmra.mrb[104].mxu1 %vm20636_vm1, %v20283_v24  ;;  %8277 = vmatmul.mubr.msk.f32.gmra.mrb[100].mxu0 %vm3996_vm13, %v20283_v24  ;;  %vm20642_vm13 = vmmov %vm20635_vm9  ;;  %vm20646_vm9 = vcmp.eq.s32.totalorder %v20628_v55, %v20645_v51  ;;  %v9655_v14 = vpop.f32.mrb[1].mxu0 }
 0x3b6   : > { %8314 = vmatprep.mubr.msk.f32.mxu1 %vm20638_vm2, %v20283_v24  ;;  %8278 = vmatprep.mubr.msk.f32.mxu0 %vm4001_vm6, %v20283_v24  ;;  %v9737_v4 = vpop.f32.mrb[2].mxu1  ;;  %vm20644_vm6 = vmmov %vm20636_vm1  ;;  %v9656_v25 = vadd.f32 %v9655_v14, %v9654_v9  ;;  %v18020_v16 = vadd.f32 %v9621_v30, %v5187_v38 }
 0x3b7   : > { %v9738_v53 = vpop.f32.mrb[3].mxu1  ;;  %vm20647_vm1 = vmmov %vm20638_vm2  ;;  %vm20648_vm2 = vcmp.eq.s32.totalorder %v20630_v57, %v20645_v51 }
 0x3b8   : > { %v9739_v2 = vadd.f32 %v9738_v53, %v9737_v4  ;;  %v5628_v27 = vadd.f32 %v9656_v25, %v17812_v10  ;;  %v9657_v33 = vpop.f32.mrb[2].mxu0 }
 0x3b9   : > { %8315 = vmatmul.mubr.msk.f32.gmra.mrb[106].mxu1 %vm20639_vm0, %v20283_v24  ;;  %8279 = vmatmul.mubr.msk.f32.gmra.mrb[102].mxu0 %vm4000_vm8, %v20283_v24  ;;  %vm20643_vm8 = vcmp.eq.s32.totalorder %v20630_v57, %v20640_v43  ;;  %v9658_v40 = vpop.f32.mrb[3].mxu0 }
 0x3ba   : > { %8316 = vmatprep.mubr.msk.f32.mxu1 %vm20641_vm14, %v20283_v24  ;;  %8280 = vmatprep.mubr.msk.f32.mxu0 %vm20642_vm13, %v20283_v24  ;;  %v9740_v59 = vpop.f32.mrb[4].mxu1  ;;  %vm20650_vm14 = vcmp.eq.s32.totalorder %v20628_v55, %v20649_v62  ;;  %vm20651_vm13 = vcmp.eq.s32.totalorder %v20628_v55, %v20640_v43  ;;  %v9659_v10 = vadd.f32 %v9658_v40, %v9657_v33 }
 0x3bb   : > { %v9741_v1 = vpop.f32.mrb[5].mxu1  ;;  %v18039_v54 = vadd.f32 %v9736_v7, %v5628_v27 }
 0x3bc   : > { %v9742_v13 = vadd.f32 %v9741_v1, %v9740_v59  ;;  %v5635_v37 = vadd.f32 %v9659_v10, %v17821_v26 }
 0x3bd   : > { %8317 = vmatmul.mubr.msk.f32.gmra.mrb[108].mxu1 %vm20643_vm8, %v20283_v24  ;;  %8281 = vmatmul.mubr.msk.f32.gmra.mrb[104].mxu0 %vm20644_vm6, %v20283_v24  ;;  %vm20652_vm8 = vcmp.eq.s32.totalorder %v20630_v57, %v20649_v62  ;;  %vm20653_vm6 = vcmp.eq.s32.totalorder %v20630_v57, %v20640_v43  ;;  %v9660_v60 = vpop.f32.mrb[4].mxu0 }
 0x3be   : > { %8318 = vmatprep.mubr.msk.f32.mxu1 %vm20646_vm9, %v20283_v24  ;;  %8282 = vmatprep.mubr.msk.f32.mxu0 %vm20647_vm1, %v20283_v24  ;;  %v9743_v47 = vpop.f32.mrb[6].mxu1  ;;  %vm20655_vm9 = vcmp.eq.s32.totalorder %v20628_v55, %v20654_v0  ;;  %vm20656_vm1 = vcmp.eq.s32.totalorder %v20628_v55, %v20645_v51  ;;  %v9661_v29 = vpop.f32.mrb[5].mxu0  ;;  %v18058_v18 = vadd.f32 %v9739_v2, %v5635_v37 }
 0x3bf   : > { %v9744_v8 = vpop.f32.mrb[7].mxu1  ;;  %v9662_v26 = vadd.f32 %v9661_v29, %v9660_v60 }
 0x3c0   : > { %v9745_v39 = vadd.f32 %v9744_v8, %v9743_v47 }
 0x3c1   : > { %8319 = vmatmul.mubr.msk.f32.gmra.mrb[110].mxu1 %vm20648_vm2, %v20283_v24  ;;  %8283 = vmatmul.mubr.msk.f32.gmra.mrb[106].mxu0 %vm20639_vm0, %v20283_v24  ;;  %vm20657_vm2 = vcmp.eq.s32.totalorder %v20630_v57, %v20654_v0  ;;  %vm20658_vm0 = vcmp.eq.s32.totalorder %v20630_v57, %v20645_v51  ;;  %v5642_v30 = vadd.f32 %v9662_v26, %v17830_v49  ;;  %v9663_v32 = vpop.f32.mrb[6].mxu0 }
 0x3c2   : > { %8320 = vmatprep.mubr.msk.f32.mxu1 %vm20650_vm14, %v20283_v24  ;;  %8284 = vmatprep.mubr.msk.f32.mxu0 %vm20651_vm13, %v20283_v24  ;;  %v9746_v20 = vpop.f32.mrb[8].mxu1  ;;  %vm20660_vm14 = vcmp.eq.s32.totalorder %v20628_v55, %v20659_v21  ;;  %vm20661_vm13 = vcmp.eq.s32.totalorder %v20628_v55, %v20649_v62  ;;  %v9664_v15 = vpop.f32.mrb[7].mxu0 }
 0x3c3   : > { %v9747_v23 = vpop.f32.mrb[9].mxu1  ;;  %v9665_v49 = vadd.f32 %v9664_v15, %v9663_v32  ;;  %v18077_v36 = vadd.f32 %v9742_v13, %v5642_v30 }
 0x3c4   : > { %v9748_v28 = vadd.f32 %v9747_v23, %v9746_v20 }
 0x3c5   : > { %8321 = vmatmul.mubr.msk.f32.gmra.mrb[112].mxu1 %vm20652_vm8, %v20283_v24  ;;  %8285 = vmatmul.mubr.msk.f32.gmra.mrb[108].mxu0 %vm20653_vm6, %v20283_v24  ;;  %vm20662_vm8 = vcmp.eq.s32.totalorder %v20630_v57, %v20659_v21  ;;  %vm20663_vm6 = vcmp.eq.s32.totalorder %v20630_v57, %v20649_v62  ;;  %v5649_v7 = vadd.f32 %v9665_v49, %v17839_v52  ;;  %v9666_v5 = vpop.f32.mrb[8].mxu0 }
 0x3c6   : > { %8322 = vmatprep.mubr.msk.f32.mxu1 %vm20655_vm9, %v20283_v24  ;;  %8286 = vmatprep.mubr.msk.f32.mxu0 %vm20656_vm1, %v20283_v24  ;;  %v9749_v17 = vpop.f32.mrb[10].mxu1  ;;  %vm20665_vm9 = vcmp.eq.s32.totalorder %v20628_v55, %v20664_v45  ;;  %vm20666_vm1 = vcmp.eq.s32.totalorder %v20628_v55, %v20654_v0  ;;  %v9667_v4 = vpop.f32.mrb[9].mxu0 }
 0x3c7   : > { %v9750_v50 = vpop.f32.mrb[11].mxu1  ;;  %v9668_v52 = vadd.f32 %v9667_v4, %v9666_v5  ;;  %v18096_v35 = vadd.f32 %v9745_v39, %v5649_v7 }
 0x3c8   : > { %v9751_v46 = vadd.f32 %v9750_v50, %v9749_v17 }
 0x3c9   : > { %8323 = vmatmul.mubr.msk.f32.gmra.mrb[114].mxu1 %vm20657_vm2, %v20283_v24  ;;  %8287 = vmatmul.mubr.msk.f32.gmra.mrb[110].mxu0 %vm20658_vm0, %v20283_v24  ;;  %vm20667_vm2 = vcmp.eq.s32.totalorder %v20630_v57, %v20664_v45  ;;  %vm20668_vm0 = vcmp.eq.s32.totalorder %v20630_v57, %v20654_v0  ;;  %v5656_v2 = vadd.f32 %v9668_v52, %v17848_v58  ;;  %v9669_v63 = vpop.f32.mrb[10].mxu0 }
 0x3ca   : > { %8324 = vmatprep.mubr.msk.f32.mxu1 %vm20660_vm14, %v20283_v24  ;;  %8288 = vmatprep.mubr.msk.f32.mxu0 %vm20661_vm13, %v20283_v24  ;;  %v9670_v59 = vpop.f32.mrb[11].mxu0  ;;  %vm20670_vm13 = vmmov %vm20662_vm8 }
 0x3cb   : > { %v9752_v6 = vpop.f32.mrb[12].mxu1  ;;  %v9671_v58 = vadd.f32 %v9670_v59, %v9669_v63  ;;  %v18115_v9 = vadd.f32 %v9748_v28, %v5656_v2 }
 0x3cc   : > { %v9753_v43 = vpop.f32.mrb[13].mxu1 }
 0x3cd   : > { %8325 = vmatmul.mubr.msk.f32.gmra.mrb[116].mxu1 %vm20662_vm8, %v20283_v24  ;;  %8289 = vmatmul.mubr.msk.f32.gmra.mrb[112].mxu0 %vm20663_vm6, %v20283_v24  ;;  %v9754_v19 = vadd.f32 %v9753_v43, %v9752_v6  ;;  %vm20672_vm8 = vmmov %vm20665_vm9  ;;  %v5663_v13 = vadd.f32 %v9671_v58, %v17857_v12 }
 0x3ce   : > { %8326 = vmatprep.mubr.msk.f32.mxu1 %vm20665_vm9, %v20283_v24  ;;  %8290 = vmatprep.mubr.msk.f32.mxu0 %vm20666_vm1, %v20283_v24  ;;  %vm20673_vm6 = vmmov %vm20667_vm2 }
 0x3cf   : > { %v9755_v53 = vpop.f32.mrb[14].mxu1  ;;  %v18134_v33 = vadd.f32 %v9751_v46, %v5663_v13 }
 0x3d0   : > { %v9756_v51 = vpop.f32.mrb[15].mxu1 }
 0x3d1   : > { %8327 = vmatmul.mubr.msk.f32.gmra.mrb[118].mxu1 %vm20667_vm2, %v20283_v24  ;;  %8291 = vmatmul.mubr.msk.f32.gmra.mrb[114].mxu0 %vm20668_vm0, %v20283_v24  ;;  %v9757_v11 = vadd.f32 %v9756_v51, %v9755_v53 }
 0x3d2   : > { %8328 = vmatprep.mubr.msk.f32.mxu1 %vm4037_vm15, %v20283_v24  ;;  %8292 = vmatprep.mubr.msk.f32.mxu0 %vm20660_vm14, %v20283_v24 }
 0x3d3   : > { %v9758_v1 = vpop.f32.mrb[16].mxu1  ;;  %v9672_v14 = vpop.f32.mrb[12].mxu0 }
 0x3d4   : > { %v9759_v62 = vpop.f32.mrb[17].mxu1  ;;  %v9673_v47 = vpop.f32.mrb[13].mxu0 }
 0x3d5   : > { %8329 = vmatmul.mubr.msk.f32.gmra.mrb[120].mxu1 %vm4036_vm12, %v20283_v24  ;;  %8293 = vmatmul.mubr.msk.f32.gmra.mrb[116].mxu0 %vm20670_vm13, %v20283_v24  ;;  %v9760_v25 = vadd.f32 %v9759_v62, %v9758_v1  ;;  %v9674_v12 = vadd.f32 %v9673_v47, %v9672_v14 }
 0x3d6   : > { %8330 = vmatprep.mubr.msk.f32.mxu1 %vm4041_vm7, %v20283_v24  ;;  %8294 = vmatprep.mubr.msk.f32.mxu0 %vm20672_vm8, %v20283_v24 }
 0x3d7   : > { %v9761_v8 = vpop.f32.mrb[18].mxu1  ;;  %v5670_v39 = vadd.f32 %v9674_v12, %v17866_v3  ;;  %v9675_v40 = vpop.f32.mrb[14].mxu0 }
 0x3d8   : > { %v9762_v0 = vpop.f32.mrb[19].mxu1  ;;  %v9676_v20 = vpop.f32.mrb[15].mxu0 }
 0x3d9   : > { %8331 = vmatmul.mubr.msk.f32.gmra.mrb[122].mxu1 %vm4040_vm10, %v20283_v24  ;;  %8295 = vmatmul.mubr.msk.f32.gmra.mrb[118].mxu0 %vm20673_vm6, %v20283_v24  ;;  %v9763_v10 = vadd.f32 %v9762_v0, %v9761_v8  ;;  %v9677_v3 = vadd.f32 %v9676_v20, %v9675_v40  ;;  %v18153_v60 = vadd.f32 %v9754_v19, %v5670_v39 }
 0x3da   : > { %8332 = vmatprep.mubr.msk.f32.mxu1 %vm4045_vm5, %v20283_v24  ;;  %8296 = vmatprep.mubr.msk.f32.mxu0 %vm4037_vm15, %v20283_v24 }
 0x3db   : > { %v9764_v23 = vpop.f32.mrb[20].mxu1  ;;  %v5677_v28 = vadd.f32 %v9677_v3, %v17877_v56  ;;  %v9678_v29 = vpop.f32.mrb[16].mxu0 }
 0x3dc   : > { %v9765_v21 = vpop.f32.mrb[21].mxu1  ;;  %v9679_v17 = vpop.f32.mrb[17].mxu0 }
 0x3dd   : > { %8333 = vmatmul.mubr.msk.f32.gmra.mrb[124].mxu1 %vm4044_vm3, %v20283_v24  ;;  %8297 = vmatmul.mubr.msk.f32.gmra.mrb[120].mxu0 %vm4036_vm12, %v20283_v24  ;;  %v9766_v26 = vadd.f32 %v9765_v21, %v9764_v23  ;;  %v9680_v30 = vadd.f32 %v9679_v17, %v9678_v29  ;;  %v18168_v56 = vadd.f32 %v9757_v11, %v5677_v28 }
 0x3de   : > { %8334 = vmatprep.mubr.msk.f32.mxu1 %vm4049_vm11, %v20283_v24  ;;  %8298 = vmatprep.mubr.msk.f32.mxu0 %vm4041_vm7, %v20283_v24 }
 0x3df   : > { %v9767_v32 = vpop.f32.mrb[22].mxu1  ;;  %v5684_v50 = vadd.f32 %v9680_v30, %v17890_v31  ;;  %v9681_v46 = vpop.f32.mrb[18].mxu0 }
 0x3e0   : > { %v9768_v15 = vpop.f32.mrb[23].mxu1  ;;  %v9682_v49 = vpop.f32.mrb[19].mxu0 }
 0x3e1   : > { %8335 = vmatmul.mubr.msk.f32.gmra.mrb[126].mxu1 %vm4048_vm4, %v20283_v24  ;;  %8299 = vmatmul.mubr.msk.f32.gmra.mrb[122].mxu0 %vm4040_vm10, %v20283_v24  ;;  %v9769_v45 = vadd.f32 %v9768_v15, %v9767_v32  ;;  %v9683_v6 = vadd.f32 %v9682_v49, %v9681_v46  ;;  %v18179_v7 = vadd.f32 %v9760_v25, %v5684_v50 }
 0x3e2   : > { %8300 = vmatprep.mubr.msk.f32.mxu0 %vm4045_vm5, %v20283_v24 }
 0x3e3   : > { %v9770_v5 = vpop.f32.mrb[24].mxu1  ;;  %v5691_v31 = vadd.f32 %v9683_v6, %v17906_v61  ;;  %v9684_v43 = vpop.f32.mrb[20].mxu0 }
 0x3e4   : > { %v9771_v19 = vpop.f32.mrb[25].mxu1  ;;  %v9685_v44 = vpop.f32.mrb[21].mxu0 }
 0x3e5   : > { %8301 = vmatmul.mubr.msk.f32.gmra.mrb[124].mxu0 %vm4044_vm3, %v20283_v24  ;;  %v9772_v4 = vadd.f32 %v9771_v19, %v9770_v5  ;;  %v9686_v52 = vadd.f32 %v9685_v44, %v9684_v43  ;;  %v18186_v53 = vadd.f32 %v9763_v10, %v5691_v31 }
 0x3e6   : > { %8302 = vmatprep.mubr.msk.f32.mxu0 %vm4049_vm11, %v20283_v24 }
 0x3e7   : > { %v9773_v2 = vpop.f32.mrb[26].mxu1  ;;  %v5698_v55 = vadd.f32 %v9686_v52, %v17925_v22  ;;  %v9687_v63 = vpop.f32.mrb[22].mxu0 }
 0x3e8   : > { %v9774_v51 = vpop.f32.mrb[27].mxu1  ;;  %v9688_v59 = vpop.f32.mrb[23].mxu0 }
 0x3e9   : > { %8303 = vmatmul.mubr.msk.f32.gmra.mrb[126].mxu0 %vm4048_vm4, %v20283_v24  ;;  %v9775_v11 = vadd.f32 %v9774_v51, %v9773_v2  ;;  %v9689_v61 = vadd.f32 %v9688_v59, %v9687_v63  ;;  %v18189_v38 = vadd.f32 %v9766_v26, %v5698_v55 }
 0x3eb   : > { %v9776_v58 = vpop.f32.mrb[28].mxu1  ;;  %v5705_v1 = vadd.f32 %v9689_v61, %v17944_v34  ;;  %v9690_v13 = vpop.f32.mrb[24].mxu0 }
 0x3ec   : > { %v9777_v14 = vpop.f32.mrb[29].mxu1  ;;  %v9691_v24 = vpop.f32.mrb[25].mxu0 }
 0x3ed   : > { %v9778_v57 = vadd.f32 %v9777_v14, %v9776_v58  ;;  %v9692_v62 = vadd.f32 %v9691_v24, %v9690_v13  ;;  %v18192_v25 = vadd.f32 %v9769_v45, %v5705_v1 }
 0x3ef   : > { %v9779_v47 = vpop.f32.mrb[30].mxu1  ;;  %v5712_v22 = vadd.f32 %v9692_v62, %v17963_v42  ;;  %v9693_v27 = vpop.f32.mrb[26].mxu0 }
 0x3f0   : > { %v9780_v12 = vpop.f32.mrb[31].mxu1  ;;  %v9694_v39 = vpop.f32.mrb[27].mxu0 }
 0x3f1   : > { %v9781_v8 = vadd.f32 %v9780_v12, %v9779_v47  ;;  %v9695_v40 = vadd.f32 %v9694_v39, %v9693_v27  ;;  %v18195_v0 = vadd.f32 %v9772_v4, %v5712_v22 }
 0x3f3   : > { %v9894_v10 = vpop.f32.mrb[32].mxu1  ;;  %v5719_v34 = vadd.f32 %v9695_v40, %v17982_v48  ;;  %v9696_v20 = vpop.f32.mrb[28].mxu0 }
 0x3f4   : > { %v9895_v37 = vpop.f32.mrb[33].mxu1  ;;  %v9697_v23 = vpop.f32.mrb[29].mxu0 }
 0x3f5   : > { %v9896_v3 = vadd.f32 %v9895_v37, %v9894_v10  ;;  %v9698_v28 = vadd.f32 %v9697_v23, %v9696_v20  ;;  %v18198_v29 = vadd.f32 %v9775_v11, %v5719_v34 }
 0x3f7   : > { %v9897_v21 = vpop.f32.mrb[34].mxu1  ;;  %v5726_v42 = vadd.f32 %v9698_v28, %v18001_v41  ;;  %v9699_v26 = vpop.f32.mrb[30].mxu0 }
 0x3f8   : > { %v9898_v17 = vpop.f32.mrb[35].mxu1  ;;  %v9700_v32 = vpop.f32.mrb[31].mxu0 }
 0x3f9   : > { %v9899_v30 = vadd.f32 %v9898_v17, %v9897_v21  ;;  %v9701_v50 = vadd.f32 %v9700_v32, %v9699_v26  ;;  %v18201_v46 = vadd.f32 %v9778_v57, %v5726_v42 }
 0x3fb   : > { %v9900_v15 = vpop.f32.mrb[36].mxu1  ;;  %v5733_v48 = vadd.f32 %v9701_v50, %v18020_v16  ;;  %v9814_v45 = vpop.f32.mrb[32].mxu0 }
 0x3fc   : > { %v9901_v49 = vpop.f32.mrb[37].mxu1  ;;  %v9815_v5 = vpop.f32.mrb[33].mxu0 }
 0x3fd   : > { %v9902_v6 = vadd.f32 %v9901_v49, %v9900_v15  ;;  %v9816_v31 = vadd.f32 %v9815_v5, %v9814_v45  ;;  %v18204_v43 = vadd.f32 %v9781_v8, %v5733_v48 }
 0x3ff   : > { %v9903_v19 = vpop.f32.mrb[38].mxu1  ;;  %v6054_v41 = vadd.f32 %v9816_v31, %v18039_v54 }
 0x400   : > { %v9817_v4 = vpop.f32.mrb[34].mxu0  ;;  %v9904_v44 = vpop.f32.mrb[39].mxu1 }
 0x401   : > { %v9905_v52 = vadd.f32 %v9904_v44, %v9903_v19  ;;  %v9818_v2 = vpop.f32.mrb[35].mxu0  ;;  %v18207_v63 = vadd.f32 %v9896_v3, %v6054_v41 }
 0x402   : > { %v9819_v55 = vadd.f32 %v9818_v2, %v9817_v4 }
 0x403   : > { %v9906_v51 = vpop.f32.mrb[40].mxu1 }
 0x404   : > { %v6069_v16 = vadd.f32 %v9819_v55, %v18058_v18  ;;  %v9907_v59 = vpop.f32.mrb[41].mxu1 }
 0x405   : > { %v9820_v11 = vpop.f32.mrb[36].mxu0  ;;  %v9908_v61 = vadd.f32 %v9907_v59, %v9906_v51 }
 0x406   : > { %v9821_v58 = vpop.f32.mrb[37].mxu0  ;;  %v18210_v13 = vadd.f32 %v9899_v30, %v6069_v16 }
 0x407   : > { %v9822_v1 = vadd.f32 %v9821_v58, %v9820_v11  ;;  %v9909_v14 = vpop.f32.mrb[42].mxu1 }
 0x408   : > { %v9910_v24 = vpop.f32.mrb[43].mxu1 }
 0x409   : > { %v6084_v54 = vadd.f32 %v9822_v1, %v18077_v36  ;;  %v9823_v57 = vpop.f32.mrb[38].mxu0  ;;  %v9911_v62 = vadd.f32 %v9910_v24, %v9909_v14 }
 0x40a   : > { %v9824_v47 = vpop.f32.mrb[39].mxu0 }
 0x40b   : > { %v9825_v22 = vadd.f32 %v9824_v47, %v9823_v57  ;;  %v18213_v27 = vadd.f32 %v9902_v6, %v6084_v54  ;;  %v9912_v12 = vpop.f32.mrb[44].mxu1 }
 0x40c   : > { %v9913_v39 = vpop.f32.mrb[45].mxu1 }
 0x40d   : > { %v6099_v18 = vadd.f32 %v9825_v22, %v18096_v35  ;;  %v9826_v8 = vpop.f32.mrb[40].mxu0  ;;  %v9914_v40 = vadd.f32 %v9913_v39, %v9912_v12 }
 0x40e   : > { %v9827_v10 = vpop.f32.mrb[41].mxu0 }
 0x40f   : > { %v9828_v34 = vadd.f32 %v9827_v10, %v9826_v8  ;;  %v18216_v20 = vadd.f32 %v9905_v52, %v6099_v18  ;;  %v9915_v37 = vpop.f32.mrb[46].mxu1 }
 0x410   : > { %v9916_v23 = vpop.f32.mrb[47].mxu1 }
 0x411   : > { %v6114_v36 = vadd.f32 %v9828_v34, %v18115_v9  ;;  %v9829_v3 = vpop.f32.mrb[42].mxu0  ;;  %v9917_v28 = vadd.f32 %v9916_v23, %v9915_v37 }
 0x412   : > { %v9830_v21 = vpop.f32.mrb[43].mxu0 }
 0x413   : > { %v9831_v42 = vadd.f32 %v9830_v21, %v9829_v3  ;;  %v18219_v26 = vadd.f32 %v9908_v61, %v6114_v36 }
 0x414   : > { %v9918_v17 = vpop.f32.mrb[48].mxu1 }
 0x415   : > { %v6129_v35 = vadd.f32 %v9831_v42, %v18134_v33  ;;  %v9832_v30 = vpop.f32.mrb[44].mxu0  ;;  %v9919_v32 = vpop.f32.mrb[49].mxu1 }
 0x416   : > { %v9920_v50 = vadd.f32 %v9919_v32, %v9918_v17  ;;  %v9833_v15 = vpop.f32.mrb[45].mxu0 }
 0x417   : > { %v9834_v48 = vadd.f32 %v9833_v15, %v9832_v30  ;;  %v18222_v45 = vadd.f32 %v9911_v62, %v6129_v35 }
 0x418   : > { %v9921_v49 = vpop.f32.mrb[50].mxu1 }
 0x419   : > { %v6144_v9 = vadd.f32 %v9834_v48, %v18153_v60  ;;  %v9922_v5 = vpop.f32.mrb[51].mxu1 }
 0x41a   : > { %v9835_v6 = vpop.f32.mrb[46].mxu0  ;;  %v9923_v31 = vadd.f32 %v9922_v5, %v9921_v49 }
 0x41b   : > { %v9836_v19 = vpop.f32.mrb[47].mxu0  ;;  %v18225_v4 = vadd.f32 %v9914_v40, %v6144_v9 }
 0x41c   : > { %v9837_v41 = vadd.f32 %v9836_v19, %v9835_v6 }
 0x41d   : > { %v9924_v44 = vpop.f32.mrb[52].mxu1 }
 0x41e   : > { %v6159_v33 = vadd.f32 %v9837_v41, %v18168_v56  ;;  %v9925_v2 = vpop.f32.mrb[53].mxu1 }
 0x41f   : > { %v9838_v52 = vpop.f32.mrb[48].mxu0  ;;  %v9926_v55 = vadd.f32 %v9925_v2, %v9924_v44 }
 0x420   : > { %v9839_v51 = vpop.f32.mrb[49].mxu0  ;;  %v18228_v11 = vadd.f32 %v9917_v28, %v6159_v33 }
 0x421   : > { %v9840_v16 = vadd.f32 %v9839_v51, %v9838_v52  ;;  %v9927_v59 = vpop.f32.mrb[54].mxu1 }
 0x422   : > { %v9928_v58 = vpop.f32.mrb[55].mxu1 }
 0x423   : > { %v6174_v60 = vadd.f32 %v9840_v16, %v18179_v7  ;;  %v9841_v61 = vpop.f32.mrb[50].mxu0  ;;  %v9929_v1 = vadd.f32 %v9928_v58, %v9927_v59 }
 0x424   : > { %v9842_v14 = vpop.f32.mrb[51].mxu0 }
 0x425   : > { %v9843_v54 = vadd.f32 %v9842_v14, %v9841_v61  ;;  %v18231_v57 = vadd.f32 %v9920_v50, %v6174_v60  ;;  %v9930_v24 = vpop.f32.mrb[56].mxu1 }
 0x426   : > { %v9931_v47 = vpop.f32.mrb[57].mxu1 }
 0x427   : > { %v6189_v56 = vadd.f32 %v9843_v54, %v18186_v53  ;;  %v9844_v62 = vpop.f32.mrb[52].mxu0  ;;  %v9932_v22 = vadd.f32 %v9931_v47, %v9930_v24 }
 0x428   : > { %v9845_v12 = vpop.f32.mrb[53].mxu0 }
 0x429   : > { %v9846_v18 = vadd.f32 %v9845_v12, %v9844_v62  ;;  %v18234_v8 = vadd.f32 %v9923_v31, %v6189_v56  ;;  %v9933_v39 = vpop.f32.mrb[58].mxu1 }
 0x42a   : > { %v9934_v10 = vpop.f32.mrb[59].mxu1 }
 0x42b   : > { %v6204_v7 = vadd.f32 %v9846_v18, %v18189_v38  ;;  %v9847_v40 = vpop.f32.mrb[54].mxu0  ;;  %v9935_v34 = vadd.f32 %v9934_v10, %v9933_v39 }
 0x42c   : > { %v9848_v37 = vpop.f32.mrb[55].mxu0 }
 0x42d   : > { %v9849_v36 = vadd.f32 %v9848_v37, %v9847_v40  ;;  %v18237_v3 = vadd.f32 %v9926_v55, %v6204_v7  ;;  %v9936_v23 = vpop.f32.mrb[60].mxu1 }
 0x42e   : > { %v9937_v21 = vpop.f32.mrb[61].mxu1 }
 0x42f   : > { %v6219_v53 = vadd.f32 %v9849_v36, %v18192_v25  ;;  %v9850_v28 = vpop.f32.mrb[56].mxu0  ;;  %v9938_v42 = vadd.f32 %v9937_v21, %v9936_v23 }
 0x430   : > { %v9851_v17 = vpop.f32.mrb[57].mxu0 }
 0x431   : > { %v9852_v35 = vadd.f32 %v9851_v17, %v9850_v28  ;;  %v18240_v30 = vadd.f32 %v9929_v1, %v6219_v53  ;;  %v9939_v32 = vpop.f32.mrb[62].mxu1 }
 0x432   : > { %v9940_v15 = vpop.f32.mrb[63].mxu1 }
 0x433   : > { %v6234_v38 = vadd.f32 %v9852_v35, %v18195_v0  ;;  %v9853_v50 = vpop.f32.mrb[58].mxu0  ;;  %v9941_v48 = vadd.f32 %v9940_v15, %v9939_v32 }
 0x434   : > { %v9854_v49 = vpop.f32.mrb[59].mxu0 }
 0x435   : > { %v9855_v9 = vadd.f32 %v9854_v49, %v9853_v50  ;;  %v18243_v6 = vadd.f32 %v9932_v22, %v6234_v38  ;;  %v10054_v5 = vpop.f32.mrb[64].mxu1 }
 0x436   : > { %v10055_v19 = vpop.f32.mrb[65].mxu1 }
 0x437   : > { %v6249_v25 = vadd.f32 %v9855_v9, %v18198_v29  ;;  %v9856_v31 = vpop.f32.mrb[60].mxu0  ;;  %v10056_v41 = vadd.f32 %v10055_v19, %v10054_v5 }
 0x438   : > { %v9857_v44 = vpop.f32.mrb[61].mxu0 }
 0x439   : > { %v9858_v33 = vadd.f32 %v9857_v44, %v9856_v31  ;;  %v18246_v52 = vadd.f32 %v9935_v34, %v6249_v25  ;;  %v10057_v2 = vpop.f32.mrb[66].mxu1 }
 0x43a   : > { %v10058_v51 = vpop.f32.mrb[67].mxu1 }
 0x43b   : > { %v6264_v0 = vadd.f32 %v9858_v33, %v18201_v46  ;;  %v9859_v55 = vpop.f32.mrb[62].mxu0  ;;  %v10059_v16 = vadd.f32 %v10058_v51, %v10057_v2 }
 0x43c   : > { %v9860_v59 = vpop.f32.mrb[63].mxu0 }
 0x43d   : > { %v9861_v60 = vadd.f32 %v9860_v59, %v9859_v55  ;;  %v18249_v61 = vadd.f32 %v9938_v42, %v6264_v0 }
 0x43f   : > { %v10060_v58 = vpop.f32.mrb[68].mxu1  ;;  %v6279_v29 = vadd.f32 %v9861_v60, %v18204_v43  ;;  %v9974_v1 = vpop.f32.mrb[64].mxu0 }
 0x440   : > { %v10061_v14 = vpop.f32.mrb[69].mxu1  ;;  %v9975_v24 = vpop.f32.mrb[65].mxu0 }
 0x441   : > { %v10062_v54 = vadd.f32 %v10061_v14, %v10060_v58  ;;  %v9976_v56 = vadd.f32 %v9975_v24, %v9974_v1  ;;  %v18252_v62 = vadd.f32 %v9941_v48, %v6279_v29 }
 0x443   : > { %v10063_v47 = vpop.f32.mrb[70].mxu1  ;;  %v6754_v46 = vadd.f32 %v9976_v56, %v18207_v63 }
 0x444   : > { %v9977_v22 = vpop.f32.mrb[66].mxu0  ;;  %v10064_v12 = vpop.f32.mrb[71].mxu1 }
 0x445   : > { %v10065_v18 = vadd.f32 %v10064_v12, %v10063_v47  ;;  %v9978_v39 = vpop.f32.mrb[67].mxu0  ;;  %v18255_v40 = vadd.f32 %v10056_v41, %v6754_v46 }
 0x446   : > { %v9979_v7 = vadd.f32 %v9978_v39, %v9977_v22 }
 0x447   : > { %v10066_v10 = vpop.f32.mrb[72].mxu1 }
 0x448   : > { %v6763_v43 = vadd.f32 %v9979_v7, %v18210_v13  ;;  %v9980_v34 = vpop.f32.mrb[68].mxu0  ;;  %v10067_v37 = vpop.f32.mrb[73].mxu1 }
 0x449   : > { %v10068_v36 = vadd.f32 %v10067_v37, %v10066_v10  ;;  %v9981_v23 = vpop.f32.mrb[69].mxu0 }
 0x44a   : > { %v9982_v53 = vadd.f32 %v9981_v23, %v9980_v34  ;;  %v18258_v28 = vadd.f32 %v10059_v16, %v6763_v43 }
 0x44c   : > { %v10069_v21 = vpop.f32.mrb[74].mxu1  ;;  %v6772_v63 = vadd.f32 %v9982_v53, %v18213_v27  ;;  %v9983_v42 = vpop.f32.mrb[70].mxu0 }
 0x44d   : > { %v10070_v17 = vpop.f32.mrb[75].mxu1  ;;  %v9984_v32 = vpop.f32.mrb[71].mxu0 }
 0x44e   : > { %v10071_v35 = vadd.f32 %v10070_v17, %v10069_v21  ;;  %v9985_v38 = vadd.f32 %v9984_v32, %v9983_v42  ;;  %v18261_v50 = vadd.f32 %v10062_v54, %v6772_v63 }
 0x450   : > { %v10072_v15 = vpop.f32.mrb[76].mxu1  ;;  %v6781_v13 = vadd.f32 %v9985_v38, %v18216_v20  ;;  %v9986_v48 = vpop.f32.mrb[72].mxu0 }
 0x451   : > { %v10073_v49 = vpop.f32.mrb[77].mxu1  ;;  %v9987_v5 = vpop.f32.mrb[73].mxu0 }
 0x452   : > { %v10074_v9 = vadd.f32 %v10073_v49, %v10072_v15  ;;  %v9988_v25 = vadd.f32 %v9987_v5, %v9986_v48  ;;  %v18264_v31 = vadd.f32 %v10065_v18, %v6781_v13 }
 0x454   : > { %v10075_v19 = vpop.f32.mrb[78].mxu1  ;;  %v6790_v27 = vadd.f32 %v9988_v25, %v18219_v26  ;;  %v9989_v41 = vpop.f32.mrb[74].mxu0 }
 0x455   : > { %v10076_v44 = vpop.f32.mrb[79].mxu1  ;;  %v9990_v2 = vpop.f32.mrb[75].mxu0 }
 0x456   : > { %v10077_v33 = vadd.f32 %v10076_v44, %v10075_v19  ;;  %v9991_v0 = vadd.f32 %v9990_v2, %v9989_v41  ;;  %v18267_v55 = vadd.f32 %v10068_v36, %v6790_v27 }
 0x458   : > { %v10078_v51 = vpop.f32.mrb[80].mxu1  ;;  %v6799_v20 = vadd.f32 %v9991_v0, %v18222_v45  ;;  %v9992_v16 = vpop.f32.mrb[76].mxu0 }
 0x459   : > { %v10079_v59 = vpop.f32.mrb[81].mxu1  ;;  %v9993_v58 = vpop.f32.mrb[77].mxu0 }
 0x45a   : > { %v10080_v60 = vadd.f32 %v10079_v59, %v10078_v51  ;;  %v9994_v29 = vadd.f32 %v9993_v58, %v9992_v16  ;;  %v18270_v1 = vadd.f32 %v10071_v35, %v6799_v20 }
 0x45c   : > { %v10081_v14 = vpop.f32.mrb[82].mxu1  ;;  %v6808_v26 = vadd.f32 %v9994_v29, %v18225_v4  ;;  %v9995_v54 = vpop.f32.mrb[78].mxu0 }
 0x45d   : > { %v10082_v24 = vpop.f32.mrb[83].mxu1  ;;  %v9996_v47 = vpop.f32.mrb[79].mxu0 }
 0x45e   : > { %v10083_v56 = vadd.f32 %v10082_v24, %v10081_v14  ;;  %v9997_v46 = vadd.f32 %v9996_v47, %v9995_v54  ;;  %v18273_v22 = vadd.f32 %v10074_v9, %v6808_v26 }
 0x460   : > { %v10084_v12 = vpop.f32.mrb[84].mxu1  ;;  %v6817_v45 = vadd.f32 %v9997_v46, %v18228_v11  ;;  %v9998_v18 = vpop.f32.mrb[80].mxu0 }
 0x461   : > { %v10085_v39 = vpop.f32.mrb[85].mxu1  ;;  %v9999_v10 = vpop.f32.mrb[81].mxu0 }
 0x462   : > { %v10086_v7 = vadd.f32 %v10085_v39, %v10084_v12  ;;  %v10000_v43 = vadd.f32 %v9999_v10, %v9998_v18  ;;  %v18276_v34 = vadd.f32 %v10077_v33, %v6817_v45 }
 0x464   : > { %v10087_v37 = vpop.f32.mrb[86].mxu1  ;;  %v6826_v4 = vadd.f32 %v10000_v43, %v18231_v57  ;;  %v10001_v36 = vpop.f32.mrb[82].mxu0 }
 0x465   : > { %v10088_v23 = vpop.f32.mrb[87].mxu1  ;;  %v10002_v21 = vpop.f32.mrb[83].mxu0 }
 0x466   : > { %v10089_v53 = vadd.f32 %v10088_v23, %v10087_v37  ;;  %v10003_v63 = vadd.f32 %v10002_v21, %v10001_v36  ;;  %v18279_v42 = vadd.f32 %v10080_v60, %v6826_v4 }
 0x468   : > { %v10090_v17 = vpop.f32.mrb[88].mxu1  ;;  %v6835_v11 = vadd.f32 %v10003_v63, %v18234_v8  ;;  %v10004_v35 = vpop.f32.mrb[84].mxu0 }
 0x469   : > { %v10091_v32 = vpop.f32.mrb[89].mxu1  ;;  %v10005_v15 = vpop.f32.mrb[85].mxu0 }
 0x46a   : > { %v10092_v38 = vadd.f32 %v10091_v32, %v10090_v17  ;;  %v10006_v13 = vadd.f32 %v10005_v15, %v10004_v35  ;;  %v18282_v48 = vadd.f32 %v10083_v56, %v6835_v11 }
 0x46c   : > { %v10093_v49 = vpop.f32.mrb[90].mxu1  ;;  %v6844_v57 = vadd.f32 %v10006_v13, %v18237_v3  ;;  %v10007_v9 = vpop.f32.mrb[86].mxu0 }
 0x46d   : > { %v10094_v5 = vpop.f32.mrb[91].mxu1  ;;  %v10008_v19 = vpop.f32.mrb[87].mxu0 }
 0x46e   : > { %v10095_v25 = vadd.f32 %v10094_v5, %v10093_v49  ;;  %v10009_v27 = vadd.f32 %v10008_v19, %v10007_v9  ;;  %v18285_v41 = vadd.f32 %v10086_v7, %v6844_v57  ;;  %v20676_v5 = vld [vmem:[#allocation83_spill] sm:$0xff] }
 0x470   : > { %v10096_v44 = vpop.f32.mrb[92].mxu1  ;;  %v6853_v8 = vadd.f32 %v10009_v27, %v18240_v30  ;;  %v10010_v33 = vpop.f32.mrb[88].mxu0 }
 0x471   : > { %v10097_v2 = vpop.f32.mrb[93].mxu1  ;;  %v10011_v51 = vpop.f32.mrb[89].mxu0 }
 0x472   : > { %v10098_v0 = vadd.f32 %v10097_v2, %v10096_v44  ;;  %v10012_v20 = vadd.f32 %v10011_v51, %v10010_v33  ;;  %v18288_v16 = vadd.f32 %v10089_v53, %v6853_v8  ;;  %v20677_v51 = vld [vmem:[#allocation46_spill] sm:$0xff] }
 0x474   : > { %v10099_v59 = vpop.f32.mrb[94].mxu1  ;;  %v6862_v3 = vadd.f32 %v10012_v20, %v18243_v6  ;;  %v10013_v60 = vpop.f32.mrb[90].mxu0 }
 0x475   : > { %v10100_v58 = vpop.f32.mrb[95].mxu1  ;;  %v10014_v14 = vpop.f32.mrb[91].mxu0 }
 0x476   : > { %v10101_v29 = vadd.f32 %v10100_v58, %v10099_v59  ;;  %v10015_v26 = vadd.f32 %v10014_v14, %v10013_v60  ;;  %v18291_v54 = vadd.f32 %v10092_v38, %v6862_v3 }
 0x478   : > { %v10214_v24 = vpop.f32.mrb[96].mxu1  ;;  %v6871_v30 = vadd.f32 %v10015_v26, %v18246_v52  ;;  %v10016_v56 = vpop.f32.mrb[92].mxu0 }
 0x479   : > { %v10215_v47 = vpop.f32.mrb[97].mxu1  ;;  %v10017_v12 = vpop.f32.mrb[93].mxu0 }
 0x47a   : > { %v10216_v46 = vadd.f32 %v10215_v47, %v10214_v24  ;;  %v10018_v45 = vadd.f32 %v10017_v12, %v10016_v56  ;;  %v18294_v18 = vadd.f32 %v10095_v25, %v6871_v30  ;;  %v20678_v24 = vld [vmem:[#allocation61_spill] sm:$0xff] }
 0x47c   : > { %v10217_v39 = vpop.f32.mrb[98].mxu1  ;;  %v6880_v6 = vadd.f32 %v10018_v45, %v18249_v61  ;;  %v10019_v7 = vpop.f32.mrb[94].mxu0 }
 0x47d   : > { %v10218_v10 = vpop.f32.mrb[99].mxu1  ;;  %v10020_v37 = vpop.f32.mrb[95].mxu0 }
 0x47e   : > { %v10219_v43 = vadd.f32 %v10218_v10, %v10217_v39  ;;  %v10021_v4 = vadd.f32 %v10020_v37, %v10019_v7  ;;  %v18297_v36 = vadd.f32 %v10098_v0, %v6880_v6  ;;  %v20679_v7 = vld [vmem:[#allocation17_spill] sm:$0xff] }
 0x480   : > { %v10220_v52 = vpop.f32.mrb[100].mxu1  ;;  %v6889_v23 = vadd.f32 %v10021_v4, %v18252_v62  ;;  %v10134_v53 = vpop.f32.mrb[96].mxu0 }
 0x481   : > { %v10221_v21 = vpop.f32.mrb[101].mxu1  ;;  %v10135_v17 = vpop.f32.mrb[97].mxu0 }
 0x482   : > { %v10222_v63 = vadd.f32 %v10221_v21, %v10220_v52  ;;  %v10136_v11 = vadd.f32 %v10135_v17, %v10134_v53  ;;  %v18301_v35 = vadd.f32 %v10101_v29, %v6889_v23 }
 0x484   : > { %v10223_v61 = vpop.f32.mrb[102].mxu1  ;;  %v7330_v32 = vadd.f32 %v10136_v11, %v18255_v40  ;;  %v10137_v38 = vpop.f32.mrb[98].mxu0 }
 0x485   : > { %v10224_v15 = vpop.f32.mrb[103].mxu1  ;;  %v10138_v49 = vpop.f32.mrb[99].mxu0 }
 0x486   : > { %v10225_v13 = vadd.f32 %v10224_v15, %v10223_v61  ;;  %v7539_v57 = vadd.f32 %v10216_v46, %v7330_v32  ;;  %v10139_v9 = vadd.f32 %v10138_v49, %v10137_v38 }
 0x488   : > { %v10226_v62 = vpop.f32.mrb[104].mxu1  ;;  %v7647_v25 = vadd.f32 %v7539_v57, %v20676_v5  ;;  %v7337_v19 = vadd.f32 %v10139_v9, %v18258_v28  ;;  %v10140_v27 = vpop.f32.mrb[100].mxu0  ;;  %v20681_v57 = vld [vmem:[#allocation15_spill] sm:$0xff] }
 0x489   : > { %v10227_v44 = vpop.f32.mrb[105].mxu1  ;;  %v10141_v33 = vpop.f32.mrb[101].mxu0 }
 0x48a   : > { %v10228_v8 = vadd.f32 %v10227_v44, %v10226_v62  ;;  %7695 = vst [vmem:[%s18308_s25] sm:$0xff] %v7647_v25  ;;  %v7546_v40 = vadd.f32 %v10219_v43, %v7337_v19  ;;  %v10142_v2 = vadd.f32 %v10141_v33, %v10140_v27  ;;  %v20682_v33 = vld [vmem:[#allocation73_spill] sm:$0xff] }
 0x48c   : > { %v10229_v0 = vpop.f32.mrb[106].mxu1  ;;  %v7648_v20 = vadd.f32 %v7546_v40, %v20677_v51  ;;  %v7344_v59 = vadd.f32 %v10142_v2, %v18261_v50  ;;  %v10143_v3 = vpop.f32.mrb[102].mxu0 }
 0x48d   : > { %v10230_v60 = vpop.f32.mrb[107].mxu1  ;;  %v10144_v58 = vpop.f32.mrb[103].mxu0 }
 0x48e   : > { %v10231_v28 = vadd.f32 %v10230_v60, %v10229_v0  ;;  %7696 = vst [vmem:[%s18308_s25 + $0x8] sm:$0xff] %v7648_v20  ;;  %v7553_v29 = vadd.f32 %v10222_v63, %v7344_v59  ;;  %v10145_v14 = vadd.f32 %v10144_v58, %v10143_v3  ;;  %v20680_v63 = vld [vmem:[#allocation55_spill] sm:$0xff] }
 0x490   : > { %v10232_v26 = vpop.f32.mrb[108].mxu1  ;;  %v7649_v30 = vadd.f32 %v7553_v29, %v20678_v24  ;;  %v7351_v56 = vadd.f32 %v10145_v14, %v18264_v31  ;;  %v10146_v47 = vpop.f32.mrb[104].mxu0 }
 0x491   : > { %v10233_v46 = vpop.f32.mrb[109].mxu1  ;;  %v10147_v45 = vpop.f32.mrb[105].mxu0 }
 0x492   : > { %v10234_v12 = vadd.f32 %v10233_v46, %v10232_v26  ;;  %7697 = vst [vmem:[%s18308_s25 + $0x10] sm:$0xff] %v7649_v30  ;;  %v7560_v39 = vadd.f32 %v10225_v13, %v7351_v56  ;;  %v10148_v50 = vadd.f32 %v10147_v45, %v10146_v47  ;;  %v20684_v46 = vld [vmem:[#allocation71_spill] sm:$0xff] }
 0x494   : > { %v10235_v6 = vpop.f32.mrb[110].mxu1  ;;  %v7650_v10 = vadd.f32 %v7560_v39, %v20679_v7  ;;  %v7358_v43 = vadd.f32 %v10148_v50, %v18267_v55  ;;  %v10149_v37 = vpop.f32.mrb[106].mxu0 }
 0x495   : > { %v10236_v4 = vpop.f32.mrb[111].mxu1  ;;  %v10150_v23 = vpop.f32.mrb[107].mxu0 }
 0x496   : > { %v10237_v52 = vadd.f32 %v10236_v4, %v10235_v6  ;;  %7698 = vst [vmem:[%s18308_s25 + $0x18] sm:$0xff] %v7650_v10  ;;  %v7567_v53 = vadd.f32 %v10228_v8, %v7358_v43  ;;  %v10151_v31 = vadd.f32 %v10150_v23, %v10149_v37  ;;  %v20685_v37 = vld [vmem:[#allocation87_spill] sm:$0xff] }
 0x498   : > { %v10238_v21 = vpop.f32.mrb[112].mxu1  ;;  %v7651_v17 = vadd.f32 %v7567_v53, %v20680_v63  ;;  %v7365_v11 = vadd.f32 %v10151_v31, %v18270_v1  ;;  %v10152_v61 = vpop.f32.mrb[108].mxu0 }
 0x499   : > { %v10239_v32 = vpop.f32.mrb[113].mxu1  ;;  %v10153_v15 = vpop.f32.mrb[109].mxu0 }
 0x49a   : > { %v10240_v38 = vadd.f32 %v10239_v32, %v10238_v21  ;;  %7699 = vst [vmem:[%s18308_s25 + $0x20] sm:$0xff] %v7651_v17  ;;  %v7574_v13 = vadd.f32 %v10231_v28, %v7365_v11  ;;  %v10154_v55 = vadd.f32 %v10153_v15, %v10152_v61  ;;  %v20683_v28 = vld [vmem:[#allocation16_spill] sm:$0xff]  ;;  %v20686_v11 = vld [vmem:[#allocation89_spill] sm:$0xff] }
 0x49c   : > { %v10241_v49 = vpop.f32.mrb[114].mxu1  ;;  %v7652_v9 = vadd.f32 %v7574_v13, %v20681_v57  ;;  %v7372_v62 = vadd.f32 %v10154_v55, %v18273_v22  ;;  %v10155_v5 = vpop.f32.mrb[110].mxu0 }
 0x49d   : > { %v10242_v25 = vpop.f32.mrb[115].mxu1  ;;  %v10156_v27 = vpop.f32.mrb[111].mxu0 }
 0x49e   : > { %v10243_v19 = vadd.f32 %v10242_v25, %v10241_v49  ;;  %7700 = vst [vmem:[%s18308_s25 + $0x28] sm:$0xff] %v7652_v9  ;;  %v7581_v44 = vadd.f32 %v10234_v12, %v7372_v62  ;;  %v10157_v1 = vadd.f32 %v10156_v27, %v10155_v5  ;;  %v20687_v9 = vld [vmem:[#allocation41_spill] sm:$0xff] }
 0x4a0   : > { %v10244_v8 = vpop.f32.mrb[116].mxu1  ;;  %v7653_v40 = vadd.f32 %v7581_v44, %v20682_v33  ;;  %v7379_v2 = vadd.f32 %v10157_v1, %v18276_v34  ;;  %v10158_v0 = vpop.f32.mrb[112].mxu0 }
 0x4a1   : > { %v10245_v51 = vpop.f32.mrb[117].mxu1  ;;  %v10159_v59 = vpop.f32.mrb[113].mxu0 }
 0x4a2   : > { %v10246_v20 = vadd.f32 %v10245_v51, %v10244_v8  ;;  %7701 = vst [vmem:[%s18308_s25 + $0x30] sm:$0xff] %v7653_v40  ;;  %v7588_v3 = vadd.f32 %v10237_v52, %v7379_v2  ;;  %v10160_v22 = vadd.f32 %v10159_v59, %v10158_v0  ;;  %v20688_v8 = vld [vmem:[#allocation22_spill] sm:$0xff] }
 0x4a4   : > { %v10247_v60 = vpop.f32.mrb[118].mxu1  ;;  %v7654_v58 = vadd.f32 %v7588_v3, %v20683_v28  ;;  %v7386_v29 = vadd.f32 %v10160_v22, %v18279_v42  ;;  %v10161_v14 = vpop.f32.mrb[114].mxu0 }
 0x4a5   : > { %v10248_v26 = vpop.f32.mrb[119].mxu1  ;;  %v10162_v30 = vpop.f32.mrb[115].mxu0 }
 0x4a6   : > { %v10249_v24 = vadd.f32 %v10248_v26, %v10247_v60  ;;  %7702 = vst [vmem:[%s18308_s25 + $0x38] sm:$0xff] %v7654_v58  ;;  %v7595_v56 = vadd.f32 %v10240_v38, %v7386_v29  ;;  %v10163_v34 = vadd.f32 %v10162_v30, %v10161_v14 }
 0x4a8   : > { %v10250_v47 = vpop.f32.mrb[120].mxu1  ;;  %v7655_v12 = vadd.f32 %v7595_v56, %v20684_v46  ;;  %v7393_v45 = vadd.f32 %v10163_v34, %v18282_v48  ;;  %v10164_v39 = vpop.f32.mrb[116].mxu0 }
 0x4a9   : > { %v10251_v50 = vpop.f32.mrb[121].mxu1  ;;  %v10165_v7 = vpop.f32.mrb[117].mxu0 }
 0x4aa   : > { %v10252_v6 = vadd.f32 %v10251_v50, %v10250_v47  ;;  %7703 = vst [vmem:[%s18308_s25 + $0x40] sm:$0xff] %v7655_v12  ;;  %v7602_v10 = vadd.f32 %v10243_v19, %v7393_v45  ;;  %v10166_v42 = vadd.f32 %v10165_v7, %v10164_v39 }
 0x4ac   : > { %v10253_v43 = vpop.f32.mrb[122].mxu1  ;;  %v7656_v4 = vadd.f32 %v7602_v10, %v20685_v37  ;;  %v7400_v52 = vadd.f32 %v10166_v42, %v18285_v41  ;;  %v10167_v23 = vpop.f32.mrb[118].mxu0 }
 0x4ad   : > { %v10254_v53 = vpop.f32.mrb[123].mxu1  ;;  %v10168_v21 = vpop.f32.mrb[119].mxu0 }
 0x4ae   : > { %v10255_v31 = vadd.f32 %v10254_v53, %v10253_v43  ;;  %7704 = vst [vmem:[%s18308_s25 + $0x48] sm:$0xff] %v7656_v4  ;;  %v7609_v63 = vadd.f32 %v10246_v20, %v7400_v52  ;;  %v10169_v48 = vadd.f32 %v10168_v21, %v10167_v23  ;;  %v20689_v20 = vld [vmem:[#allocation66_spill] sm:$0xff] }
 0x4b0   : > { %v10256_v17 = vpop.f32.mrb[124].mxu1  ;;  %v7657_v61 = vadd.f32 %v7609_v63, %v20686_v11  ;;  %v7407_v32 = vadd.f32 %v10169_v48, %v18288_v16  ;;  %v10170_v38 = vpop.f32.mrb[120].mxu0 }
 0x4b1   : > { %v10257_v15 = vpop.f32.mrb[125].mxu1  ;;  %v10171_v55 = vpop.f32.mrb[121].mxu0 }
 0x4b2   : > { %v10258_v13 = vadd.f32 %v10257_v15, %v10256_v17  ;;  %7705 = vst [vmem:[%s18308_s25 + $0x50] sm:$0xff] %v7657_v61  ;;  %v7616_v49 = vadd.f32 %v10249_v24, %v7407_v32  ;;  %v10172_v41 = vadd.f32 %v10171_v55, %v10170_v38 }
 0x4b4   : > { %v10259_v57 = vpop.f32.mrb[126].mxu1  ;;  %v7658_v62 = vadd.f32 %v7616_v49, %v20687_v9  ;;  %v7414_v5 = vadd.f32 %v10172_v41, %v18291_v54  ;;  %v10173_v25 = vpop.f32.mrb[122].mxu0 }
 0x4b5   : > { %v10260_v19 = vpop.f32.mrb[127].mxu1  ;;  %v10174_v44 = vpop.f32.mrb[123].mxu0 }
 0x4b6   : > { %v10261_v27 = vadd.f32 %v10260_v19, %v10259_v57  ;;  %7706 = vst [vmem:[%s18308_s25 + $0x58] sm:$0xff] %v7658_v62  ;;  %v7623_v16 = vadd.f32 %v10252_v6, %v7414_v5  ;;  %v10175_v1 = vadd.f32 %v10174_v44, %v10173_v25 }
 0x4b8   : > { %v7659_v33 = vadd.f32 %v7623_v16, %v20688_v8  ;;  %v7421_v40 = vadd.f32 %v10175_v1, %v18294_v18  ;;  %v10176_v2 = vpop.f32.mrb[124].mxu0  ;;  %v20690_v18 = vld [vmem:[#allocation28_spill] sm:$0xff] }
 0x4b9   : > { %v10177_v0 = vpop.f32.mrb[125].mxu0 }
 0x4ba   : > { %7707 = vst [vmem:[%s18308_s25 + $0x60] sm:$0xff] %v7659_v33  ;;  %v7630_v51 = vadd.f32 %v10255_v31, %v7421_v40  ;;  %v10178_v54 = vadd.f32 %v10177_v0, %v10176_v2 }
 0x4bc   : > { %v7660_v59 = vadd.f32 %v7630_v51, %v20689_v20  ;;  %v7428_v3 = vadd.f32 %v10178_v54, %v18297_v36  ;;  %v10179_v22 = vpop.f32.mrb[126].mxu0  ;;  %v20691_v36 = vld [vmem:[#allocation44_spill] sm:$0xff] }
 0x4bd   : > { %v10180_v60 = vpop.f32.mrb[127].mxu0 }
 0x4be   : > { %7708 = vst [vmem:[%s18308_s25 + $0x68] sm:$0xff] %v7660_v59  ;;  %v7637_v28 = vadd.f32 %v10258_v13, %v7428_v3  ;;  %v10181_v58 = vadd.f32 %v10180_v60, %v10179_v22 }
 0x4c0   : > { %v7661_v29 = vadd.f32 %v7637_v28, %v20690_v18  ;;  %v7435_v14 = vadd.f32 %v10181_v58, %v18301_v35 }
 0x4c2   : > { %7709 = vst [vmem:[%s18308_s25 + $0x70] sm:$0xff] %v7661_v29  ;;  %v7644_v26 = vadd.f32 %v10261_v27, %v7435_v14 }
 0x4c4   : > { %v7662_v24 = vadd.f32 %v7644_v26, %v20691_v36 }
 0x4c6   : > { %7710 = vst [vmem:[%s18308_s25 + $0x78] sm:$0xff] %v7662_v24 }
 0x4c7   : > { %11130 = shalt.err (!%p11127_p7)
}
 0x4c8   : > { %s11131_s7 = scalar_lea.hbm %s18358_s30, 2048  ;;  %s11135_s16 = scalar_lea.hbm %s18409_s2, 4096 }
 0x4c9   : > { %p11132_p8 = scmp.ne.s32.totalorder %s18358_s30, %s11131_s7  ;;  %p11136_p1 = scmp.lt.u32.totalorder %s18358_s30, %s18409_s2 }
 0x4ca   : > { %p11137_p0 = scmp.lt.u32.totalorder %s11135_s16, %s11131_s7  ;;  %p11139_p6 = scmp.lt.u32.totalorder %s11131_s7, %s18358_s30 }
 0x4cb   : > { %p11133_p11 = pnand %p11132_p8, %p20692_p9 }
 0x4cc   : > { %p11138_p5 = por %p11137_p0, %p11136_p1 }
 0x4cd   : > { %p11134_p13 = pneg %p11133_p11 }
 0x4ce   : > { %p11140_p10 = por %p11139_p6, %p11138_p5 }
 0x4d0   : > { %p11141_p12 = pnand %p11140_p10, %p11134_p13 }
 0x4d2   : > { %11144 = shalt.err (!%p11141_p12)
}
 0x4d3   : > { %s11192_s23 = smov 128   ;;  %s11193_s21 = smov 8  }
 0x4d4   : > { %11034 = dma.vmem_to_hbm [thread:$0]  (%p20692_p9), %s18360_s27, 2048, %s18358_s30, %s18366_s3, %s11192_s23, %s11192_s23, %s11193_s21  }
 0x4d5 PF: > { %p11046_p2 = scmp.ge.s32.totalorder %s11183_s12, 2  ;;  %s7740_s24 = sand.u32 1, %s11171_s9  }
 0x4d6   : > { %p20693_p3 = scmp.ne.s32.totalorder %s19149_s20, 0  ;;  %s7741_s25 = scalar_lea.sflag [#allocation5], %s7740_s24 }
 0x4d8   : > { %p11041_p4 = pnand %p11046_p2, %p20693_p3 }
 0x4da   : > { %11166 = dma.done.wait (!%p11041_p4), %s7741_s25, 2048  }
 0x4db   : > { %11168 = vsyncadd (!%p11041_p4), %s7741_s25, 4294965248  ;;  %p13_p7 = scmp.ge.s32.totalorder %s11234_s15, 4   ;;  %s20694_s9 = smov %s11175_s10 }
 0x4dc   : > { %s20695_s10 = smov %s11179_s11  ;;  %s20696_s11 = smov %s11245_s18 }
 0x4dd   : > { %s20697_s12 = smov %s11234_s15  ;;  %15 = sbr.rel (!%p13_p7) target bundleno = 4 (0x4), region = 69 }
 0x4e4   :  { %7746 = vsyncpa [#allocation4], 1 }
 0x4e5   :  { %7748 = vsyncpa [#allocation4 + $0x1], 1 }
 0x4e6   :  { %7749 = vsyncpa [#allocation5], 1 }
 0x4e7   :  { %7751 = vsyncpa [#allocation5 + $0x1], 1 }

</bundles_post_ra>
